<compile_context>
chip_gen: v5e
topology: v5e:2x2
jax: 0.10.0
libtpu: 0.0.40
codegen_flags: <defaults>
</compile_context>

<pallas_src>
import jax
import jax.numpy as jnp
from jax import lax
from jax.experimental import pallas as pl
from jax.experimental.pallas import tpu as pltpu


def _make_level_kernel(cin, cout, ho, wo):
    """Fused conv1(stride2)+LReLU+conv2(stride1)+LReLU for one image.

    conv1's input arrives phase-packed: xph[(py*2+px)*cin + c, y, x] equals
    zero-padded-input[c, 2y+py, 2x+px], so every stride-2 tap becomes a
    stride-1 read of one phase block.  Both convs are per-tap
    (Cout, Cin) x (Cin, M) matmuls on the flattened slab; the tap offset
    (dy, dx) is applied as ONE static column shift of the whole operand.
    """
    hp1, wp1 = ho + 1, wo + 1          # phase-slab spatial dims (conv1 input)
    hp2, wp2 = ho + 2, wo + 2          # zero-padded conv1 output (conv2 input)
    mp1, mp2 = hp1 * wp1, hp2 * wp2

    # conv1 taps: (phase block, flat shift inside the phase slab)
    taps1 = []
    for ky in range(3):
        for kx in range(3):
            p = (ky % 2) * 2 + (kx % 2)
            s = (ky // 2) * wp1 + (kx // 2)
            taps1.append((p, s))
    # conv2 taps: flat shift inside the padded intermediate slab
    taps2 = [dy * wp2 + dx for dy in range(3) for dx in range(3)]

    def shift_cols(a, s):
        """a[:, i] <- a[:, i + s] (tail filled with zeros; tail is never used
        for valid output positions)."""
        if s == 0:
            return a
        z = jnp.zeros((a.shape[0], s), a.dtype)
        return jnp.concatenate([a[:, s:], z], axis=1)

    def kernel(xph_ref, w1_ref, b1_ref, w2_ref, b2_ref, out_ref):
        xf = xph_ref[0].reshape(4 * cin, mp1)                 # (4Cin, Mp1) bf16

        # ---- conv1 (stride 2 via phase blocks) + bias + LeakyReLU(0.1) ----
        acc = jnp.zeros((cout, mp1), jnp.float32)
        for t, (p, s) in enumerate(taps1):
            xt = shift_cols(xf[p * cin:(p + 1) * cin, :], s)
            acc = acc + jnp.dot(w1_ref[t], xt,
                                preferred_element_type=jnp.float32)
        acc = acc + b1_ref[...]
        acc = jnp.where(acc >= 0, acc, 0.1 * acc)
        y1 = acc.reshape(cout, hp1, wp1)[:, :ho, :wo].astype(xf.dtype)

        # Zero-pad the intermediate activation entirely in VMEM (no HBM trip).
        zr = jnp.zeros((cout, 1, wo), y1.dtype)
        zc = jnp.zeros((cout, hp2, 1), y1.dtype)
        mid = jnp.concatenate([zr, y1, zr], axis=1)           # (Cout, Hp2, Wo)
        mid = jnp.concatenate([zc, mid, zc], axis=2)          # (Cout, Hp2, Wp2)
        mf = mid.reshape(cout, mp2)

        # ---- conv2 (stride 1) + bias + LeakyReLU(0.1) ----
        acc = jnp.zeros((cout, mp2), jnp.float32)
        for t, s in enumerate(taps2):
            acc = acc + jnp.dot(w2_ref[t], shift_cols(mf, s),
                                preferred_element_type=jnp.float32)
        acc = acc + b2_ref[...]
        acc = jnp.where(acc >= 0, acc, 0.1 * acc)
        y2 = acc.reshape(cout, hp2, wp2)[:, :ho, :wo]
        out_ref[0] = y2.reshape(cout, ho * wo).astype(out_ref.dtype)

    return kernel


def conv_level(x, w1, b1, w2, b2):
    """One pyramid level: 3x3/s2 conv + LReLU + 3x3/s1 conv + LReLU (fused).

    x:  (N, Cin, H, W) bf16 NCHW.  w: (3,3,Cin,Cout) HWIO f32, b: (Cout,) f32.
    Returns (N, Cout, H//2, W//2) bf16 NCHW.
    """
    n, cin, h, w = x.shape
    assert h % 2 == 0 and w % 2 == 0  # TODO(synk): support odd spatial sizes
    cout = w1.shape[-1]
    ho, wo = h // 2, w // 2
    hp1, wp1 = ho + 1, wo + 1
    mp1, mp2 = hp1 * wp1, (ho + 2) * (wo + 2)

    # Phase-pack the zero-padded input (bf16) so the stride-2 conv becomes a
    # stride-1 conv over 4 channel blocks.
    # TODO(synk): fold this pass into the previous level's output writeback.
    xpad = jnp.pad(x, ((0, 0), (0, 0), (1, 1), (1, 1)))
    xph = jnp.concatenate(
        [xpad[:, :, py::2, px::2] for py in (0, 1) for px in (0, 1)], axis=1)
    # xph: (N, 4*Cin, ho+1, wo+1) bf16

    # Per-tap transposed weights (MXU orientation (Cout, Cin)), resident bf16.
    w1t = jnp.stack([w1[ky, kx].T for ky in range(3) for kx in range(3)]
                    ).astype(jnp.bfloat16)                    # (9, Cout, Cin)
    w2t = jnp.stack([w2[ky, kx].T for ky in range(3) for kx in range(3)]
                    ).astype(jnp.bfloat16)                    # (9, Cout, Cout)
    b1c = b1.reshape(cout, 1).astype(jnp.float32)
    b2c = b2.reshape(cout, 1).astype(jnp.float32)

    kernel = _make_level_kernel(cin, cout, ho, wo)

    cost = pl.CostEstimate(
        flops=2 * n * 9 * (cin * cout * mp1 + cout * cout * mp2),
        transcendentals=0,
        bytes_accessed=(xph.size * 2 + w1t.size * 2 + w2t.size * 2
                        + b1c.size * 4 + b2c.size * 4
                        + n * cout * ho * wo * 2))

    out = pl.pallas_call(
        kernel,
        out_shape=jax.ShapeDtypeStruct((n, cout, ho * wo), jnp.bfloat16),
        grid=(n,),
        in_specs=[
            pl.BlockSpec((1, 4 * cin, hp1, wp1), lambda i: (i, 0, 0, 0)),
            pl.BlockSpec((9, cout, cin), lambda i: (0, 0, 0)),   # resident
            pl.BlockSpec((cout, 1), lambda i: (0, 0)),           # resident
            pl.BlockSpec((9, cout, cout), lambda i: (0, 0, 0)),  # resident
            pl.BlockSpec((cout, 1), lambda i: (0, 0)),           # resident
        ],
        out_specs=pl.BlockSpec((1, cout, ho * wo), lambda i: (i, 0, 0)),
        compiler_params=pltpu.CompilerParams(
            dimension_semantics=("parallel",)),
        cost_estimate=cost,
    )(xph, w1t, b1c, w2t, b2c)

    return out.reshape(n, cout, ho, wo)


def init_feature_extractor_params(num_chs, key):
    """Per level: conv1 (stride 2, ch_in->ch_out) and conv2 (stride 1,
    ch_out->ch_out); weights HWIO, biases (Cout,)."""
    params = []
    for (ch_in, ch_out) in zip(num_chs[:-1], num_chs[1:]):
        key, k1, k2, k3, k4 = jax.random.split(key, 5)
        w1 = 0.1 * jax.random.normal(k1, (3, 3, ch_in, ch_out), jnp.float32)
        b1 = 0.1 * jax.random.normal(k2, (ch_out,), jnp.float32)
        w2 = 0.1 * jax.random.normal(k3, (3, 3, ch_out, ch_out), jnp.float32)
        b2 = 0.1 * jax.random.normal(k4, (ch_out,), jnp.float32)
        params.append(((w1, b1), (w2, b2)))
    return params


def feature_extractor_forward(params, x_nchw):
    """FeatureExtractor.forward: list of NCHW features, coarsest first."""
    x = x_nchw.astype(jnp.bfloat16)
    pyramid = []
    for (w1, b1), (w2, b2) in params:
        x = conv_level(x, w1, b1, w2, b2)
        pyramid.append(x)
    return pyramid[::-1]


def _reference_forward(params, x_nchw):
    """Pure-JAX lax.conv reference that rounds weights/activations to bf16 at
    exactly the points where the kernel does, isolating kernel logic from
    bf16 quantization."""
    bf = jnp.bfloat16
    x = x_nchw.astype(bf).astype(jnp.float32)
    pyramid = []
    for (w1, b1), (w2, b2) in params:
        for wgt, b, s in ((w1, b1, 2), (w2, b2, 1)):
            wq = wgt.astype(bf).astype(jnp.float32)
            dn = lax.conv_dimension_numbers(x.shape, wq.shape,
                                            ("NCHW", "HWIO", "NCHW"))
            x = lax.conv_general_dilated(
                x, wq, window_strides=(s, s), padding=((1, 1), (1, 1)),
                dimension_numbers=dn, precision=lax.Precision.HIGHEST)
            x = x + b.reshape(1, -1, 1, 1)
            x = jnp.where(x >= 0, x, 0.1 * x)
            x = x.astype(bf).astype(jnp.float32)   # kernel stores bf16 acts
        pyramid.append(x)
    return pyramid[::-1]


if __name__ == "__main__":
    # Small, forward-consistent shapes: batch=2, 4 input channels, 16x16.
    num_chs = [4, 8, 16, 32]
    key = jax.random.PRNGKey(0)
    key, kx = jax.random.split(key)
    x = jax.random.normal(kx, (2, num_chs[0], 16, 16), jnp.float32)

    params = init_feature_extractor_params(num_chs, key)

    fwd = jax.jit(feature_extractor_forward)
    feats = fwd(params, x)
    feats = [jax.block_until_ready(f) for f in feats]

    # Correctness check against a pure-JAX convolution reference.
    ref = _reference_forward(params, x)
    for f, r in zip(feats, ref):
        assert f.shape == r.shape, (f.shape, r.shape)
        ff = f.astype(jnp.float32)
        assert jnp.allclose(ff, r, atol=3e-2, rtol=3e-2), (
            "max abs diff", float(jnp.max(jnp.abs(ff - r))))

    # Expected pyramid (coarsest first): (2,32,2,2), (2,16,4,4), (2,8,8,8)
    print("KERNEL_OK")
</pallas_src>

<mosaic_0001>
module attributes {stable_mosaic.version = 11 : i64} {
  func.func @kernel(%arg0: i32, %arg1: memref<1x16x9x9xbf16, #tpu.memory_space<vmem>>, %arg2: memref<9x8x4xbf16, #tpu.memory_space<vmem>>, %arg3: memref<8x1xf32, #tpu.memory_space<vmem>>, %arg4: memref<9x8x8xbf16, #tpu.memory_space<vmem>>, %arg5: memref<8x1xf32, #tpu.memory_space<vmem>>, %arg6: memref<1x8x64xbf16, #tpu.memory_space<vmem>>) attributes {dimension_semantics = [#tpu.dimension_semantics<parallel>], iteration_bounds = array<i64: 2>, scalar_prefetch = 0 : i64, scratch_operands = 0 : i64, tpu.core_type = #tpu.core_type<tc>, window_params = [{transform_indices = @transform_0, window_bounds = array<i64: 1, 16, 9, 9>}, {pipeline_mode = #tpu.pipeline_mode<synchronous>, transform_indices = @transform_1, window_bounds = array<i64: 9, 8, 4>}, {pipeline_mode = #tpu.pipeline_mode<synchronous>, transform_indices = @transform_2, window_bounds = array<i64: 8, 1>}, {pipeline_mode = #tpu.pipeline_mode<synchronous>, transform_indices = @transform_3, window_bounds = array<i64: 9, 8, 8>}, {pipeline_mode = #tpu.pipeline_mode<synchronous>, transform_indices = @transform_4, window_bounds = array<i64: 8, 1>}, {transform_indices = @transform_5, window_bounds = array<i64: 1, 8, 64>}]} {
    %c0 = arith.constant 0 : index
    %c0_0 = arith.constant 0 : index
    %c0_1 = arith.constant 0 : index
    %c0_2 = arith.constant 0 : index
    %0 = vector.load %arg1[%c0, %c0_0, %c0_1, %c0_2] : memref<1x16x9x9xbf16, #tpu.memory_space<vmem>>, vector<1x16x9x9xbf16>
    %1 = vector.shape_cast %0 : vector<1x16x9x9xbf16> to vector<16x9x9xbf16>
    %2 = vector.shape_cast %1 : vector<16x9x9xbf16> to vector<16x81xbf16>
    %cst = arith.constant 0.000000e+00 : f32
    %3 = vector.broadcast %cst : f32 to vector<8x81xf32>
    %4 = vector.extract_strided_slice %2 {offsets = [0, 0], sizes = [4, 81], strides = [1, 1]} : vector<16x81xbf16> to vector<4x81xbf16>
    %c0_3 = arith.constant 0 : index
    %c0_4 = arith.constant 0 : index
    %c0_5 = arith.constant 0 : index
    %5 = vector.load %arg2[%c0_3, %c0_4, %c0_5] : memref<9x8x4xbf16, #tpu.memory_space<vmem>>, vector<1x8x4xbf16>
    %6 = vector.shape_cast %5 : vector<1x8x4xbf16> to vector<8x4xbf16>
    %cst_6 = arith.constant dense<0.000000e+00> : vector<8x81xf32>
    %7 = tpu.matmul %6, %4, %cst_6 {dimension_numbers = #tpu.dot_dimension_numbers<[1], [0], [0], [1], [0, 0, 1, 1], [], []>} : vector<8x4xbf16>, vector<4x81xbf16>, vector<8x81xf32> -> vector<8x81xf32>
    %8 = arith.addf %3, %7 : vector<8x81xf32>
    %9 = vector.extract_strided_slice %2 {offsets = [4, 0], sizes = [4, 81], strides = [1, 1]} : vector<16x81xbf16> to vector<4x81xbf16>
    %c1 = arith.constant 1 : index
    %c0_7 = arith.constant 0 : index
    %c0_8 = arith.constant 0 : index
    %10 = vector.load %arg2[%c1, %c0_7, %c0_8] : memref<9x8x4xbf16, #tpu.memory_space<vmem>>, vector<1x8x4xbf16>
    %11 = vector.shape_cast %10 : vector<1x8x4xbf16> to vector<8x4xbf16>
    %cst_9 = arith.constant dense<0.000000e+00> : vector<8x81xf32>
    %12 = tpu.matmul %11, %9, %cst_9 {dimension_numbers = #tpu.dot_dimension_numbers<[1], [0], [0], [1], [0, 0, 1, 1], [], []>} : vector<8x4xbf16>, vector<4x81xbf16>, vector<8x81xf32> -> vector<8x81xf32>
    %13 = arith.addf %8, %12 : vector<8x81xf32>
    %14 = vector.extract_strided_slice %2 {offsets = [0, 0], sizes = [4, 81], strides = [1, 1]} : vector<16x81xbf16> to vector<4x81xbf16>
    %cst_10 = arith.constant 0.000000e+00 : bf16
    %15 = vector.broadcast %cst_10 : bf16 to vector<4x1xbf16>
    %16 = vector.extract_strided_slice %14 {offsets = [0, 1], sizes = [4, 80], strides = [1, 1]} : vector<4x81xbf16> to vector<4x80xbf16>
    %17 = tpu.concatenate %16, %15 in 1 : vector<4x80xbf16>, vector<4x1xbf16> -> vector<4x81xbf16>
    %c2 = arith.constant 2 : index
    %c0_11 = arith.constant 0 : index
    %c0_12 = arith.constant 0 : index
    %18 = vector.load %arg2[%c2, %c0_11, %c0_12] : memref<9x8x4xbf16, #tpu.memory_space<vmem>>, vector<1x8x4xbf16>
    %19 = vector.shape_cast %18 : vector<1x8x4xbf16> to vector<8x4xbf16>
    %cst_13 = arith.constant dense<0.000000e+00> : vector<8x81xf32>
    %20 = tpu.matmul %19, %17, %cst_13 {dimension_numbers = #tpu.dot_dimension_numbers<[1], [0], [0], [1], [0, 0, 1, 1], [], []>} : vector<8x4xbf16>, vector<4x81xbf16>, vector<8x81xf32> -> vector<8x81xf32>
    %21 = arith.addf %13, %20 : vector<8x81xf32>
    %22 = vector.extract_strided_slice %2 {offsets = [8, 0], sizes = [4, 81], strides = [1, 1]} : vector<16x81xbf16> to vector<4x81xbf16>
    %c3 = arith.constant 3 : index
    %c0_14 = arith.constant 0 : index
    %c0_15 = arith.constant 0 : index
    %23 = vector.load %arg2[%c3, %c0_14, %c0_15] : memref<9x8x4xbf16, #tpu.memory_space<vmem>>, vector<1x8x4xbf16>
    %24 = vector.shape_cast %23 : vector<1x8x4xbf16> to vector<8x4xbf16>
    %cst_16 = arith.constant dense<0.000000e+00> : vector<8x81xf32>
    %25 = tpu.matmul %24, %22, %cst_16 {dimension_numbers = #tpu.dot_dimension_numbers<[1], [0], [0], [1], [0, 0, 1, 1], [], []>} : vector<8x4xbf16>, vector<4x81xbf16>, vector<8x81xf32> -> vector<8x81xf32>
    %26 = arith.addf %21, %25 : vector<8x81xf32>
    %27 = vector.extract_strided_slice %2 {offsets = [12, 0], sizes = [4, 81], strides = [1, 1]} : vector<16x81xbf16> to vector<4x81xbf16>
    %c4 = arith.constant 4 : index
    %c0_17 = arith.constant 0 : index
    %c0_18 = arith.constant 0 : index
    %28 = vector.load %arg2[%c4, %c0_17, %c0_18] : memref<9x8x4xbf16, #tpu.memory_space<vmem>>, vector<1x8x4xbf16>
    %29 = vector.shape_cast %28 : vector<1x8x4xbf16> to vector<8x4xbf16>
    %cst_19 = arith.constant dense<0.000000e+00> : vector<8x81xf32>
    %30 = tpu.matmul %29, %27, %cst_19 {dimension_numbers = #tpu.dot_dimension_numbers<[1], [0], [0], [1], [0, 0, 1, 1], [], []>} : vector<8x4xbf16>, vector<4x81xbf16>, vector<8x81xf32> -> vector<8x81xf32>
    %31 = arith.addf %26, %30 : vector<8x81xf32>
    %32 = vector.extract_strided_slice %2 {offsets = [8, 0], sizes = [4, 81], strides = [1, 1]} : vector<16x81xbf16> to vector<4x81xbf16>
    %cst_20 = arith.constant 0.000000e+00 : bf16
    %33 = vector.broadcast %cst_20 : bf16 to vector<4x1xbf16>
    %34 = vector.extract_strided_slice %32 {offsets = [0, 1], sizes = [4, 80], strides = [1, 1]} : vector<4x81xbf16> to vector<4x80xbf16>
    %35 = tpu.concatenate %34, %33 in 1 : vector<4x80xbf16>, vector<4x1xbf16> -> vector<4x81xbf16>
    %c5 = arith.constant 5 : index
    %c0_21 = arith.constant 0 : index
    %c0_22 = arith.constant 0 : index
    %36 = vector.load %arg2[%c5, %c0_21, %c0_22] : memref<9x8x4xbf16, #tpu.memory_space<vmem>>, vector<1x8x4xbf16>
    %37 = vector.shape_cast %36 : vector<1x8x4xbf16> to vector<8x4xbf16>
    %cst_23 = arith.constant dense<0.000000e+00> : vector<8x81xf32>
    %38 = tpu.matmul %37, %35, %cst_23 {dimension_numbers = #tpu.dot_dimension_numbers<[1], [0], [0], [1], [0, 0, 1, 1], [], []>} : vector<8x4xbf16>, vector<4x81xbf16>, vector<8x81xf32> -> vector<8x81xf32>
    %39 = arith.addf %31, %38 : vector<8x81xf32>
    %40 = vector.extract_strided_slice %2 {offsets = [0, 0], sizes = [4, 81], strides = [1, 1]} : vector<16x81xbf16> to vector<4x81xbf16>
    %cst_24 = arith.constant 0.000000e+00 : bf16
    %41 = vector.broadcast %cst_24 : bf16 to vector<4x9xbf16>
    %42 = vector.extract_strided_slice %40 {offsets = [0, 9], sizes = [4, 72], strides = [1, 1]} : vector<4x81xbf16> to vector<4x72xbf16>
    %43 = tpu.concatenate %42, %41 in 1 : vector<4x72xbf16>, vector<4x9xbf16> -> vector<4x81xbf16>
    %c6 = arith.constant 6 : index
    %c0_25 = arith.constant 0 : index
    %c0_26 = arith.constant 0 : index
    %44 = vector.load %arg2[%c6, %c0_25, %c0_26] : memref<9x8x4xbf16, #tpu.memory_space<vmem>>, vector<1x8x4xbf16>
    %45 = vector.shape_cast %44 : vector<1x8x4xbf16> to vector<8x4xbf16>
    %cst_27 = arith.constant dense<0.000000e+00> : vector<8x81xf32>
    %46 = tpu.matmul %45, %43, %cst_27 {dimension_numbers = #tpu.dot_dimension_numbers<[1], [0], [0], [1], [0, 0, 1, 1], [], []>} : vector<8x4xbf16>, vector<4x81xbf16>, vector<8x81xf32> -> vector<8x81xf32>
    %47 = arith.addf %39, %46 : vector<8x81xf32>
    %48 = vector.extract_strided_slice %2 {offsets = [4, 0], sizes = [4, 81], strides = [1, 1]} : vector<16x81xbf16> to vector<4x81xbf16>
    %cst_28 = arith.constant 0.000000e+00 : bf16
    %49 = vector.broadcast %cst_28 : bf16 to vector<4x9xbf16>
    %50 = vector.extract_strided_slice %48 {offsets = [0, 9], sizes = [4, 72], strides = [1, 1]} : vector<4x81xbf16> to vector<4x72xbf16>
    %51 = tpu.concatenate %50, %49 in 1 : vector<4x72xbf16>, vector<4x9xbf16> -> vector<4x81xbf16>
    %c7 = arith.constant 7 : index
    %c0_29 = arith.constant 0 : index
    %c0_30 = arith.constant 0 : index
    %52 = vector.load %arg2[%c7, %c0_29, %c0_30] : memref<9x8x4xbf16, #tpu.memory_space<vmem>>, vector<1x8x4xbf16>
    %53 = vector.shape_cast %52 : vector<1x8x4xbf16> to vector<8x4xbf16>
    %cst_31 = arith.constant dense<0.000000e+00> : vector<8x81xf32>
    %54 = tpu.matmul %53, %51, %cst_31 {dimension_numbers = #tpu.dot_dimension_numbers<[1], [0], [0], [1], [0, 0, 1, 1], [], []>} : vector<8x4xbf16>, vector<4x81xbf16>, vector<8x81xf32> -> vector<8x81xf32>
    %55 = arith.addf %47, %54 : vector<8x81xf32>
    %56 = vector.extract_strided_slice %2 {offsets = [0, 0], sizes = [4, 81], strides = [1, 1]} : vector<16x81xbf16> to vector<4x81xbf16>
    %cst_32 = arith.constant 0.000000e+00 : bf16
    %57 = vector.broadcast %cst_32 : bf16 to vector<4x10xbf16>
    %58 = vector.extract_strided_slice %56 {offsets = [0, 10], sizes = [4, 71], strides = [1, 1]} : vector<4x81xbf16> to vector<4x71xbf16>
    %59 = tpu.concatenate %58, %57 in 1 : vector<4x71xbf16>, vector<4x10xbf16> -> vector<4x81xbf16>
    %c8 = arith.constant 8 : index
    %c0_33 = arith.constant 0 : index
    %c0_34 = arith.constant 0 : index
    %60 = vector.load %arg2[%c8, %c0_33, %c0_34] : memref<9x8x4xbf16, #tpu.memory_space<vmem>>, vector<1x8x4xbf16>
    %61 = vector.shape_cast %60 : vector<1x8x4xbf16> to vector<8x4xbf16>
    %cst_35 = arith.constant dense<0.000000e+00> : vector<8x81xf32>
    %62 = tpu.matmul %61, %59, %cst_35 {dimension_numbers = #tpu.dot_dimension_numbers<[1], [0], [0], [1], [0, 0, 1, 1], [], []>} : vector<8x4xbf16>, vector<4x81xbf16>, vector<8x81xf32> -> vector<8x81xf32>
    %63 = arith.addf %55, %62 : vector<8x81xf32>
    %c0_36 = arith.constant 0 : index
    %c0_37 = arith.constant 0 : index
    %64 = vector.load %arg3[%c0_36, %c0_37] : memref<8x1xf32, #tpu.memory_space<vmem>>, vector<8x1xf32>
    %65 = vector.broadcast %64 : vector<8x1xf32> to vector<8x81xf32>
    %66 = arith.addf %63, %65 : vector<8x81xf32>
    %cst_38 = arith.constant 0.000000e+00 : f32
    %67 = vector.broadcast %cst_38 : f32 to vector<8x81xf32>
    %68 = arith.cmpf oge, %66, %67 : vector<8x81xf32>
    %cst_39 = arith.constant 1.000000e-01 : f32
    %69 = vector.broadcast %cst_39 : f32 to vector<8x81xf32>
    %70 = arith.mulf %69, %66 : vector<8x81xf32>
    %71 = arith.select %68, %66, %70 : vector<8x81xi1>, vector<8x81xf32>
    %72 = vector.shape_cast %71 : vector<8x81xf32> to vector<8x9x9xf32>
    %73 = vector.extract_strided_slice %72 {offsets = [0, 0, 0], sizes = [8, 8, 8], strides = [1, 1, 1]} : vector<8x9x9xf32> to vector<8x8x8xf32>
    %74 = arith.truncf %73 : vector<8x8x8xf32> to vector<8x8x8xbf16>
    %cst_40 = arith.constant 0.000000e+00 : bf16
    %75 = vector.broadcast %cst_40 : bf16 to vector<8x1x8xbf16>
    %cst_41 = arith.constant 0.000000e+00 : bf16
    %76 = vector.broadcast %cst_41 : bf16 to vector<8x10x1xbf16>
    %77 = tpu.concatenate %75, %74, %75 in 1 : vector<8x1x8xbf16>, vector<8x8x8xbf16>, vector<8x1x8xbf16> -> vector<8x10x8xbf16>
    %78 = tpu.concatenate %76, %77, %76 in 2 : vector<8x10x1xbf16>, vector<8x10x8xbf16>, vector<8x10x1xbf16> -> vector<8x10x10xbf16>
    %79 = vector.shape_cast %78 : vector<8x10x10xbf16> to vector<8x100xbf16>
    %cst_42 = arith.constant 0.000000e+00 : f32
    %80 = vector.broadcast %cst_42 : f32 to vector<8x100xf32>
    %c0_43 = arith.constant 0 : index
    %c0_44 = arith.constant 0 : index
    %c0_45 = arith.constant 0 : index
    %81 = vector.load %arg4[%c0_43, %c0_44, %c0_45] : memref<9x8x8xbf16, #tpu.memory_space<vmem>>, vector<1x8x8xbf16>
    %82 = vector.shape_cast %81 : vector<1x8x8xbf16> to vector<8x8xbf16>
    %cst_46 = arith.constant dense<0.000000e+00> : vector<8x100xf32>
    %83 = tpu.matmul %82, %79, %cst_46 {dimension_numbers = #tpu.dot_dimension_numbers<[1], [0], [0], [1], [0, 0, 1, 1], [], []>} : vector<8x8xbf16>, vector<8x100xbf16>, vector<8x100xf32> -> vector<8x100xf32>
    %84 = arith.addf %80, %83 : vector<8x100xf32>
    %c1_47 = arith.constant 1 : index
    %c0_48 = arith.constant 0 : index
    %c0_49 = arith.constant 0 : index
    %85 = vector.load %arg4[%c1_47, %c0_48, %c0_49] : memref<9x8x8xbf16, #tpu.memory_space<vmem>>, vector<1x8x8xbf16>
    %86 = vector.shape_cast %85 : vector<1x8x8xbf16> to vector<8x8xbf16>
    %cst_50 = arith.constant 0.000000e+00 : bf16
    %87 = vector.broadcast %cst_50 : bf16 to vector<8x1xbf16>
    %88 = vector.extract_strided_slice %79 {offsets = [0, 1], sizes = [8, 99], strides = [1, 1]} : vector<8x100xbf16> to vector<8x99xbf16>
    %89 = tpu.concatenate %88, %87 in 1 : vector<8x99xbf16>, vector<8x1xbf16> -> vector<8x100xbf16>
    %cst_51 = arith.constant dense<0.000000e+00> : vector<8x100xf32>
    %90 = tpu.matmul %86, %89, %cst_51 {dimension_numbers = #tpu.dot_dimension_numbers<[1], [0], [0], [1], [0, 0, 1, 1], [], []>} : vector<8x8xbf16>, vector<8x100xbf16>, vector<8x100xf32> -> vector<8x100xf32>
    %91 = arith.addf %84, %90 : vector<8x100xf32>
    %c2_52 = arith.constant 2 : index
    %c0_53 = arith.constant 0 : index
    %c0_54 = arith.constant 0 : index
    %92 = vector.load %arg4[%c2_52, %c0_53, %c0_54] : memref<9x8x8xbf16, #tpu.memory_space<vmem>>, vector<1x8x8xbf16>
    %93 = vector.shape_cast %92 : vector<1x8x8xbf16> to vector<8x8xbf16>
    %cst_55 = arith.constant 0.000000e+00 : bf16
    %94 = vector.broadcast %cst_55 : bf16 to vector<8x2xbf16>
    %95 = vector.extract_strided_slice %79 {offsets = [0, 2], sizes = [8, 98], strides = [1, 1]} : vector<8x100xbf16> to vector<8x98xbf16>
    %96 = tpu.concatenate %95, %94 in 1 : vector<8x98xbf16>, vector<8x2xbf16> -> vector<8x100xbf16>
    %cst_56 = arith.constant dense<0.000000e+00> : vector<8x100xf32>
    %97 = tpu.matmul %93, %96, %cst_56 {dimension_numbers = #tpu.dot_dimension_numbers<[1], [0], [0], [1], [0, 0, 1, 1], [], []>} : vector<8x8xbf16>, vector<8x100xbf16>, vector<8x100xf32> -> vector<8x100xf32>
    %98 = arith.addf %91, %97 : vector<8x100xf32>
    %c3_57 = arith.constant 3 : index
    %c0_58 = arith.constant 0 : index
    %c0_59 = arith.constant 0 : index
    %99 = vector.load %arg4[%c3_57, %c0_58, %c0_59] : memref<9x8x8xbf16, #tpu.memory_space<vmem>>, vector<1x8x8xbf16>
    %100 = vector.shape_cast %99 : vector<1x8x8xbf16> to vector<8x8xbf16>
    %cst_60 = arith.constant 0.000000e+00 : bf16
    %101 = vector.broadcast %cst_60 : bf16 to vector<8x10xbf16>
    %102 = vector.extract_strided_slice %79 {offsets = [0, 10], sizes = [8, 90], strides = [1, 1]} : vector<8x100xbf16> to vector<8x90xbf16>
    %103 = tpu.concatenate %102, %101 in 1 : vector<8x90xbf16>, vector<8x10xbf16> -> vector<8x100xbf16>
    %cst_61 = arith.constant dense<0.000000e+00> : vector<8x100xf32>
    %104 = tpu.matmul %100, %103, %cst_61 {dimension_numbers = #tpu.dot_dimension_numbers<[1], [0], [0], [1], [0, 0, 1, 1], [], []>} : vector<8x8xbf16>, vector<8x100xbf16>, vector<8x100xf32> -> vector<8x100xf32>
    %105 = arith.addf %98, %104 : vector<8x100xf32>
    %c4_62 = arith.constant 4 : index
    %c0_63 = arith.constant 0 : index
    %c0_64 = arith.constant 0 : index
    %106 = vector.load %arg4[%c4_62, %c0_63, %c0_64] : memref<9x8x8xbf16, #tpu.memory_space<vmem>>, vector<1x8x8xbf16>
    %107 = vector.shape_cast %106 : vector<1x8x8xbf16> to vector<8x8xbf16>
    %cst_65 = arith.constant 0.000000e+00 : bf16
    %108 = vector.broadcast %cst_65 : bf16 to vector<8x11xbf16>
    %109 = vector.extract_strided_slice %79 {offsets = [0, 11], sizes = [8, 89], strides = [1, 1]} : vector<8x100xbf16> to vector<8x89xbf16>
    %110 = tpu.concatenate %109, %108 in 1 : vector<8x89xbf16>, vector<8x11xbf16> -> vector<8x100xbf16>
    %cst_66 = arith.constant dense<0.000000e+00> : vector<8x100xf32>
    %111 = tpu.matmul %107, %110, %cst_66 {dimension_numbers = #tpu.dot_dimension_numbers<[1], [0], [0], [1], [0, 0, 1, 1], [], []>} : vector<8x8xbf16>, vector<8x100xbf16>, vector<8x100xf32> -> vector<8x100xf32>
    %112 = arith.addf %105, %111 : vector<8x100xf32>
    %c5_67 = arith.constant 5 : index
    %c0_68 = arith.constant 0 : index
    %c0_69 = arith.constant 0 : index
    %113 = vector.load %arg4[%c5_67, %c0_68, %c0_69] : memref<9x8x8xbf16, #tpu.memory_space<vmem>>, vector<1x8x8xbf16>
    %114 = vector.shape_cast %113 : vector<1x8x8xbf16> to vector<8x8xbf16>
    %cst_70 = arith.constant 0.000000e+00 : bf16
    %115 = vector.broadcast %cst_70 : bf16 to vector<8x12xbf16>
    %116 = vector.extract_strided_slice %79 {offsets = [0, 12], sizes = [8, 88], strides = [1, 1]} : vector<8x100xbf16> to vector<8x88xbf16>
    %117 = tpu.concatenate %116, %115 in 1 : vector<8x88xbf16>, vector<8x12xbf16> -> vector<8x100xbf16>
    %cst_71 = arith.constant dense<0.000000e+00> : vector<8x100xf32>
    %118 = tpu.matmul %114, %117, %cst_71 {dimension_numbers = #tpu.dot_dimension_numbers<[1], [0], [0], [1], [0, 0, 1, 1], [], []>} : vector<8x8xbf16>, vector<8x100xbf16>, vector<8x100xf32> -> vector<8x100xf32>
    %119 = arith.addf %112, %118 : vector<8x100xf32>
    %c6_72 = arith.constant 6 : index
    %c0_73 = arith.constant 0 : index
    %c0_74 = arith.constant 0 : index
    %120 = vector.load %arg4[%c6_72, %c0_73, %c0_74] : memref<9x8x8xbf16, #tpu.memory_space<vmem>>, vector<1x8x8xbf16>
    %121 = vector.shape_cast %120 : vector<1x8x8xbf16> to vector<8x8xbf16>
    %cst_75 = arith.constant 0.000000e+00 : bf16
    %122 = vector.broadcast %cst_75 : bf16 to vector<8x20xbf16>
    %123 = vector.extract_strided_slice %79 {offsets = [0, 20], sizes = [8, 80], strides = [1, 1]} : vector<8x100xbf16> to vector<8x80xbf16>
    %124 = tpu.concatenate %123, %122 in 1 : vector<8x80xbf16>, vector<8x20xbf16> -> vector<8x100xbf16>
    %cst_76 = arith.constant dense<0.000000e+00> : vector<8x100xf32>
    %125 = tpu.matmul %121, %124, %cst_76 {dimension_numbers = #tpu.dot_dimension_numbers<[1], [0], [0], [1], [0, 0, 1, 1], [], []>} : vector<8x8xbf16>, vector<8x100xbf16>, vector<8x100xf32> -> vector<8x100xf32>
    %126 = arith.addf %119, %125 : vector<8x100xf32>
    %c7_77 = arith.constant 7 : index
    %c0_78 = arith.constant 0 : index
    %c0_79 = arith.constant 0 : index
    %127 = vector.load %arg4[%c7_77, %c0_78, %c0_79] : memref<9x8x8xbf16, #tpu.memory_space<vmem>>, vector<1x8x8xbf16>
    %128 = vector.shape_cast %127 : vector<1x8x8xbf16> to vector<8x8xbf16>
    %cst_80 = arith.constant 0.000000e+00 : bf16
    %129 = vector.broadcast %cst_80 : bf16 to vector<8x21xbf16>
    %130 = vector.extract_strided_slice %79 {offsets = [0, 21], sizes = [8, 79], strides = [1, 1]} : vector<8x100xbf16> to vector<8x79xbf16>
    %131 = tpu.concatenate %130, %129 in 1 : vector<8x79xbf16>, vector<8x21xbf16> -> vector<8x100xbf16>
    %cst_81 = arith.constant dense<0.000000e+00> : vector<8x100xf32>
    %132 = tpu.matmul %128, %131, %cst_81 {dimension_numbers = #tpu.dot_dimension_numbers<[1], [0], [0], [1], [0, 0, 1, 1], [], []>} : vector<8x8xbf16>, vector<8x100xbf16>, vector<8x100xf32> -> vector<8x100xf32>
    %133 = arith.addf %126, %132 : vector<8x100xf32>
    %c8_82 = arith.constant 8 : index
    %c0_83 = arith.constant 0 : index
    %c0_84 = arith.constant 0 : index
    %134 = vector.load %arg4[%c8_82, %c0_83, %c0_84] : memref<9x8x8xbf16, #tpu.memory_space<vmem>>, vector<1x8x8xbf16>
    %135 = vector.shape_cast %134 : vector<1x8x8xbf16> to vector<8x8xbf16>
    %cst_85 = arith.constant 0.000000e+00 : bf16
    %136 = vector.broadcast %cst_85 : bf16 to vector<8x22xbf16>
    %137 = vector.extract_strided_slice %79 {offsets = [0, 22], sizes = [8, 78], strides = [1, 1]} : vector<8x100xbf16> to vector<8x78xbf16>
    %138 = tpu.concatenate %137, %136 in 1 : vector<8x78xbf16>, vector<8x22xbf16> -> vector<8x100xbf16>
    %cst_86 = arith.constant dense<0.000000e+00> : vector<8x100xf32>
    %139 = tpu.matmul %135, %138, %cst_86 {dimension_numbers = #tpu.dot_dimension_numbers<[1], [0], [0], [1], [0, 0, 1, 1], [], []>} : vector<8x8xbf16>, vector<8x100xbf16>, vector<8x100xf32> -> vector<8x100xf32>
    %140 = arith.addf %133, %139 : vector<8x100xf32>
    %c0_87 = arith.constant 0 : index
    %c0_88 = arith.constant 0 : index
    %141 = vector.load %arg5[%c0_87, %c0_88] : memref<8x1xf32, #tpu.memory_space<vmem>>, vector<8x1xf32>
    %142 = vector.broadcast %141 : vector<8x1xf32> to vector<8x100xf32>
    %143 = arith.addf %140, %142 : vector<8x100xf32>
    %cst_89 = arith.constant 0.000000e+00 : f32
    %144 = vector.broadcast %cst_89 : f32 to vector<8x100xf32>
    %145 = arith.cmpf oge, %143, %144 : vector<8x100xf32>
    %cst_90 = arith.constant 1.000000e-01 : f32
    %146 = vector.broadcast %cst_90 : f32 to vector<8x100xf32>
    %147 = arith.mulf %146, %143 : vector<8x100xf32>
    %148 = arith.select %145, %143, %147 : vector<8x100xi1>, vector<8x100xf32>
    %149 = vector.shape_cast %148 : vector<8x100xf32> to vector<8x10x10xf32>
    %150 = vector.extract_strided_slice %149 {offsets = [0, 0, 0], sizes = [8, 8, 8], strides = [1, 1, 1]} : vector<8x10x10xf32> to vector<8x8x8xf32>
    %151 = vector.shape_cast %150 : vector<8x8x8xf32> to vector<8x64xf32>
    %152 = arith.truncf %151 : vector<8x64xf32> to vector<8x64xbf16>
    %c0_91 = arith.constant 0 : index
    %c0_92 = arith.constant 0 : index
    %c0_93 = arith.constant 0 : index
    %153 = vector.load %arg6[%c0_91, %c0_92, %c0_93] : memref<1x8x64xbf16, #tpu.memory_space<vmem>>, vector<1x8x64xbf16>
    %154 = vector.shape_cast %153 : vector<1x8x64xbf16> to vector<8x64xbf16>
    %155 = vector.shape_cast %152 : vector<8x64xbf16> to vector<1x8x64xbf16>
    tpu.vector_store %arg6[%c0_91, %c0_92, %c0_93], %155 {strides = array<i32>} : memref<1x8x64xbf16, #tpu.memory_space<vmem>>, vector<1x8x64xbf16>,
    return
  }
  func.func @transform_0(%arg0: i32) -> (i32, i32, i32, i32) {
    %c0_i32 = arith.constant 0 : i32
    %c0_i32_0 = arith.constant 0 : i32
    %c0_i32_1 = arith.constant 0 : i32
    %c0_i32_2 = arith.constant 0 : i32
    return %arg0, %c0_i32, %c0_i32_0, %c0_i32_1 : i32, i32, i32, i32
  }
  func.func @transform_1(%arg0: i32) -> (i32, i32, i32) {
    %c0_i32 = arith.constant 0 : i32
    %c0_i32_0 = arith.constant 0 : i32
    %c0_i32_1 = arith.constant 0 : i32
    %c0_i32_2 = arith.constant 0 : i32
    return %c0_i32, %c0_i32_0, %c0_i32_1 : i32, i32, i32
  }
  func.func @transform_2(%arg0: i32) -> (i32, i32) {
    %c0_i32 = arith.constant 0 : i32
    %c0_i32_0 = arith.constant 0 : i32
    %c0_i32_1 = arith.constant 0 : i32
    return %c0_i32, %c0_i32_0 : i32, i32
  }
  func.func @transform_3(%arg0: i32) -> (i32, i32, i32) {
    %c0_i32 = arith.constant 0 : i32
    %c0_i32_0 = arith.constant 0 : i32
    %c0_i32_1 = arith.constant 0 : i32
    %c0_i32_2 = arith.constant 0 : i32
    return %c0_i32, %c0_i32_0, %c0_i32_1 : i32, i32, i32
  }
  func.func @transform_4(%arg0: i32) -> (i32, i32) {
    %c0_i32 = arith.constant 0 : i32
    %c0_i32_0 = arith.constant 0 : i32
    %c0_i32_1 = arith.constant 0 : i32
    return %c0_i32, %c0_i32_0 : i32, i32
  }
  func.func @transform_5(%arg0: i32) -> (i32, i32, i32) {
    %c0_i32 = arith.constant 0 : i32
    %c0_i32_0 = arith.constant 0 : i32
    %c0_i32_1 = arith.constant 0 : i32
    return %arg0, %c0_i32, %c0_i32_0 : i32, i32, i32
  }
}

module attributes {stable_mosaic.version = 11 : i64} {
  func.func @kernel(%arg0: i32, %arg1: memref<1x32x5x5xbf16, #tpu.memory_space<vmem>>, %arg2: memref<9x16x8xbf16, #tpu.memory_space<vmem>>, %arg3: memref<16x1xf32, #tpu.memory_space<vmem>>, %arg4: memref<9x16x16xbf16, #tpu.memory_space<vmem>>, %arg5: memref<16x1xf32, #tpu.memory_space<vmem>>, %arg6: memref<1x16x16xbf16, #tpu.memory_space<vmem>>) attributes {dimension_semantics = [#tpu.dimension_semantics<parallel>], iteration_bounds = array<i64: 2>, scalar_prefetch = 0 : i64, scratch_operands = 0 : i64, tpu.core_type = #tpu.core_type<tc>, window_params = [{transform_indices = @transform_0, window_bounds = array<i64: 1, 32, 5, 5>}, {pipeline_mode = #tpu.pipeline_mode<synchronous>, transform_indices = @transform_1, window_bounds = array<i64: 9, 16, 8>}, {pipeline_mode = #tpu.pipeline_mode<synchronous>, transform_indices = @transform_2, window_bounds = array<i64: 16, 1>}, {pipeline_mode = #tpu.pipeline_mode<synchronous>, transform_indices = @transform_3, window_bounds = array<i64: 9, 16, 16>}, {pipeline_mode = #tpu.pipeline_mode<synchronous>, transform_indices = @transform_4, window_bounds = array<i64: 16, 1>}, {transform_indices = @transform_5, window_bounds = array<i64: 1, 16, 16>}]} {
    %c0 = arith.constant 0 : index
    %c0_0 = arith.constant 0 : index
    %c0_1 = arith.constant 0 : index
    %c0_2 = arith.constant 0 : index
    %0 = vector.load %arg1[%c0, %c0_0, %c0_1, %c0_2] : memref<1x32x5x5xbf16, #tpu.memory_space<vmem>>, vector<1x32x5x5xbf16>
    %1 = vector.shape_cast %0 : vector<1x32x5x5xbf16> to vector<32x5x5xbf16>
    %2 = vector.shape_cast %1 : vector<32x5x5xbf16> to vector<32x25xbf16>
    %cst = arith.constant 0.000000e+00 : f32
    %3 = vector.broadcast %cst : f32 to vector<16x25xf32>
    %4 = vector.extract_strided_slice %2 {offsets = [0, 0], sizes = [8, 25], strides = [1, 1]} : vector<32x25xbf16> to vector<8x25xbf16>
    %c0_3 = arith.constant 0 : index
    %c0_4 = arith.constant 0 : index
    %c0_5 = arith.constant 0 : index
    %5 = vector.load %arg2[%c0_3, %c0_4, %c0_5] : memref<9x16x8xbf16, #tpu.memory_space<vmem>>, vector<1x16x8xbf16>
    %6 = vector.shape_cast %5 : vector<1x16x8xbf16> to vector<16x8xbf16>
    %cst_6 = arith.constant dense<0.000000e+00> : vector<16x25xf32>
    %7 = tpu.matmul %6, %4, %cst_6 {dimension_numbers = #tpu.dot_dimension_numbers<[1], [0], [0], [1], [0, 0, 1, 1], [], []>} : vector<16x8xbf16>, vector<8x25xbf16>, vector<16x25xf32> -> vector<16x25xf32>
    %8 = arith.addf %3, %7 : vector<16x25xf32>
    %9 = vector.extract_strided_slice %2 {offsets = [8, 0], sizes = [8, 25], strides = [1, 1]} : vector<32x25xbf16> to vector<8x25xbf16>
    %c1 = arith.constant 1 : index
    %c0_7 = arith.constant 0 : index
    %c0_8 = arith.constant 0 : index
    %10 = vector.load %arg2[%c1, %c0_7, %c0_8] : memref<9x16x8xbf16, #tpu.memory_space<vmem>>, vector<1x16x8xbf16>
    %11 = vector.shape_cast %10 : vector<1x16x8xbf16> to vector<16x8xbf16>
    %cst_9 = arith.constant dense<0.000000e+00> : vector<16x25xf32>
    %12 = tpu.matmul %11, %9, %cst_9 {dimension_numbers = #tpu.dot_dimension_numbers<[1], [0], [0], [1], [0, 0, 1, 1], [], []>} : vector<16x8xbf16>, vector<8x25xbf16>, vector<16x25xf32> -> vector<16x25xf32>
    %13 = arith.addf %8, %12 : vector<16x25xf32>
    %14 = vector.extract_strided_slice %2 {offsets = [0, 0], sizes = [8, 25], strides = [1, 1]} : vector<32x25xbf16> to vector<8x25xbf16>
    %cst_10 = arith.constant 0.000000e+00 : bf16
    %15 = vector.broadcast %cst_10 : bf16 to vector<8x1xbf16>
    %16 = vector.extract_strided_slice %14 {offsets = [0, 1], sizes = [8, 24], strides = [1, 1]} : vector<8x25xbf16> to vector<8x24xbf16>
    %17 = tpu.concatenate %16, %15 in 1 : vector<8x24xbf16>, vector<8x1xbf16> -> vector<8x25xbf16>
    %c2 = arith.constant 2 : index
    %c0_11 = arith.constant 0 : index
    %c0_12 = arith.constant 0 : index
    %18 = vector.load %arg2[%c2, %c0_11, %c0_12] : memref<9x16x8xbf16, #tpu.memory_space<vmem>>, vector<1x16x8xbf16>
    %19 = vector.shape_cast %18 : vector<1x16x8xbf16> to vector<16x8xbf16>
    %cst_13 = arith.constant dense<0.000000e+00> : vector<16x25xf32>
    %20 = tpu.matmul %19, %17, %cst_13 {dimension_numbers = #tpu.dot_dimension_numbers<[1], [0], [0], [1], [0, 0, 1, 1], [], []>} : vector<16x8xbf16>, vector<8x25xbf16>, vector<16x25xf32> -> vector<16x25xf32>
    %21 = arith.addf %13, %20 : vector<16x25xf32>
    %22 = vector.extract_strided_slice %2 {offsets = [16, 0], sizes = [8, 25], strides = [1, 1]} : vector<32x25xbf16> to vector<8x25xbf16>
    %c3 = arith.constant 3 : index
    %c0_14 = arith.constant 0 : index
    %c0_15 = arith.constant 0 : index
    %23 = vector.load %arg2[%c3, %c0_14, %c0_15] : memref<9x16x8xbf16, #tpu.memory_space<vmem>>, vector<1x16x8xbf16>
    %24 = vector.shape_cast %23 : vector<1x16x8xbf16> to vector<16x8xbf16>
    %cst_16 = arith.constant dense<0.000000e+00> : vector<16x25xf32>
    %25 = tpu.matmul %24, %22, %cst_16 {dimension_numbers = #tpu.dot_dimension_numbers<[1], [0], [0], [1], [0, 0, 1, 1], [], []>} : vector<16x8xbf16>, vector<8x25xbf16>, vector<16x25xf32> -> vector<16x25xf32>
    %26 = arith.addf %21, %25 : vector<16x25xf32>
    %27 = vector.extract_strided_slice %2 {offsets = [24, 0], sizes = [8, 25], strides = [1, 1]} : vector<32x25xbf16> to vector<8x25xbf16>
    %c4 = arith.constant 4 : index
    %c0_17 = arith.constant 0 : index
    %c0_18 = arith.constant 0 : index
    %28 = vector.load %arg2[%c4, %c0_17, %c0_18] : memref<9x16x8xbf16, #tpu.memory_space<vmem>>, vector<1x16x8xbf16>
    %29 = vector.shape_cast %28 : vector<1x16x8xbf16> to vector<16x8xbf16>
    %cst_19 = arith.constant dense<0.000000e+00> : vector<16x25xf32>
    %30 = tpu.matmul %29, %27, %cst_19 {dimension_numbers = #tpu.dot_dimension_numbers<[1], [0], [0], [1], [0, 0, 1, 1], [], []>} : vector<16x8xbf16>, vector<8x25xbf16>, vector<16x25xf32> -> vector<16x25xf32>
    %31 = arith.addf %26, %30 : vector<16x25xf32>
    %32 = vector.extract_strided_slice %2 {offsets = [16, 0], sizes = [8, 25], strides = [1, 1]} : vector<32x25xbf16> to vector<8x25xbf16>
    %cst_20 = arith.constant 0.000000e+00 : bf16
    %33 = vector.broadcast %cst_20 : bf16 to vector<8x1xbf16>
    %34 = vector.extract_strided_slice %32 {offsets = [0, 1], sizes = [8, 24], strides = [1, 1]} : vector<8x25xbf16> to vector<8x24xbf16>
    %35 = tpu.concatenate %34, %33 in 1 : vector<8x24xbf16>, vector<8x1xbf16> -> vector<8x25xbf16>
    %c5 = arith.constant 5 : index
    %c0_21 = arith.constant 0 : index
    %c0_22 = arith.constant 0 : index
    %36 = vector.load %arg2[%c5, %c0_21, %c0_22] : memref<9x16x8xbf16, #tpu.memory_space<vmem>>, vector<1x16x8xbf16>
    %37 = vector.shape_cast %36 : vector<1x16x8xbf16> to vector<16x8xbf16>
    %cst_23 = arith.constant dense<0.000000e+00> : vector<16x25xf32>
    %38 = tpu.matmul %37, %35, %cst_23 {dimension_numbers = #tpu.dot_dimension_numbers<[1], [0], [0], [1], [0, 0, 1, 1], [], []>} : vector<16x8xbf16>, vector<8x25xbf16>, vector<16x25xf32> -> vector<16x25xf32>
    %39 = arith.addf %31, %38 : vector<16x25xf32>
    %40 = vector.extract_strided_slice %2 {offsets = [0, 0], sizes = [8, 25], strides = [1, 1]} : vector<32x25xbf16> to vector<8x25xbf16>
    %cst_24 = arith.constant 0.000000e+00 : bf16
    %41 = vector.broadcast %cst_24 : bf16 to vector<8x5xbf16>
    %42 = vector.extract_strided_slice %40 {offsets = [0, 5], sizes = [8, 20], strides = [1, 1]} : vector<8x25xbf16> to vector<8x20xbf16>
    %43 = tpu.concatenate %42, %41 in 1 : vector<8x20xbf16>, vector<8x5xbf16> -> vector<8x25xbf16>
    %c6 = arith.constant 6 : index
    %c0_25 = arith.constant 0 : index
    %c0_26 = arith.constant 0 : index
    %44 = vector.load %arg2[%c6, %c0_25, %c0_26] : memref<9x16x8xbf16, #tpu.memory_space<vmem>>, vector<1x16x8xbf16>
    %45 = vector.shape_cast %44 : vector<1x16x8xbf16> to vector<16x8xbf16>
    %cst_27 = arith.constant dense<0.000000e+00> : vector<16x25xf32>
    %46 = tpu.matmul %45, %43, %cst_27 {dimension_numbers = #tpu.dot_dimension_numbers<[1], [0], [0], [1], [0, 0, 1, 1], [], []>} : vector<16x8xbf16>, vector<8x25xbf16>, vector<16x25xf32> -> vector<16x25xf32>
    %47 = arith.addf %39, %46 : vector<16x25xf32>
    %48 = vector.extract_strided_slice %2 {offsets = [8, 0], sizes = [8, 25], strides = [1, 1]} : vector<32x25xbf16> to vector<8x25xbf16>
    %cst_28 = arith.constant 0.000000e+00 : bf16
    %49 = vector.broadcast %cst_28 : bf16 to vector<8x5xbf16>
    %50 = vector.extract_strided_slice %48 {offsets = [0, 5], sizes = [8, 20], strides = [1, 1]} : vector<8x25xbf16> to vector<8x20xbf16>
    %51 = tpu.concatenate %50, %49 in 1 : vector<8x20xbf16>, vector<8x5xbf16> -> vector<8x25xbf16>
    %c7 = arith.constant 7 : index
    %c0_29 = arith.constant 0 : index
    %c0_30 = arith.constant 0 : index
    %52 = vector.load %arg2[%c7, %c0_29, %c0_30] : memref<9x16x8xbf16, #tpu.memory_space<vmem>>, vector<1x16x8xbf16>
    %53 = vector.shape_cast %52 : vector<1x16x8xbf16> to vector<16x8xbf16>
    %cst_31 = arith.constant dense<0.000000e+00> : vector<16x25xf32>
    %54 = tpu.matmul %53, %51, %cst_31 {dimension_numbers = #tpu.dot_dimension_numbers<[1], [0], [0], [1], [0, 0, 1, 1], [], []>} : vector<16x8xbf16>, vector<8x25xbf16>, vector<16x25xf32> -> vector<16x25xf32>
    %55 = arith.addf %47, %54 : vector<16x25xf32>
    %56 = vector.extract_strided_slice %2 {offsets = [0, 0], sizes = [8, 25], strides = [1, 1]} : vector<32x25xbf16> to vector<8x25xbf16>
    %cst_32 = arith.constant 0.000000e+00 : bf16
    %57 = vector.broadcast %cst_32 : bf16 to vector<8x6xbf16>
    %58 = vector.extract_strided_slice %56 {offsets = [0, 6], sizes = [8, 19], strides = [1, 1]} : vector<8x25xbf16> to vector<8x19xbf16>
    %59 = tpu.concatenate %58, %57 in 1 : vector<8x19xbf16>, vector<8x6xbf16> -> vector<8x25xbf16>
    %c8 = arith.constant 8 : index
    %c0_33 = arith.constant 0 : index
    %c0_34 = arith.constant 0 : index
    %60 = vector.load %arg2[%c8, %c0_33, %c0_34] : memref<9x16x8xbf16, #tpu.memory_space<vmem>>, vector<1x16x8xbf16>
    %61 = vector.shape_cast %60 : vector<1x16x8xbf16> to vector<16x8xbf16>
    %cst_35 = arith.constant dense<0.000000e+00> : vector<16x25xf32>
    %62 = tpu.matmul %61, %59, %cst_35 {dimension_numbers = #tpu.dot_dimension_numbers<[1], [0], [0], [1], [0, 0, 1, 1], [], []>} : vector<16x8xbf16>, vector<8x25xbf16>, vector<16x25xf32> -> vector<16x25xf32>
    %63 = arith.addf %55, %62 : vector<16x25xf32>
    %c0_36 = arith.constant 0 : index
    %c0_37 = arith.constant 0 : index
    %64 = vector.load %arg3[%c0_36, %c0_37] : memref<16x1xf32, #tpu.memory_space<vmem>>, vector<16x1xf32>
    %65 = vector.broadcast %64 : vector<16x1xf32> to vector<16x25xf32>
    %66 = arith.addf %63, %65 : vector<16x25xf32>
    %cst_38 = arith.constant 0.000000e+00 : f32
    %67 = vector.broadcast %cst_38 : f32 to vector<16x25xf32>
    %68 = arith.cmpf oge, %66, %67 : vector<16x25xf32>
    %cst_39 = arith.constant 1.000000e-01 : f32
    %69 = vector.broadcast %cst_39 : f32 to vector<16x25xf32>
    %70 = arith.mulf %69, %66 : vector<16x25xf32>
    %71 = arith.select %68, %66, %70 : vector<16x25xi1>, vector<16x25xf32>
    %72 = vector.shape_cast %71 : vector<16x25xf32> to vector<16x5x5xf32>
    %73 = vector.extract_strided_slice %72 {offsets = [0, 0, 0], sizes = [16, 4, 4], strides = [1, 1, 1]} : vector<16x5x5xf32> to vector<16x4x4xf32>
    %74 = arith.truncf %73 : vector<16x4x4xf32> to vector<16x4x4xbf16>
    %cst_40 = arith.constant 0.000000e+00 : bf16
    %75 = vector.broadcast %cst_40 : bf16 to vector<16x1x4xbf16>
    %cst_41 = arith.constant 0.000000e+00 : bf16
    %76 = vector.broadcast %cst_41 : bf16 to vector<16x6x1xbf16>
    %77 = tpu.concatenate %75, %74, %75 in 1 : vector<16x1x4xbf16>, vector<16x4x4xbf16>, vector<16x1x4xbf16> -> vector<16x6x4xbf16>
    %78 = tpu.concatenate %76, %77, %76 in 2 : vector<16x6x1xbf16>, vector<16x6x4xbf16>, vector<16x6x1xbf16> -> vector<16x6x6xbf16>
    %79 = vector.shape_cast %78 : vector<16x6x6xbf16> to vector<16x36xbf16>
    %cst_42 = arith.constant 0.000000e+00 : f32
    %80 = vector.broadcast %cst_42 : f32 to vector<16x36xf32>
    %c0_43 = arith.constant 0 : index
    %c0_44 = arith.constant 0 : index
    %c0_45 = arith.constant 0 : index
    %81 = vector.load %arg4[%c0_43, %c0_44, %c0_45] : memref<9x16x16xbf16, #tpu.memory_space<vmem>>, vector<1x16x16xbf16>
    %82 = vector.shape_cast %81 : vector<1x16x16xbf16> to vector<16x16xbf16>
    %cst_46 = arith.constant dense<0.000000e+00> : vector<16x36xf32>
    %83 = tpu.matmul %82, %79, %cst_46 {dimension_numbers = #tpu.dot_dimension_numbers<[1], [0], [0], [1], [0, 0, 1, 1], [], []>} : vector<16x16xbf16>, vector<16x36xbf16>, vector<16x36xf32> -> vector<16x36xf32>
    %84 = arith.addf %80, %83 : vector<16x36xf32>
    %c1_47 = arith.constant 1 : index
    %c0_48 = arith.constant 0 : index
    %c0_49 = arith.constant 0 : index
    %85 = vector.load %arg4[%c1_47, %c0_48, %c0_49] : memref<9x16x16xbf16, #tpu.memory_space<vmem>>, vector<1x16x16xbf16>
    %86 = vector.shape_cast %85 : vector<1x16x16xbf16> to vector<16x16xbf16>
    %cst_50 = arith.constant 0.000000e+00 : bf16
    %87 = vector.broadcast %cst_50 : bf16 to vector<16x1xbf16>
    %88 = vector.extract_strided_slice %79 {offsets = [0, 1], sizes = [16, 35], strides = [1, 1]} : vector<16x36xbf16> to vector<16x35xbf16>
    %89 = tpu.concatenate %88, %87 in 1 : vector<16x35xbf16>, vector<16x1xbf16> -> vector<16x36xbf16>
    %cst_51 = arith.constant dense<0.000000e+00> : vector<16x36xf32>
    %90 = tpu.matmul %86, %89, %cst_51 {dimension_numbers = #tpu.dot_dimension_numbers<[1], [0], [0], [1], [0, 0, 1, 1], [], []>} : vector<16x16xbf16>, vector<16x36xbf16>, vector<16x36xf32> -> vector<16x36xf32>
    %91 = arith.addf %84, %90 : vector<16x36xf32>
    %c2_52 = arith.constant 2 : index
    %c0_53 = arith.constant 0 : index
    %c0_54 = arith.constant 0 : index
    %92 = vector.load %arg4[%c2_52, %c0_53, %c0_54] : memref<9x16x16xbf16, #tpu.memory_space<vmem>>, vector<1x16x16xbf16>
    %93 = vector.shape_cast %92 : vector<1x16x16xbf16> to vector<16x16xbf16>
    %cst_55 = arith.constant 0.000000e+00 : bf16
    %94 = vector.broadcast %cst_55 : bf16 to vector<16x2xbf16>
    %95 = vector.extract_strided_slice %79 {offsets = [0, 2], sizes = [16, 34], strides = [1, 1]} : vector<16x36xbf16> to vector<16x34xbf16>
    %96 = tpu.concatenate %95, %94 in 1 : vector<16x34xbf16>, vector<16x2xbf16> -> vector<16x36xbf16>
    %cst_56 = arith.constant dense<0.000000e+00> : vector<16x36xf32>
    %97 = tpu.matmul %93, %96, %cst_56 {dimension_numbers = #tpu.dot_dimension_numbers<[1], [0], [0], [1], [0, 0, 1, 1], [], []>} : vector<16x16xbf16>, vector<16x36xbf16>, vector<16x36xf32> -> vector<16x36xf32>
    %98 = arith.addf %91, %97 : vector<16x36xf32>
    %c3_57 = arith.constant 3 : index
    %c0_58 = arith.constant 0 : index
    %c0_59 = arith.constant 0 : index
    %99 = vector.load %arg4[%c3_57, %c0_58, %c0_59] : memref<9x16x16xbf16, #tpu.memory_space<vmem>>, vector<1x16x16xbf16>
    %100 = vector.shape_cast %99 : vector<1x16x16xbf16> to vector<16x16xbf16>
    %cst_60 = arith.constant 0.000000e+00 : bf16
    %101 = vector.broadcast %cst_60 : bf16 to vector<16x6xbf16>
    %102 = vector.extract_strided_slice %79 {offsets = [0, 6], sizes = [16, 30], strides = [1, 1]} : vector<16x36xbf16> to vector<16x30xbf16>
    %103 = tpu.concatenate %102, %101 in 1 : vector<16x30xbf16>, vector<16x6xbf16> -> vector<16x36xbf16>
    %cst_61 = arith.constant dense<0.000000e+00> : vector<16x36xf32>
    %104 = tpu.matmul %100, %103, %cst_61 {dimension_numbers = #tpu.dot_dimension_numbers<[1], [0], [0], [1], [0, 0, 1, 1], [], []>} : vector<16x16xbf16>, vector<16x36xbf16>, vector<16x36xf32> -> vector<16x36xf32>
    %105 = arith.addf %98, %104 : vector<16x36xf32>
    %c4_62 = arith.constant 4 : index
    %c0_63 = arith.constant 0 : index
    %c0_64 = arith.constant 0 : index
    %106 = vector.load %arg4[%c4_62, %c0_63, %c0_64] : memref<9x16x16xbf16, #tpu.memory_space<vmem>>, vector<1x16x16xbf16>
    %107 = vector.shape_cast %106 : vector<1x16x16xbf16> to vector<16x16xbf16>
    %cst_65 = arith.constant 0.000000e+00 : bf16
    %108 = vector.broadcast %cst_65 : bf16 to vector<16x7xbf16>
    %109 = vector.extract_strided_slice %79 {offsets = [0, 7], sizes = [16, 29], strides = [1, 1]} : vector<16x36xbf16> to vector<16x29xbf16>
    %110 = tpu.concatenate %109, %108 in 1 : vector<16x29xbf16>, vector<16x7xbf16> -> vector<16x36xbf16>
    %cst_66 = arith.constant dense<0.000000e+00> : vector<16x36xf32>
    %111 = tpu.matmul %107, %110, %cst_66 {dimension_numbers = #tpu.dot_dimension_numbers<[1], [0], [0], [1], [0, 0, 1, 1], [], []>} : vector<16x16xbf16>, vector<16x36xbf16>, vector<16x36xf32> -> vector<16x36xf32>
    %112 = arith.addf %105, %111 : vector<16x36xf32>
    %c5_67 = arith.constant 5 : index
    %c0_68 = arith.constant 0 : index
    %c0_69 = arith.constant 0 : index
    %113 = vector.load %arg4[%c5_67, %c0_68, %c0_69] : memref<9x16x16xbf16, #tpu.memory_space<vmem>>, vector<1x16x16xbf16>
    %114 = vector.shape_cast %113 : vector<1x16x16xbf16> to vector<16x16xbf16>
    %cst_70 = arith.constant 0.000000e+00 : bf16
    %115 = vector.broadcast %cst_70 : bf16 to vector<16x8xbf16>
    %116 = vector.extract_strided_slice %79 {offsets = [0, 8], sizes = [16, 28], strides = [1, 1]} : vector<16x36xbf16> to vector<16x28xbf16>
    %117 = tpu.concatenate %116, %115 in 1 : vector<16x28xbf16>, vector<16x8xbf16> -> vector<16x36xbf16>
    %cst_71 = arith.constant dense<0.000000e+00> : vector<16x36xf32>
    %118 = tpu.matmul %114, %117, %cst_71 {dimension_numbers = #tpu.dot_dimension_numbers<[1], [0], [0], [1], [0, 0, 1, 1], [], []>} : vector<16x16xbf16>, vector<16x36xbf16>, vector<16x36xf32> -> vector<16x36xf32>
    %119 = arith.addf %112, %118 : vector<16x36xf32>
    %c6_72 = arith.constant 6 : index
    %c0_73 = arith.constant 0 : index
    %c0_74 = arith.constant 0 : index
    %120 = vector.load %arg4[%c6_72, %c0_73, %c0_74] : memref<9x16x16xbf16, #tpu.memory_space<vmem>>, vector<1x16x16xbf16>
    %121 = vector.shape_cast %120 : vector<1x16x16xbf16> to vector<16x16xbf16>
    %cst_75 = arith.constant 0.000000e+00 : bf16
    %122 = vector.broadcast %cst_75 : bf16 to vector<16x12xbf16>
    %123 = vector.extract_strided_slice %79 {offsets = [0, 12], sizes = [16, 24], strides = [1, 1]} : vector<16x36xbf16> to vector<16x24xbf16>
    %124 = tpu.concatenate %123, %122 in 1 : vector<16x24xbf16>, vector<16x12xbf16> -> vector<16x36xbf16>
    %cst_76 = arith.constant dense<0.000000e+00> : vector<16x36xf32>
    %125 = tpu.matmul %121, %124, %cst_76 {dimension_numbers = #tpu.dot_dimension_numbers<[1], [0], [0], [1], [0, 0, 1, 1], [], []>} : vector<16x16xbf16>, vector<16x36xbf16>, vector<16x36xf32> -> vector<16x36xf32>
    %126 = arith.addf %119, %125 : vector<16x36xf32>
    %c7_77 = arith.constant 7 : index
    %c0_78 = arith.constant 0 : index
    %c0_79 = arith.constant 0 : index
    %127 = vector.load %arg4[%c7_77, %c0_78, %c0_79] : memref<9x16x16xbf16, #tpu.memory_space<vmem>>, vector<1x16x16xbf16>
    %128 = vector.shape_cast %127 : vector<1x16x16xbf16> to vector<16x16xbf16>
    %cst_80 = arith.constant 0.000000e+00 : bf16
    %129 = vector.broadcast %cst_80 : bf16 to vector<16x13xbf16>
    %130 = vector.extract_strided_slice %79 {offsets = [0, 13], sizes = [16, 23], strides = [1, 1]} : vector<16x36xbf16> to vector<16x23xbf16>
    %131 = tpu.concatenate %130, %129 in 1 : vector<16x23xbf16>, vector<16x13xbf16> -> vector<16x36xbf16>
    %cst_81 = arith.constant dense<0.000000e+00> : vector<16x36xf32>
    %132 = tpu.matmul %128, %131, %cst_81 {dimension_numbers = #tpu.dot_dimension_numbers<[1], [0], [0], [1], [0, 0, 1, 1], [], []>} : vector<16x16xbf16>, vector<16x36xbf16>, vector<16x36xf32> -> vector<16x36xf32>
    %133 = arith.addf %126, %132 : vector<16x36xf32>
    %c8_82 = arith.constant 8 : index
    %c0_83 = arith.constant 0 : index
    %c0_84 = arith.constant 0 : index
    %134 = vector.load %arg4[%c8_82, %c0_83, %c0_84] : memref<9x16x16xbf16, #tpu.memory_space<vmem>>, vector<1x16x16xbf16>
    %135 = vector.shape_cast %134 : vector<1x16x16xbf16> to vector<16x16xbf16>
    %cst_85 = arith.constant 0.000000e+00 : bf16
    %136 = vector.broadcast %cst_85 : bf16 to vector<16x14xbf16>
    %137 = vector.extract_strided_slice %79 {offsets = [0, 14], sizes = [16, 22], strides = [1, 1]} : vector<16x36xbf16> to vector<16x22xbf16>
    %138 = tpu.concatenate %137, %136 in 1 : vector<16x22xbf16>, vector<16x14xbf16> -> vector<16x36xbf16>
    %cst_86 = arith.constant dense<0.000000e+00> : vector<16x36xf32>
    %139 = tpu.matmul %135, %138, %cst_86 {dimension_numbers = #tpu.dot_dimension_numbers<[1], [0], [0], [1], [0, 0, 1, 1], [], []>} : vector<16x16xbf16>, vector<16x36xbf16>, vector<16x36xf32> -> vector<16x36xf32>
    %140 = arith.addf %133, %139 : vector<16x36xf32>
    %c0_87 = arith.constant 0 : index
    %c0_88 = arith.constant 0 : index
    %141 = vector.load %arg5[%c0_87, %c0_88] : memref<16x1xf32, #tpu.memory_space<vmem>>, vector<16x1xf32>
    %142 = vector.broadcast %141 : vector<16x1xf32> to vector<16x36xf32>
    %143 = arith.addf %140, %142 : vector<16x36xf32>
    %cst_89 = arith.constant 0.000000e+00 : f32
    %144 = vector.broadcast %cst_89 : f32 to vector<16x36xf32>
    %145 = arith.cmpf oge, %143, %144 : vector<16x36xf32>
    %cst_90 = arith.constant 1.000000e-01 : f32
    %146 = vector.broadcast %cst_90 : f32 to vector<16x36xf32>
    %147 = arith.mulf %146, %143 : vector<16x36xf32>
    %148 = arith.select %145, %143, %147 : vector<16x36xi1>, vector<16x36xf32>
    %149 = vector.shape_cast %148 : vector<16x36xf32> to vector<16x6x6xf32>
    %150 = vector.extract_strided_slice %149 {offsets = [0, 0, 0], sizes = [16, 4, 4], strides = [1, 1, 1]} : vector<16x6x6xf32> to vector<16x4x4xf32>
    %151 = vector.shape_cast %150 : vector<16x4x4xf32> to vector<16x16xf32>
    %152 = arith.truncf %151 : vector<16x16xf32> to vector<16x16xbf16>
    %c0_91 = arith.constant 0 : index
    %c0_92 = arith.constant 0 : index
    %c0_93 = arith.constant 0 : index
    %153 = vector.load %arg6[%c0_91, %c0_92, %c0_93] : memref<1x16x16xbf16, #tpu.memory_space<vmem>>, vector<1x16x16xbf16>
    %154 = vector.shape_cast %153 : vector<1x16x16xbf16> to vector<16x16xbf16>
    %155 = vector.shape_cast %152 : vector<16x16xbf16> to vector<1x16x16xbf16>
    tpu.vector_store %arg6[%c0_91, %c0_92, %c0_93], %155 {strides = array<i32>} : memref<1x16x16xbf16, #tpu.memory_space<vmem>>, vector<1x16x16xbf16>,
    return
  }
  func.func @transform_0(%arg0: i32) -> (i32, i32, i32, i32) {
    %c0_i32 = arith.constant 0 : i32
    %c0_i32_0 = arith.constant 0 : i32
    %c0_i32_1 = arith.constant 0 : i32
    %c0_i32_2 = arith.constant 0 : i32
    return %arg0, %c0_i32, %c0_i32_0, %c0_i32_1 : i32, i32, i32, i32
  }
  func.func @transform_1(%arg0: i32) -> (i32, i32, i32) {
    %c0_i32 = arith.constant 0 : i32
    %c0_i32_0 = arith.constant 0 : i32
    %c0_i32_1 = arith.constant 0 : i32
    %c0_i32_2 = arith.constant 0 : i32
    return %c0_i32, %c0_i32_0, %c0_i32_1 : i32, i32, i32
  }
  func.func @transform_2(%arg0: i32) -> (i32, i32) {
    %c0_i32 = arith.constant 0 : i32
    %c0_i32_0 = arith.constant 0 : i32
    %c0_i32_1 = arith.constant 0 : i32
    return %c0_i32, %c0_i32_0 : i32, i32
  }
  func.func @transform_3(%arg0: i32) -> (i32, i32, i32) {
    %c0_i32 = arith.constant 0 : i32
    %c0_i32_0 = arith.constant 0 : i32
    %c0_i32_1 = arith.constant 0 : i32
    %c0_i32_2 = arith.constant 0 : i32
    return %c0_i32, %c0_i32_0, %c0_i32_1 : i32, i32, i32
  }
  func.func @transform_4(%arg0: i32) -> (i32, i32) {
    %c0_i32 = arith.constant 0 : i32
    %c0_i32_0 = arith.constant 0 : i32
    %c0_i32_1 = arith.constant 0 : i32
    return %c0_i32, %c0_i32_0 : i32, i32
  }
  func.func @transform_5(%arg0: i32) -> (i32, i32, i32) {
    %c0_i32 = arith.constant 0 : i32
    %c0_i32_0 = arith.constant 0 : i32
    %c0_i32_1 = arith.constant 0 : i32
    return %arg0, %c0_i32, %c0_i32_0 : i32, i32, i32
  }
}

module attributes {stable_mosaic.version = 11 : i64} {
  func.func @kernel(%arg0: i32, %arg1: memref<1x64x3x3xbf16, #tpu.memory_space<vmem>>, %arg2: memref<9x32x16xbf16, #tpu.memory_space<vmem>>, %arg3: memref<32x1xf32, #tpu.memory_space<vmem>>, %arg4: memref<9x32x32xbf16, #tpu.memory_space<vmem>>, %arg5: memref<32x1xf32, #tpu.memory_space<vmem>>, %arg6: memref<1x32x4xbf16, #tpu.memory_space<vmem>>) attributes {dimension_semantics = [#tpu.dimension_semantics<parallel>], iteration_bounds = array<i64: 2>, scalar_prefetch = 0 : i64, scratch_operands = 0 : i64, tpu.core_type = #tpu.core_type<tc>, window_params = [{transform_indices = @transform_0, window_bounds = array<i64: 1, 64, 3, 3>}, {pipeline_mode = #tpu.pipeline_mode<synchronous>, transform_indices = @transform_1, window_bounds = array<i64: 9, 32, 16>}, {pipeline_mode = #tpu.pipeline_mode<synchronous>, transform_indices = @transform_2, window_bounds = array<i64: 32, 1>}, {pipeline_mode = #tpu.pipeline_mode<synchronous>, transform_indices = @transform_3, window_bounds = array<i64: 9, 32, 32>}, {pipeline_mode = #tpu.pipeline_mode<synchronous>, transform_indices = @transform_4, window_bounds = array<i64: 32, 1>}, {transform_indices = @transform_5, window_bounds = array<i64: 1, 32, 4>}]} {
    %c0 = arith.constant 0 : index
    %c0_0 = arith.constant 0 : index
    %c0_1 = arith.constant 0 : index
    %c0_2 = arith.constant 0 : index
    %0 = vector.load %arg1[%c0, %c0_0, %c0_1, %c0_2] : memref<1x64x3x3xbf16, #tpu.memory_space<vmem>>, vector<1x64x3x3xbf16>
    %1 = vector.shape_cast %0 : vector<1x64x3x3xbf16> to vector<64x3x3xbf16>
    %2 = vector.shape_cast %1 : vector<64x3x3xbf16> to vector<64x9xbf16>
    %cst = arith.constant 0.000000e+00 : f32
    %3 = vector.broadcast %cst : f32 to vector<32x9xf32>
    %4 = vector.extract_strided_slice %2 {offsets = [0, 0], sizes = [16, 9], strides = [1, 1]} : vector<64x9xbf16> to vector<16x9xbf16>
    %c0_3 = arith.constant 0 : index
    %c0_4 = arith.constant 0 : index
    %c0_5 = arith.constant 0 : index
    %5 = vector.load %arg2[%c0_3, %c0_4, %c0_5] : memref<9x32x16xbf16, #tpu.memory_space<vmem>>, vector<1x32x16xbf16>
    %6 = vector.shape_cast %5 : vector<1x32x16xbf16> to vector<32x16xbf16>
    %cst_6 = arith.constant dense<0.000000e+00> : vector<32x9xf32>
    %7 = tpu.matmul %6, %4, %cst_6 {dimension_numbers = #tpu.dot_dimension_numbers<[1], [0], [0], [1], [0, 0, 1, 1], [], []>} : vector<32x16xbf16>, vector<16x9xbf16>, vector<32x9xf32> -> vector<32x9xf32>
    %8 = arith.addf %3, %7 : vector<32x9xf32>
    %9 = vector.extract_strided_slice %2 {offsets = [16, 0], sizes = [16, 9], strides = [1, 1]} : vector<64x9xbf16> to vector<16x9xbf16>
    %c1 = arith.constant 1 : index
    %c0_7 = arith.constant 0 : index
    %c0_8 = arith.constant 0 : index
    %10 = vector.load %arg2[%c1, %c0_7, %c0_8] : memref<9x32x16xbf16, #tpu.memory_space<vmem>>, vector<1x32x16xbf16>
    %11 = vector.shape_cast %10 : vector<1x32x16xbf16> to vector<32x16xbf16>
    %cst_9 = arith.constant dense<0.000000e+00> : vector<32x9xf32>
    %12 = tpu.matmul %11, %9, %cst_9 {dimension_numbers = #tpu.dot_dimension_numbers<[1], [0], [0], [1], [0, 0, 1, 1], [], []>} : vector<32x16xbf16>, vector<16x9xbf16>, vector<32x9xf32> -> vector<32x9xf32>
    %13 = arith.addf %8, %12 : vector<32x9xf32>
    %14 = vector.extract_strided_slice %2 {offsets = [0, 0], sizes = [16, 9], strides = [1, 1]} : vector<64x9xbf16> to vector<16x9xbf16>
    %cst_10 = arith.constant 0.000000e+00 : bf16
    %15 = vector.broadcast %cst_10 : bf16 to vector<16x1xbf16>
    %16 = vector.extract_strided_slice %14 {offsets = [0, 1], sizes = [16, 8], strides = [1, 1]} : vector<16x9xbf16> to vector<16x8xbf16>
    %17 = tpu.concatenate %16, %15 in 1 : vector<16x8xbf16>, vector<16x1xbf16> -> vector<16x9xbf16>
    %c2 = arith.constant 2 : index
    %c0_11 = arith.constant 0 : index
    %c0_12 = arith.constant 0 : index
    %18 = vector.load %arg2[%c2, %c0_11, %c0_12] : memref<9x32x16xbf16, #tpu.memory_space<vmem>>, vector<1x32x16xbf16>
    %19 = vector.shape_cast %18 : vector<1x32x16xbf16> to vector<32x16xbf16>
    %cst_13 = arith.constant dense<0.000000e+00> : vector<32x9xf32>
    %20 = tpu.matmul %19, %17, %cst_13 {dimension_numbers = #tpu.dot_dimension_numbers<[1], [0], [0], [1], [0, 0, 1, 1], [], []>} : vector<32x16xbf16>, vector<16x9xbf16>, vector<32x9xf32> -> vector<32x9xf32>
    %21 = arith.addf %13, %20 : vector<32x9xf32>
    %22 = vector.extract_strided_slice %2 {offsets = [32, 0], sizes = [16, 9], strides = [1, 1]} : vector<64x9xbf16> to vector<16x9xbf16>
    %c3 = arith.constant 3 : index
    %c0_14 = arith.constant 0 : index
    %c0_15 = arith.constant 0 : index
    %23 = vector.load %arg2[%c3, %c0_14, %c0_15] : memref<9x32x16xbf16, #tpu.memory_space<vmem>>, vector<1x32x16xbf16>
    %24 = vector.shape_cast %23 : vector<1x32x16xbf16> to vector<32x16xbf16>
    %cst_16 = arith.constant dense<0.000000e+00> : vector<32x9xf32>
    %25 = tpu.matmul %24, %22, %cst_16 {dimension_numbers = #tpu.dot_dimension_numbers<[1], [0], [0], [1], [0, 0, 1, 1], [], []>} : vector<32x16xbf16>, vector<16x9xbf16>, vector<32x9xf32> -> vector<32x9xf32>
    %26 = arith.addf %21, %25 : vector<32x9xf32>
    %27 = vector.extract_strided_slice %2 {offsets = [48, 0], sizes = [16, 9], strides = [1, 1]} : vector<64x9xbf16> to vector<16x9xbf16>
    %c4 = arith.constant 4 : index
    %c0_17 = arith.constant 0 : index
    %c0_18 = arith.constant 0 : index
    %28 = vector.load %arg2[%c4, %c0_17, %c0_18] : memref<9x32x16xbf16, #tpu.memory_space<vmem>>, vector<1x32x16xbf16>
    %29 = vector.shape_cast %28 : vector<1x32x16xbf16> to vector<32x16xbf16>
    %cst_19 = arith.constant dense<0.000000e+00> : vector<32x9xf32>
    %30 = tpu.matmul %29, %27, %cst_19 {dimension_numbers = #tpu.dot_dimension_numbers<[1], [0], [0], [1], [0, 0, 1, 1], [], []>} : vector<32x16xbf16>, vector<16x9xbf16>, vector<32x9xf32> -> vector<32x9xf32>
    %31 = arith.addf %26, %30 : vector<32x9xf32>
    %32 = vector.extract_strided_slice %2 {offsets = [32, 0], sizes = [16, 9], strides = [1, 1]} : vector<64x9xbf16> to vector<16x9xbf16>
    %cst_20 = arith.constant 0.000000e+00 : bf16
    %33 = vector.broadcast %cst_20 : bf16 to vector<16x1xbf16>
    %34 = vector.extract_strided_slice %32 {offsets = [0, 1], sizes = [16, 8], strides = [1, 1]} : vector<16x9xbf16> to vector<16x8xbf16>
    %35 = tpu.concatenate %34, %33 in 1 : vector<16x8xbf16>, vector<16x1xbf16> -> vector<16x9xbf16>
    %c5 = arith.constant 5 : index
    %c0_21 = arith.constant 0 : index
    %c0_22 = arith.constant 0 : index
    %36 = vector.load %arg2[%c5, %c0_21, %c0_22] : memref<9x32x16xbf16, #tpu.memory_space<vmem>>, vector<1x32x16xbf16>
    %37 = vector.shape_cast %36 : vector<1x32x16xbf16> to vector<32x16xbf16>
    %cst_23 = arith.constant dense<0.000000e+00> : vector<32x9xf32>
    %38 = tpu.matmul %37, %35, %cst_23 {dimension_numbers = #tpu.dot_dimension_numbers<[1], [0], [0], [1], [0, 0, 1, 1], [], []>} : vector<32x16xbf16>, vector<16x9xbf16>, vector<32x9xf32> -> vector<32x9xf32>
    %39 = arith.addf %31, %38 : vector<32x9xf32>
    %40 = vector.extract_strided_slice %2 {offsets = [0, 0], sizes = [16, 9], strides = [1, 1]} : vector<64x9xbf16> to vector<16x9xbf16>
    %cst_24 = arith.constant 0.000000e+00 : bf16
    %41 = vector.broadcast %cst_24 : bf16 to vector<16x3xbf16>
    %42 = vector.extract_strided_slice %40 {offsets = [0, 3], sizes = [16, 6], strides = [1, 1]} : vector<16x9xbf16> to vector<16x6xbf16>
    %43 = tpu.concatenate %42, %41 in 1 : vector<16x6xbf16>, vector<16x3xbf16> -> vector<16x9xbf16>
    %c6 = arith.constant 6 : index
    %c0_25 = arith.constant 0 : index
    %c0_26 = arith.constant 0 : index
    %44 = vector.load %arg2[%c6, %c0_25, %c0_26] : memref<9x32x16xbf16, #tpu.memory_space<vmem>>, vector<1x32x16xbf16>
    %45 = vector.shape_cast %44 : vector<1x32x16xbf16> to vector<32x16xbf16>
    %cst_27 = arith.constant dense<0.000000e+00> : vector<32x9xf32>
    %46 = tpu.matmul %45, %43, %cst_27 {dimension_numbers = #tpu.dot_dimension_numbers<[1], [0], [0], [1], [0, 0, 1, 1], [], []>} : vector<32x16xbf16>, vector<16x9xbf16>, vector<32x9xf32> -> vector<32x9xf32>
    %47 = arith.addf %39, %46 : vector<32x9xf32>
    %48 = vector.extract_strided_slice %2 {offsets = [16, 0], sizes = [16, 9], strides = [1, 1]} : vector<64x9xbf16> to vector<16x9xbf16>
    %cst_28 = arith.constant 0.000000e+00 : bf16
    %49 = vector.broadcast %cst_28 : bf16 to vector<16x3xbf16>
    %50 = vector.extract_strided_slice %48 {offsets = [0, 3], sizes = [16, 6], strides = [1, 1]} : vector<16x9xbf16> to vector<16x6xbf16>
    %51 = tpu.concatenate %50, %49 in 1 : vector<16x6xbf16>, vector<16x3xbf16> -> vector<16x9xbf16>
    %c7 = arith.constant 7 : index
    %c0_29 = arith.constant 0 : index
    %c0_30 = arith.constant 0 : index
    %52 = vector.load %arg2[%c7, %c0_29, %c0_30] : memref<9x32x16xbf16, #tpu.memory_space<vmem>>, vector<1x32x16xbf16>
    %53 = vector.shape_cast %52 : vector<1x32x16xbf16> to vector<32x16xbf16>
    %cst_31 = arith.constant dense<0.000000e+00> : vector<32x9xf32>
    %54 = tpu.matmul %53, %51, %cst_31 {dimension_numbers = #tpu.dot_dimension_numbers<[1], [0], [0], [1], [0, 0, 1, 1], [], []>} : vector<32x16xbf16>, vector<16x9xbf16>, vector<32x9xf32> -> vector<32x9xf32>
    %55 = arith.addf %47, %54 : vector<32x9xf32>
    %56 = vector.extract_strided_slice %2 {offsets = [0, 0], sizes = [16, 9], strides = [1, 1]} : vector<64x9xbf16> to vector<16x9xbf16>
    %cst_32 = arith.constant 0.000000e+00 : bf16
    %57 = vector.broadcast %cst_32 : bf16 to vector<16x4xbf16>
    %58 = vector.extract_strided_slice %56 {offsets = [0, 4], sizes = [16, 5], strides = [1, 1]} : vector<16x9xbf16> to vector<16x5xbf16>
    %59 = tpu.concatenate %58, %57 in 1 : vector<16x5xbf16>, vector<16x4xbf16> -> vector<16x9xbf16>
    %c8 = arith.constant 8 : index
    %c0_33 = arith.constant 0 : index
    %c0_34 = arith.constant 0 : index
    %60 = vector.load %arg2[%c8, %c0_33, %c0_34] : memref<9x32x16xbf16, #tpu.memory_space<vmem>>, vector<1x32x16xbf16>
    %61 = vector.shape_cast %60 : vector<1x32x16xbf16> to vector<32x16xbf16>
    %cst_35 = arith.constant dense<0.000000e+00> : vector<32x9xf32>
    %62 = tpu.matmul %61, %59, %cst_35 {dimension_numbers = #tpu.dot_dimension_numbers<[1], [0], [0], [1], [0, 0, 1, 1], [], []>} : vector<32x16xbf16>, vector<16x9xbf16>, vector<32x9xf32> -> vector<32x9xf32>
    %63 = arith.addf %55, %62 : vector<32x9xf32>
    %c0_36 = arith.constant 0 : index
    %c0_37 = arith.constant 0 : index
    %64 = vector.load %arg3[%c0_36, %c0_37] : memref<32x1xf32, #tpu.memory_space<vmem>>, vector<32x1xf32>
    %65 = vector.broadcast %64 : vector<32x1xf32> to vector<32x9xf32>
    %66 = arith.addf %63, %65 : vector<32x9xf32>
    %cst_38 = arith.constant 0.000000e+00 : f32
    %67 = vector.broadcast %cst_38 : f32 to vector<32x9xf32>
    %68 = arith.cmpf oge, %66, %67 : vector<32x9xf32>
    %cst_39 = arith.constant 1.000000e-01 : f32
    %69 = vector.broadcast %cst_39 : f32 to vector<32x9xf32>
    %70 = arith.mulf %69, %66 : vector<32x9xf32>
    %71 = arith.select %68, %66, %70 : vector<32x9xi1>, vector<32x9xf32>
    %72 = vector.shape_cast %71 : vector<32x9xf32> to vector<32x3x3xf32>
    %73 = vector.extract_strided_slice %72 {offsets = [0, 0, 0], sizes = [32, 2, 2], strides = [1, 1, 1]} : vector<32x3x3xf32> to vector<32x2x2xf32>
    %74 = arith.truncf %73 : vector<32x2x2xf32> to vector<32x2x2xbf16>
    %cst_40 = arith.constant 0.000000e+00 : bf16
    %75 = vector.broadcast %cst_40 : bf16 to vector<32x1x2xbf16>
    %cst_41 = arith.constant 0.000000e+00 : bf16
    %76 = vector.broadcast %cst_41 : bf16 to vector<32x4x1xbf16>
    %77 = tpu.concatenate %75, %74, %75 in 1 : vector<32x1x2xbf16>, vector<32x2x2xbf16>, vector<32x1x2xbf16> -> vector<32x4x2xbf16>
    %78 = tpu.concatenate %76, %77, %76 in 2 : vector<32x4x1xbf16>, vector<32x4x2xbf16>, vector<32x4x1xbf16> -> vector<32x4x4xbf16>
    %79 = vector.shape_cast %78 : vector<32x4x4xbf16> to vector<32x16xbf16>
    %cst_42 = arith.constant 0.000000e+00 : f32
    %80 = vector.broadcast %cst_42 : f32 to vector<32x16xf32>
    %c0_43 = arith.constant 0 : index
    %c0_44 = arith.constant 0 : index
    %c0_45 = arith.constant 0 : index
    %81 = vector.load %arg4[%c0_43, %c0_44, %c0_45] : memref<9x32x32xbf16, #tpu.memory_space<vmem>>, vector<1x32x32xbf16>
    %82 = vector.shape_cast %81 : vector<1x32x32xbf16> to vector<32x32xbf16>
    %cst_46 = arith.constant dense<0.000000e+00> : vector<32x16xf32>
    %83 = tpu.matmul %82, %79, %cst_46 {dimension_numbers = #tpu.dot_dimension_numbers<[1], [0], [0], [1], [0, 0, 1, 1], [], []>} : vector<32x32xbf16>, vector<32x16xbf16>, vector<32x16xf32> -> vector<32x16xf32>
    %84 = arith.addf %80, %83 : vector<32x16xf32>
    %c1_47 = arith.constant 1 : index
    %c0_48 = arith.constant 0 : index
    %c0_49 = arith.constant 0 : index
    %85 = vector.load %arg4[%c1_47, %c0_48, %c0_49] : memref<9x32x32xbf16, #tpu.memory_space<vmem>>, vector<1x32x32xbf16>
    %86 = vector.shape_cast %85 : vector<1x32x32xbf16> to vector<32x32xbf16>
    %cst_50 = arith.constant 0.000000e+00 : bf16
    %87 = vector.broadcast %cst_50 : bf16 to vector<32x1xbf16>
    %88 = vector.extract_strided_slice %79 {offsets = [0, 1], sizes = [32, 15], strides = [1, 1]} : vector<32x16xbf16> to vector<32x15xbf16>
    %89 = tpu.concatenate %88, %87 in 1 : vector<32x15xbf16>, vector<32x1xbf16> -> vector<32x16xbf16>
    %cst_51 = arith.constant dense<0.000000e+00> : vector<32x16xf32>
    %90 = tpu.matmul %86, %89, %cst_51 {dimension_numbers = #tpu.dot_dimension_numbers<[1], [0], [0], [1], [0, 0, 1, 1], [], []>} : vector<32x32xbf16>, vector<32x16xbf16>, vector<32x16xf32> -> vector<32x16xf32>
    %91 = arith.addf %84, %90 : vector<32x16xf32>
    %c2_52 = arith.constant 2 : index
    %c0_53 = arith.constant 0 : index
    %c0_54 = arith.constant 0 : index
    %92 = vector.load %arg4[%c2_52, %c0_53, %c0_54] : memref<9x32x32xbf16, #tpu.memory_space<vmem>>, vector<1x32x32xbf16>
    %93 = vector.shape_cast %92 : vector<1x32x32xbf16> to vector<32x32xbf16>
    %cst_55 = arith.constant 0.000000e+00 : bf16
    %94 = vector.broadcast %cst_55 : bf16 to vector<32x2xbf16>
    %95 = vector.extract_strided_slice %79 {offsets = [0, 2], sizes = [32, 14], strides = [1, 1]} : vector<32x16xbf16> to vector<32x14xbf16>
    %96 = tpu.concatenate %95, %94 in 1 : vector<32x14xbf16>, vector<32x2xbf16> -> vector<32x16xbf16>
    %cst_56 = arith.constant dense<0.000000e+00> : vector<32x16xf32>
    %97 = tpu.matmul %93, %96, %cst_56 {dimension_numbers = #tpu.dot_dimension_numbers<[1], [0], [0], [1], [0, 0, 1, 1], [], []>} : vector<32x32xbf16>, vector<32x16xbf16>, vector<32x16xf32> -> vector<32x16xf32>
    %98 = arith.addf %91, %97 : vector<32x16xf32>
    %c3_57 = arith.constant 3 : index
    %c0_58 = arith.constant 0 : index
    %c0_59 = arith.constant 0 : index
    %99 = vector.load %arg4[%c3_57, %c0_58, %c0_59] : memref<9x32x32xbf16, #tpu.memory_space<vmem>>, vector<1x32x32xbf16>
    %100 = vector.shape_cast %99 : vector<1x32x32xbf16> to vector<32x32xbf16>
    %cst_60 = arith.constant 0.000000e+00 : bf16
    %101 = vector.broadcast %cst_60 : bf16 to vector<32x4xbf16>
    %102 = vector.extract_strided_slice %79 {offsets = [0, 4], sizes = [32, 12], strides = [1, 1]} : vector<32x16xbf16> to vector<32x12xbf16>
    %103 = tpu.concatenate %102, %101 in 1 : vector<32x12xbf16>, vector<32x4xbf16> -> vector<32x16xbf16>
    %cst_61 = arith.constant dense<0.000000e+00> : vector<32x16xf32>
    %104 = tpu.matmul %100, %103, %cst_61 {dimension_numbers = #tpu.dot_dimension_numbers<[1], [0], [0], [1], [0, 0, 1, 1], [], []>} : vector<32x32xbf16>, vector<32x16xbf16>, vector<32x16xf32> -> vector<32x16xf32>
    %105 = arith.addf %98, %104 : vector<32x16xf32>
    %c4_62 = arith.constant 4 : index
    %c0_63 = arith.constant 0 : index
    %c0_64 = arith.constant 0 : index
    %106 = vector.load %arg4[%c4_62, %c0_63, %c0_64] : memref<9x32x32xbf16, #tpu.memory_space<vmem>>, vector<1x32x32xbf16>
    %107 = vector.shape_cast %106 : vector<1x32x32xbf16> to vector<32x32xbf16>
    %cst_65 = arith.constant 0.000000e+00 : bf16
    %108 = vector.broadcast %cst_65 : bf16 to vector<32x5xbf16>
    %109 = vector.extract_strided_slice %79 {offsets = [0, 5], sizes = [32, 11], strides = [1, 1]} : vector<32x16xbf16> to vector<32x11xbf16>
    %110 = tpu.concatenate %109, %108 in 1 : vector<32x11xbf16>, vector<32x5xbf16> -> vector<32x16xbf16>
    %cst_66 = arith.constant dense<0.000000e+00> : vector<32x16xf32>
    %111 = tpu.matmul %107, %110, %cst_66 {dimension_numbers = #tpu.dot_dimension_numbers<[1], [0], [0], [1], [0, 0, 1, 1], [], []>} : vector<32x32xbf16>, vector<32x16xbf16>, vector<32x16xf32> -> vector<32x16xf32>
    %112 = arith.addf %105, %111 : vector<32x16xf32>
    %c5_67 = arith.constant 5 : index
    %c0_68 = arith.constant 0 : index
    %c0_69 = arith.constant 0 : index
    %113 = vector.load %arg4[%c5_67, %c0_68, %c0_69] : memref<9x32x32xbf16, #tpu.memory_space<vmem>>, vector<1x32x32xbf16>
    %114 = vector.shape_cast %113 : vector<1x32x32xbf16> to vector<32x32xbf16>
    %cst_70 = arith.constant 0.000000e+00 : bf16
    %115 = vector.broadcast %cst_70 : bf16 to vector<32x6xbf16>
    %116 = vector.extract_strided_slice %79 {offsets = [0, 6], sizes = [32, 10], strides = [1, 1]} : vector<32x16xbf16> to vector<32x10xbf16>
    %117 = tpu.concatenate %116, %115 in 1 : vector<32x10xbf16>, vector<32x6xbf16> -> vector<32x16xbf16>
    %cst_71 = arith.constant dense<0.000000e+00> : vector<32x16xf32>
    %118 = tpu.matmul %114, %117, %cst_71 {dimension_numbers = #tpu.dot_dimension_numbers<[1], [0], [0], [1], [0, 0, 1, 1], [], []>} : vector<32x32xbf16>, vector<32x16xbf16>, vector<32x16xf32> -> vector<32x16xf32>
    %119 = arith.addf %112, %118 : vector<32x16xf32>
    %c6_72 = arith.constant 6 : index
    %c0_73 = arith.constant 0 : index
    %c0_74 = arith.constant 0 : index
    %120 = vector.load %arg4[%c6_72, %c0_73, %c0_74] : memref<9x32x32xbf16, #tpu.memory_space<vmem>>, vector<1x32x32xbf16>
    %121 = vector.shape_cast %120 : vector<1x32x32xbf16> to vector<32x32xbf16>
    %cst_75 = arith.constant 0.000000e+00 : bf16
    %122 = vector.broadcast %cst_75 : bf16 to vector<32x8xbf16>
    %123 = vector.extract_strided_slice %79 {offsets = [0, 8], sizes = [32, 8], strides = [1, 1]} : vector<32x16xbf16> to vector<32x8xbf16>
    %124 = tpu.concatenate %123, %122 in 1 : vector<32x8xbf16>, vector<32x8xbf16> -> vector<32x16xbf16>
    %cst_76 = arith.constant dense<0.000000e+00> : vector<32x16xf32>
    %125 = tpu.matmul %121, %124, %cst_76 {dimension_numbers = #tpu.dot_dimension_numbers<[1], [0], [0], [1], [0, 0, 1, 1], [], []>} : vector<32x32xbf16>, vector<32x16xbf16>, vector<32x16xf32> -> vector<32x16xf32>
    %126 = arith.addf %119, %125 : vector<32x16xf32>
    %c7_77 = arith.constant 7 : index
    %c0_78 = arith.constant 0 : index
    %c0_79 = arith.constant 0 : index
    %127 = vector.load %arg4[%c7_77, %c0_78, %c0_79] : memref<9x32x32xbf16, #tpu.memory_space<vmem>>, vector<1x32x32xbf16>
    %128 = vector.shape_cast %127 : vector<1x32x32xbf16> to vector<32x32xbf16>
    %cst_80 = arith.constant 0.000000e+00 : bf16
    %129 = vector.broadcast %cst_80 : bf16 to vector<32x9xbf16>
    %130 = vector.extract_strided_slice %79 {offsets = [0, 9], sizes = [32, 7], strides = [1, 1]} : vector<32x16xbf16> to vector<32x7xbf16>
    %131 = tpu.concatenate %130, %129 in 1 : vector<32x7xbf16>, vector<32x9xbf16> -> vector<32x16xbf16>
    %cst_81 = arith.constant dense<0.000000e+00> : vector<32x16xf32>
    %132 = tpu.matmul %128, %131, %cst_81 {dimension_numbers = #tpu.dot_dimension_numbers<[1], [0], [0], [1], [0, 0, 1, 1], [], []>} : vector<32x32xbf16>, vector<32x16xbf16>, vector<32x16xf32> -> vector<32x16xf32>
    %133 = arith.addf %126, %132 : vector<32x16xf32>
    %c8_82 = arith.constant 8 : index
    %c0_83 = arith.constant 0 : index
    %c0_84 = arith.constant 0 : index
    %134 = vector.load %arg4[%c8_82, %c0_83, %c0_84] : memref<9x32x32xbf16, #tpu.memory_space<vmem>>, vector<1x32x32xbf16>
    %135 = vector.shape_cast %134 : vector<1x32x32xbf16> to vector<32x32xbf16>
    %cst_85 = arith.constant 0.000000e+00 : bf16
    %136 = vector.broadcast %cst_85 : bf16 to vector<32x10xbf16>
    %137 = vector.extract_strided_slice %79 {offsets = [0, 10], sizes = [32, 6], strides = [1, 1]} : vector<32x16xbf16> to vector<32x6xbf16>
    %138 = tpu.concatenate %137, %136 in 1 : vector<32x6xbf16>, vector<32x10xbf16> -> vector<32x16xbf16>
    %cst_86 = arith.constant dense<0.000000e+00> : vector<32x16xf32>
    %139 = tpu.matmul %135, %138, %cst_86 {dimension_numbers = #tpu.dot_dimension_numbers<[1], [0], [0], [1], [0, 0, 1, 1], [], []>} : vector<32x32xbf16>, vector<32x16xbf16>, vector<32x16xf32> -> vector<32x16xf32>
    %140 = arith.addf %133, %139 : vector<32x16xf32>
    %c0_87 = arith.constant 0 : index
    %c0_88 = arith.constant 0 : index
    %141 = vector.load %arg5[%c0_87, %c0_88] : memref<32x1xf32, #tpu.memory_space<vmem>>, vector<32x1xf32>
    %142 = vector.broadcast %141 : vector<32x1xf32> to vector<32x16xf32>
    %143 = arith.addf %140, %142 : vector<32x16xf32>
    %cst_89 = arith.constant 0.000000e+00 : f32
    %144 = vector.broadcast %cst_89 : f32 to vector<32x16xf32>
    %145 = arith.cmpf oge, %143, %144 : vector<32x16xf32>
    %cst_90 = arith.constant 1.000000e-01 : f32
    %146 = vector.broadcast %cst_90 : f32 to vector<32x16xf32>
    %147 = arith.mulf %146, %143 : vector<32x16xf32>
    %148 = arith.select %145, %143, %147 : vector<32x16xi1>, vector<32x16xf32>
    %149 = vector.shape_cast %148 : vector<32x16xf32> to vector<32x4x4xf32>
    %150 = vector.extract_strided_slice %149 {offsets = [0, 0, 0], sizes = [32, 2, 2], strides = [1, 1, 1]} : vector<32x4x4xf32> to vector<32x2x2xf32>
    %151 = vector.shape_cast %150 : vector<32x2x2xf32> to vector<32x4xf32>
    %152 = arith.truncf %151 : vector<32x4xf32> to vector<32x4xbf16>
    %c0_91 = arith.constant 0 : index
    %c0_92 = arith.constant 0 : index
    %c0_93 = arith.constant 0 : index
    %153 = vector.load %arg6[%c0_91, %c0_92, %c0_93] : memref<1x32x4xbf16, #tpu.memory_space<vmem>>, vector<1x32x4xbf16>
    %154 = vector.shape_cast %153 : vector<1x32x4xbf16> to vector<32x4xbf16>
    %155 = vector.shape_cast %152 : vector<32x4xbf16> to vector<1x32x4xbf16>
    tpu.vector_store %arg6[%c0_91, %c0_92, %c0_93], %155 {strides = array<i32>} : memref<1x32x4xbf16, #tpu.memory_space<vmem>>, vector<1x32x4xbf16>,
    return
  }
  func.func @transform_0(%arg0: i32) -> (i32, i32, i32, i32) {
    %c0_i32 = arith.constant 0 : i32
    %c0_i32_0 = arith.constant 0 : i32
    %c0_i32_1 = arith.constant 0 : i32
    %c0_i32_2 = arith.constant 0 : i32
    return %arg0, %c0_i32, %c0_i32_0, %c0_i32_1 : i32, i32, i32, i32
  }
  func.func @transform_1(%arg0: i32) -> (i32, i32, i32) {
    %c0_i32 = arith.constant 0 : i32
    %c0_i32_0 = arith.constant 0 : i32
    %c0_i32_1 = arith.constant 0 : i32
    %c0_i32_2 = arith.constant 0 : i32
    return %c0_i32, %c0_i32_0, %c0_i32_1 : i32, i32, i32
  }
  func.func @transform_2(%arg0: i32) -> (i32, i32) {
    %c0_i32 = arith.constant 0 : i32
    %c0_i32_0 = arith.constant 0 : i32
    %c0_i32_1 = arith.constant 0 : i32
    return %c0_i32, %c0_i32_0 : i32, i32
  }
  func.func @transform_3(%arg0: i32) -> (i32, i32, i32) {
    %c0_i32 = arith.constant 0 : i32
    %c0_i32_0 = arith.constant 0 : i32
    %c0_i32_1 = arith.constant 0 : i32
    %c0_i32_2 = arith.constant 0 : i32
    return %c0_i32, %c0_i32_0, %c0_i32_1 : i32, i32, i32
  }
  func.func @transform_4(%arg0: i32) -> (i32, i32) {
    %c0_i32 = arith.constant 0 : i32
    %c0_i32_0 = arith.constant 0 : i32
    %c0_i32_1 = arith.constant 0 : i32
    return %c0_i32, %c0_i32_0 : i32, i32
  }
  func.func @transform_5(%arg0: i32) -> (i32, i32, i32) {
    %c0_i32 = arith.constant 0 : i32
    %c0_i32_0 = arith.constant 0 : i32
    %c0_i32_1 = arith.constant 0 : i32
    return %arg0, %c0_i32, %c0_i32_0 : i32, i32, i32
  }
}

</mosaic_0001>

<bundles_post_ra>
// kernel: feature_extractor_forward.3
= control target key start
LH: loop header
LB: loop body
LE: loop exit
PB: predicated region body
PF: predicated region fallthrough
CT: control target
= control target key end

     0   :  { %s2032_s18 = smov 0   ;;  %s2569_s0 = inlined_call_operand.vmem [shape: bf16[2,16,9,9], index: 0, kind: input, shape index: {}]   ;;  %s2570_s1 = inlined_call_operand.vmem [shape: bf16[9,8,4], index: 1, kind: input, shape index: {}]   ;;  %s2571_s2 = inlined_call_operand.vmem [shape: f32[8,1], index: 2, kind: input, shape index: {}]   ;;  %s2572_s3 = inlined_call_operand.vmem [shape: bf16[9,8,8], index: 3, kind: input, shape index: {}]   ;;  %s2573_s4 = inlined_call_operand.vmem [shape: f32[8,1], index: 4, kind: input, shape index: {}]   ;;  %s2574_s5 = inlined_call_operand.vmem [shape: bf16[2,8,64], index: 5, kind: output, shape index: {}]  }
   0x1 LB: > { %s1845_s19 = sadd.s32 4294967295, %s1953_s18   ;;  %p1849_p0 = scmp.ge.s32.totalorder %s1953_s18, 1  ;;  %s1953_s18 = sphi %s2032_s18, %s15_s18  }
   0x2   : > { %p187_p1 = scmp.lt.s32.totalorder %s1953_s18, 3 }
   0x4   : > { %p188_p2 = pnand %p1849_p0, %p187_p1 }
   0x5   : > { %p214_p3 = scmp.lt.s32.totalorder (!%p188_p2), %s1845_s19, 1  ;;  %s1957_s24 = smov (!%p188_p2), 9  }
   0x6   : > { %191 = sbr.rel (%p188_p2) target bundleno = 1452 (0x5ac), region = 40  ;;  %s1958_s25 = smov (!%p188_p2), 36  }
   0x7   : > { %s1959_s26 = smov (!%p188_p2), 18   ;;  %s1960_s27 = smov (!%p188_p2), 27  }
   0x8   : > { %s1961_s28 = smov (!%p188_p2), 63   ;;  %s1962_s29 = smov (!%p188_p2), 45  }
   0x9   : > { %s1963_s30 = smov (!%p188_p2), 72   ;;  %s1964_s6 = smov (!%p188_p2), 54  }
   0xa   : > { %s1965_s7 = smov (!%p188_p2), 118   ;;  %s1966_s8 = smov (!%p188_p2), 119  }
   0xb   : > { %s2580_s19 = smov (!%p214_p3, %s1845_s19), 1  ;;  %v1955_v0 = vmov 1983009808   ;;  %v1956_v2 = vmov 1934713408   ;;  %vm257_vm0 = vcmask 1047556  }
   0xc   : > { %s1889_s20 = sshll.u32 %s2580_s19, 7  ;;  %v260_v1 = vunpack.c.l.s4 %v1955_v0  ;;  %v274_v3 = vunpack.c.l.s4 %v1956_v2  ;;  %vm538_vm1 = vcmask 72704   ;;  %vm542_vm2 = vcmask 146432   ;;  %s1967_s9 = smov 127  }
   0xd   : > { %s2046_s23 = scalar_lea.vmem %s2569_s0, %s1889_s20  ;;  %vm545_vm3 = vcmask 220160   ;;  %vm548_vm4 = vcmask 293888   ;;  %vm551_vm5 = vcmask 367616   ;;  %vm554_vm6 = vcmask 441344   ;;  %s1969_s10 = smov 110  }
   0xe   : > { %v232_v4 = vld [vmem:[%s2046_s23 + $0x20] sm:$0xf]  ;;  %v234_v6 = vld [vmem:[%s2046_s23 + $0x28] sm:$0xf]  ;;  %v236_v7 = vld [vmem:[%s2046_s23 + $0x30] sm:$0xf]  ;;  %v2062_v18 = vunpack.c.0.s8 %v260_v1  ;;  %v2064_v19 = vunpack.c.0.s8 %v274_v3 }
   0xf   : > { %v224_v5 = vld [vmem:[%s2046_s23] sm:$0xf]  ;;  %v238_v8 = vld [vmem:[%s2046_s23 + $0x38] sm:$0xf]  ;;  %v226_v9 = vld [vmem:[%s2046_s23 + $0x8] sm:$0xf] }
  0x10   : > { %v228_v10 = vld [vmem:[%s2046_s23 + $0x10] sm:$0xf]  ;;  %v230_v11 = vld [vmem:[%s2046_s23 + $0x18] sm:$0xf]  ;;  %v240_v12 = vld [vmem:[%s2046_s23 + $0x40] sm:$0xf] }
  0x11   : > { %v242_v13 = vld [vmem:[%s2046_s23 + $0x48] sm:$0xf]  ;;  %v244_v14 = vld [vmem:[%s2046_s23 + $0x50] sm:$0xf]  ;;  %v248_v15 = vld [vmem:[%s2046_s23 + $0x60] sm:$0xf] }
  0x12   : > { %v250_v16 = vld [vmem:[%s2046_s23 + $0x68] sm:$0xf]  ;;  %v252_v17 = vld [vmem:[%s2046_s23 + $0x70] sm:$0xf]  ;;  %v254_v20 = vld [vmem:[%s2046_s23 + $0x78] sm:$0xf] }
  0x13   : > { %v256_v21 = vrot.slane %v232_v4, 4  ;;  %v263_v22 = vrot.slane %v236_v7, 4  ;;  %v285_v23 = vrot.slane %v234_v6, 4  ;;  %v291_v24 = vrot.slane %v238_v8, 4  ;;  %v246_v25 = vld [vmem:[%s2046_s23 + $0x58] sm:$0xf] }
  0x14   : > { %v313_v26 = vrot.slane %v248_v15, 4  ;;  %v319_v27 = vrot.slane %v252_v17, 4  ;;  %v341_v28 = vrot.slane %v250_v16, 4  ;;  %v347_v29 = vrot.slane %v254_v20, 4  ;;  %s1970_s11 = smov 92   ;;  %s1971_s12 = smov 101  }
  0x15   : > { %v258_v30 = vsel %vm257_vm0, %v256_v21, %v224_v5  ;;  %v264_v31 = vsel %vm257_vm0, %v263_v22, %v228_v10  ;;  %v286_v32 = vsel %vm257_vm0, %v285_v23, %v226_v9  ;;  %v292_v33 = vsel %vm257_vm0, %v291_v24, %v230_v11  ;;  %s1972_s13 = smov 74   ;;  %s1973_s14 = smov 83  }
  0x16   : > { %v262_v34 = vperm.slane %v258_v30, %v2062_v18  ;;  %v268_v35 = vperm.slane %v264_v31, %v2062_v18  ;;  %v290_v36 = vperm.slane %v286_v32, %v2062_v18  ;;  %v296_v37 = vperm.slane %v292_v33, %v2062_v18  ;;  %s1974_s15 = smov 65   ;;  %s1976_s16 = smov 40  }
  0x17   : > { %v314_v38 = vsel %vm257_vm0, %v313_v26, %v240_v12  ;;  %v320_v39 = vsel %vm257_vm0, %v319_v27, %v244_v14  ;;  %v342_v40 = vsel %vm257_vm0, %v341_v28, %v242_v13  ;;  %v348_v41 = vsel %vm257_vm0, %v347_v29, %v246_v25  ;;  %s1977_s17 = smov 50   ;;  %s1978_s20 = smov 60  }
  0x18   : > { %v269_v42 = vrot.slane %v268_v35, 4  ;;  %v297_v43 = vrot.slane %v296_v37, 4  ;;  %v318_v44 = vperm.slane %v314_v38, %v2062_v18  ;;  %v324_v45 = vperm.slane %v320_v39, %v2062_v18  ;;  %s1979_s21 = smov 10   ;;  %s1980_s22 = smov 20  }
  0x19   : > { %v346_v46 = vperm.slane %v342_v40, %v2062_v18  ;;  %v352_v47 = vperm.slane %v348_v41, %v2062_v18  ;;  %v271_v48 = vrot.slane %v262_v34, 4  ;;  %v299_v49 = vrot.slane %v290_v36, 4  ;;  %v225_v40 = vld [vmem:[%s2046_s23 + $0x4] sm:$0x1] }
  0x1a   : > { %v270_v50 = vsel %vm257_vm0, %v269_v42, %v262_v34  ;;  %v298_v51 = vsel %vm257_vm0, %v297_v43, %v290_v36  ;;  %v325_v52 = vrot.slane %v324_v45, 4  ;;  %v327_v53 = vrot.slane %v318_v44, 4  ;;  %v233_v41 = vld [vmem:[%s2046_s23 + $0x24] sm:$0x1] }
  0x1b   : > { %v2087_v54 = vperm.slane %v270_v50, %v2064_v19  ;;  %v2090_v55 = vperm.slane %v298_v51, %v2064_v19  ;;  %v353_v56 = vrot.slane %v352_v47, 4  ;;  %v272_v57 = vsel %vm257_vm0, %v268_v35, %v271_v48 }
  0x1c   : > { %v326_v58 = vsel %vm257_vm0, %v325_v52, %v318_v44  ;;  %v2095_v59 = vperm.slane %v272_v57, %v2064_v19  ;;  %v300_v60 = vsel %vm257_vm0, %v296_v37, %v299_v49  ;;  %v328_v61 = vsel %vm257_vm0, %v324_v45, %v327_v53  ;;  %v227_v52 = vld [vmem:[%s2046_s23 + $0xc] sm:$0x1] }
  0x1d   : > { %v2100_v62 = vperm.slane %v326_v58, %v2064_v19  ;;  %v354_v63 = vsel %vm257_vm0, %v353_v56, %v346_v46  ;;  %v444_v0 = vshrl.u32 %v2087_v54, 16  ;;  %v445_v1 = vshrl.u32 %v2090_v55, 16  ;;  %v235_v53 = vld [vmem:[%s2046_s23 + $0x2c] sm:$0x1] }
  0x1e   : > { %v2106_v2 = vperm.slane %v354_v63, %v2064_v19  ;;  %v2109_v3 = vperm.slane %v300_v60, %v2064_v19  ;;  %v2112_v4 = vperm.slane %v328_v61, %v2064_v19  ;;  %v355_v5 = vrot.slane %v346_v46, 4  ;;  %v229_v46 = vld [vmem:[%s2046_s23 + $0x14] sm:$0x1]  ;;  %v239_v60 = vld [vmem:[%s2046_s23 + $0x3c] sm:$0x1] }
  0x1f   : > { %v446_v6 = vpack.i.b16 %v445_v1, %v444_v0  ;;  %v471_v7 = vshrl.u32 %v2100_v62, 16  ;;  %v281_v8 = vrot.slane %v2087_v54, 4  ;;  %v309_v9 = vrot.slane %v2090_v55, 4 }
  0x20   : > { %v472_v10 = vshrl.u32 %v2106_v2, 16  ;;  %v356_v11 = vsel %vm257_vm0, %v352_v47, %v355_v5  ;;  %v455_v12 = vpack.i.b16 %v2109_v3, %v2095_v59  ;;  %v337_v13 = vrot.slane %v2100_v62, 4  ;;  %v237_v47 = vld [vmem:[%s2046_s23 + $0x34] sm:$0x1]  ;;  %v231_v5 = vld [vmem:[%s2046_s23 + $0x1c] sm:$0x1] }
  0x21   : > { %v498_v14 = vunpack.c.l.b16 %v446_v6  ;;  %v2123_v15 = vperm.slane %v356_v11, %v2064_v19  ;;  %v282_v16 = vsel %vm257_vm0, 0, %v281_v8  ;;  %v310_v17 = vsel %vm257_vm0, 0, %v309_v9  ;;  %v249_v9 = vld [vmem:[%s2046_s23 + $0x64] sm:$0x1] }
  0x22   : > { %v473_v20 = vpack.i.b16 %v472_v10, %v471_v7  ;;  %v513_v21 = vunpack.c.l.b16 %v455_v12  ;;  %v338_v22 = vsel %vm257_vm0, 0, %v337_v13  ;;  %v365_v23 = vrot.slane %v2106_v2, 4  ;;  %v253_v10 = vld [vmem:[%s2046_s23 + $0x74] sm:$0x1] }
  0x23   : > { %v482_v24 = vpack.i.b16 %v2123_v15, %v2112_v4  ;;  %v449_v25 = vpack.i.b16 %v310_v17, %v282_v16  ;;  %v450_v26 = vshrl.u32 %v282_v16, 16  ;;  %v451_v27 = vshrl.u32 %v310_v17, 16 }
  0x24   : > { %v499_v28 = vunpack.c.l.b16 %v473_v20  ;;  %v366_v29 = vsel %vm257_vm0, 0, %v365_v23  ;;  %v477_v30 = vshrl.u32 %v338_v22, 16  ;;  %v283_v31 = vrot.slane %v2095_v59, 4  ;;  %v241_v23 = vld [vmem:[%s2046_s23 + $0x44] sm:$0x1] }
  0x25   : > { %v514_v32 = vunpack.c.l.b16 %v482_v24  ;;  %v476_v33 = vpack.i.b16 %v366_v29, %v338_v22  ;;  %v2133_v34 = vunpack.c.l.b16 %v449_v25  ;;  %v452_v35 = vpack.i.b16 %v451_v27, %v450_v26  ;;  %v245_v24 = vld [vmem:[%s2046_s23 + $0x54] sm:$0x1]  ;;  %v255_v25 = vld [vmem:[%s2046_s23 + $0x7c] sm:$0x1] }
  0x26   : > { %v500_v36 = vpack.c.b16 %v499_v28, %v498_v14  ;;  %v478_v37 = vshrl.u32 %v366_v29, 16  ;;  %v2136_v38 = vsel %vm257_vm0, 0, %v283_v31  ;;  %v311_v39 = vrot.slane %v2109_v3, 4  ;;  %v251_v14 = vld [vmem:[%s2046_s23 + $0x6c] sm:$0x1] }
  0x27   : > { %v515_v42 = vpack.c.b16 %v514_v32, %v513_v21  ;;  %v504_v43 = vunpack.c.l.b16 %v476_v33  ;;  %v508_v44 = vunpack.c.l.b16 %v452_v35  ;;  %v339_v45 = vrot.slane %v2112_v4, 4  ;;  %v243_v33 = vld [vmem:[%s2046_s23 + $0x4c] sm:$0x1] }
  0x28   : > { %501 = vrot.lane.b32.xlu0 %v500_v36, %s1957_s24  ;;  %v479_v48 = vpack.i.b16 %v478_v37, %v477_v30  ;;  %v2145_v49 = vsel %vm257_vm0, 0, %v311_v39  ;;  %v367_v50 = vrot.slane %v2123_v15, 4  ;;  %v462_v51 = vshrl.u32 %v2136_v38, 16  ;;  %s1982_s24 = smov 70  }
  0x29   : > { %516 = vrot.lane.b32.xlu1 %v515_v42, %s1958_s25  ;;  %v505_v56 = vpack.c.b16 %v504_v43, %v2133_v34  ;;  %v2153_v57 = vsel %vm257_vm0, 0, %v339_v45  ;;  %v463_v58 = vshrl.u32 %v2145_v49, 16  ;;  %v369_v61 = vrot.slane %v233_v41, 4  ;;  %v247_v34 = vld [vmem:[%s2046_s23 + $0x5c] sm:$0x1]  ;;  %s1981_s23 = smov 30  }
  0x2a   : > { %v509_v63 = vunpack.c.l.b16 %v479_v48  ;;  %v2158_v0 = vsel %vm257_vm0, 0, %v367_v50  ;;  %v489_v1 = vshrl.u32 %v2153_v57, 16  ;;  %v375_v6 = vrot.slane %v237_v47, 4  ;;  %s1983_s25 = smov 80  }
  0x2b   : > { %v464_v7 = vpack.i.b16 %v463_v58, %v462_v51  ;;  %v490_v8 = vshrl.u32 %v2158_v0, 16  ;;  %v370_v11 = vsel %vm257_vm0, %v369_v61, %v225_v40  ;;  %v387_v12 = vrot.slane %v235_v53, 4 }
  0x2c   : > { %v510_v13 = vpack.c.b16 %v509_v63, %v508_v44  ;;  %v374_v16 = vperm.slane %v370_v11, %v2062_v18  ;;  %v376_v17 = vsel %vm257_vm0, %v375_v6, %v229_v46  ;;  %v393_v20 = vrot.slane %v239_v60, 4 }
  0x2d   : > { %v491_v21 = vpack.i.b16 %v490_v8, %v489_v1  ;;  %v528_v22 = vunpack.c.l.b16 %v464_v7  ;;  %v380_v26 = vperm.slane %v376_v17, %v2062_v18  ;;  %v388_v27 = vsel %vm257_vm0, %v387_v12, %v227_v52 }
  0x2e   : > { %v392_v28 = vperm.slane %v388_v27, %v2062_v18  ;;  %v394_v29 = vsel %vm257_vm0, %v393_v20, %v231_v5  ;;  %v405_v30 = vrot.slane %v249_v9, 4  ;;  %v411_v31 = vrot.slane %v253_v10, 4 }
  0x2f   : > { %v529_v32 = vunpack.c.l.b16 %v491_v21  ;;  %v381_v35 = vrot.slane %v380_v26, 4  ;;  %v398_v36 = vperm.slane %v394_v29, %v2062_v18  ;;  %v423_v37 = vrot.slane %v251_v14, 4 }
  0x30   : > { %506 = vrot.lane.b32.xlu0 %v505_v56, %s1959_s26  ;;  %v406_v39 = vsel %vm257_vm0, %v405_v30, %v241_v23  ;;  %v412_v40 = vsel %vm257_vm0, %v411_v31, %v245_v24  ;;  %v429_v41 = vrot.slane %v255_v25, 4  ;;  %v456_v42 = vshrl.u32 %v2095_v59, 16  ;;  %s1984_s26 = smov 90  }
  0x31   : > { %511 = vrot.lane.b32.xlu1 %v510_v13, %s1960_s27  ;;  %v530_v43 = vpack.c.b16 %v529_v32, %v528_v22  ;;  %v382_v44 = vsel %vm257_vm0, %v381_v35, %v374_v16  ;;  %v399_v45 = vrot.slane %v398_v36, 4  ;;  %v410_v46 = vperm.slane %v406_v39, %v2062_v18  ;;  %s1985_s27 = smov 126  }
  0x32   : > { %v386_v47 = vperm.slane %v382_v44, %v2064_v19  ;;  %v416_v48 = vperm.slane %v412_v40, %v2062_v18  ;;  %v424_v50 = vsel %vm257_vm0, %v423_v37, %v243_v33  ;;  %v430_v51 = vsel %vm257_vm0, %v429_v41, %v247_v34 }
  0x33   : > { %v400_v52 = vsel %vm257_vm0, %v399_v45, %v392_v28  ;;  %v428_v59 = vperm.slane %v424_v50, %v2062_v18  ;;  %v434_v53 = vperm.slane %v430_v51, %v2062_v18  ;;  %v457_v56 = vshrl.u32 %v2109_v3, 16  ;;  %v1853_v45 = vld [vmem:[%s2570_s1 + $0x4] sm:$0xf] }
  0x34   : > { %v404_v58 = vperm.slane %v400_v52, %v2064_v19  ;;  %v417_v60 = vrot.slane %v416_v48, 4  ;;  %v483_v61 = vshrl.u32 %v2112_v4, 16  ;;  %v484_v63 = vshrl.u32 %v2123_v15, 16  ;;  %v1860_v48 = vld [vmem:[%s2570_s1 + $0x10] sm:$0xf]  ;;  %v779_v50 = vld [vmem:[%s2571_s2] sm:$0xff] }
  0x35   : > { %v435_v1 = vrot.slane %v434_v53, 4  ;;  %v458_v5 = vpack.i.b16 %v457_v56, %v456_v42  ;;  %v470_v9 = vpack.i.b16 %v2106_v2, %v2100_v62  ;;  %v461_v15 = vpack.i.b16 %v2145_v49, %v2136_v38 }
  0x36   : > { %v418_v6 = vsel %vm257_vm0, %v417_v60, %v410_v46  ;;  %v467_v7 = vpack.i.b16 %v404_v58, %v386_v47  ;;  %v485_v8 = vpack.i.b16 %v484_v63, %v483_v61  ;;  %v488_v13 = vpack.i.b16 %v2158_v0, %v2153_v57  ;;  %v563_v46 = vld [vmem:[%s2570_s1] sm:$0xf]  ;;  %v1858_v47 = vld [vmem:[%s2570_s1 + $0xc] sm:$0xf]  ;;  %v1856_v58 = vld [vmem:[%s2570_s1 + $0x8] sm:$0xf] }
  0x37   : > { %v422_v10 = vperm.slane %v418_v6, %v2064_v19  ;;  %v436_v3 = vsel %vm257_vm0, %v435_v1, %v428_v59  ;;  %v518_v11 = vunpack.c.l.b16 %v458_v5  ;;  %v523_v2 = vunpack.c.l.b16 %v461_v15  ;;  %v1862_v61 = vld [vmem:[%s2570_s1 + $0x14] sm:$0xf] }
  0x38   : > { %531 = vrot.lane.b32.xlu0 %v530_v43, %s1961_s28  ;;  %v440_v4 = vperm.slane %v436_v3, %v2064_v19  ;;  %v519_v12 = vunpack.c.l.b16 %v485_v8  ;;  %v533_v16 = vunpack.c.l.b16 %v467_v7  ;;  %v524_v20 = vunpack.c.l.b16 %v488_v13  ;;  %v1868_v3 = vld [vmem:[%s2570_s1 + $0x20] sm:$0xf]  ;;  %s1986_s28 = smov 108  }
  0x39   : > { %v443_v38 = vpack.i.b16 %v2090_v55, %v2087_v54  ;;  %v496_v49 = vunpack.c.l.b16 %v470_v9  ;;  %vm557_vm7 = vcmask 515072   ;;  %vm560_vm8 = vcmask 588800  }
  0x3a   : > { %v494_v14 = vpack.i.b16 %v440_v4, %v422_v10  ;;  %v520_v17 = vpack.c.b16 %v519_v12, %v518_v11  ;;  %v525_v22 = vpack.c.b16 %v524_v20, %v523_v2  ;;  %vm572_vm9 = vcmask 1041408   ;;  %v1864_v10 = vld [vmem:[%s2570_s1 + $0x18] sm:$0xf]  ;;  %v1866_v4 = vld [vmem:[%s2570_s1 + $0x1c] sm:$0xf] }
  0x3b   : > { %v495_v57 = vunpack.c.l.b16 %v443_v38  ;;  %vm568_vm10 = vcmask 31744   ;;  %vm609_vm11 = vcmask 654336   ;;  %v1968_v52 = vmov 0  }
  0x3c   : > { %v534_v62 = vunpack.c.l.b16 %v494_v14  ;;  %521 = vrot.lane.b32.xlu2 %v520_v17, %s1962_s29  ;;  %1946 = vset.pattern.permute.xlu0 %v1968_v52  ;;  %vm755_vm12 = vcmask 580608   ;;  %vm1020_vm14 = vcmask 1040384   ;;  %vm1021_vm15 = vsmask.f32 256  ;;  %s1987_s29 = smov 116  }
  0x3d   : > { %v497_v24 = vpack.c.b16 %v496_v49, %v495_v57  ;;  %1945 = vset.pattern.permute.xlu2 %v1968_v52 }
  0x3e   : > { %v535_v21 = vpack.c.b16 %v534_v62, %v533_v16 }
  0x40   : > { %536 = vrot.lane.b32.xlu1 %v535_v21, %s1963_s30  ;;  %s1988_s30 = smov 117  }
  0x44   : > { %526 = vrot.lane.b32.xlu2 %v525_v22, %s1964_s6 }
  0x96   : > { %v522_v26 = vpop.permute.xlu2 %521 }
  0x9a   : > { %v502_v23 = vpop.permute.xlu0 %501 }
  0x9b   : > { %v517_v0 = vpop.permute.xlu1 %516  ;;  %v541_v25 = vsel %vm538_vm1, %v497_v24, %v502_v23 }
  0x9e   : > { %v527_v54 = vpop.permute.xlu2 %526 }
  0xa2   : > { %v507_v27 = vpop.permute.xlu0 %506 }
  0xa3   : > { %v544_v28 = vsel %vm542_vm2, %v541_v25, %v507_v27  ;;  %v512_v29 = vpop.permute.xlu1 %511  ;;  %vm1031_vm2 = vcmask 1044480  }
  0xa4   : > { %v547_v30 = vsel %vm545_vm3, %v544_v28, %v512_v29  ;;  %vm1032_vm3 = vsmask.f32 4352 }
  0xa5   : > { %v550_v31 = vsel %vm548_vm4, %v547_v30, %v517_v0  ;;  %vm2307_vm4 = vmand %vm1020_vm14, %vm1021_vm15  ;;  %vm1263_vm14 = vcmask 736256   ;;  %vm1279_vm15 = vcmask 1043456  }
  0xa6   : > { %v553_v55 = vsel %vm551_vm5, %v550_v31, %v522_v26  ;;  %vm2313_vm5 = vmand %vm1031_vm2, %vm1032_vm3  ;;  %vm1275_vm2 = vcmask 64512   ;;  %vm1317_vm3 = vcmask 801792  }
  0xa7   : > { %v556_v33 = vsel %vm554_vm6, %v553_v55, %v527_v54  ;;  %vm1066_vm6 = vcmask 7168  }
  0xaa   : > { %v532_v32 = vpop.permute.xlu0 %531 }
  0xab   : > { %v559_v34 = vsel %vm557_vm7, %v556_v33, %v532_v32  ;;  %vm1243_vm7 = vcmask 162816  }
  0xb2   : > { %v537_v35 = vpop.permute.xlu1 %536 }
  0xb3   : > { %v562_v36 = vsel %vm560_vm8, %v559_v34, %v537_v35 }
  0xb4   : > { %753 = vrot.lane.b32.xlu1 %v562_v36, %s1965_s7  ;;  %704 = vrot.lane.b32.xlu0 %v562_v36, %s1966_s8  ;;  %v592_v37 = vsel %vm572_vm9, %v562_v36, 0  ;;  %v567_v39 = vrot.slane %v562_v36, 2  ;;  %v636_v40 = vrot.slane %v562_v36, 4  ;;  %v659_v41 = vrot.slane %v562_v36, 6 }
  0xb5   : > { %607 = vrot.lane.b32.xlu2 %v562_v36, %s1967_s9  ;;  %601 = vmatpush.bf16.msra.mxu1 %v592_v37 }
  0xb6   : > { %v574_v42 = vsel %vm572_vm9, %v567_v39, 0  ;;  %v641_v43 = vsel %vm572_vm9, %v636_v40, 0  ;;  %v664_v44 = vsel %vm572_vm9, %v659_v41, 0 }
  0xb7   : > { %583 = vmatpush.bf16.msra.mxu0 %v574_v42  ;;  %650 = vmatpush.bf16.msra.mxu3 %v641_v43 }
  0xb8   : > { %1855 = vmatmul.msk.bf16.vlgmr.msra.gmra.mxu1 %vm568_vm10, %v563_v46 }
  0xba   : > { %1854 = vmatmul.msk.bf16.vlgmr.msra.gmra.mxu0 %vm568_vm10, %v1853_v45  ;;  %1859 = vmatmul.msk.bf16.vlgmr.msra.gmra.mxu3 %vm568_vm10, %v1858_v47 }
  0xbb   : > { %673 = vmatpush.bf16.msrb.mxu0 %v664_v44 }
  0xbd   : > { %782 = vperm.xlu2 %1945, %v779_v50  }
  0xca   : > { %1861 = vmatmul.msk.bf16.vlgmr.msrb.gmra.mxu0 %vm568_vm10, %v1860_v48 }
 0x10f   : > { %v608_v51 = vpop.permute.xlu2 %607 }
 0x110   : > { %v612_v59 = vsel %vm609_vm11, %v608_v51, 0 }
 0x111   : > { %v683_v53 = vrot.slane %v612_v59, 4  ;;  %v618_v56 = vsel %vm572_vm9, %v612_v59, 0 }
 0x112   : > { %627 = vmatpush.bf16.msra.mxu2 %v618_v56 }
 0x113   : > { %v688_v60 = vsel %vm572_vm9, %v683_v53, 0 }
 0x114   : > { %697 = vmatpush.bf16.msrb.mxu1 %v688_v60 }
 0x115   : > { %1857 = vmatmul.msk.bf16.vlgmr.msra.gmra.mxu2 %vm568_vm10, %v1856_v58 }
 0x117   : > { %1863 = vmatmul.msk.bf16.vlgmr.msrb.gmra.mxu1 %vm568_vm10, %v1862_v61  ;;  %v783_v31 = vpop.permute.xlu2 %782 }
 0x126   : > { %v754_v63 = vpop.permute.xlu1 %753  ;;  %v705_v1 = vpop.permute.xlu0 %704 }
 0x127   : > { %v757_v5 = vsel %vm755_vm12, %v754_v63, 0  ;;  %v707_v6 = vsel %vm560_vm8, %v705_v1, 0  ;;  %vm1246_vm8 = vcmask 244736   ;;  %vm1255_vm12 = vcmask 490496  }
 0x128   : > { %v763_v7 = vsel %vm572_vm9, %v757_v5, 0  ;;  %v732_v8 = vrot.slane %v707_v6, 2  ;;  %v713_v9 = vsel %vm572_vm9, %v707_v6, 0 }
 0x129   : > { %722 = vmatpush.bf16.msrb.mxu2 %v713_v9  ;;  %772 = vmatpush.bf16.msra.mxu0 %v763_v7 }
 0x12a   : > { %v737_v11 = vsel %vm572_vm9, %v732_v8, 0  ;;  %vm1249_vm9 = vcmask 326656  }
 0x12b   : > { %746 = vmatpush.bf16.msrb.mxu3 %v737_v11 }
 0x12c   : > { %1865 = vmatmul.msk.bf16.vlgmr.msrb.gmra.mxu2 %vm568_vm10, %v1864_v10  ;;  %1869 = vmatmul.msk.bf16.vlgmr.msra.gmra.mxu0 %vm568_vm10, %v1868_v3 }
 0x12e   : > { %1867 = vmatmul.msk.bf16.vlgmr.msrb.gmra.mxu3 %vm568_vm10, %v1866_v4  ;;  %vm1252_vm10 = vcmask 408576  }
 0x135   : > { %v603_v15 = vpop.f32.mrf.mxu1 }
 0x137   : > { %v585_v12 = vpop.f32.mrf.mxu0 }
 0x138   : > { %v604_v38 = vadd.f32 %v603_v15, %v585_v12 }
 0x13d   : > { %v605_v14 = vpop.f32.mrf.mxu1  ;;  %v652_v16 = vpop.f32.mrf.mxu3 }
 0x13f   : > { %v587_v13 = vpop.f32.mrf.mxu0 }
 0x145   : > { %v654_v62 = vpop.f32.mrf.mxu3 }
 0x147   : > { %v675_v17 = vpop.f32.mrf.mxu0 }
 0x14f   : > { %v677_v2 = vpop.f32.mrf.mxu0 }
 0x194   : > { %v699_v20 = vpop.f32.mrf.mxu1 }
 0x198   : > { %v629_v21 = vpop.f32.mrf.mxu2 }
 0x199   : > { %v633_v23 = vadd.f32 %v629_v21, %v604_v38 }
 0x19b   : > { %v656_v57 = vadd.f32 %v652_v16, %v633_v23 }
 0x19c   : > { %v701_v22 = vpop.f32.mrf.mxu1 }
 0x19d   : > { %v679_v24 = vadd.f32 %v675_v17, %v656_v57 }
 0x19f   : > { %v703_v25 = vadd.f32 %v699_v20, %v679_v24 }
 0x1a0   : > { %v631_v49 = vpop.f32.mrf.mxu2 }
 0x1a9   : > { %v774_v0 = vpop.f32.mrf.mxu0 }
 0x1af   : > { %v724_v26 = vpop.f32.mrf.mxu2 }
 0x1b0   : > { %v728_v27 = vadd.f32 %v724_v26, %v703_v25 }
 0x1b1   : > { %v748_v28 = vpop.f32.mrf.mxu3  ;;  %v776_v29 = vpop.f32.mrf.mxu0 }
 0x1b2   : > { %v752_v30 = vadd.f32 %v748_v28, %v728_v27 }
 0x1b4   : > { %v778_v54 = vadd.f32 %v774_v0, %v752_v30 }
 0x1b6   : > { %v785_v55 = vadd.f32 %v783_v31, %v778_v54 }
 0x1b7   : > { %v726_v32 = vpop.f32.mrf.mxu2 }
 0x1b8   : > { %vm786_vm13 = vcmp.ge.f32.partialorder %v785_v55, 0.0  ;;  %v787_v33 = vmul.f32 0.1, %v785_v55 }
 0x1b9   : > { %v750_v34 = vpop.f32.mrf.mxu3 }
 0x1ba   : > { %v788_v35 = vsel %vm786_vm13, %v785_v55, %v787_v33  ;;  %vm1258_vm13 = vcmask 572416  }
 0x1bb   : > { %793 = vrot.lane.b32.xlu2 %v788_v35, %s1969_s10  ;;  %790 = vrot.lane.b32.xlu1 %v788_v35, %s1966_s8  ;;  %v814_v43 = vrot.slane %v788_v35, 4  ;;  %s1975_s8 = smov 1  }
 0x1bc   : > { %799 = vrot.lane.b32.xlu0 %v788_v35, %s1970_s11  ;;  %s1989_s11 = smov 106  }
 0x1c3   : > { %796 = vrot.lane.b32.xlu2 %v788_v35, %s1971_s12  ;;  %805 = vrot.lane.b32.xlu1 %v788_v35, %s1972_s13  ;;  %s1990_s12 = smov 107   ;;  %s1993_s13 = smov 78  }
 0x1c4   : > { %802 = vrot.lane.b32.xlu0 %v788_v35, %s1973_s14  ;;  %s1994_s14 = smov 68  }
 0x1cc   : > { %808 = vrot.lane.b32.xlu0 %v788_v35, %s1974_s15  ;;  %s1998_s15 = smov 24  }
 0x215   : > { %v794_v36 = vpop.permute.xlu2 %793 }
 0x216   : > { %v811_v42 = vrot.slane %v794_v36, 4  ;;  %v815_v45 = vsel %vm257_vm0, %v794_v36, %v814_v43 }
 0x217   : > { %v823_v51 = vperm.slane %v815_v45, %v2062_v18 }
 0x218   : > { %v813_v48 = vsel %vm257_vm0, %v811_v42, %v788_v35 }
 0x219   : > { %v819_v56 = vperm.slane %v813_v48, %v2062_v18  ;;  %v874_v63 = vrot.slane %v823_v51, 4 }
 0x21b   : > { %v862_v6 = vrot.slane %v819_v56, 4 }
 0x21d   : > { %v797_v39 = vpop.permute.xlu2 %796 }
 0x21e   : > { %v824_v44 = vrot.slane %v797_v39, 4 }
 0x22d   : > { %v791_v37 = vpop.permute.xlu1 %790 }
 0x22e   : > { %v800_v40 = vpop.permute.xlu0 %799  ;;  %v826_v41 = vrot.slane %v791_v37, 4  ;;  %v825_v46 = vsel %vm257_vm0, %v824_v44, %v791_v37 }
 0x22f   : > { %v831_v52 = vperm.slane %v825_v46, %v2062_v18  ;;  %v838_v58 = vrot.slane %v800_v40, 4 }
 0x230   : > { %v827_v47 = vsel %vm257_vm0, %v797_v39, %v826_v41 }
 0x231   : > { %v835_v59 = vperm.slane %v827_v47, %v2062_v18  ;;  %v860_v1 = vrot.slane %v831_v52, 4  ;;  %v863_v10 = vsel %vm257_vm0, %v831_v52, %v862_v6 }
 0x232   : > { %v871_v17 = vperm.slane %v863_v10, %v2064_v19 }
 0x233   : > { %v872_v5 = vrot.slane %v835_v59, 4  ;;  %v875_v8 = vsel %vm257_vm0, %v835_v59, %v874_v63  ;;  %v861_v11 = vsel %vm257_vm0, %v860_v1, %v819_v56 }
 0x234   : > { %v883_v13 = vperm.slane %v875_v8, %v2064_v19  ;;  %v2284_v20 = vperm.slane %v861_v11, %v2064_v19  ;;  %v914_v25 = vrot.slane %v871_v17, 4 }
 0x235   : > { %v806_v50 = vpop.permute.xlu1 %805  ;;  %v873_v4 = vsel %vm257_vm0, %v872_v5, %v823_v51 }
 0x236   : > { %v803_v53 = vpop.permute.xlu0 %802  ;;  %v836_v60 = vrot.slane %v806_v50, 4  ;;  %v839_v61 = vsel %vm257_vm0, %v806_v50, %v838_v58  ;;  %v879_v22 = vperm.slane %v873_v4, %v2064_v19  ;;  %v922_v24 = vrot.slane %v883_v13, 4 }
 0x237   : > { %v847_v9 = vperm.slane %v839_v61, %v2062_v18  ;;  %v850_v3 = vrot.slane %v803_v53, 4  ;;  %v910_v55 = vrot.slane %v2284_v20, 4 }
 0x238   : > { %v837_v7 = vsel %vm257_vm0, %v836_v60, %v800_v40  ;;  %v918_v34 = vrot.slane %v879_v22, 4 }
 0x239   : > { %v843_v12 = vperm.slane %v837_v7, %v2062_v18  ;;  %v898_v62 = vrot.slane %v847_v9, 4 }
 0x23b   : > { %v886_v38 = vrot.slane %v843_v12, 4 }
 0x23e   : > { %v809_v15 = vpop.permute.xlu0 %808 }
 0x23f   : > { %v848_v14 = vrot.slane %v809_v15, 4  ;;  %v851_v16 = vsel %vm257_vm0, %v809_v15, %v850_v3 }
 0x240   : > { %v859_v2 = vperm.slane %v851_v16, %v2062_v18 }
 0x241   : > { %v849_v21 = vsel %vm257_vm0, %v848_v14, %v803_v53 }
 0x242   : > { %v855_v49 = vperm.slane %v849_v21, %v2062_v18  ;;  %v896_v23 = vrot.slane %v859_v2, 4  ;;  %v899_v57 = vsel %vm257_vm0, %v859_v2, %v898_v62 }
 0x243   : > { %v907_v0 = vperm.slane %v899_v57, %v2064_v19 }
 0x244   : > { %v884_v26 = vrot.slane %v855_v49, 4  ;;  %v887_v27 = vsel %vm257_vm0, %v855_v49, %v886_v38  ;;  %v897_v28 = vsel %vm257_vm0, %v896_v23, %v847_v9 }
 0x245   : > { %v895_v29 = vperm.slane %v887_v27, %v2064_v19  ;;  %v903_v30 = vperm.slane %v897_v28, %v2064_v19  ;;  %v920_v31 = vrot.slane %v907_v0, 4  ;;  %v923_v54 = vsel %vm257_vm0, %v907_v0, %v922_v24 }
 0x246   : > { %v885_v32 = vsel %vm257_vm0, %v884_v26, %v843_v12  ;;  %v931_v33 = vpack.c.bf16 %v923_v54, %v923_v54 }
 0x247   : > { %v916_v35 = vrot.slane %v903_v30, 4  ;;  %v921_v36 = vsel %vm257_vm0, %v920_v31, %v883_v13  ;;  %v912_v37 = vrot.slane %v895_v29, 4  ;;  %v915_v39 = vsel %vm257_vm0, %v895_v29, %v914_v25 }
 0x248   : > { %v947_v40 = vunpack.c.l.b16 %v931_v33  ;;  %v930_v41 = vpack.c.bf16 %v921_v36, %v921_v36  ;;  %v927_v42 = vpack.c.bf16 %v915_v39, %v915_v39  ;;  %v919_v43 = vsel %vm257_vm0, %v903_v30, %v918_v34 }
 0x249   : > { %v913_v44 = vsel %vm257_vm0, %v912_v37, %v871_v17  ;;  %v917_v45 = vsel %vm257_vm0, %v916_v35, %v879_v22  ;;  %v929_v46 = vpack.c.bf16 %v919_v43, %v919_v43  ;;  %v891_v47 = vperm.slane %v885_v32, %v2064_v19 }
 0x24a   : > { %v955_v48 = vpack.c.b16 %v947_v40, %v947_v40  ;;  %v946_v50 = vunpack.c.l.b16 %v930_v41  ;;  %v926_v51 = vpack.c.bf16 %v913_v44, %v913_v44  ;;  %v928_v52 = vpack.c.bf16 %v917_v45, %v917_v45 }
 0x24b   : > { %v943_v59 = vunpack.c.l.b16 %v927_v42  ;;  %v945_v53 = vunpack.c.l.b16 %v929_v46  ;;  %v911_v61 = vsel %vm257_vm0, %v891_v47, %v910_v55  ;;  %v908_v6 = vrot.slane %v891_v47, 4 }
 0x24c   : > { %v1006_v56 = vshrl.u32 %v955_v48, 16  ;;  %v954_v58 = vpack.c.b16 %v946_v50, %v946_v50  ;;  %v942_v60 = vunpack.c.l.b16 %v926_v51  ;;  %v944_v63 = vunpack.c.l.b16 %v928_v52 }
 0x24d   : > { %v951_v1 = vpack.c.b16 %v943_v59, %v943_v59  ;;  %v953_v5 = vpack.c.b16 %v945_v53, %v945_v53  ;;  %v1009_v8 = vshll.u32 %v955_v48, 16  ;;  %v925_v15 = vpack.c.bf16 %v911_v61, %v911_v61 }
 0x24e   : > { %v1008_v7 = vrot.slane %v1006_v56, 7  ;;  %v999_v9 = vshrl.u32 %v954_v58, 16  ;;  %v950_v10 = vpack.c.b16 %v942_v60, %v942_v60  ;;  %v1002_v11 = vshll.u32 %v954_v58, 16 }
 0x24f   : > { %v952_v4 = vpack.c.b16 %v944_v63, %v944_v63  ;;  %v978_v12 = vshrl.u32 %v951_v1, 16  ;;  %v992_v62 = vshrl.u32 %v953_v5, 16  ;;  %v981_v22 = vshll.u32 %v951_v1, 16 }
 0x250   : > { %v1011_v13 = vor.u32 %v1009_v8, %v1008_v7  ;;  %v1001_v16 = vrot.slane %v999_v9, 7  ;;  %v971_v17 = vshrl.u32 %v950_v10, 16  ;;  %v974_v2 = vshll.u32 %v950_v10, 16 }
 0x251   : > { %v985_v21 = vshrl.u32 %v952_v4, 16  ;;  %v980_v57 = vrot.slane %v978_v12, 7  ;;  %v988_v25 = vshll.u32 %v952_v4, 16  ;;  %v941_v26 = vunpack.c.l.b16 %v925_v15 }
 0x252   : > { %v1030_v38 = vsel %vm2307_vm4, 0, %v1011_v13  ;;  %v1004_v49 = vor.u32 %v1002_v11, %v1001_v16  ;;  %v973_v23 = vrot.slane %v971_v17, 7  ;;  %v994_v29 = vrot.slane %v992_v62, 7 }
 0x253   : > { %v1041_v0 = vsel %vm2313_vm5, %v1030_v38, 0  ;;  %v987_v24 = vrot.slane %v985_v21, 7  ;;  %v909_v30 = vsel %vm257_vm0, %v908_v6, %v2284_v20  ;;  %v949_v55 = vpack.c.b16 %v941_v26, %v941_v26 }
 0x254   : > { %1064 = vrot.lane.b32.xlu2 %v1041_v0, %s1975_s8  ;;  %v1029_v27 = vsel %vm2307_vm4, 0, %v1004_v49  ;;  %v976_v28 = vor.u32 %v974_v2, %v973_v23  ;;  %v983_v33 = vor.u32 %v981_v22, %v980_v57  ;;  %v995_v34 = vshll.u32 %v953_v5, 16 }
 0x255   : > { %v1040_v31 = vsel %vm2313_vm5, %v1029_v27, 0  ;;  %v990_v54 = vor.u32 %v988_v25, %v987_v24  ;;  %v924_v35 = vpack.c.bf16 %v909_v30, %v909_v30  ;;  %v964_v37 = vshrl.u32 %v949_v55, 16 }
 0x256   : > { %1062 = vrot.lane.b32.xlu1 %v1040_v31, %s1975_s8  ;;  %v1025_v32 = vsel %vm2307_vm4, 0, %v976_v28  ;;  %v997_v39 = vor.u32 %v995_v34, %v994_v29  ;;  %v1026_v42 = vsel %vm2307_vm4, 0, %v983_v33  ;;  %v967_v43 = vshll.u32 %v949_v55, 16 }
 0x257   : > { %v1036_v36 = vsel %vm2313_vm5, %v1025_v32, 0  ;;  %v1027_v20 = vsel %vm2307_vm4, 0, %v990_v54  ;;  %v940_v40 = vunpack.c.l.b16 %v924_v35  ;;  %v966_v41 = vrot.slane %v964_v37, 7 }
 0x258   : > { %1054 = vrot.lane.b32.xlu0 %v1036_v36, %s1975_s8  ;;  %v1038_v45 = vsel %vm2313_vm5, %v1027_v20, 0  ;;  %v1028_v46 = vsel %vm2307_vm4, 0, %v997_v39  ;;  %v1037_v50 = vsel %vm2313_vm5, %v1026_v42, 0 }
 0x259   : > { %v948_v44 = vpack.c.b16 %v940_v40, %v940_v40  ;;  %v969_v47 = vor.u32 %v967_v43, %v966_v41  ;;  %v1039_v59 = vsel %vm2313_vm5, %v1028_v46, 0 }
 0x25b   : > { %v957_v48 = vshrl.u32 %v948_v44, 16  ;;  %v960_v52 = vshll.u32 %v948_v44, 16  ;;  %v1024_v53 = vsel %vm2307_vm4, 0, %v969_v47 }
 0x25c   : > { %1058 = vrot.lane.b32.xlu2 %v1038_v45, %s1975_s8  ;;  %v1035_v60 = vsel %vm2313_vm5, %v1024_v53, 0 }
 0x25d   : > { %v959_v51 = vrot.slane %v957_v48, 7 }
 0x25e   : > { %1056 = vrot.lane.b32.xlu1 %v1037_v50, %s1975_s8 }
 0x25f   : > { %v962_v56 = vor.u32 %v960_v52, %v959_v51 }
 0x260   : > { %1060 = vrot.lane.b32.xlu0 %v1039_v59, %s1975_s8 }
 0x261   : > { %v1023_v58 = vsel %vm2307_vm4, 0, %v962_v56  ;;  %vm1272_vm4 = vcmask 809984  }
 0x262   : > { %v1034_v61 = vsel %vm2313_vm5, %v1023_v58, 0  ;;  %vm1368_vm5 = vcmask 728064  }
 0x264   : > { %1052 = vrot.lane.b32.xlu2 %v1035_v60, %s1975_s8 }
 0x266   : > { %1050 = vrot.lane.b32.xlu1 %v1034_v61, %s1975_s8  ;;  %s1999_s8 = smov 32  }
 0x2ae   : > { %v1065_v63 = vpop.permute.xlu2 %1064 }
 0x2af   : > { %v1082_v8 = vsel %vm1066_vm6, 0, %v1065_v63 }
 0x2b0   : > { %v1097_v10 = vsel %vm538_vm1, %v1082_v8, 0 }
 0x2b1   : > { %v1157_v13 = vrot.slane %v1097_v10, 4 }
 0x2b6   : > { %v1059_v1 = vpop.permute.xlu2 %1058 }
 0x2b7   : > { %v1076_v62 = vsel %vm1066_vm6, 0, %v1059_v1 }
 0x2b8   : > { %v1091_v57 = vsel %vm538_vm1, %v1076_v62, 0 }
 0x2b9   : > { %v1099_v29 = vrot.slane %v1091_v57, 4 }
 0x2be   : > { %v1053_v11 = vpop.permute.xlu2 %1052 }
 0x2bf   : > { %v1070_v2 = vsel %vm1066_vm6, 0, %v1053_v11 }
 0x2c0   : > { %v1085_v0 = vsel %vm538_vm1, %v1070_v2, 0 }
 0x2c1   : > { %v1147_v8 = vrot.slane %v1085_v0, 4 }
 0x2c8   : > { %v1063_v5 = vpop.permute.xlu1 %1062 }
 0x2c9   : > { %v1080_v7 = vsel %vm1066_vm6, 0, %v1063_v5 }
 0x2ca   : > { %v1055_v6 = vpop.permute.xlu0 %1054  ;;  %v1095_v9 = vsel %vm538_vm1, %v1080_v7, 0 }
 0x2cb   : > { %v1072_v3 = vsel %vm1066_vm6, 0, %v1055_v6  ;;  %v1111_v12 = vrot.slane %v1095_v9, 4 }
 0x2cc   : > { %v1087_v14 = vsel %vm538_vm1, %v1072_v3, 0 }
 0x2cd   : > { %v1112_v49 = vsel %vm257_vm0, %v1111_v12, %v1087_v14  ;;  %v1113_v36 = vrot.slane %v1087_v14, 4 }
 0x2ce   : > { %v1118_v26 = vperm.slane %v1112_v49, %v2062_v18 }
 0x2cf   : > { %v1114_v46 = vsel %vm257_vm0, %v1095_v9, %v1113_v36 }
 0x2d0   : > { %v1057_v4 = vpop.permute.xlu1 %1056  ;;  %v1123_v33 = vrot.slane %v1118_v26, 4  ;;  %v1122_v60 = vperm.slane %v1114_v46, %v2062_v18 }
 0x2d1   : > { %v1074_v15 = vsel %vm1066_vm6, 0, %v1057_v4 }
 0x2d2   : > { %v1089_v16 = vsel %vm538_vm1, %v1074_v15, 0  ;;  %v1061_v17 = vpop.permute.xlu0 %1060  ;;  %v1135_v12 = vrot.slane %v1122_v60, 4 }
 0x2d3   : > { %v1078_v21 = vsel %vm1066_vm6, 0, %v1061_v17  ;;  %v1158_v22 = vsel %vm257_vm0, %v1157_v13, %v1089_v16  ;;  %v1159_v37 = vrot.slane %v1089_v16, 4 }
 0x2d4   : > { %v1093_v38 = vsel %vm538_vm1, %v1078_v21, 0  ;;  %v1164_v24 = vperm.slane %v1158_v22, %v2062_v18 }
 0x2d5   : > { %v1145_v23 = vrot.slane %v1093_v38, 4  ;;  %v1160_v47 = vsel %vm257_vm0, %v1097_v10, %v1159_v37  ;;  %v1148_v4 = vsel %vm257_vm0, %v1093_v38, %v1147_v8  ;;  %v1870_v8 = vld [vmem:[%s2572_s3 + $0x4] sm:$0xf] }
 0x2d6   : > { %v1169_v55 = vrot.slane %v1164_v24, 4  ;;  %v1168_v61 = vperm.slane %v1160_v47, %v2062_v18  ;;  %v1156_v17 = vperm.slane %v1148_v4, %v2062_v18  ;;  %v1493_v47 = vld [vmem:[%s2573_s4] sm:$0xff] }
 0x2d7   : > { %v1146_v25 = vsel %vm257_vm0, %v1145_v23, %v1085_v0 }
 0x2d8   : > { %v1152_v27 = vperm.slane %v1146_v25, %v2062_v18  ;;  %v1051_v28 = vpop.permute.xlu1 %1050  ;;  %v1181_v15 = vrot.slane %v1168_v61, 4 }
 0x2d9   : > { %v1068_v30 = vsel %vm1066_vm6, 0, %v1051_v28  ;;  %vm1471_vm6 = vcmask 637952  }
 0x2da   : > { %v1171_v31 = vrot.slane %v1152_v27, 4  ;;  %v1083_v54 = vsel %vm538_vm1, %v1068_v30, 0  ;;  %v1170_v39 = vsel %vm257_vm0, %v1169_v55, %v1152_v27  ;;  %v1182_v38 = vsel %vm257_vm0, %v1181_v15, %v1156_v17  ;;  %v1879_v15 = vld [vmem:[%s2572_s3 + $0x14] sm:$0xf] }
 0x2db   : > { %v1100_v32 = vsel %vm257_vm0, %v1099_v29, %v1083_v54  ;;  %v1101_v43 = vrot.slane %v1083_v54, 4  ;;  %v2392_v45 = vperm.slane %v1170_v39, %v2064_v19  ;;  %v1190_v0 = vperm.slane %v1182_v38, %v2064_v19  ;;  %v1883_v38 = vld [vmem:[%s2572_s3 + $0x1c] sm:$0xf] }
 0x2dc   : > { %v1106_v34 = vperm.slane %v1100_v32, %v2062_v18  ;;  %v1172_v35 = vsel %vm257_vm0, %v1164_v24, %v1171_v31  ;;  %vm1239_vm1 = vcmask 80896  }
 0x2dd   : > { %v1180_v20 = vperm.slane %v1172_v35, %v2064_v19  ;;  %v1102_v63 = vsel %vm257_vm0, %v1091_v57, %v1101_v43  ;;  %v1183_v7 = vrot.slane %v2392_v45, 4  ;;  %v1195_v13 = vshrl.u32 %v2392_v45, 16 }
 0x2de   : > { %v1124_v40 = vsel %vm257_vm0, %v1123_v33, %v1106_v34  ;;  %v1125_v41 = vrot.slane %v1106_v34, 4  ;;  %v1110_v10 = vperm.slane %v1102_v63, %v2062_v18  ;;  %v1219_v27 = vshrl.u32 %v1190_v0, 16 }
 0x2df   : > { %v2388_v42 = vperm.slane %v1124_v40, %v2064_v19  ;;  %v1185_v50 = vrot.slane %v1180_v20, 4  ;;  %v1207_v51 = vshrl.u32 %v1180_v20, 16  ;;  %v1184_v14 = vsel %vm257_vm0, 0, %v1183_v7  ;;  %v1873_v7 = vld [vmem:[%s2572_s3 + $0x8] sm:$0xf] }
 0x2e0   : > { %v1126_v44 = vsel %vm257_vm0, %v1118_v26, %v1125_v41  ;;  %v1136_v2 = vsel %vm257_vm0, %v1135_v12, %v1110_v10  ;;  %v1201_v21 = vshrl.u32 %v1184_v14, 16 }
 0x2e1   : > { %v1134_v48 = vperm.slane %v1126_v44, %v2064_v19  ;;  %v1193_v52 = vpack.i.b16 %v2392_v45, %v2388_v42  ;;  %v1137_v58 = vrot.slane %v2388_v42, 4  ;;  %v1186_v6 = vsel %vm257_vm0, 0, %v1185_v50 }
 0x2e2   : > { %v1194_v3 = vshrl.u32 %v2388_v42, 16  ;;  %v1144_v23 = vperm.slane %v1136_v2, %v2064_v19  ;;  %v1213_v24 = vshrl.u32 %v1186_v6, 16 }
 0x2e3   : > { %v1205_v59 = vpack.i.b16 %v1180_v20, %v1134_v48  ;;  %v1206_v53 = vshrl.u32 %v1134_v48, 16  ;;  %v1139_v56 = vrot.slane %v1134_v48, 4  ;;  %v1138_v11 = vsel %vm257_vm0, 0, %v1137_v58  ;;  %v1266_v48 = vld [vmem:[%s2572_s3] sm:$0xf] }
 0x2e4   : > { %v1200_v16 = vshrl.u32 %v1138_v11, 16  ;;  %v1196_v62 = vpack.i.b16 %v1195_v13, %v1194_v3  ;;  %v1199_v22 = vpack.i.b16 %v1184_v14, %v1138_v11  ;;  %v1218_v25 = vshrl.u32 %v1144_v23, 16 }
 0x2e5   : > { %1227 = vrot.lane.b32.xlu0 %v1205_v59, %s1976_s16  ;;  %v1208_v1 = vpack.i.b16 %v1207_v51, %v1206_v53  ;;  %v1140_v5 = vsel %vm257_vm0, 0, %v1139_v56  ;;  %v1217_v28 = vpack.i.b16 %v1190_v0, %v1144_v23  ;;  %v1875_v59 = vld [vmem:[%s2572_s3 + $0xc] sm:$0xf] }
 0x2e6   : > { %v1211_v9 = vpack.i.b16 %v1186_v6, %v1140_v5  ;;  %v1202_v49 = vpack.i.b16 %v1201_v21, %v1200_v16  ;;  %v1212_v57 = vshrl.u32 %v1140_v5, 16  ;;  %v1220_v29 = vpack.i.b16 %v1219_v27, %v1218_v25  ;;  %v1881_v21 = vld [vmem:[%s2572_s3 + $0x18] sm:$0xf] }
 0x2e7   : > { %1229 = vrot.lane.b32.xlu1 %v1208_v1, %s1977_s17  ;;  %s2000_s17 = smov 48  }
 0x2e8   : > { %1231 = vrot.lane.b32.xlu2 %v1211_v9, %s1978_s20  ;;  %v1214_v26 = vpack.i.b16 %v1213_v24, %v1212_v57  ;;  %s2001_s20 = smov 56  }
 0x2ed   : > { %1221 = vrot.lane.b32.xlu0 %v1196_v62, %s1979_s21 }
 0x2ef   : > { %1223 = vrot.lane.b32.xlu1 %v1199_v22, %s1980_s22  ;;  %v1877_v22 = vld [vmem:[%s2572_s3 + $0x10] sm:$0xf] }
 0x2f0   : > { %1225 = vrot.lane.b32.xlu2 %v1202_v49, %s1981_s23  ;;  %v1885_v49 = vld [vmem:[%s2572_s3 + $0x20] sm:$0xf] }
 0x2f5   : > { %1233 = vrot.lane.b32.xlu0 %v1214_v26, %s1982_s24 }
 0x2f7   : > { %1235 = vrot.lane.b32.xlu1 %v1217_v28, %s1983_s25 }
 0x2f8   : > { %1237 = vrot.lane.b32.xlu2 %v1220_v29, %s1984_s26 }
 0x342   : > { %v1232_v30 = vpop.permute.xlu2 %1231 }
 0x34a   : > { %v1226_v32 = vpop.permute.xlu2 %1225 }
 0x352   : > { %v1238_v44 = vpop.permute.xlu2 %1237 }
 0x357   : > { %v1228_v31 = vpop.permute.xlu0 %1227 }
 0x359   : > { %v1230_v54 = vpop.permute.xlu1 %1229 }
 0x35f   : > { %v1222_v55 = vpop.permute.xlu0 %1221 }
 0x360   : > { %v1242_v33 = vsel %vm1239_vm1, %v1193_v52, %v1222_v55  ;;  %vm1445_vm1 = vcmask 646144  }
 0x361   : > { %v1224_v34 = vpop.permute.xlu1 %1223 }
 0x362   : > { %v1245_v35 = vsel %vm1243_vm7, %v1242_v33, %v1224_v34 }
 0x363   : > { %v1248_v36 = vsel %vm1246_vm8, %v1245_v35, %v1226_v32  ;;  %vm1778_vm8 = vcmask 130048  }
 0x364   : > { %v1251_v37 = vsel %vm1249_vm9, %v1248_v36, %v1228_v31 }
 0x365   : > { %v1254_v20 = vsel %vm1252_vm10, %v1251_v37, %v1230_v54  ;;  %vm1780_vm10 = vcmask 195584  }
 0x366   : > { %v1257_v39 = vsel %vm1255_vm12, %v1254_v20, %v1232_v30  ;;  %vm1782_vm12 = vcmask 261120  }
 0x367   : > { %v1234_v40 = vpop.permute.xlu0 %1233 }
 0x368   : > { %v1260_v41 = vsel %vm1258_vm13, %v1257_v39, %v1234_v40  ;;  %vm1785_vm13 = vcmask 392192  }
 0x369   : > { %v1236_v43 = vpop.permute.xlu1 %1235 }
 0x36a   : > { %v1262_v42 = vsel %vm609_vm11, %v1260_v41, %v1236_v43 }
 0x36b   : > { %v1265_v45 = vsel %vm1263_vm14, %v1262_v42, %v1238_v44 }
 0x36c   : > { %1341 = vrot.lane.b32.xlu2 %v1265_v45, %s1965_s7  ;;  %1315 = vrot.lane.b32.xlu1 %v1265_v45, %s1985_s27  ;;  %v1298_v46 = vsel %vm1279_vm15, %v1265_v45, 0 }
 0x36d   : > { %1270 = vrot.lane.b32.xlu0 %v1265_v45, %s1967_s9  ;;  %1307 = vmatpush.bf16.msra.mxu2 %v1298_v46  ;;  %s1995_s9 = smov 58  }
 0x370   : > { %1872 = vmatmul.msk.bf16.vlgmr.msra.gmra.mxu2 %vm1275_vm2, %v1266_v48 }
 0x374   : > { %1418 = vrot.lane.b32.xlu2 %v1265_v45, %s1986_s28  ;;  %1392 = vrot.lane.b32.xlu1 %v1265_v45, %s1987_s29 }
 0x375   : > { %1366 = vrot.lane.b32.xlu0 %v1265_v45, %s1988_s30 }
 0x37c   : > { %1496 = vperm.xlu2 %1945, %v1493_v47   ;;  %1469 = vrot.lane.b32.xlu1 %v1265_v45, %s1989_s11  ;;  %s1991_s11 = smov 98  }
 0x37d   : > { %1443 = vrot.lane.b32.xlu0 %v1265_v45, %s1990_s12  ;;  %s1992_s12 = smov 88  }
 0x3c6   : > { %v1342_v50 = vpop.permute.xlu2 %1341 }
 0x3c7   : > { %v1344_v51 = vsel %vm1263_vm14, %v1342_v50, 0  ;;  %vm1790_vm14 = vcmask 519168  }
 0x3c8   : > { %v1348_v52 = vsel %vm1279_vm15, %v1344_v51, 0 }
 0x3c9   : > { %1357 = vmatpush.bf16.msrb.mxu0 %v1348_v52 }
 0x3cc   : > { %1876 = vmatmul.msk.bf16.vlgmr.msrb.gmra.mxu0 %vm1275_vm2, %v1875_v59 }
 0x3ce   : > { %v1419_v53 = vpop.permute.xlu2 %1418 }
 0x3cf   : > { %v1421_v56 = vsel %vm609_vm11, %v1419_v53, 0  ;;  %vm1394_vm11 = vcmask 719872  }
 0x3d0   : > { %v1425_v5 = vsel %vm1279_vm15, %v1421_v56, 0 }
 0x3d6   : > { %v1497_v42 = vpop.permute.xlu2 %1496 }
 0x3de   : > { %v1316_v58 = vpop.permute.xlu1 %1315 }
 0x3df   : > { %v1319_v60 = vsel %vm1317_vm3, %v1316_v58, 0  ;;  %v1271_v61 = vpop.permute.xlu0 %1270 }
 0x3e0   : > { %v1323_v63 = vsel %vm1279_vm15, %v1319_v60, 0  ;;  %v1274_v1 = vsel %vm1272_vm4, %v1271_v61, 0 }
 0x3e1   : > { %v1280_v6 = vsel %vm1279_vm15, %v1274_v1, 0  ;;  %1332 = vmatpush.bf16.msra.mxu3 %v1323_v63 }
 0x3e2   : > { %1289 = vmatpush.bf16.msra.mxu1 %v1280_v6 }
 0x3e4   : > { %1874 = vmatmul.msk.bf16.vlgmr.msra.gmra.mxu3 %vm1275_vm2, %v1873_v7 }
 0x3e5   : > { %1434 = vmatpush.bf16.msrb.mxu3 %v1425_v5  ;;  %1871 = vmatmul.msk.bf16.vlgmr.msra.gmra.mxu1 %vm1275_vm2, %v1870_v8 }
 0x3e6   : > { %v1393_v9 = vpop.permute.xlu1 %1392 }
 0x3e7   : > { %v1396_v10 = vsel %vm1394_vm11, %v1393_v9, 0  ;;  %v1367_v3 = vpop.permute.xlu0 %1366 }
 0x3e8   : > { %v1400_v11 = vsel %vm1279_vm15, %v1396_v10, 0  ;;  %v1370_v4 = vsel %vm1368_vm5, %v1367_v3, 0 }
 0x3e9   : > { %v1374_v12 = vsel %vm1279_vm15, %v1370_v4, 0  ;;  %1409 = vmatpush.bf16.msrb.mxu2 %v1400_v11 }
 0x3ea   : > { %1383 = vmatpush.bf16.msrb.mxu1 %v1374_v12 }
 0x3ec   : > { %1880 = vmatmul.msk.bf16.vlgmr.msrb.gmra.mxu2 %vm1275_vm2, %v1879_v15 }
 0x3ee   : > { %v1470_v13 = vpop.permute.xlu1 %1469 }
 0x3ef   : > { %v1473_v14 = vsel %vm1471_vm6, %v1470_v13, 0  ;;  %v1444_v16 = vpop.permute.xlu0 %1443 }
 0x3f0   : > { %v1477_v17 = vsel %vm1279_vm15, %v1473_v14, 0  ;;  %v1447_v62 = vsel %vm1445_vm1, %v1444_v16, 0 }
 0x3f1   : > { %v1451_v2 = vsel %vm1279_vm15, %v1447_v62, 0  ;;  %1486 = vmatpush.bf16.msra.mxu1 %v1477_v17 }
 0x3f2   : > { %1460 = vmatpush.bf16.msra.mxu0 %v1451_v2 }
 0x3f3   : > { %v1309_v23 = vpop.f32.mrf.mxu2 }
 0x3f4   : > { %1882 = vmatmul.msk.bf16.vlgmr.msrb.gmra.mxu3 %vm1275_vm2, %v1881_v21 }
 0x3f5   : > { %1878 = vmatmul.msk.bf16.vlgmr.msrb.gmra.mxu1 %vm1275_vm2, %v1877_v22  ;;  %1884 = vmatmul.msk.bf16.vlgmr.msra.gmra.mxu0 %vm1275_vm2, %v1883_v38 }
 0x3fb   : > { %v1311_v0 = vpop.f32.mrf.mxu2 }
 0x405   : > { %1886 = vmatmul.msk.bf16.vlgmr.msra.gmra.mxu1 %vm1275_vm2, %v1885_v49 }
 0x449   : > { %v1359_v57 = vpop.f32.mrf.mxu0 }
 0x451   : > { %v1361_v24 = vpop.f32.mrf.mxu0 }
 0x462   : > { %v1291_v25 = vpop.f32.mrf.mxu1 }
 0x463   : > { %v1310_v28 = vadd.f32 %v1309_v23, %v1291_v25 }
 0x467   : > { %v1334_v26 = vpop.f32.mrf.mxu3 }
 0x468   : > { %v1338_v31 = vadd.f32 %v1334_v26, %v1310_v28 }
 0x46a   : > { %v1293_v27 = vpop.f32.mrf.mxu1  ;;  %v1363_v32 = vadd.f32 %v1359_v57, %v1338_v31 }
 0x46f   : > { %v1336_v29 = vpop.f32.mrf.mxu3  ;;  %v1411_v30 = vpop.f32.mrf.mxu2 }
 0x472   : > { %v1385_v54 = vpop.f32.mrf.mxu1  ;;  %v1462_v55 = vpop.f32.mrf.mxu0 }
 0x473   : > { %v1389_v33 = vadd.f32 %v1385_v54, %v1363_v32 }
 0x475   : > { %v1415_v20 = vadd.f32 %v1411_v30, %v1389_v33 }
 0x477   : > { %v1436_v34 = vpop.f32.mrf.mxu3  ;;  %v1413_v35 = vpop.f32.mrf.mxu2 }
 0x478   : > { %v1440_v39 = vadd.f32 %v1436_v34, %v1415_v20 }
 0x47a   : > { %v1387_v36 = vpop.f32.mrf.mxu1  ;;  %v1464_v37 = vpop.f32.mrf.mxu0  ;;  %v1466_v41 = vadd.f32 %v1462_v55, %v1440_v39 }
 0x47f   : > { %v1438_v40 = vpop.f32.mrf.mxu3 }
 0x482   : > { %v1488_v43 = vpop.f32.mrf.mxu1 }
 0x483   : > { %v1492_v44 = vadd.f32 %v1488_v43, %v1466_v41 }
 0x485   : > { %v1499_v45 = vadd.f32 %v1497_v42, %v1492_v44 }
 0x487   : > { %vm1500_vm7 = vcmp.ge.f32.partialorder %v1499_v45, 0.0  ;;  %v1501_v46 = vmul.f32 0.1, %v1499_v45 }
 0x489   : > { %v1502_v47 = vsel %vm1500_vm7, %v1499_v45, %v1501_v46 }
 0x48a   : > { %1510 = vrot.lane.b32.xlu2 %v1502_v47, %s1991_s11  ;;  %1513 = vrot.lane.b32.xlu1 %v1502_v47, %s1992_s12  ;;  %v1490_v48 = vpop.f32.mrf.mxu1  ;;  %v1527_v53 = vrot.slane %v1502_v47, 4 }
 0x48b   : > { %1507 = vrot.lane.b32.xlu0 %v1502_v47, %s1986_s28  ;;  %s1997_s28 = smov 8  }
 0x492   : > { %1516 = vrot.lane.b32.xlu2 %v1502_v47, %s1993_s13  ;;  %1504 = vrot.lane.b32.xlu1 %v1502_v47, %s1965_s7  ;;  %s1996_s7 = smov 16  }
 0x493   : > { %1519 = vrot.lane.b32.xlu0 %v1502_v47, %s1994_s14 }
 0x49b   : > { %1522 = vrot.lane.b32.xlu0 %v1502_v47, %s1995_s9 }
 0x4e4   : > { %v1511_v52 = vpop.permute.xlu2 %1510 }
 0x4e5   : > { %v1537_v58 = vrot.slane %v1511_v52, 4 }
 0x4ec   : > { %v1517_v12 = vpop.permute.xlu2 %1516 }
 0x4ed   : > { %v1563_v21 = vrot.slane %v1517_v12, 4 }
 0x4fc   : > { %v1514_v50 = vpop.permute.xlu1 %1513 }
 0x4fd   : > { %v1508_v51 = vpop.permute.xlu0 %1507  ;;  %v1551_v7 = vrot.slane %v1514_v50, 4 }
 0x4fe   : > { %v1525_v59 = vrot.slane %v1508_v51, 4  ;;  %v1528_v56 = vsel %vm257_vm0, %v1508_v51, %v1527_v53 }
 0x4ff   : > { %v1536_v63 = vperm.slane %v1528_v56, %v2062_v18 }
 0x500   : > { %v1526_v60 = vsel %vm257_vm0, %v1525_v59, %v1502_v47 }
 0x501   : > { %v1532_v8 = vperm.slane %v1526_v60, %v2062_v18  ;;  %v1587_v15 = vrot.slane %v1536_v63, 4 }
 0x503   : > { %v1575_v14 = vrot.slane %v1532_v8, 4 }
 0x504   : > { %v1505_v61 = vpop.permute.xlu1 %1504 }
 0x505   : > { %v1538_v1 = vsel %vm257_vm0, %v1537_v58, %v1505_v61  ;;  %v1539_v5 = vrot.slane %v1505_v61, 4  ;;  %v1520_v6 = vpop.permute.xlu0 %1519 }
 0x506   : > { %v1549_v9 = vrot.slane %v1520_v6, 4  ;;  %v1544_v3 = vperm.slane %v1538_v1, %v2062_v18  ;;  %v1552_v4 = vsel %vm257_vm0, %v1520_v6, %v1551_v7 }
 0x507   : > { %v1540_v10 = vsel %vm257_vm0, %v1511_v52, %v1539_v5  ;;  %v1560_v2 = vperm.slane %v1552_v4, %v2062_v18 }
 0x508   : > { %v1548_v11 = vperm.slane %v1540_v10, %v2062_v18  ;;  %v1550_v13 = vsel %vm257_vm0, %v1549_v9, %v1514_v50  ;;  %v1573_v17 = vrot.slane %v1544_v3, 4  ;;  %v1576_v22 = vsel %vm257_vm0, %v1544_v3, %v1575_v14 }
 0x509   : > { %v1556_v38 = vperm.slane %v1550_v13, %v2062_v18  ;;  %v1584_v26 = vperm.slane %v1576_v22, %v2064_v19  ;;  %v1611_v27 = vrot.slane %v1560_v2, 4 }
 0x50a   : > { %v1585_v16 = vrot.slane %v1548_v11, 4  ;;  %v1588_v62 = vsel %vm257_vm0, %v1548_v11, %v1587_v15  ;;  %v1574_v25 = vsel %vm257_vm0, %v1573_v17, %v1532_v8 }
 0x50b   : > { %v1596_v57 = vperm.slane %v1588_v62, %v2064_v19  ;;  %v1599_v29 = vrot.slane %v1556_v38, 4  ;;  %v1580_v33 = vperm.slane %v1574_v25, %v2064_v19  ;;  %v1627_v36 = vrot.slane %v1584_v26, 4 }
 0x50c   : > { %v1586_v23 = vsel %vm257_vm0, %v1585_v16, %v1536_v63 }
 0x50d   : > { %v1523_v49 = vpop.permute.xlu0 %1522  ;;  %v1592_v31 = vperm.slane %v1586_v23, %v2064_v19  ;;  %v1635_v34 = vrot.slane %v1596_v57, 4  ;;  %v1623_v52 = vrot.slane %v1580_v33, 4 }
 0x50e   : > { %v1561_v0 = vrot.slane %v1523_v49, 4  ;;  %v1564_v24 = vsel %vm257_vm0, %v1523_v49, %v1563_v21 }
 0x50f   : > { %v1572_v28 = vperm.slane %v1564_v24, %v2062_v18  ;;  %v1631_v42 = vrot.slane %v1592_v31, 4 }
 0x510   : > { %v1562_v30 = vsel %vm257_vm0, %v1561_v0, %v1517_v12 }
 0x511   : > { %v1568_v54 = vperm.slane %v1562_v30, %v2062_v18  ;;  %v1609_v55 = vrot.slane %v1572_v28, 4  ;;  %v1612_v32 = vsel %vm257_vm0, %v1572_v28, %v1611_v27 }
 0x512   : > { %v1620_v35 = vperm.slane %v1612_v32, %v2064_v19 }
 0x513   : > { %v1597_v37 = vrot.slane %v1568_v54, 4  ;;  %v1600_v20 = vsel %vm257_vm0, %v1568_v54, %v1599_v29  ;;  %v1610_v39 = vsel %vm257_vm0, %v1609_v55, %v1560_v2 }
 0x514   : > { %v1608_v40 = vperm.slane %v1600_v20, %v2064_v19  ;;  %v1616_v41 = vperm.slane %v1610_v39, %v2064_v19  ;;  %v1633_v43 = vrot.slane %v1620_v35, 4  ;;  %v1636_v44 = vsel %vm257_vm0, %v1620_v35, %v1635_v34 }
 0x515   : > { %v1598_v45 = vsel %vm257_vm0, %v1597_v37, %v1556_v38  ;;  %v1673_v46 = vrot.slane %v1636_v44, 4 }
 0x516   : > { %v1604_v47 = vperm.slane %v1598_v45, %v2064_v19  ;;  %v1625_v48 = vrot.slane %v1608_v40, 4  ;;  %v1628_v50 = vsel %vm257_vm0, %v1608_v40, %v1627_v36  ;;  %v1629_v51 = vrot.slane %v1616_v41, 4 }
 0x517   : > { %v1632_v59 = vsel %vm257_vm0, %v1616_v41, %v1631_v42  ;;  %v1634_v53 = vsel %vm257_vm0, %v1633_v43, %v1596_v57  ;;  %v1649_v56 = vrot.slane %v1628_v50, 4 }
 0x518   : > { %v1621_v58 = vrot.slane %v1604_v47, 4  ;;  %v1626_v60 = vsel %vm257_vm0, %v1625_v48, %v1584_v26  ;;  %v1630_v61 = vsel %vm257_vm0, %v1629_v51, %v1592_v31  ;;  %v1661_v63 = vrot.slane %v1634_v53, 4 }
 0x519   : > { %v1675_v1 = vrot.slane %v1632_v59, 4  ;;  %v1624_v5 = vsel %vm257_vm0, %v1604_v47, %v1623_v52  ;;  %v1637_v6 = vrot.slane %v1626_v60, 4  ;;  %v1674_v7 = vsel %vm257_vm0, %v1673_v46, %v1632_v59 }
 0x51a   : > { %v1622_v8 = vsel %vm257_vm0, %v1621_v58, %v1580_v33  ;;  %v1650_v9 = vsel %vm257_vm0, %v1649_v56, %v1624_v5  ;;  %v1651_v10 = vrot.slane %v1624_v5, 4  ;;  %v1662_v3 = vsel %vm257_vm0, %v1661_v63, %v1630_v61 }
 0x51b   : > { %v1638_v11 = vsel %vm257_vm0, %v1637_v6, %v1622_v8  ;;  %v1639_v4 = vrot.slane %v1622_v8, 4  ;;  %v1656_v12 = vperm.slane %v1650_v9, %v2062_v18  ;;  %v1668_v15 = vperm.slane %v1662_v3, %v2062_v18 }
 0x51c   : > { %v1644_v13 = vperm.slane %v1638_v11, %v2062_v18  ;;  %v1680_v14 = vperm.slane %v1674_v7, %v2062_v18  ;;  %v1652_v16 = vsel %vm257_vm0, %v1628_v50, %v1651_v10  ;;  %v1663_v17 = vrot.slane %v1630_v61, 4 }
 0x51d   : > { %v1711_v62 = vrot.slane %v1668_v15, 4  ;;  %v1685_v2 = vrot.slane %v1656_v12, 4  ;;  %v1640_v21 = vsel %vm257_vm0, %v1626_v60, %v1639_v4  ;;  %v1660_v22 = vperm.slane %v1652_v16, %v2062_v18 }
 0x51e   : > { %v1687_v38 = vrot.slane %v1644_v13, 4  ;;  %v1709_v49 = vrot.slane %v1680_v14, 4  ;;  %v1648_v23 = vperm.slane %v1640_v21, %v2062_v18  ;;  %v1664_v57 = vsel %vm257_vm0, %v1634_v53, %v1663_v17 }
 0x51f   : > { %v1712_v0 = vsel %vm257_vm0, %v1680_v14, %v1711_v62  ;;  %v1686_v24 = vsel %vm257_vm0, %v1685_v2, %v1644_v13  ;;  %v1672_v25 = vperm.slane %v1664_v57, %v2062_v18  ;;  %v1676_v26 = vsel %vm257_vm0, %v1636_v44, %v1675_v1 }
 0x520   : > { %v1688_v27 = vsel %vm257_vm0, %v1656_v12, %v1687_v38  ;;  %v1720_v28 = vperm.slane %v1712_v0, %v2064_v19  ;;  %v1692_v29 = vperm.slane %v1686_v24, %v2064_v19  ;;  %v1710_v30 = vsel %vm257_vm0, %v1709_v49, %v1668_v15 }
 0x521   : > { %v1696_v31 = vperm.slane %v1688_v27, %v2064_v19  ;;  %v1716_v54 = vperm.slane %v1710_v30, %v2064_v19  ;;  %v1684_v55 = vperm.slane %v1676_v26, %v2062_v18  ;;  %v1697_v32 = vrot.slane %v1660_v22, 4 }
 0x522   : > { %v1737_v33 = vrot.slane %v1720_v28, 4  ;;  %v1735_v34 = vrot.slane %v1692_v29, 4  ;;  %v1699_v35 = vrot.slane %v1648_v23, 4  ;;  %v1723_v36 = vrot.slane %v1672_v25, 4 }
 0x523   : > { %v1733_v37 = vrot.slane %v1716_v54, 4  ;;  %v1739_v20 = vrot.slane %v1696_v31, 4  ;;  %v1698_v39 = vsel %vm257_vm0, %v1697_v32, %v1648_v23  ;;  %v1721_v40 = vrot.slane %v1684_v55, 4 }
 0x524   : > { %v1738_v41 = vsel %vm257_vm0, %v1737_v33, %v1696_v31  ;;  %v1736_v43 = vsel %vm257_vm0, %v1716_v54, %v1735_v34  ;;  %v1704_v44 = vperm.slane %v1698_v39, %v2064_v19  ;;  %v1700_v46 = vsel %vm257_vm0, %v1660_v22, %v1699_v35 }
 0x525   : > { %1754 = vrot.lane.b32.xlu2 %v1738_v41, %s1996_s7  ;;  %1750 = vrot.lane.b32.xlu1 %v1736_v43, %s1997_s28  ;;  %v1740_v18 = vsel %vm257_vm0, %v1720_v28, %v1739_v20  ;;  %v1722_v42 = vsel %vm257_vm0, %v1721_v40, %v1672_v25  ;;  %v1724_v47 = vsel %vm257_vm0, %v1684_v55, %v1723_v36 }
 0x526   : > { %1758 = vrot.lane.b32.xlu0 %v1740_v18, %s1998_s15  ;;  %v1728_v45 = vperm.slane %v1722_v42, %v2064_v19  ;;  %v1734_v48 = vsel %vm257_vm0, %v1733_v37, %v1692_v29  ;;  %v1732_v50 = vperm.slane %v1724_v47, %v2064_v19  ;;  %v1743_v51 = vrot.slane %v1704_v44, 4 }
 0x527   : > { %v1708_v59 = vperm.slane %v1700_v46, %v2064_v19 }
 0x528   : > { %v1741_v52 = vrot.slane %v1728_v45, 4  ;;  %v1745_v53 = vrot.slane %v1732_v50, 4  ;;  %v1744_v56 = vsel %vm257_vm0, %v1728_v45, %v1743_v51 }
 0x529   : > { %v1747_v61 = vrot.slane %v1708_v59, 4 }
 0x52a   : > { %v1742_v58 = vsel %vm257_vm0, %v1741_v52, %v1704_v44  ;;  %v1746_v60 = vsel %vm257_vm0, %v1745_v53, %v1708_v59 }
 0x52b   : > { %v1748_v63 = vsel %vm257_vm0, %v1732_v50, %v1747_v61  ;;  %vm1787_vm0 = vcmask 457728  }
 0x52d   : > { %1766 = vrot.lane.b32.xlu2 %v1744_v56, %s1976_s16  ;;  %1762 = vrot.lane.b32.xlu1 %v1742_v58, %s1999_s8  ;;  %s1852_s16 = sshll.u32 %s2580_s19, 2 }
 0x52e   : > { %1770 = vrot.lane.b32.xlu0 %v1746_v60, %s2000_s17  ;;  %s222_s23 = scalar_lea.vmem %s2574_s5, %s1852_s16 }
 0x535   : > { %1774 = vrot.lane.b32.xlu1 %v1748_v63, %s2001_s20 }
 0x57f   : > { %v1755_v1 = vpop.permute.xlu2 %1754 }
 0x587   : > { %v1767_v3 = vpop.permute.xlu2 %1766 }
 0x597   : > { %v1751_v19 = vpop.permute.xlu1 %1750 }
 0x598   : > { %v1777_v5 = vsel %vm1275_vm2, %v1734_v48, %v1751_v19  ;;  %v1759_v6 = vpop.permute.xlu0 %1758 }
 0x599   : > { %v1779_v7 = vsel %vm1778_vm8, %v1777_v5, %v1755_v1 }
 0x59a   : > { %v1781_v9 = vsel %vm1780_vm10, %v1779_v7, %v1759_v6 }
 0x59f   : > { %v1763_v8 = vpop.permute.xlu1 %1762 }
 0x5a0   : > { %v1783_v10 = vsel %vm1782_vm12, %v1781_v9, %v1763_v8  ;;  %v1771_v11 = vpop.permute.xlu0 %1770 }
 0x5a1   : > { %v1784_v4 = vsel %vm1249_vm9, %v1783_v10, %v1767_v3 }
 0x5a2   : > { %v1786_v12 = vsel %vm1785_vm13, %v1784_v4, %v1771_v11 }
 0x5a7   : > { %v1775_v15 = vpop.permute.xlu1 %1774 }
 0x5a8   : > { %v1788_v13 = vsel %vm1787_vm0, %v1786_v12, %v1775_v15 }
 0x5a9   : > { %v1789_v14 = vpack.c.bf16 %v1788_v13, %v1788_v13 }
 0x5ab   : > { %1791 = vst.msk [vmem:[%s222_s23] sm:$0xf] %vm1790_vm14, %v1789_v14 }
 0x5ac PF: > { %s15_s18 = sadd.s32 1, %s1953_s18  }
 0x5ad   : > { %p12_p4 = scmp.ge.s32.totalorder %s15_s18, 4  }
 0x5af   :  { %14 = sbr.rel (!%p12_p4) target bundleno = 1 (0x1), region = 86 }

// kernel: feature_extractor_forward.4
= control target key start
LH: loop header
LB: loop body
LE: loop exit
PB: predicated region body
PF: predicated region fallthrough
CT: control target
= control target key end

     0   :  { %s2689_s18 = smov 0   ;;  %s3461_s0 = inlined_call_operand.vmem [shape: bf16[2,32,5,5], index: 0, kind: input, shape index: {}]   ;;  %s3462_s1 = inlined_call_operand.vmem [shape: bf16[9,16,8], index: 1, kind: input, shape index: {}]   ;;  %s3463_s2 = inlined_call_operand.vmem [shape: f32[16,1], index: 2, kind: input, shape index: {}]   ;;  %s3464_s3 = inlined_call_operand.vmem [shape: bf16[9,16,16], index: 3, kind: input, shape index: {}]   ;;  %s3465_s4 = inlined_call_operand.vmem [shape: f32[16,1], index: 4, kind: input, shape index: {}]   ;;  %s3466_s5 = inlined_call_operand.vmem [shape: bf16[2,16,16], index: 5, kind: output, shape index: {}]  }
   0x1 LB: > { %s2368_s19 = sadd.s32 4294967295, %s2627_s18   ;;  %p2372_p0 = scmp.ge.s32.totalorder %s2627_s18, 1  ;;  %s2627_s18 = sphi %s2689_s18, %s15_s18  }
   0x2   : > { %p187_p1 = scmp.lt.s32.totalorder %s2627_s18, 3 }
   0x4   : > { %p188_p2 = pnand %p2372_p0, %p187_p1 }
   0x5   : > { %p215_p3 = scmp.lt.s32.totalorder (!%p188_p2), %s2368_s19, 1  ;;  %s2631_s24 = smov (!%p188_p2), 5  }
   0x6   : > { %191 = sbr.rel (%p188_p2) target bundleno = 1471 (0x5bf), region = 40  ;;  %s2632_s25 = smov (!%p188_p2), 15  }
   0x7   : > { %s2633_s26 = smov (!%p188_p2), 10   ;;  %s2634_s27 = smov (!%p188_p2), 20  }
   0x8   : > { %s2635_s28 = smov (!%p188_p2), 123   ;;  %s2636_s29 = smov (!%p188_p2), 127  }
   0x9   : > { %s2637_s30 = smov (!%p188_p2), 122   ;;  %s2639_s8 = smov (!%p188_p2), 113  }
   0xa   : > { %s2640_s9 = smov (!%p188_p2), 108   ;;  %s2641_s10 = smov (!%p188_p2), 118  }
   0xb   : > { %s3472_s19 = smov (!%p215_p3, %s2368_s19), 1  ;;  %v2629_v0 = vmov 1983009808   ;;  %v2630_v2 = vmov 1934713408   ;;  %vm259_vm0 = vcmask 1047556  }
   0xc   : > { %s2501_s20 = sshll.u32 %s3472_s19, 7  ;;  %v262_v1 = vunpack.c.l.s4 %v2629_v0  ;;  %v276_v3 = vunpack.c.l.s4 %v2630_v2  ;;  %vm573_vm1 = vcmask 39936   ;;  %vm580_vm2 = vcmask 80896   ;;  %s2643_s11 = smov 12  }
   0xd   : > { %s2703_s23 = scalar_lea.vmem %s3461_s0, %s2501_s20  ;;  %vm585_vm3 = vcmask 121856   ;;  %vm590_vm4 = vcmask 162816   ;;  %vm611_vm5 = vcmask 1043456   ;;  %vm607_vm6 = vcmask 64512   ;;  %s2644_s12 = smov 6  }
   0xe   : > { %v230_v4 = vld [vmem:[%s2703_s23 + $0x10] sm:$0x7]  ;;  %v226_v5 = vld [vmem:[%s2703_s23] sm:$0x7]  ;;  %v231_v6 = vld [vmem:[%s2703_s23 + $0x14] sm:$0x7]  ;;  %v2719_v18 = vunpack.c.0.s8 %v262_v1  ;;  %v2721_v19 = vunpack.c.0.s8 %v276_v3 }
   0xf   : > { %v232_v7 = vld [vmem:[%s2703_s23 + $0x18] sm:$0x7]  ;;  %v233_v8 = vld [vmem:[%s2703_s23 + $0x1c] sm:$0x7]  ;;  %v227_v9 = vld [vmem:[%s2703_s23 + $0x4] sm:$0x7] }
  0x10   : > { %v228_v10 = vld [vmem:[%s2703_s23 + $0x8] sm:$0x7]  ;;  %v229_v11 = vld [vmem:[%s2703_s23 + $0xc] sm:$0x7]  ;;  %v234_v12 = vld [vmem:[%s2703_s23 + $0x20] sm:$0x7] }
  0x11   : > { %v235_v13 = vld [vmem:[%s2703_s23 + $0x24] sm:$0x7]  ;;  %v236_v14 = vld [vmem:[%s2703_s23 + $0x28] sm:$0x7]  ;;  %v238_v15 = vld [vmem:[%s2703_s23 + $0x30] sm:$0x7] }
  0x12   : > { %v239_v16 = vld [vmem:[%s2703_s23 + $0x34] sm:$0x7]  ;;  %v240_v17 = vld [vmem:[%s2703_s23 + $0x38] sm:$0x7]  ;;  %v241_v20 = vld [vmem:[%s2703_s23 + $0x3c] sm:$0x7] }
  0x13   : > { %v258_v21 = vrot.slane %v230_v4, 4  ;;  %v265_v22 = vrot.slane %v232_v7, 4  ;;  %v285_v23 = vrot.slane %v231_v6, 4  ;;  %v291_v24 = vrot.slane %v233_v8, 4  ;;  %v237_v25 = vld [vmem:[%s2703_s23 + $0x2c] sm:$0x7] }
  0x14   : > { %v311_v26 = vrot.slane %v238_v15, 4  ;;  %v317_v27 = vrot.slane %v240_v17, 4  ;;  %v337_v28 = vrot.slane %v239_v16, 4  ;;  %v343_v29 = vrot.slane %v241_v20, 4  ;;  %v246_v20 = vld [vmem:[%s2703_s23 + $0x50] sm:$0x7] }
  0x15   : > { %v260_v30 = vsel %vm259_vm0, %v258_v21, %v226_v5  ;;  %v266_v31 = vsel %vm259_vm0, %v265_v22, %v228_v10  ;;  %v286_v32 = vsel %vm259_vm0, %v285_v23, %v227_v9  ;;  %v292_v33 = vsel %vm259_vm0, %v291_v24, %v229_v11  ;;  %s2645_s13 = smov 18   ;;  %s2646_s14 = smov 30  }
  0x16   : > { %v264_v34 = vperm.slane %v260_v30, %v2719_v18  ;;  %v270_v35 = vperm.slane %v266_v31, %v2719_v18  ;;  %v290_v36 = vperm.slane %v286_v32, %v2719_v18  ;;  %v296_v37 = vperm.slane %v292_v33, %v2719_v18  ;;  %v248_v33 = vld [vmem:[%s2703_s23 + $0x58] sm:$0x7]  ;;  %s2647_s15 = smov 24   ;;  %s2648_s16 = smov 126  }
  0x17   : > { %v312_v38 = vsel %vm259_vm0, %v311_v26, %v234_v12  ;;  %v318_v39 = vsel %vm259_vm0, %v317_v27, %v236_v14  ;;  %v338_v40 = vsel %vm259_vm0, %v337_v28, %v235_v13  ;;  %v344_v41 = vsel %vm259_vm0, %v343_v29, %v237_v25  ;;  %v242_v29 = vld [vmem:[%s2703_s23 + $0x40] sm:$0x7]  ;;  %s2649_s17 = smov 116   ;;  %s2650_s20 = smov 120  }
  0x18   : > { %v271_v42 = vrot.slane %v270_v35, 4  ;;  %v297_v43 = vrot.slane %v296_v37, 4  ;;  %v316_v44 = vperm.slane %v312_v38, %v2719_v18  ;;  %v322_v45 = vperm.slane %v318_v39, %v2719_v18  ;;  %v243_v39 = vld [vmem:[%s2703_s23 + $0x44] sm:$0x7]  ;;  %s2651_s21 = smov 121  }
  0x19   : > { %v342_v46 = vperm.slane %v338_v40, %v2719_v18  ;;  %v348_v47 = vperm.slane %v344_v41, %v2719_v18  ;;  %v273_v48 = vrot.slane %v264_v34, 4  ;;  %v299_v49 = vrot.slane %v290_v36, 4  ;;  %v247_v40 = vld [vmem:[%s2703_s23 + $0x54] sm:$0x7]  ;;  %v249_v41 = vld [vmem:[%s2703_s23 + $0x5c] sm:$0x7] }
  0x1a   : > { %v272_v50 = vsel %vm259_vm0, %v271_v42, %v264_v34  ;;  %v298_v51 = vsel %vm259_vm0, %v297_v43, %v290_v36  ;;  %v323_v52 = vrot.slane %v322_v45, 4  ;;  %v325_v53 = vrot.slane %v316_v44, 4  ;;  %v254_v42 = vld [vmem:[%s2703_s23 + $0x70] sm:$0x7] }
  0x1b   : > { %v2744_v54 = vperm.slane %v272_v50, %v2721_v19  ;;  %v2747_v55 = vperm.slane %v298_v51, %v2721_v19  ;;  %v349_v56 = vrot.slane %v348_v47, 4  ;;  %v274_v57 = vsel %vm259_vm0, %v270_v35, %v273_v48  ;;  %v255_v48 = vld [vmem:[%s2703_s23 + $0x74] sm:$0x7] }
  0x1c   : > { %v324_v58 = vsel %vm259_vm0, %v323_v52, %v316_v44  ;;  %v284_v59 = vperm.slane %v274_v57, %v2721_v19  ;;  %v300_v60 = vsel %vm259_vm0, %v296_v37, %v299_v49  ;;  %v326_v61 = vsel %vm259_vm0, %v322_v45, %v325_v53  ;;  %v256_v49 = vld [vmem:[%s2703_s23 + $0x78] sm:$0x7]  ;;  %v245_v53 = vld [vmem:[%s2703_s23 + $0x4c] sm:$0x7] }
  0x1d   : > { %v2755_v62 = vperm.slane %v324_v58, %v2721_v19  ;;  %v350_v63 = vsel %vm259_vm0, %v349_v56, %v342_v46  ;;  %v470_v0 = vshrl.u32 %v2744_v54, 16  ;;  %v471_v1 = vshrl.u32 %v2747_v55, 16 }
  0x1e   : > { %v2761_v2 = vperm.slane %v350_v63, %v2721_v19  ;;  %v279_v3 = vrot.slane %v2744_v54, 4  ;;  %v305_v4 = vrot.slane %v2747_v55, 4  ;;  %v310_v5 = vperm.slane %v300_v60, %v2721_v19 }
  0x1f   : > { %v472_v6 = vpack.i.b16 %v471_v1, %v470_v0  ;;  %v485_v7 = vshrl.u32 %v2755_v62, 16  ;;  %v331_v8 = vrot.slane %v2755_v62, 4  ;;  %v336_v9 = vperm.slane %v326_v61, %v2721_v19 }
  0x20   : > { %v486_v10 = vshrl.u32 %v2761_v2, 16  ;;  %v280_v11 = vsel %vm259_vm0, 0, %v279_v3  ;;  %v306_v12 = vsel %vm259_vm0, 0, %v305_v4  ;;  %v357_v13 = vrot.slane %v2761_v2, 4 }
  0x21   : > { %v533_v14 = vunpack.c.l.b16 %v472_v6  ;;  %v332_v15 = vsel %vm259_vm0, 0, %v331_v8  ;;  %v476_v16 = vshrl.u32 %v280_v11, 16  ;;  %v477_v17 = vshrl.u32 %v306_v12, 16  ;;  %v251_v6 = vld [vmem:[%s2703_s23 + $0x64] sm:$0x7] }
  0x22   : > { %v487_v21 = vpack.i.b16 %v486_v10, %v485_v7  ;;  %v358_v22 = vsel %vm259_vm0, 0, %v357_v13  ;;  %v491_v23 = vshrl.u32 %v332_v15, 16  ;;  %v475_v24 = vpack.i.b16 %v306_v12, %v280_v11  ;;  %v257_v7 = vld [vmem:[%s2703_s23 + $0x7c] sm:$0x7] }
  0x23   : > { %v478_v25 = vpack.i.b16 %v477_v17, %v476_v16  ;;  %v492_v26 = vshrl.u32 %v358_v22, 16  ;;  %v490_v27 = vpack.i.b16 %v358_v22, %v332_v15  ;;  %v351_v28 = vrot.slane %v342_v46, 4  ;;  %v244_v46 = vld [vmem:[%s2703_s23 + $0x48] sm:$0x7]  ;;  %v253_v16 = vld [vmem:[%s2703_s23 + $0x6c] sm:$0x7] }
  0x24   : > { %v534_v30 = vunpack.c.l.b16 %v487_v21  ;;  %v2777_v31 = vunpack.c.l.b16 %v475_v24  ;;  %v481_v32 = vpack.i.b16 %v310_v5, %v284_v59  ;;  %v363_v34 = vrot.slane %v246_v20, 4  ;;  %v252_v59 = vld [vmem:[%s2703_s23 + $0x68] sm:$0x7] }
  0x25   : > { %v493_v35 = vpack.i.b16 %v492_v26, %v491_v23  ;;  %v553_v36 = vunpack.c.l.b16 %v478_v25  ;;  %v544_v37 = vunpack.c.l.b16 %v490_v27  ;;  %v352_v38 = vsel %vm259_vm0, %v348_v47, %v351_v28  ;;  %v250_v47 = vld [vmem:[%s2703_s23 + $0x60] sm:$0x7] }
  0x26   : > { %v537_v43 = vpack.c.b16 %v534_v30, %v533_v14  ;;  %v362_v44 = vperm.slane %v352_v38, %v2721_v19  ;;  %v563_v45 = vunpack.c.l.b16 %v481_v32  ;;  %v364_v50 = vsel %vm259_vm0, %v363_v34, %v242_v29 }
  0x27   : > { %v554_v51 = vunpack.c.l.b16 %v493_v35  ;;  %v547_v52 = vpack.c.b16 %v544_v37, %v2777_v31  ;;  %v368_v56 = vperm.slane %v364_v50, %v2719_v18  ;;  %v369_v57 = vrot.slane %v248_v33, 4 }
  0x28   : > { %539 = vrot.lane.b32.xlu0 %v537_v43, %s2631_s24  ;;  %v496_v58 = vpack.i.b16 %v362_v44, %v336_v9  ;;  %v389_v60 = vrot.slane %v247_v40, 4  ;;  %v395_v61 = vrot.slane %v249_v41, 4  ;;  %v415_v63 = vrot.slane %v254_v42, 4 }
  0x29   : > { %v557_v0 = vpack.c.b16 %v554_v51, %v553_v36  ;;  %v370_v1 = vsel %vm259_vm0, %v369_v57, %v244_v46  ;;  %v421_v3 = vrot.slane %v256_v49, 4  ;;  %v441_v4 = vrot.slane %v255_v48, 4 }
  0x2a   : > { %v564_v5 = vunpack.c.l.b16 %v496_v58  ;;  %v374_v8 = vperm.slane %v370_v1, %v2719_v18  ;;  %v390_v10 = vsel %vm259_vm0, %v389_v60, %v243_v39  ;;  %v396_v11 = vsel %vm259_vm0, %v395_v61, %v245_v53 }
  0x2b   : > { %559 = vrot.lane.b32.xlu1 %v557_v0, %s2632_s25  ;;  %v394_v9 = vperm.slane %v390_v10, %v2719_v18  ;;  %v400_v12 = vperm.slane %v396_v11, %v2719_v18  ;;  %v416_v13 = vsel %vm259_vm0, %v415_v63, %v250_v47  ;;  %v422_v14 = vsel %vm259_vm0, %v421_v3, %v252_v59 }
  0x2c   : > { %v567_v15 = vpack.c.b16 %v564_v5, %v563_v45  ;;  %v375_v17 = vrot.slane %v374_v8, 4  ;;  %v420_v20 = vperm.slane %v416_v13, %v2719_v18  ;;  %v426_v21 = vperm.slane %v422_v14, %v2719_v18 }
  0x2d   : > { %v401_v22 = vrot.slane %v400_v12, 4  ;;  %v442_v23 = vsel %vm259_vm0, %v441_v4, %v251_v6  ;;  %v447_v24 = vrot.slane %v257_v7, 4  ;;  %v377_v25 = vrot.slane %v368_v56, 4 }
  0x2e   : > { %v376_v26 = vsel %vm259_vm0, %v375_v17, %v368_v56  ;;  %v427_v27 = vrot.slane %v426_v21, 4  ;;  %v446_v28 = vperm.slane %v442_v23, %v2719_v18  ;;  %v403_v29 = vrot.slane %v394_v9, 4 }
  0x2f   : > { %v2814_v30 = vperm.slane %v376_v26, %v2721_v19  ;;  %v402_v31 = vsel %vm259_vm0, %v401_v22, %v394_v9  ;;  %v448_v32 = vsel %vm259_vm0, %v447_v24, %v253_v16  ;;  %v378_v33 = vsel %vm259_vm0, %v374_v8, %v377_v25 }
  0x30   : > { %549 = vrot.lane.b32.xlu0 %v547_v52, %s2633_s26  ;;  %v2821_v34 = vperm.slane %v402_v31, %v2721_v19  ;;  %v428_v35 = vsel %vm259_vm0, %v427_v27, %v420_v20  ;;  %v452_v36 = vperm.slane %v448_v32, %v2719_v18  ;;  %v388_v37 = vperm.slane %v378_v33, %v2721_v19 }
  0x31   : > { %v383_v38 = vrot.slane %v2814_v30, 4  ;;  %v2828_v39 = vperm.slane %v428_v35, %v2721_v19  ;;  %v404_v40 = vsel %vm259_vm0, %v400_v12, %v403_v29  ;;  %v429_v41 = vrot.slane %v420_v20, 4 }
  0x32   : > { %v409_v42 = vrot.slane %v2821_v34, 4  ;;  %v453_v43 = vrot.slane %v452_v36, 4  ;;  %v414_v44 = vperm.slane %v404_v40, %v2721_v19  ;;  %v455_v45 = vrot.slane %v446_v28, 4 }
  0x33   : > { %569 = vrot.lane.b32.xlu1 %v567_v15, %s2634_s27  ;;  %v384_v46 = vsel %vm259_vm0, 0, %v383_v38  ;;  %v435_v48 = vrot.slane %v2828_v39, 4  ;;  %v430_v49 = vsel %vm259_vm0, %v426_v21, %v429_v41  ;;  %v500_v50 = vshrl.u32 %v2814_v30, 16 }
  0x34   : > { %v410_v51 = vsel %vm259_vm0, 0, %v409_v42  ;;  %v454_v52 = vsel %vm259_vm0, %v453_v43, %v446_v28  ;;  %v506_v53 = vshrl.u32 %v384_v46, 16  ;;  %v440_v47 = vperm.slane %v430_v49, %v2721_v19 }
  0x35   : > { %v436_v56 = vsel %vm259_vm0, 0, %v435_v48  ;;  %v2843_v57 = vperm.slane %v454_v52, %v2721_v19  ;;  %v507_v58 = vshrl.u32 %v410_v51, 16  ;;  %v456_v59 = vsel %vm259_vm0, %v452_v36, %v455_v45 }
  0x36   : > { %v466_v60 = vperm.slane %v456_v59, %v2721_v19  ;;  %v511_v61 = vpack.i.b16 %v414_v44, %v388_v37  ;;  %v501_v63 = vshrl.u32 %v2821_v34, 16  ;;  %v521_v1 = vshrl.u32 %v436_v56, 16  ;;  %v2503_v59 = vld [vmem:[%s3462_s1] sm:$0xff] }
  0x37   : > { %v461_v0 = vrot.slane %v2843_v57, 4  ;;  %v515_v3 = vshrl.u32 %v2828_v39, 16  ;;  %v516_v4 = vshrl.u32 %v2843_v57, 16  ;;  %v508_v5 = vpack.i.b16 %v507_v58, %v506_v53  ;;  %v2504_v58 = vld [vmem:[%s3462_s1 + $0x8] sm:$0xff] }
  0x38   : > { %v526_v6 = vpack.i.b16 %v466_v60, %v440_v47  ;;  %v565_v7 = vunpack.c.l.b16 %v511_v61  ;;  %v502_v8 = vpack.i.b16 %v501_v63, %v500_v50  ;;  %v484_v9 = vpack.i.b16 %v2761_v2, %v2755_v62  ;;  %v2506_v60 = vld [vmem:[%s3462_s1 + $0x18] sm:$0xff]  ;;  %v2507_v61 = vld [vmem:[%s3462_s1 + $0x20] sm:$0xff] }
  0x39   : > { %v462_v10 = vsel %vm259_vm0, 0, %v461_v0  ;;  %v517_v11 = vpack.i.b16 %v516_v4, %v515_v3  ;;  %v505_v16 = vpack.i.b16 %v410_v51, %v384_v46  ;;  %v555_v21 = vunpack.c.l.b16 %v508_v5  ;;  %v2505_v3 = vld [vmem:[%s3462_s1 + $0x10] sm:$0xff] }
  0x3a   : > { %v522_v12 = vshrl.u32 %v462_v10, 16  ;;  %v566_v13 = vunpack.c.l.b16 %v526_v6  ;;  %v535_v14 = vunpack.c.l.b16 %v502_v8  ;;  %v520_v17 = vpack.i.b16 %v462_v10, %v436_v56  ;;  %v881_v8 = vld [vmem:[%s3463_s2] sm:$0xff]  ;;  %v882_v10 = vld [vmem:[%s3463_s2 + $0x8] sm:$0xff] }
  0x3b   : > { %v536_v15 = vunpack.c.l.b16 %v517_v11  ;;  %v545_v25 = vunpack.c.l.b16 %v505_v16  ;;  %v469_v2 = vpack.i.b16 %v2747_v55, %v2744_v54  ;;  %v528_v28 = vunpack.c.l.b16 %v484_v9 }
  0x3c   : > { %v523_v20 = vpack.i.b16 %v522_v12, %v521_v1  ;;  %v568_v22 = vpack.c.b16 %v566_v13, %v565_v7  ;;  %v546_v26 = vunpack.c.l.b16 %v520_v17  ;;  %v514_v54 = vpack.i.b16 %v2843_v57, %v2828_v39  ;;  %v2511_v7 = vld [vmem:[%s3462_s1 + $0x40] sm:$0xff]  ;;  %v2510_v17 = vld [vmem:[%s3462_s1 + $0x38] sm:$0xff] }
  0x3d   : > { %v538_v23 = vpack.c.b16 %v536_v15, %v535_v14  ;;  %v527_v31 = vunpack.c.l.b16 %v469_v2  ;;  %v499_v55 = vpack.i.b16 %v2821_v34, %v2814_v30  ;;  %vm655_vm7 = vcmask 195584   ;;  %v2509_v15 = vld [vmem:[%s3462_s1 + $0x30] sm:$0xff] }
  0x3e   : > { %v556_v24 = vunpack.c.l.b16 %v523_v20  ;;  %571 = vrot.lane.b32.xlu1 %v568_v22, %s2634_s27  ;;  %v548_v62 = vpack.c.b16 %v546_v26, %v545_v25  ;;  %v530_v45 = vunpack.c.l.b16 %v514_v54  ;;  %vm849_vm8 = vcmask 154624   ;;  %s2655_s27 = smov 104  }
  0x3f   : > { %541 = vrot.lane.b32.xlu2 %v538_v23, %s2631_s24  ;;  %v531_v33 = vpack.c.b16 %v528_v28, %v527_v31  ;;  %v529_v46 = vunpack.c.l.b16 %v499_v55  ;;  %v2638_v11 = vmov 0   ;;  %v2508_v23 = vld [vmem:[%s3462_s1 + $0x28] sm:$0xff]  ;;  %vm1308_vm11 = vcmask 1040384   ;;  %s2652_s24 = smov 114  }
  0x40   : > { %v558_v27 = vpack.c.b16 %v556_v24, %v555_v21  ;;  %2560 = vset.pattern.permute.xlu1 %v2638_v11  ;;  %2559 = vset.pattern.permute.xlu0 %v2638_v11  ;;  %vm1309_vm12 = vsmask.f32 256  ;;  %vm1327_vm13 = vcmask 1042432   ;;  %vm1328_vm14 = vsmask.f32 2304 }
  0x41   : > { %v532_v30 = vpack.c.b16 %v530_v45, %v529_v46  ;;  %vm3033_vm15 = vmand %vm1308_vm11, %vm1309_vm12  ;;  %vm1771_vm11 = vcmask 228352   ;;  %vm1619_vm12 = vcmask 285696  }
  0x42   : > { %561 = vrot.lane.b32.xlu0 %v558_v27, %s2632_s25  ;;  %s2653_s25 = smov 115  }
  0x47   : > { %551 = vrot.lane.b32.xlu2 %v548_v62, %s2633_s26  ;;  %s2654_s26 = smov 110  }
  0x99   : > { %v542_v42 = vpop.permute.xlu2 %541 }
  0x9a   : > { %v540_v29 = vpop.permute.xlu0 %539  ;;  %v579_v34 = vsel %vm573_vm1, %v532_v30, %v542_v42 }
  0x9b   : > { %v576_v35 = vsel %vm573_vm1, %v531_v33, %v540_v29 }
  0x9d   : > { %v560_v32 = vpop.permute.xlu1 %559 }
  0xa1   : > { %v552_v48 = vpop.permute.xlu2 %551 }
  0xa2   : > { %v550_v36 = vpop.permute.xlu0 %549  ;;  %v584_v50 = vsel %vm580_vm2, %v579_v34, %v552_v48 }
  0xa3   : > { %v582_v37 = vsel %vm580_vm2, %v576_v35, %v550_v36  ;;  %vm3039_vm2 = vmand %vm1327_vm13, %vm1328_vm14  ;;  %vm1738_vm13 = vcmask 236544   ;;  %vm1869_vm14 = vcmask 179200  }
  0xa4   : > { %v587_v38 = vsel %vm585_vm3, %v582_v37, %v560_v32 }
  0xa5   : > { %v570_v40 = vpop.permute.xlu1 %569 }
  0xa6   : > { %v592_v41 = vsel %vm590_vm4, %v587_v38, %v570_v40 }
  0xa7   : > { %782 = vrot.lane.b32.xlu0 %v592_v41, %s2635_s28  ;;  %653 = vrot.lane.b32.xlu2 %v592_v41, %s2636_s29  ;;  %v637_v43 = vsel %vm611_vm5, %v592_v41, 0  ;;  %v606_v44 = vrot.slane %v592_v41, 4 }
  0xa8   : > { %646 = vmatpush.bf16.msra.mxu1 %v637_v43 }
  0xa9   : > { %v613_v39 = vsel %vm611_vm5, %v606_v44, 0 }
  0xaa   : > { %622 = vmatpush.bf16.msra.mxu0 %v613_v39 }
  0xab   : > { %2388 = vmatmul.msk.bf16.vlgmr.msra.gmra.mxu1 %vm607_vm6, %v2503_v59 }
  0xad   : > { %2383 = vmatmul.msk.bf16.vlgmr.msra.gmra.mxu0 %vm607_vm6, %v2504_v58 }
  0xaf   : > { %847 = vrot.lane.b32.xlu2 %v592_v41, %s2637_s30  ;;  %890 = vperm.xlu0 %2559, %v882_v10  }
  0xb0   : > { %v572_v49 = vpop.permute.xlu1 %571 }
  0xb4   : > { %v562_v51 = vpop.permute.xlu0 %561 }
  0xb5   : > { %v589_v52 = vsel %vm585_vm3, %v584_v50, %v562_v51  ;;  %vm1394_vm3 = vcmask 7168  }
  0xb6   : > { %v594_v53 = vsel %vm590_vm4, %v589_v52, %v572_v49 }
  0xb7   : > { %749 = vrot.lane.b32.xlu1 %v594_v53, %s2636_s29  ;;  %v699_v47 = vsel %vm611_vm5, %v594_v53, 0  ;;  %v726_v56 = vrot.slane %v594_v53, 4 }
  0xb8   : > { %708 = vmatpush.bf16.msra.mxu3 %v699_v47 }
  0xb9   : > { %v731_v57 = vsel %vm611_vm5, %v726_v56, 0 }
  0xba   : > { %740 = vmatpush.bf16.msrb.mxu0 %v731_v57 }
  0xbb   : > { %2402 = vmatmul.msk.bf16.vlgmr.msra.gmra.mxu3 %vm607_vm6, %v2506_v60 }
  0xbd   : > { %2409 = vmatmul.msk.bf16.vlgmr.msrb.gmra.mxu0 %vm607_vm6, %v2507_v61 }
  0xbf   : > { %885 = vperm.xlu1 %2560, %v881_v8  }
 0x101   : > { %v654_v63 = vpop.permute.xlu2 %653 }
 0x102   : > { %v658_v0 = vsel %vm655_vm7, %v654_v63, 0 }
 0x103   : > { %v670_v1 = vsel %vm611_vm5, %v658_v0, 0 }
 0x104   : > { %679 = vmatpush.bf16.msra.mxu2 %v670_v1 }
 0x107   : > { %2395 = vmatmul.msk.bf16.vlgmr.msra.gmra.mxu2 %vm607_vm6, %v2505_v3 }
 0x109   : > { %v848_v4 = vpop.permute.xlu2 %847 }
 0x10a   : > { %v851_v5 = vsel %vm849_vm8, %v848_v4, 0  ;;  %vm1607_vm8 = vcmask 244736  }
 0x10b   : > { %v863_v6 = vsel %vm611_vm5, %v851_v5, 0 }
 0x10c   : > { %872 = vmatpush.bf16.msra.mxu0 %v863_v6 }
 0x10f   : > { %2437 = vmatmul.msk.bf16.vlgmr.msra.gmra.mxu0 %vm607_vm6, %v2511_v7 }
 0x119   : > { %v783_v9 = vpop.permute.xlu0 %782 }
 0x11a   : > { %v785_v12 = vsel %vm590_vm4, %v783_v9, 0  ;;  %vm1599_vm4 = vcmask 97280  }
 0x11b   : > { %v824_v13 = vrot.slane %v785_v12, 4  ;;  %v797_v14 = vsel %vm611_vm5, %v785_v12, 0 }
 0x11c   : > { %806 = vmatpush.bf16.msrb.mxu2 %v797_v14 }
 0x11d   : > { %v829_v16 = vsel %vm611_vm5, %v824_v13, 0 }
 0x11e   : > { %838 = vmatpush.bf16.msrb.mxu3 %v829_v16 }
 0x11f   : > { %2423 = vmatmul.msk.bf16.vlgmr.msrb.gmra.mxu2 %vm607_vm6, %v2509_v15 }
 0x121   : > { %2430 = vmatmul.msk.bf16.vlgmr.msrb.gmra.mxu3 %vm607_vm6, %v2510_v17  ;;  %v891_v57 = vpop.permute.xlu0 %890 }
 0x128   : > { %v648_v26 = vpop.f32.mrf.mxu1 }
 0x129   : > { %v750_v20 = vpop.permute.xlu1 %749 }
 0x12a   : > { %v752_v21 = vsel %vm655_vm7, %v750_v20, 0  ;;  %v624_v24 = vpop.f32.mrf.mxu0 }
 0x12b   : > { %v764_v22 = vsel %vm611_vm5, %v752_v21, 0  ;;  %v649_v28 = vadd.f32 %v648_v26, %v624_v24  ;;  %vm1602_vm5 = vcmask 146432  }
 0x12c   : > { %773 = vmatpush.bf16.msrb.mxu1 %v764_v22 }
 0x12f   : > { %2416 = vmatmul.msk.bf16.vlgmr.msrb.gmra.mxu1 %vm607_vm6, %v2508_v23 }
 0x130   : > { %v650_v31 = vpop.f32.mrf.mxu1 }
 0x131   : > { %v886_v50 = vpop.permute.xlu1 %885 }
 0x132   : > { %v626_v25 = vpop.f32.mrf.mxu0 }
 0x133   : > { %v651_v37 = vadd.f32 %v650_v31, %v626_v25 }
 0x13a   : > { %v742_v2 = vpop.f32.mrf.mxu0 }
 0x13e   : > { %v710_v62 = vpop.f32.mrf.mxu3 }
 0x142   : > { %v744_v36 = vpop.f32.mrf.mxu0 }
 0x146   : > { %v712_v33 = vpop.f32.mrf.mxu3 }
 0x18a   : > { %v681_v27 = vpop.f32.mrf.mxu2 }
 0x18b   : > { %v686_v29 = vadd.f32 %v681_v27, %v649_v28 }
 0x18c   : > { %v874_v45 = vpop.f32.mrf.mxu0 }
 0x18d   : > { %v715_v35 = vadd.f32 %v710_v62, %v686_v29 }
 0x18f   : > { %v747_v38 = vadd.f32 %v742_v2, %v715_v35 }
 0x192   : > { %v683_v32 = vpop.f32.mrf.mxu2 }
 0x193   : > { %v687_v54 = vadd.f32 %v683_v32, %v651_v37 }
 0x194   : > { %v876_v56 = vpop.f32.mrf.mxu0 }
 0x195   : > { %v716_v43 = vadd.f32 %v712_v33, %v687_v54 }
 0x197   : > { %v748_v39 = vadd.f32 %v744_v36, %v716_v43 }
 0x1a2   : > { %v808_v55 = vpop.f32.mrf.mxu2 }
 0x1a4   : > { %v840_v42 = vpop.f32.mrf.mxu3 }
 0x1aa   : > { %v810_v49 = vpop.f32.mrf.mxu2 }
 0x1ac   : > { %v775_v40 = vpop.f32.mrf.mxu1  ;;  %v842_v52 = vpop.f32.mrf.mxu3 }
 0x1ad   : > { %v780_v41 = vadd.f32 %v775_v40, %v747_v38 }
 0x1af   : > { %v813_v44 = vadd.f32 %v808_v55, %v780_v41 }
 0x1b1   : > { %v845_v46 = vadd.f32 %v840_v42, %v813_v44 }
 0x1b3   : > { %v879_v48 = vadd.f32 %v874_v45, %v845_v46 }
 0x1b4   : > { %v777_v30 = vpop.f32.mrf.mxu1 }
 0x1b5   : > { %v781_v34 = vadd.f32 %v777_v30, %v748_v39  ;;  %v893_v53 = vadd.f32 %v886_v50, %v879_v48 }
 0x1b7   : > { %v814_v51 = vadd.f32 %v810_v49, %v781_v34  ;;  %v897_v59 = vmul.f32 0.1, %v893_v53  ;;  %vm895_vm9 = vcmp.ge.f32.partialorder %v893_v53, 0.0 }
 0x1b9   : > { %v846_v47 = vadd.f32 %v842_v52, %v814_v51  ;;  %v899_v63 = vsel %vm895_vm9, %v893_v53, %v897_v59  ;;  %vm1628_vm9 = vcmask 130048  }
 0x1ba   : > { %v930_v26 = vrot.slane %v899_v63, 4 }
 0x1bb   : > { %v880_v58 = vadd.f32 %v876_v56, %v846_v47 }
 0x1bd   : > { %v894_v60 = vadd.f32 %v891_v57, %v880_v58 }
 0x1bf   : > { %vm896_vm10 = vcmp.ge.f32.partialorder %v894_v60, 0.0  ;;  %v898_v61 = vmul.f32 0.1, %v894_v60 }
 0x1c1   : > { %v900_v0 = vsel %vm896_vm10, %v894_v60, %v898_v61  ;;  %vm1673_vm10 = vcmask 277504  }
 0x1c2   : > { %v2576_v1 = vpack.i.bf16 %v899_v63, %v900_v0  ;;  %v1024_v31 = vrot.slane %v900_v0, 4 }
 0x1c4   : > { %2577 = vrot.lane.b32.xlu0 %v2576_v1, %s2639_s8  ;;  %2567 = vrot.lane.b32.xlu1 %v2576_v1, %s2635_s28  ;;  %s2642_s28 = smov 1  }
 0x1c5   : > { %2562 = vrot.lane.b32.xlu2 %v2576_v1, %s2640_s9 }
 0x1cd   : > { %2572 = vrot.lane.b32.xlu2 %v2576_v1, %s2641_s10 }
 0x21f   : > { %v2563_v3 = vpop.permute.xlu2 %2562 }
 0x220   : > { %v2565_v4 = vunpack.i.h.bf16 %v2563_v3  ;;  %v2564_v5 = vunpack.i.l.bf16 %v2563_v3 }
 0x222   : > { %v952_v6 = vrot.slane %v2565_v4, 4  ;;  %v957_v7 = vperm.slane %v2565_v4, %v2719_v18  ;;  %v1046_v10 = vrot.slane %v2564_v5, 4  ;;  %v1051_v11 = vperm.slane %v2564_v5, %v2719_v18 }
 0x224   : > { %v953_v9 = vsel %vm259_vm0, 0.0, %v952_v6  ;;  %v986_v12 = vrot.slane %v957_v7, 4  ;;  %v1047_v15 = vsel %vm259_vm0, 0.0, %v1046_v10  ;;  %v1080_v16 = vrot.slane %v1051_v11, 4 }
 0x225   : > { %v961_v14 = vperm.slane %v953_v9, %v2719_v18  ;;  %v2938_v22 = vperm.slane %v957_v7, %v2721_v19  ;;  %v1055_v23 = vperm.slane %v1047_v15, %v2719_v18  ;;  %v2946_v2 = vperm.slane %v1051_v11, %v2721_v19 }
 0x226   : > { %v987_v20 = vsel %vm259_vm0, 0.0, %v986_v12  ;;  %v1081_v25 = vsel %vm259_vm0, 0.0, %v1080_v16 }
 0x227   : > { %v2573_v8 = vpop.permute.xlu2 %2572  ;;  %v996_v24 = vrot.slane %v961_v14, 4  ;;  %v2943_v62 = vperm.slane %v987_v20, %v2721_v19  ;;  %v2951_v32 = vperm.slane %v961_v14, %v2721_v19  ;;  %v1006_v33 = vrot.slane %v2938_v22, 4 }
 0x228   : > { %v2575_v13 = vunpack.i.h.bf16 %v2573_v8  ;;  %v2574_v17 = vunpack.i.l.bf16 %v2573_v8  ;;  %v2955_v35 = vperm.slane %v1081_v25, %v2721_v19  ;;  %v1090_v36 = vrot.slane %v1055_v23, 4 }
 0x229   : > { %v997_v37 = vsel %vm259_vm0, 0.0, %v996_v24  ;;  %v2959_v38 = vperm.slane %v1055_v23, %v2721_v19  ;;  %v1010_v40 = vrot.slane %v2943_v62, 4  ;;  %v1100_v41 = vrot.slane %v2946_v2, 4 }
 0x22a   : > { %v927_v21 = vrot.slane %v2575_v13, 4  ;;  %v1022_v27 = vrot.slane %v2574_v17, 4  ;;  %v931_v29 = vsel %vm259_vm0, %v2575_v13, %v930_v26  ;;  %v1025_v55 = vsel %vm259_vm0, %v2574_v17, %v1024_v31 }
 0x22b   : > { %v939_v43 = vperm.slane %v931_v29, %v2719_v18  ;;  %v1005_v48 = vperm.slane %v997_v37, %v2721_v19  ;;  %v1014_v49 = vrot.slane %v2951_v32, 4  ;;  %v2973_v51 = vperm.slane %v1025_v55, %v2719_v18 }
 0x22c   : > { %v929_v28 = vsel %vm259_vm0, %v927_v21, %v899_v63  ;;  %v1023_v54 = vsel %vm259_vm0, %v1022_v27, %v900_v0  ;;  %v1091_v57 = vsel %vm259_vm0, 0.0, %v1090_v36  ;;  %v1104_v58 = vrot.slane %v2955_v35, 4 }
 0x22d   : > { %v935_v42 = vperm.slane %v929_v28, %v2719_v18  ;;  %v2970_v50 = vperm.slane %v1023_v54, %v2719_v18  ;;  %v976_v60 = vrot.slane %v939_v43, 4  ;;  %v2990_v7 = vperm.slane %v1091_v57, %v2721_v19 }
 0x22e   : > { %v1108_v8 = vrot.slane %v2959_v38, 4  ;;  %v1070_v11 = vrot.slane %v2973_v51, 4  ;;  %v1018_v15 = vrot.slane %v1005_v48, 4 }
 0x22f   : > { %v964_v59 = vrot.slane %v935_v42, 4  ;;  %v1058_v10 = vrot.slane %v2970_v50, 4 }
 0x236   : > { %v2578_v44 = vpop.permute.xlu0 %2577  ;;  %v2568_v45 = vpop.permute.xlu1 %2567 }
 0x237   : > { %v2580_v46 = vunpack.i.h.bf16 %v2578_v44  ;;  %v2579_v39 = vunpack.i.l.bf16 %v2578_v44  ;;  %v2570_v30 = vunpack.i.h.bf16 %v2568_v45  ;;  %v2569_v34 = vunpack.i.l.bf16 %v2568_v45 }
 0x239   : > { %v940_v52 = vrot.slane %v2580_v46, 4  ;;  %v1034_v53 = vrot.slane %v2579_v39, 4  ;;  %v942_v47 = vrot.slane %v2570_v30, 4  ;;  %v1036_v56 = vrot.slane %v2569_v34, 4 }
 0x23b   : > { %v941_v61 = vsel %vm259_vm0, %v940_v52, %v2570_v30  ;;  %v943_v63 = vsel %vm259_vm0, %v2580_v46, %v942_v47  ;;  %v1035_v0 = vsel %vm259_vm0, %v1034_v53, %v2569_v34  ;;  %v1037_v1 = vsel %vm259_vm0, %v2579_v39, %v1036_v56 }
 0x23c   : > { %v947_v3 = vperm.slane %v941_v61, %v2719_v18  ;;  %v951_v4 = vperm.slane %v943_v63, %v2719_v18  ;;  %v2984_v5 = vperm.slane %v1035_v0, %v2719_v18  ;;  %v2987_v6 = vperm.slane %v1037_v1, %v2719_v18 }
 0x23e   : > { %v962_v9 = vrot.slane %v947_v3, 4  ;;  %v974_v12 = vrot.slane %v951_v4, 4  ;;  %v965_v13 = vsel %vm259_vm0, %v947_v3, %v964_v59  ;;  %v977_v14 = vsel %vm259_vm0, %v951_v4, %v976_v60 }
 0x23f   : > { %v973_v16 = vperm.slane %v965_v13, %v2721_v19  ;;  %v985_v17 = vperm.slane %v977_v14, %v2721_v19  ;;  %v1059_v20 = vsel %vm259_vm0, %v2984_v5, %v1058_v10  ;;  %v1056_v23 = vrot.slane %v2984_v5, 4 }
 0x240   : > { %v3002_v21 = vsel %vm259_vm0, %v962_v9, %v935_v42  ;;  %v3006_v24 = vperm.slane %v1059_v20, %v2721_v19  ;;  %v1071_v25 = vsel %vm259_vm0, %v2987_v6, %v1070_v11  ;;  %v1068_v26 = vrot.slane %v2987_v6, 4 }
 0x241   : > { %v3012_v27 = vperm.slane %v1071_v25, %v2721_v19  ;;  %v1011_v28 = vsel %vm259_vm0, %v1010_v40, %v973_v16  ;;  %v975_v29 = vsel %vm259_vm0, %v974_v12, %v939_v43  ;;  %v1020_v37 = vrot.slane %v985_v17, 4 }
 0x242   : > { %v1118_v31 = vpack.c.bf16 %v1011_v28, %v1011_v28  ;;  %v981_v36 = vperm.slane %v975_v29, %v2721_v19  ;;  %v1019_v54 = vsel %vm259_vm0, %v1018_v15, %v985_v17  ;;  %v1012_v42 = vrot.slane %v973_v16, 4 }
 0x243   : > { %v1122_v55 = vpack.c.bf16 %v1019_v54, %v1019_v54  ;;  %v1114_v44 = vrot.slane %v3012_v27, 4  ;;  %v3021_v45 = vsel %vm259_vm0, %v1104_v58, %v3006_v24  ;;  %v1021_v39 = vsel %vm259_vm0, %v1005_v48, %v1020_v37 }
 0x244   : > { %v1150_v46 = vunpack.c.l.b16 %v1118_v31  ;;  %v1015_v40 = vsel %vm259_vm0, %v1014_v49, %v981_v36  ;;  %v1016_v43 = vrot.slane %v981_v36, 4  ;;  %v1123_v34 = vpack.c.bf16 %v1021_v39, %v1021_v39 }
 0x245   : > { %v1120_v30 = vpack.c.bf16 %v1015_v40, %v1015_v40  ;;  %v1154_v52 = vunpack.c.l.b16 %v1122_v55  ;;  %v1013_v53 = vsel %vm259_vm0, %v2943_v62, %v1012_v42  ;;  %v1115_v57 = vsel %vm259_vm0, %v2990_v7, %v1114_v44 }
 0x246   : > { %v1166_v47 = vpack.c.b16 %v1150_v46, %v1150_v46  ;;  %v1119_v56 = vpack.c.bf16 %v1013_v53, %v1013_v53  ;;  %v1017_v58 = vsel %vm259_vm0, %v2951_v32, %v1016_v43  ;;  %v1155_v60 = vunpack.c.l.b16 %v1123_v34 }
 0x247   : > { %v1152_v59 = vunpack.c.l.b16 %v1120_v30  ;;  %v1170_v49 = vpack.c.b16 %v1154_v52, %v1154_v52  ;;  %v1131_v61 = vpack.c.bf16 %v1115_v57, %v1115_v57  ;;  %v1121_v1 = vpack.c.bf16 %v1017_v58, %v1017_v58 }
 0x248   : > { %v1195_v48 = vshrl.u32 %v1166_v47, 16  ;;  %v1198_v63 = vshll.u32 %v1166_v47, 16  ;;  %v1151_v0 = vunpack.c.l.b16 %v1119_v56  ;;  %v1171_v4 = vpack.c.b16 %v1155_v60, %v1155_v60 }
 0x249   : > { %v1168_v3 = vpack.c.b16 %v1152_v59, %v1152_v59  ;;  %v1223_v10 = vshrl.u32 %v1170_v49, 16  ;;  %v1226_v62 = vshll.u32 %v1170_v49, 16  ;;  %v1163_v12 = vunpack.c.l.b16 %v1131_v61 }
 0x24a   : > { %v1197_v11 = vrot.slane %v1195_v48, 7  ;;  %v1167_v9 = vpack.c.b16 %v1151_v0, %v1151_v0  ;;  %v1153_v13 = vunpack.c.l.b16 %v1121_v1  ;;  %v1230_v16 = vshrl.u32 %v1171_v4, 16 }
 0x24b   : > { %v1209_v14 = vshrl.u32 %v1168_v3, 16  ;;  %v1212_v15 = vshll.u32 %v1168_v3, 16  ;;  %v1233_v17 = vshll.u32 %v1171_v4, 16  ;;  %v1225_v28 = vrot.slane %v1223_v10, 7 }
 0x24c   : > { %v1200_v20 = vor.u32 %v1198_v63, %v1197_v11  ;;  %v1202_v29 = vshrl.u32 %v1167_v9, 16  ;;  %v1205_v31 = vshll.u32 %v1167_v9, 16  ;;  %v1232_v37 = vrot.slane %v1230_v16, 7 }
 0x24d   : > { %v1211_v36 = vrot.slane %v1209_v14, 7  ;;  %v1179_v54 = vpack.c.b16 %v1163_v12, %v1163_v12  ;;  %v1169_v55 = vpack.c.b16 %v1153_v13, %v1153_v13  ;;  %v1228_v44 = vor.u32 %v1226_v62, %v1225_v28 }
 0x24e   : > { %v1313_v42 = vsel %vm3033_vm15, 0, %v1200_v20  ;;  %v1204_v46 = vrot.slane %v1202_v29, 7  ;;  %v1126_v40 = vpack.c.bf16 %v3021_v45, %v3021_v45  ;;  %v1235_v30 = vor.u32 %v1233_v17, %v1232_v37 }
 0x24f   : > { %v1332_v39 = vsel %vm3039_vm2, %v1313_v42, 0  ;;  %v1214_v43 = vor.u32 %v1212_v15, %v1211_v36  ;;  %v1286_v34 = vshrl.u32 %v1179_v54, 16  ;;  %v1057_v52 = vsel %vm259_vm0, %v1056_v23, %v2970_v50 }
 0x250   : > { %1366 = vrot.lane.b32.xlu0 %v1332_v39, %s2642_s28  ;;  %v1317_v53 = vsel %vm3033_vm15, 0, %v1228_v44  ;;  %v1207_v47 = vor.u32 %v1205_v31, %v1204_v46  ;;  %v1216_v56 = vshrl.u32 %v1169_v55, 16  ;;  %v1318_v57 = vsel %vm3033_vm15, 0, %v1235_v30 }
 0x251   : > { %v1315_v45 = vsel %vm3033_vm15, 0, %v1214_v43  ;;  %v1288_v58 = vrot.slane %v1286_v34, 7  ;;  %v1289_v59 = vshll.u32 %v1179_v54, 16  ;;  %v1112_v5 = vrot.slane %v2990_v7, 4 }
 0x252   : > { %v1334_v50 = vsel %vm3039_vm2, %v1315_v45, 0  ;;  %v1337_v23 = vsel %vm3039_vm2, %v1318_v57, 0  ;;  %v1336_v60 = vsel %vm3039_vm2, %v1317_v53, 0  ;;  %v1314_v49 = vsel %vm3033_vm15, 0, %v1207_v47 }
 0x253   : > { %1370 = vrot.lane.b32.xlu2 %v1334_v50, %s2642_s28  ;;  %1376 = vrot.lane.b32.xlu1 %v1337_v23, %s2642_s28  ;;  %v1291_v61 = vor.u32 %v1289_v59, %v1288_v58  ;;  %v1218_v48 = vrot.slane %v1216_v56, 7  ;;  %v1158_v63 = vunpack.c.l.b16 %v1126_v40  ;;  %v1069_v7 = vsel %vm259_vm0, %v1068_v26, %v2973_v51 }
 0x254   : > { %v1106_v0 = vrot.slane %v3006_v24, 4  ;;  %v1063_v1 = vperm.slane %v1057_v52, %v2721_v19  ;;  %v3079_v3 = vperm.slane %v3002_v21, %v2721_v19  ;;  %v1219_v10 = vshll.u32 %v1169_v55, 16 }
 0x255   : > { %v1326_v4 = vsel %vm3033_vm15, 0, %v1291_v61  ;;  %v1174_v62 = vpack.c.b16 %v1158_v63, %v1158_v63  ;;  %v1075_v11 = vperm.slane %v1069_v7, %v2721_v19  ;;  %v1333_v6 = vsel %vm3039_vm2, %v1314_v49, 0 }
 0x256   : > { %v1107_v51 = vsel %vm259_vm0, %v2955_v35, %v1106_v0  ;;  %v1101_v24 = vsel %vm259_vm0, %v1100_v41, %v1063_v1  ;;  %v1007_v21 = vsel %vm259_vm0, %v1006_v33, %v3079_v3  ;;  %v1345_v26 = vsel %vm3039_vm2, %v1326_v4, 0 }
 0x257   : > { %v1221_v9 = vor.u32 %v1219_v10, %v1218_v48  ;;  %v1251_v12 = vshrl.u32 %v1174_v62, 16  ;;  %v1109_v13 = vsel %vm259_vm0, %v1108_v8, %v1075_v11  ;;  %v1254_v35 = vshll.u32 %v1174_v62, 16 }
 0x258   : > { %1374 = vrot.lane.b32.xlu0 %v1336_v60, %s2642_s28  ;;  %v1128_v14 = vpack.c.bf16 %v1109_v13, %v1109_v13  ;;  %v1127_v15 = vpack.c.bf16 %v1107_v51, %v1107_v51  ;;  %v1110_v41 = vrot.slane %v1075_v11, 4  ;;  %v1124_v17 = vpack.c.bf16 %v1101_v24, %v1101_v24 }
 0x259   : > { %v1253_v16 = vrot.slane %v1251_v12, 7  ;;  %v1116_v20 = vpack.c.bf16 %v1007_v21, %v1007_v21  ;;  %v1102_v28 = vrot.slane %v1063_v1, 4  ;;  %v1113_v36 = vsel %vm259_vm0, %v1112_v5, %v3012_v27 }
 0x25a   : > { %v1160_v33 = vunpack.c.l.b16 %v1128_v14  ;;  %v1159_v29 = vunpack.c.l.b16 %v1127_v15  ;;  %v1111_v31 = vsel %vm259_vm0, %v2959_v38, %v1110_v41  ;;  %v1156_v54 = vunpack.c.l.b16 %v1124_v17 }
 0x25b   : > { %1368 = vrot.lane.b32.xlu1 %v1333_v6, %s2642_s28  ;;  %1392 = vrot.lane.b32.xlu2 %v1345_v26, %s2642_s28  ;;  %v1256_v8 = vor.u32 %v1254_v35, %v1253_v16  ;;  %v1129_v37 = vpack.c.bf16 %v1111_v31, %v1111_v31  ;;  %v1148_v55 = vunpack.c.l.b16 %v1116_v20  ;;  %v1316_v42 = vsel %vm3033_vm15, 0, %v1221_v9 }
 0x25c   : > { %v1176_v44 = vpack.c.b16 %v1160_v33, %v1160_v33  ;;  %v1175_v46 = vpack.c.b16 %v1159_v29, %v1159_v29  ;;  %v1172_v39 = vpack.c.b16 %v1156_v54, %v1156_v54  ;;  %v1103_v38 = vsel %vm259_vm0, %v2946_v2, %v1102_v28 }
 0x25d   : > { %v1161_v40 = vunpack.c.l.b16 %v1129_v37  ;;  %v1164_v43 = vpack.c.b16 %v1148_v55, %v1148_v55  ;;  %v1321_v27 = vsel %vm3033_vm15, 0, %v1256_v8  ;;  %v1130_v52 = vpack.c.bf16 %v1113_v36, %v1113_v36 }
 0x25e   : > { %v1265_v30 = vshrl.u32 %v1176_v44, 16  ;;  %v1258_v34 = vshrl.u32 %v1175_v46, 16  ;;  %v1335_v53 = vsel %vm3039_vm2, %v1316_v42, 0  ;;  %v1268_v47 = vshll.u32 %v1176_v44, 16 }
 0x25f   : > { %v1177_v56 = vpack.c.b16 %v1161_v40, %v1161_v40  ;;  %v1237_v45 = vshrl.u32 %v1172_v39, 16  ;;  %v1261_v59 = vshll.u32 %v1175_v46, 16  ;;  %v1181_v5 = vshrl.u32 %v1164_v43, 16 }
 0x260   : > { %1372 = vrot.lane.b32.xlu0 %v1335_v53, %s2642_s28  ;;  %v1267_v57 = vrot.slane %v1265_v30, 7  ;;  %v1260_v58 = vrot.slane %v1258_v34, 7  ;;  %v1340_v2 = vsel %vm3039_vm2, %v1321_v27, 0  ;;  %v1125_v60 = vpack.c.bf16 %v1103_v38, %v1103_v38 }
 0x261   : > { %v1272_v50 = vshrl.u32 %v1177_v56, 16  ;;  %v1239_v23 = vrot.slane %v1237_v45, 7  ;;  %v1240_v48 = vshll.u32 %v1172_v39, 16  ;;  %v1162_v63 = vunpack.c.l.b16 %v1130_v52 }
 0x262   : > { %v1270_v49 = vor.u32 %v1268_v47, %v1267_v57  ;;  %v1263_v61 = vor.u32 %v1261_v59, %v1260_v58  ;;  %v1275_v0 = vshll.u32 %v1177_v56, 16  ;;  %v1157_v1 = vunpack.c.l.b16 %v1125_v60 }
 0x263   : > { %1382 = vrot.lane.b32.xlu2 %v1340_v2, %s2642_s28  ;;  %v1274_v7 = vrot.slane %v1272_v50, 7  ;;  %v1008_v4 = vrot.slane %v3079_v3, 4  ;;  %v1183_v11 = vrot.slane %v1181_v5, 7  ;;  %v1178_v6 = vpack.c.b16 %v1162_v63, %v1162_v63 }
 0x264   : > { %v1323_v10 = vsel %vm3033_vm15, 0, %v1270_v49  ;;  %v1322_v62 = vsel %vm3033_vm15, 0, %v1263_v61  ;;  %v1242_v21 = vor.u32 %v1240_v48, %v1239_v23  ;;  %v1184_v26 = vshll.u32 %v1164_v43, 16 }
 0x265   : > { %v1342_v51 = vsel %vm3039_vm2, %v1323_v10, 0  ;;  %v1277_v24 = vor.u32 %v1275_v0, %v1274_v7  ;;  %v1173_v9 = vpack.c.b16 %v1157_v1, %v1157_v1  ;;  %v1279_v12 = vshrl.u32 %v1178_v6, 16 }
 0x266   : > { %1386 = vrot.lane.b32.xlu1 %v1342_v51, %s2642_s28  ;;  %v1341_v3 = vsel %vm3039_vm2, %v1322_v62, 0  ;;  %v1009_v35 = vsel %vm259_vm0, %v2938_v22, %v1008_v4  ;;  %v1186_v14 = vor.u32 %v1184_v26, %v1183_v11  ;;  %v1319_v41 = vsel %vm3033_vm15, 0, %v1242_v21 }
 0x267   : > { %v1324_v13 = vsel %vm3033_vm15, 0, %v1277_v24  ;;  %v1244_v15 = vshrl.u32 %v1173_v9, 16  ;;  %v1117_v16 = vpack.c.bf16 %v1009_v35, %v1009_v35  ;;  %v1247_v28 = vshll.u32 %v1173_v9, 16 }
 0x268   : > { %1384 = vrot.lane.b32.xlu0 %v1341_v3, %s2642_s28  ;;  %v1343_v17 = vsel %vm3039_vm2, %v1324_v13, 0  ;;  %v1281_v33 = vrot.slane %v1279_v12, 7  ;;  %v1311_v22 = vsel %vm3033_vm15, 0, %v1186_v14  ;;  %v1282_v36 = vshll.u32 %v1178_v6, 16 }
 0x269   : > { %v1246_v20 = vrot.slane %v1244_v15, 7  ;;  %v1149_v29 = vunpack.c.l.b16 %v1117_v16  ;;  %v1338_v8 = vsel %vm3039_vm2, %v1319_v41, 0  ;;  %v1330_v55 = vsel %vm3039_vm2, %v1311_v22, 0 }
 0x26a   : > { %v1284_v54 = vor.u32 %v1282_v36, %v1281_v33 }
 0x26b   : > { %1388 = vrot.lane.b32.xlu2 %v1343_v17, %s2642_s28  ;;  %v1249_v31 = vor.u32 %v1247_v28, %v1246_v20  ;;  %v1165_v37 = vpack.c.b16 %v1149_v29, %v1149_v29 }
 0x26c   : > { %v1325_v40 = vsel %vm3033_vm15, 0, %v1284_v54 }
 0x26d   : > { %v1320_v42 = vsel %vm3033_vm15, 0, %v1249_v31  ;;  %v1188_v44 = vshrl.u32 %v1165_v37, 16  ;;  %v1191_v43 = vshll.u32 %v1165_v37, 16  ;;  %v1344_v38 = vsel %vm3039_vm2, %v1325_v40, 0 }
 0x26e   : > { %1378 = vrot.lane.b32.xlu1 %v1338_v8, %s2642_s28  ;;  %v1339_v46 = vsel %vm3039_vm2, %v1320_v42, 0 }
 0x26f   : > { %v1190_v39 = vrot.slane %v1188_v44, 7 }
 0x270   : > { %1362 = vrot.lane.b32.xlu0 %v1330_v55, %s2642_s28 }
 0x271   : > { %v1193_v27 = vor.u32 %v1191_v43, %v1190_v39 }
 0x273   : > { %1380 = vrot.lane.b32.xlu2 %v1339_v46, %s2642_s28  ;;  %v1312_v30 = vsel %vm3033_vm15, 0, %v1193_v27  ;;  %vm1836_vm15 = vcmask 187392  }
 0x274   : > { %v1331_v34 = vsel %vm3039_vm2, %v1312_v30, 0 }
 0x276   : > { %1390 = vrot.lane.b32.xlu1 %v1344_v38, %s2642_s28 }
 0x27e   : > { %1364 = vrot.lane.b32.xlu1 %v1331_v34, %s2642_s28 }
 0x2ad   : > { %v1371_v52 = vpop.permute.xlu2 %1370 }
 0x2ae   : > { %v1404_v49 = vsel %vm1394_vm3, 0, %v1371_v52 }
 0x2af   : > { %v1435_v4 = vsel %vm573_vm1, %v1404_v49, 0 }
 0x2b0   : > { %v1459_v3 = vrot.slane %v1435_v4, 4 }
 0x2b5   : > { %v1393_v53 = vpop.permute.xlu2 %1392 }
 0x2b6   : > { %v1426_v32 = vsel %vm1394_vm3, 0, %v1393_v53 }
 0x2b7   : > { %v1457_v61 = vsel %vm573_vm1, %v1426_v32, 0 }
 0x2b8   : > { %v1531_v10 = vrot.slane %v1457_v61, 4 }
 0x2bd   : > { %v1383_v45 = vpop.permute.xlu2 %1382 }
 0x2be   : > { %v1416_v29 = vsel %vm1394_vm3, 0, %v1383_v45 }
 0x2bf   : > { %v1447_v27 = vsel %vm573_vm1, %v1416_v29, 0 }
 0x2c2   : > { %v1367_v47 = vpop.permute.xlu0 %1366 }
 0x2c3   : > { %v1400_v62 = vsel %vm1394_vm3, 0, %v1367_v47 }
 0x2c4   : > { %v1431_v14 = vsel %vm573_vm1, %v1400_v62, 0 }
 0x2c5   : > { %v1377_v56 = vpop.permute.xlu1 %1376  ;;  %v1389_v5 = vpop.permute.xlu2 %1388 }
 0x2c6   : > { %v1422_v48 = vsel %vm1394_vm3, 0, %v1389_v5  ;;  %v1410_v51 = vsel %vm1394_vm3, 0, %v1377_v56 }
 0x2c7   : > { %v1453_v11 = vsel %vm573_vm1, %v1422_v48, 0  ;;  %v1441_v15 = vsel %vm573_vm1, %v1410_v51, 0 }
 0x2c8   : > { %v1525_v13 = vrot.slane %v1453_v11, 4  ;;  %v1519_v36 = vrot.slane %v1441_v15, 4 }
 0x2ca   : > { %v1375_v57 = vpop.permute.xlu0 %1374 }
 0x2cb   : > { %v1408_v23 = vsel %vm1394_vm3, 0, %v1375_v57 }
 0x2cc   : > { %v1439_v63 = vsel %vm573_vm1, %v1408_v23, 0 }
 0x2cd   : > { %v1369_v58 = vpop.permute.xlu1 %1368  ;;  %v1381_v25 = vpop.permute.xlu2 %1380  ;;  %v1465_v24 = vrot.slane %v1439_v63, 4 }
 0x2ce   : > { %v1414_v0 = vsel %vm1394_vm3, 0, %v1381_v25  ;;  %v1402_v20 = vsel %vm1394_vm3, 0, %v1369_v58 }
 0x2cf   : > { %v1445_v9 = vsel %vm573_vm1, %v1414_v0, 0  ;;  %v1466_v17 = vsel %vm259_vm0, %v1465_v24, %v1431_v14  ;;  %v1433_v42 = vsel %vm573_vm1, %v1402_v20, 0 }
 0x2d0   : > { %v1526_v28 = vsel %vm259_vm0, %v1525_v13, %v1445_v9  ;;  %v1470_v55 = vperm.slane %v1466_v17, %v2719_v18  ;;  %v1520_v34 = vsel %vm259_vm0, %v1519_v36, %v1433_v42 }
 0x2d1   : > { %v1530_v44 = vperm.slane %v1526_v28, %v2719_v18 }
 0x2d2   : > { %v1373_v59 = vpop.permute.xlu0 %1372  ;;  %v1483_v53 = vrot.slane %v1470_v55, 4 }
 0x2d3   : > { %v1406_v40 = vsel %vm1394_vm3, 0, %v1373_v59  ;;  %v1551_v57 = vrot.slane %v1530_v44, 4  ;;  %v1524_v59 = vperm.slane %v1520_v34, %v2719_v18 }
 0x2d4   : > { %v1437_v47 = vsel %vm573_vm1, %v1406_v40, 0 }
 0x2d5   : > { %v1513_v32 = vrot.slane %v1437_v47, 4 }
 0x2d8   : > { %v1387_v2 = vpop.permute.xlu1 %1386 }
 0x2d9   : > { %v1420_v21 = vsel %vm1394_vm3, 0, %v1387_v2 }
 0x2da   : > { %v1385_v50 = vpop.permute.xlu0 %1384  ;;  %v1451_v41 = vsel %vm573_vm1, %v1420_v21, 0 }
 0x2db   : > { %v1418_v60 = vsel %vm1394_vm3, 0, %v1385_v50  ;;  %v1471_v8 = vrot.slane %v1451_v41, 4 }
 0x2dc   : > { %v1449_v1 = vsel %vm573_vm1, %v1418_v60, 0 }
 0x2dd   : > { %v1532_v12 = vsel %vm259_vm0, %v1531_v10, %v1449_v1  ;;  %v1537_v1 = vrot.slane %v1524_v59, 4 }
 0x2de   : > { %v1536_v33 = vperm.slane %v1532_v12, %v2719_v18 }
 0x2e0   : > { %v1379_v7 = vpop.permute.xlu1 %1378  ;;  %v1549_v39 = vrot.slane %v1536_v33, 4  ;;  %v1552_v23 = vsel %vm259_vm0, %v1536_v33, %v1551_v57 }
 0x2e1   : > { %v1412_v35 = vsel %vm1394_vm3, 0, %v1379_v7  ;;  %v1560_v62 = vperm.slane %v1552_v23, %v2721_v19 }
 0x2e2   : > { %v1363_v6 = vpop.permute.xlu0 %1362  ;;  %v1443_v22 = vsel %vm573_vm1, %v1412_v35, 0  ;;  %v1550_v58 = vsel %vm259_vm0, %v1549_v39, %v1530_v44 }
 0x2e3   : > { %v1396_v26 = vsel %vm1394_vm3, 0, %v1363_v6  ;;  %v1472_v43 = vsel %vm259_vm0, %v1471_v8, %v1443_v22  ;;  %v1556_v48 = vperm.slane %v1550_v58, %v2721_v19  ;;  %v1565_v33 = vrot.slane %v1560_v62, 4  ;;  %v1897_v58 = vld [vmem:[%s3465_s4] sm:$0xff] }
 0x2e4   : > { %v1427_v16 = vsel %vm573_vm1, %v1396_v26, 0  ;;  %v1476_v56 = vperm.slane %v1472_v43, %v2719_v18 }
 0x2e5   : > { %v1460_v37 = vsel %vm259_vm0, %v1459_v3, %v1427_v16  ;;  %v1561_v21 = vrot.slane %v1556_v48, 4 }
 0x2e6   : > { %v1464_v30 = vperm.slane %v1460_v37, %v2719_v18  ;;  %v1497_v60 = vrot.slane %v1476_v56, 4 }
 0x2e8   : > { %v1391_v31 = vpop.permute.xlu1 %1390  ;;  %v1484_v5 = vsel %vm259_vm0, %v1483_v53, %v1464_v30  ;;  %v1485_v6 = vrot.slane %v1464_v30, 4 }
 0x2e9   : > { %v1424_v54 = vsel %vm1394_vm3, 0, %v1391_v31  ;;  %v1490_v63 = vperm.slane %v1484_v5, %v2721_v19  ;;  %v2512_v5 = vld [vmem:[%s3464_s3] sm:$0xff] }
 0x2ea   : > { %v1455_v46 = vsel %vm573_vm1, %v1424_v54, 0  ;;  %v1486_v16 = vsel %vm259_vm0, %v1470_v55, %v1485_v6 }
 0x2eb   : > { %v1477_v38 = vrot.slane %v1455_v46, 4  ;;  %v1509_v9 = vrot.slane %v1490_v63, 4  ;;  %v1494_v54 = vperm.slane %v1486_v16, %v2721_v19 }
 0x2ed   : > { %v1478_v52 = vsel %vm259_vm0, %v1477_v38, %v1447_v27 }
 0x2ee   : > { %v1482_v45 = vperm.slane %v1478_v52, %v2719_v18 }
 0x2f0   : > { %v1495_v2 = vrot.slane %v1482_v45, 4  ;;  %v1365_v50 = vpop.permute.xlu1 %1364  ;;  %v1498_v4 = vsel %vm259_vm0, %v1482_v45, %v1497_v60  ;;  %v2517_v60 = vld [vmem:[%s3464_s3 + $0x28] sm:$0xff] }
 0x2f1   : > { %v1398_v25 = vsel %vm1394_vm3, 0, %v1365_v50  ;;  %v1506_v3 = vperm.slane %v1498_v4, %v2721_v19  ;;  %vm2301_vm3 = vcmask 31744  }
 0x2f2   : > { %v1429_v49 = vsel %vm573_vm1, %v1398_v25, 0  ;;  %v1496_v61 = vsel %vm259_vm0, %v1495_v2, %v1476_v56  ;;  %vm1595_vm1 = vcmask 48128  }
 0x2f3   : > { %v1514_v7 = vsel %vm259_vm0, %v1513_v32, %v1429_v49  ;;  %v1502_v0 = vperm.slane %v1496_v61, %v2721_v19  ;;  %v1511_v22 = vrot.slane %v1506_v3, 4  ;;  %v2514_v32 = vld [vmem:[%s3464_s3 + $0x10] sm:$0xff] }
 0x2f4   : > { %v1518_v10 = vperm.slane %v1514_v7, %v2719_v18 }
 0x2f5   : > { %v1507_v11 = vrot.slane %v1502_v0, 4  ;;  %v1510_v35 = vsel %vm259_vm0, %v1502_v0, %v1509_v9  ;;  %v1512_v44 = vsel %vm259_vm0, %v1511_v22, %v1494_v54  ;;  %v2513_v0 = vld [vmem:[%s3464_s3 + $0x8] sm:$0xff]  ;;  %v2519_v9 = vld [vmem:[%s3464_s3 + $0x38] sm:$0xff] }
 0x2f6   : > { %v1538_v51 = vsel %vm259_vm0, %v1537_v1, %v1518_v10  ;;  %v1539_v24 = vrot.slane %v1518_v10, 4  ;;  %v1576_v8 = vshrl.u32 %v1510_v35, 16  ;;  %v1582_v40 = vshrl.u32 %v1512_v44, 16 }
 0x2f7   : > { %v1544_v26 = vperm.slane %v1538_v51, %v2721_v19  ;;  %v1508_v12 = vsel %vm259_vm0, %v1507_v11, %v1490_v63  ;;  %v2515_v63 = vld [vmem:[%s3464_s3 + $0x18] sm:$0xff]  ;;  %v2518_v11 = vld [vmem:[%s3464_s3 + $0x30] sm:$0xff] }
 0x2f8   : > { %v1540_v13 = vsel %vm259_vm0, %v1524_v59, %v1539_v24  ;;  %v1570_v17 = vshrl.u32 %v1508_v12, 16  ;;  %v1898_v59 = vld [vmem:[%s3465_s4 + $0x8] sm:$0xff] }
 0x2f9   : > { %v1563_v14 = vrot.slane %v1544_v26, 4  ;;  %v1562_v15 = vsel %vm259_vm0, %v1561_v21, %v1544_v26  ;;  %v1548_v41 = vperm.slane %v1540_v13, %v2721_v19  ;;  %v2516_v26 = vld [vmem:[%s3464_s3 + $0x20] sm:$0xff] }
 0x2fa   : > { %v1571_v20 = vshrl.u32 %v1562_v15, 16  ;;  %v1569_v28 = vpack.i.b16 %v1562_v15, %v1508_v12  ;;  %v2520_v12 = vld [vmem:[%s3464_s3 + $0x40] sm:$0xff] }
 0x2fb   : > { %v1564_v29 = vsel %vm259_vm0, %v1556_v48, %v1563_v14  ;;  %v1566_v42 = vsel %vm259_vm0, %v1565_v33, %v1548_v41 }
 0x2fc   : > { %v1575_v31 = vpack.i.b16 %v1564_v29, %v1510_v35  ;;  %v1572_v36 = vpack.i.b16 %v1571_v20, %v1570_v17  ;;  %v1577_v37 = vshrl.u32 %v1564_v29, 16  ;;  %v1583_v46 = vshrl.u32 %v1566_v42, 16 }
 0x2fd   : > { %v1581_v43 = vpack.i.b16 %v1566_v42, %v1512_v44 }
 0x2fe   : > { %1587 = vrot.lane.b32.xlu0 %v1575_v31, %s2643_s11  ;;  %1585 = vrot.lane.b32.xlu2 %v1572_v36, %s2644_s12  ;;  %v1578_v55 = vpack.i.b16 %v1577_v37, %v1576_v8  ;;  %v1584_v39 = vpack.i.b16 %v1583_v46, %v1582_v40 }
 0x300   : > { %1589 = vrot.lane.b32.xlu1 %v1578_v55, %s2645_s13 }
 0x306   : > { %1593 = vrot.lane.b32.xlu0 %v1584_v39, %s2646_s14  ;;  %1591 = vrot.lane.b32.xlu2 %v1581_v43, %s2647_s15 }
 0x358   : > { %v1586_v38 = vpop.permute.xlu2 %1585 }
 0x359   : > { %v1598_v30 = vsel %vm1595_vm1, %v1569_v28, %v1586_v38 }
 0x360   : > { %v1592_v47 = vpop.permute.xlu2 %1591 }
 0x370   : > { %v1588_v27 = vpop.permute.xlu0 %1587 }
 0x371   : > { %v1601_v34 = vsel %vm1599_vm4, %v1598_v30, %v1588_v27 }
 0x372   : > { %v1590_v52 = vpop.permute.xlu1 %1589 }
 0x373   : > { %v1604_v53 = vsel %vm1602_vm5, %v1601_v34, %v1590_v52 }
 0x374   : > { %v1606_v45 = vsel %vm655_vm7, %v1604_v53, %v1592_v47 }
 0x378   : > { %v1594_v56 = vpop.permute.xlu0 %1593 }
 0x379   : > { %v1609_v57 = vsel %vm1607_vm8, %v1606_v45, %v1594_v56 }
 0x37a   : > { %1704 = vrot.lane.b32.xlu0 %v1609_v57, %s2637_s30  ;;  %1671 = vrot.lane.b32.xlu2 %v1609_v57, %s2648_s16 }
 0x37b   : > { %1617 = vrot.lane.b32.xlu1 %v1609_v57, %s2636_s29  ;;  %1661 = vmatpush.bf16.msra.mxu2 %v1609_v57  ;;  %s2656_s29 = smov 98  }
 0x37e   : > { %2449 = vmatmul.msk.bf16.vlgmr.msra.gmra.mxu2 %vm1628_vm9, %v2512_v5 }
 0x382   : > { %1802 = vrot.lane.b32.xlu0 %v1609_v57, %s2649_s17  ;;  %1769 = vrot.lane.b32.xlu2 %v1609_v57, %s2650_s20 }
 0x383   : > { %1736 = vrot.lane.b32.xlu1 %v1609_v57, %s2651_s21 }
 0x38a   : > { %1901 = vperm.xlu0 %2559, %v1897_v58   ;;  %1867 = vrot.lane.b32.xlu2 %v1609_v57, %s2652_s24 }
 0x38b   : > { %1834 = vrot.lane.b32.xlu1 %v1609_v57, %s2653_s25 }
 0x393   : > { %1906 = vperm.xlu1 %2560, %v1898_v59  }
 0x3d4   : > { %v1672_v2 = vpop.permute.xlu2 %1671 }
 0x3d5   : > { %v1675_v50 = vsel %vm1673_vm10, %v1672_v2, 0 }
 0x3d6   : > { %1692 = vmatpush.bf16.msra.mxu3 %v1675_v50 }
 0x3d9   : > { %2456 = vmatmul.msk.bf16.vlgmr.msra.gmra.mxu3 %vm1628_vm9, %v2514_v32 }
 0x3dc   : > { %v1770_v23 = vpop.permute.xlu2 %1769 }
 0x3dd   : > { %v1773_v25 = vsel %vm1771_vm11, %v1770_v23, 0 }
 0x3de   : > { %1790 = vmatpush.bf16.msrb.mxu2 %v1773_v25 }
 0x3e1   : > { %2477 = vmatmul.msk.bf16.vlgmr.msrb.gmra.mxu2 %vm1628_vm9, %v2517_v60 }
 0x3e4   : > { %v1868_v1 = vpop.permute.xlu2 %1867 }
 0x3e5   : > { %v1871_v51 = vsel %vm1869_vm14, %v1868_v1, 0 }
 0x3ec   : > { %v1705_v49 = vpop.permute.xlu0 %1704 }
 0x3ed   : > { %v1707_v61 = vsel %vm1607_vm8, %v1705_v49, 0  ;;  %v1618_v48 = vpop.permute.xlu1 %1617 }
 0x3ee   : > { %v1621_v7 = vsel %vm1619_vm12, %v1618_v48, 0  ;;  %1724 = vmatpush.bf16.msrb.mxu0 %v1707_v61 }
 0x3ef   : > { %1639 = vmatpush.bf16.msra.mxu1 %v1621_v7 }
 0x3f1   : > { %2463 = vmatmul.msk.bf16.vlgmr.msrb.gmra.mxu0 %vm1628_vm9, %v2515_v63 }
 0x3f2   : > { %2444 = vmatmul.msk.bf16.vlgmr.msra.gmra.mxu1 %vm1628_vm9, %v2513_v0 }
 0x3f4   : > { %v1803_v4 = vpop.permute.xlu0 %1802 }
 0x3f5   : > { %v1805_v10 = vsel %vm655_vm7, %v1803_v4, 0  ;;  %v1737_v62 = vpop.permute.xlu1 %1736 }
 0x3f6   : > { %v1740_v6 = vsel %vm1738_vm13, %v1737_v62, 0  ;;  %1822 = vmatpush.bf16.msrb.mxu3 %v1805_v10 }
 0x3f7   : > { %1757 = vmatpush.bf16.msrb.mxu1 %v1740_v6 }
 0x3f9   : > { %2484 = vmatmul.msk.bf16.vlgmr.msrb.gmra.mxu3 %vm1628_vm9, %v2518_v11 }
 0x3fb   : > { %1888 = vmatpush.bf16.msra.mxu1 %v1871_v51 }
 0x3fc   : > { %v1902_v47 = vpop.permute.xlu0 %1901 }
 0x3fd   : > { %v1835_v24 = vpop.permute.xlu1 %1834 }
 0x3fe   : > { %v1838_v21 = vsel %vm1836_vm15, %v1835_v24, 0 }
 0x3ff   : > { %1855 = vmatpush.bf16.msra.mxu0 %v1838_v21 }
 0x401   : > { %v1663_v13 = vpop.f32.mrf.mxu2 }
 0x402   : > { %2470 = vmatmul.msk.bf16.vlgmr.msrb.gmra.mxu1 %vm1628_vm9, %v2516_v26  ;;  %2491 = vmatmul.msk.bf16.vlgmr.msra.gmra.mxu0 %vm1628_vm9, %v2519_v9 }
 0x405   : > { %v1907_v59 = vpop.permute.xlu1 %1906 }
 0x409   : > { %v1665_v41 = vpop.f32.mrf.mxu2 }
 0x412   : > { %2498 = vmatmul.msk.bf16.vlgmr.msra.gmra.mxu1 %vm1628_vm9, %v2520_v12 }
 0x45c   : > { %v1694_v35 = vpop.f32.mrf.mxu3 }
 0x464   : > { %v1696_v17 = vpop.f32.mrf.mxu3  ;;  %v1792_v22 = vpop.f32.mrf.mxu2 }
 0x46c   : > { %v1794_v40 = vpop.f32.mrf.mxu2 }
 0x46e   : > { %v1726_v14 = vpop.f32.mrf.mxu0 }
 0x46f   : > { %v1641_v3 = vpop.f32.mrf.mxu1 }
 0x470   : > { %v1664_v16 = vadd.f32 %v1663_v13, %v1641_v3 }
 0x472   : > { %v1699_v20 = vadd.f32 %v1694_v35, %v1664_v16 }
 0x474   : > { %v1731_v31 = vadd.f32 %v1726_v14, %v1699_v20 }
 0x476   : > { %v1728_v29 = vpop.f32.mrf.mxu0 }
 0x477   : > { %v1643_v15 = vpop.f32.mrf.mxu1 }
 0x478   : > { %v1666_v33 = vadd.f32 %v1665_v41, %v1643_v15 }
 0x47a   : > { %v1700_v36 = vadd.f32 %v1696_v17, %v1666_v33 }
 0x47c   : > { %v1824_v37 = vpop.f32.mrf.mxu3  ;;  %v1732_v42 = vadd.f32 %v1728_v29, %v1700_v36 }
 0x47f   : > { %v1759_v28 = vpop.f32.mrf.mxu1  ;;  %v1857_v44 = vpop.f32.mrf.mxu0 }
 0x480   : > { %v1764_v8 = vadd.f32 %v1759_v28, %v1731_v31 }
 0x482   : > { %v1797_v55 = vadd.f32 %v1792_v22, %v1764_v8 }
 0x484   : > { %v1829_v39 = vadd.f32 %v1824_v37, %v1797_v55  ;;  %v1826_v38 = vpop.f32.mrf.mxu3 }
 0x486   : > { %v1862_v30 = vadd.f32 %v1857_v44, %v1829_v39 }
 0x487   : > { %v1761_v54 = vpop.f32.mrf.mxu1  ;;  %v1859_v53 = vpop.f32.mrf.mxu0 }
 0x488   : > { %v1765_v46 = vadd.f32 %v1761_v54, %v1732_v42 }
 0x48a   : > { %v1798_v43 = vadd.f32 %v1794_v40, %v1765_v46 }
 0x48c   : > { %v1830_v34 = vadd.f32 %v1826_v38, %v1798_v43 }
 0x48e   : > { %v1863_v56 = vadd.f32 %v1859_v53, %v1830_v34 }
 0x48f   : > { %v1890_v27 = vpop.f32.mrf.mxu1 }
 0x490   : > { %v1895_v52 = vadd.f32 %v1890_v27, %v1862_v30 }
 0x492   : > { %v1909_v45 = vadd.f32 %v1902_v47, %v1895_v52 }
 0x494   : > { %v1913_v5 = vmul.f32 0.1, %v1909_v45  ;;  %vm1911_vm7 = vcmp.ge.f32.partialorder %v1909_v45, 0.0 }
 0x496   : > { %v1915_v32 = vsel %vm1911_vm7, %v1909_v45, %v1913_v5 }
 0x497   : > { %v1892_v57 = vpop.f32.mrf.mxu1  ;;  %v1951_v4 = vrot.slane %v1915_v32, 4 }
 0x498   : > { %v1896_v58 = vadd.f32 %v1892_v57, %v1863_v56 }
 0x49a   : > { %v1910_v2 = vadd.f32 %v1907_v59, %v1896_v58 }
 0x49c   : > { %vm1912_vm2 = vcmp.ge.f32.partialorder %v1910_v2, 0.0  ;;  %v1914_v50 = vmul.f32 0.1, %v1910_v2 }
 0x49e   : > { %v1916_v23 = vsel %vm1912_vm2, %v1910_v2, %v1914_v50 }
 0x49f   : > { %v2591_v25 = vpack.i.bf16 %v1916_v23, %v1915_v32  ;;  %v2059_v0 = vrot.slane %v1916_v23, 4 }
 0x4a1   : > { %2592 = vrot.lane.b32.xlu1 %v2591_v25, %s2654_s26  ;;  %2587 = vrot.lane.b32.xlu0 %v2591_v25, %s2655_s27 }
 0x4a2   : > { %2582 = vrot.lane.b32.xlu2 %v2591_v25, %s2649_s17  ;;  %s2658_s17 = smov 4  }
 0x4a9   : > { %2602 = vrot.lane.b32.xlu0 %v2591_v25, %s2637_s30  ;;  %s2657_s30 = smov 8  }
 0x4aa   : > { %2597 = vrot.lane.b32.xlu2 %v2591_v25, %s2656_s29 }
 0x4fc   : > { %v2583_v60 = vpop.permute.xlu2 %2582 }
 0x4fd   : > { %v2585_v63 = vunpack.i.h.bf16 %v2583_v60  ;;  %v2584_v7 = vunpack.i.l.bf16 %v2583_v60 }
 0x4ff   : > { %v2057_v62 = vrot.slane %v2585_v63, 4  ;;  %v2060_v11 = vsel %vm259_vm0, %v2585_v63, %v2059_v0  ;;  %v1949_v6 = vrot.slane %v2584_v7, 4  ;;  %v1952_v51 = vsel %vm259_vm0, %v2584_v7, %v1951_v4 }
 0x500   : > { %v3289_v21 = vperm.slane %v2060_v11, %v2719_v18  ;;  %v3295_v3 = vperm.slane %v1952_v51, %v2719_v18 }
 0x501   : > { %v2058_v9 = vsel %vm259_vm0, %v2057_v62, %v1916_v23  ;;  %v1950_v12 = vsel %vm259_vm0, %v1949_v6, %v1915_v32 }
 0x502   : > { %v3302_v20 = vperm.slane %v2058_v9, %v2719_v18  ;;  %v2115_v28 = vrot.slane %v3289_v21, 4  ;;  %v3306_v33 = vperm.slane %v1950_v12, %v2719_v18  ;;  %v2007_v29 = vrot.slane %v3295_v3, 4 }
 0x504   : > { %v2598_v49 = vpop.permute.xlu2 %2597  ;;  %v2103_v23 = vrot.slane %v3302_v20, 4 }
 0x505   : > { %v2600_v61 = vunpack.i.h.bf16 %v2598_v49  ;;  %v2599_v48 = vunpack.i.l.bf16 %v2598_v49 }
 0x507   : > { %v2091_v1 = vrot.slane %v2600_v61, 4  ;;  %v1983_v10 = vrot.slane %v2599_v48, 4  ;;  %v2096_v13 = vperm.slane %v2600_v61, %v2719_v18  ;;  %v1988_v14 = vperm.slane %v2599_v48, %v2719_v18 }
 0x508   : > { %v1995_v61 = vrot.slane %v3306_v33, 4 }
 0x509   : > { %v2092_v24 = vsel %vm259_vm0, 0.0, %v2091_v1  ;;  %v1984_v26 = vsel %vm259_vm0, 0.0, %v1983_v10  ;;  %v2125_v22 = vrot.slane %v2096_v13, 4  ;;  %v2017_v37 = vrot.slane %v1988_v14, 4 }
 0x50a   : > { %v2100_v35 = vperm.slane %v2092_v24, %v2719_v18  ;;  %v1992_v41 = vperm.slane %v1984_v26, %v2719_v18 }
 0x50c   : > { %v2137_v8 = vrot.slane %v2100_v35, 4  ;;  %v2029_v44 = vrot.slane %v1992_v41, 4 }
 0x513   : > { %v2588_v15 = vpop.permute.xlu0 %2587  ;;  %v2593_v54 = vpop.permute.xlu1 %2592 }
 0x514   : > { %v2590_v16 = vunpack.i.h.bf16 %v2588_v15  ;;  %v2589_v17 = vunpack.i.l.bf16 %v2588_v15  ;;  %v2595_v34 = vunpack.i.h.bf16 %v2593_v54  ;;  %v2594_v52 = vunpack.i.l.bf16 %v2593_v54 }
 0x516   : > { %v2081_v31 = vrot.slane %v2590_v16, 4  ;;  %v2086_v36 = vperm.slane %v2590_v16, %v2719_v18  ;;  %v1973_v42 = vrot.slane %v2589_v17, 4  ;;  %v1978_v55 = vperm.slane %v2589_v17, %v2719_v18 }
 0x517   : > { %v2069_v48 = vrot.slane %v2595_v34, 4  ;;  %v1961_v0 = vrot.slane %v2594_v52, 4 }
 0x518   : > { %v2082_v46 = vsel %vm259_vm0, 0.0, %v2081_v31  ;;  %v2127_v40 = vrot.slane %v2086_v36, 4  ;;  %v2126_v39 = vsel %vm259_vm0, %v2125_v22, %v2086_v36  ;;  %v1974_v38 = vsel %vm259_vm0, 0.0, %v1973_v42 }
 0x519   : > { %v2090_v43 = vperm.slane %v2082_v46, %v2719_v18  ;;  %v2018_v27 = vsel %vm259_vm0, %v2017_v37, %v1978_v55  ;;  %v2019_v30 = vrot.slane %v1978_v55, 4  ;;  %v1982_v53 = vperm.slane %v1974_v38, %v2719_v18 }
 0x51a   : > { %v2128_v47 = vsel %vm259_vm0, %v2096_v13, %v2127_v40  ;;  %v3320_v57 = vperm.slane %v2018_v27, %v2721_v19  ;;  %v3326_v50 = vperm.slane %v2126_v39, %v2721_v19 }
 0x51b   : > { %v2139_v56 = vrot.slane %v2090_v43, 4  ;;  %v2020_v45 = vsel %vm259_vm0, %v1988_v14, %v2019_v30  ;;  %v2138_v58 = vsel %vm259_vm0, %v2137_v8, %v2090_v43  ;;  %v2030_v5 = vsel %vm259_vm0, %v2029_v44, %v1982_v53  ;;  %v2603_v32 = vpop.permute.xlu0 %2602 }
 0x51c   : > { %v2028_v59 = vperm.slane %v2020_v45, %v2721_v19  ;;  %v2031_v2 = vrot.slane %v1982_v53, 4  ;;  %v3330_v25 = vperm.slane %v2030_v5, %v2721_v19  ;;  %v3333_v60 = vperm.slane %v2128_v47, %v2721_v19 }
 0x51d   : > { %v2140_v49 = vsel %vm259_vm0, %v2100_v35, %v2139_v56  ;;  %v3339_v7 = vperm.slane %v2138_v58, %v2721_v19  ;;  %v2605_v10 = vunpack.i.h.bf16 %v2603_v32  ;;  %v2041_v62 = vrot.slane %v3320_v57, 4 }
 0x51e   : > { %v2032_v63 = vsel %vm259_vm0, %v1992_v41, %v2031_v2  ;;  %v3345_v4 = vperm.slane %v2140_v49, %v2721_v19  ;;  %v2045_v11 = vrot.slane %v2028_v59, 4  ;;  %v2149_v6 = vrot.slane %v3326_v50, 4 }
 0x51f   : > { %v3342_v1 = vperm.slane %v2032_v63, %v2721_v19  ;;  %v2604_v51 = vunpack.i.l.bf16 %v2603_v32  ;;  %v2049_v24 = vrot.slane %v3330_v25, 4  ;;  %v2153_v26 = vrot.slane %v3333_v60, 4 }
 0x520   : > { %v2070_v9 = vsel %vm259_vm0, %v2069_v48, %v2605_v10  ;;  %v2071_v12 = vrot.slane %v2605_v10, 4  ;;  %v2157_v13 = vrot.slane %v3339_v7, 4  ;;  %v2161_v16 = vrot.slane %v3345_v4, 4 }
 0x521   : > { %v2076_v35 = vperm.slane %v2070_v9, %v2719_v18  ;;  %v1962_v14 = vsel %vm259_vm0, %v1961_v0, %v2604_v51  ;;  %v1963_v15 = vrot.slane %v2604_v51, 4  ;;  %v2053_v41 = vrot.slane %v3342_v1, 4 }
 0x522   : > { %v2072_v17 = vsel %vm259_vm0, %v2595_v34, %v2071_v12  ;;  %v1968_v22 = vperm.slane %v1962_v14, %v2719_v18 }
 0x523   : > { %v2080_v31 = vperm.slane %v2072_v17, %v2719_v18  ;;  %v2101_v36 = vrot.slane %v2076_v35, 4  ;;  %v1964_v8 = vsel %vm259_vm0, %v2594_v52, %v1963_v15  ;;  %v2104_v37 = vsel %vm259_vm0, %v2076_v35, %v2103_v23 }
 0x524   : > { %v1972_v54 = vperm.slane %v1964_v8, %v2719_v18  ;;  %v1993_v42 = vrot.slane %v1968_v22, 4  ;;  %v1996_v55 = vsel %vm259_vm0, %v1968_v22, %v1995_v61  ;;  %v2112_v44 = vperm.slane %v2104_v37, %v2721_v19 }
 0x525   : > { %v2113_v46 = vrot.slane %v2080_v31, 4  ;;  %v2004_v40 = vperm.slane %v1996_v55, %v2721_v19  ;;  %v2102_v39 = vsel %vm259_vm0, %v2101_v36, %v3302_v20  ;;  %v2116_v43 = vsel %vm259_vm0, %v2080_v31, %v2115_v28 }
 0x526   : > { %v1994_v38 = vsel %vm259_vm0, %v1993_v42, %v3306_v33  ;;  %v2005_v27 = vrot.slane %v1972_v54, 4  ;;  %v2008_v30 = vsel %vm259_vm0, %v1972_v54, %v2007_v29  ;;  %v2108_v34 = vperm.slane %v2102_v39, %v2721_v19 }
 0x527   : > { %v2000_v52 = vperm.slane %v1994_v38, %v2721_v19  ;;  %v2016_v53 = vperm.slane %v2008_v30, %v2721_v19  ;;  %v2046_v20 = vsel %vm259_vm0, %v2045_v11, %v2004_v40  ;;  %v2047_v47 = vrot.slane %v2004_v40, 4 }
 0x528   : > { %v2006_v28 = vsel %vm259_vm0, %v2005_v27, %v3295_v3  ;;  %v2114_v33 = vsel %vm259_vm0, %v2113_v46, %v3289_v21  ;;  %v2124_v56 = vperm.slane %v2116_v43, %v2721_v19  ;;  %v2150_v45 = vsel %vm259_vm0, %v2149_v6, %v2108_v34 }
 0x529   : > { %v2012_v29 = vperm.slane %v2006_v28, %v2721_v19  ;;  %v2042_v58 = vsel %vm259_vm0, %v2041_v62, %v2000_v52  ;;  %v2043_v5 = vrot.slane %v2000_v52, 4  ;;  %v2048_v2 = vsel %vm259_vm0, %v2028_v59, %v2047_v47 }
 0x52a   : > { %v2054_v32 = vsel %vm259_vm0, %v2053_v41, %v2016_v53  ;;  %v2055_v23 = vrot.slane %v2016_v53, 4  ;;  %v2120_v49 = vperm.slane %v2114_v33, %v2721_v19  ;;  %v2151_v3 = vrot.slane %v2108_v34, 4 }
 0x52b   : > { %v2051_v61 = vrot.slane %v2012_v29, 4  ;;  %v2154_v21 = vsel %vm259_vm0, %v2153_v26, %v2112_v44  ;;  %v2155_v48 = vrot.slane %v2112_v44, 4  ;;  %v2162_v63 = vsel %vm259_vm0, %v2161_v16, %v2124_v56 }
 0x52c   : > { %v2159_v0 = vrot.slane %v2120_v49, 4  ;;  %v2163_v10 = vrot.slane %v2124_v56, 4  ;;  %v2165_v11 = vrot.slane %v2046_v20, 4  ;;  %v2171_v6 = vrot.slane %v2048_v2, 4 }
 0x52d   : > { %v2156_v62 = vsel %vm259_vm0, %v3333_v60, %v2155_v48  ;;  %v2177_v59 = vrot.slane %v2054_v32, 4  ;;  %v2221_v51 = vrot.slane %v2154_v21, 4  ;;  %v2233_v9 = vrot.slane %v2162_v63, 4 }
 0x52e   : > { %v2227_v12 = vrot.slane %v2156_v62, 4  ;;  %v2044_v35 = vsel %vm259_vm0, %v3320_v57, %v2043_v5  ;;  %v2050_v14 = vsel %vm259_vm0, %v2049_v24, %v2012_v29  ;;  %v2052_v26 = vsel %vm259_vm0, %v3330_v25, %v2051_v61 }
 0x52f   : > { %v2056_v15 = vsel %vm259_vm0, %v3342_v1, %v2055_v23  ;;  %v2152_v41 = vsel %vm259_vm0, %v3326_v50, %v2151_v3  ;;  %v2158_v60 = vsel %vm259_vm0, %v2157_v13, %v2120_v49  ;;  %v2160_v16 = vsel %vm259_vm0, %v3339_v7, %v2159_v0 }
 0x530   : > { %v2164_v17 = vsel %vm259_vm0, %v3345_v4, %v2163_v10  ;;  %v2166_v57 = vsel %vm259_vm0, %v2165_v11, %v2042_v58  ;;  %v2172_v24 = vsel %vm259_vm0, %v2171_v6, %v2044_v35  ;;  %v2178_v25 = vsel %vm259_vm0, %v2177_v59, %v2050_v14 }
 0x531   : > { %v2170_v22 = vperm.slane %v2166_v57, %v2719_v18  ;;  %v2176_v1 = vperm.slane %v2172_v24, %v2719_v18  ;;  %v2182_v50 = vperm.slane %v2178_v25, %v2719_v18  ;;  %v2183_v31 = vrot.slane %v2056_v15, 4 }
 0x532   : > { %v2222_v13 = vsel %vm259_vm0, %v2221_v51, %v2150_v45  ;;  %v2228_v7 = vsel %vm259_vm0, %v2227_v12, %v2152_v41  ;;  %v2234_v36 = vsel %vm259_vm0, %v2233_v9, %v2158_v60  ;;  %v2239_v4 = vrot.slane %v2164_v17, 4 }
 0x533   : > { %v2184_v8 = vsel %vm259_vm0, %v2183_v31, %v2052_v26  ;;  %v2191_v37 = vrot.slane %v2170_v22, 4  ;;  %v2203_v54 = vrot.slane %v2182_v50, 4  ;;  %v2226_v42 = vperm.slane %v2222_v13, %v2719_v18 }
 0x534   : > { %v2188_v55 = vperm.slane %v2184_v8, %v2719_v18  ;;  %v2232_v44 = vperm.slane %v2228_v7, %v2719_v18  ;;  %v2238_v46 = vperm.slane %v2234_v36, %v2719_v18  ;;  %v2240_v40 = vsel %vm259_vm0, %v2239_v4, %v2160_v16 }
 0x535   : > { %v2192_v39 = vsel %vm259_vm0, %v2176_v1, %v2191_v37  ;;  %v2244_v43 = vperm.slane %v2240_v40, %v2719_v18  ;;  %v2247_v38 = vrot.slane %v2226_v42, 4  ;;  %v2189_v27 = vrot.slane %v2176_v1, 4 }
 0x536   : > { %v2200_v30 = vperm.slane %v2192_v39, %v2721_v19  ;;  %v2204_v34 = vsel %vm259_vm0, %v2188_v55, %v2203_v54  ;;  %v2259_v52 = vrot.slane %v2238_v46, 4  ;;  %v2201_v53 = vrot.slane %v2188_v55, 4 }
 0x537   : > { %v2212_v20 = vperm.slane %v2204_v34, %v2721_v19  ;;  %v2248_v47 = vsel %vm259_vm0, %v2232_v44, %v2247_v38  ;;  %v2190_v28 = vsel %vm259_vm0, %v2189_v27, %v2170_v22  ;;  %v2245_v33 = vrot.slane %v2232_v44, 4 }
 0x538   : > { %v2219_v56 = vrot.slane %v2200_v30, 4  ;;  %v2256_v45 = vperm.slane %v2248_v47, %v2721_v19  ;;  %v2260_v18 = vsel %vm259_vm0, %v2244_v43, %v2259_v52  ;;  %v2196_v29 = vperm.slane %v2190_v28, %v2721_v19 }
 0x539   : > { %v2268_v58 = vperm.slane %v2260_v18, %v2721_v19  ;;  %v2217_v5 = vrot.slane %v2212_v20, 4  ;;  %v2202_v2 = vsel %vm259_vm0, %v2201_v53, %v2182_v50  ;;  %v2246_v32 = vsel %vm259_vm0, %v2245_v33, %v2226_v42 }
 0x53a   : > { %v2220_v23 = vsel %vm259_vm0, %v2212_v20, %v2219_v56  ;;  %v2275_v49 = vrot.slane %v2256_v45, 4  ;;  %v2208_v3 = vperm.slane %v2202_v2, %v2721_v19  ;;  %v2215_v61 = vrot.slane %v2196_v29, 4 }
 0x53b   : > { %v2218_v21 = vsel %vm259_vm0, %v2217_v5, %v2200_v30  ;;  %v2273_v48 = vrot.slane %v2268_v58, 4  ;;  %v2252_v63 = vperm.slane %v2246_v32, %v2721_v19  ;;  %v2257_v0 = vrot.slane %v2244_v43, 4 }
 0x53c   : > { %v2276_v10 = vsel %vm259_vm0, %v2268_v58, %v2275_v49  ;;  %v2213_v11 = vrot.slane %v2208_v3, 4  ;;  %v2216_v12 = vsel %vm259_vm0, %v2208_v3, %v2215_v61 }
 0x53d   : > { %v2616_v6 = vpack.i.bf16 %v2276_v10, %v2220_v23  ;;  %v2274_v62 = vsel %vm259_vm0, %v2273_v48, %v2256_v45  ;;  %v2258_v59 = vsel %vm259_vm0, %v2257_v0, %v2238_v46  ;;  %v2271_v51 = vrot.slane %v2252_v63, 4 }
 0x53e   : > { %v2611_v9 = vpack.i.bf16 %v2274_v62, %v2218_v21  ;;  %v2264_v35 = vperm.slane %v2258_v59, %v2721_v19  ;;  %v2214_v14 = vsel %vm259_vm0, %v2213_v11, %v2196_v29 }
 0x53f   : > { %2617 = vrot.lane.b32.xlu0 %v2616_v6, %s2643_s11  ;;  %s2502_s11 = sshll.u32 %s3472_s19, 3 }
 0x540   : > { %2612 = vrot.lane.b32.xlu2 %v2611_v9, %s2657_s30  ;;  %v2269_v26 = vrot.slane %v2264_v35, 4  ;;  %v2272_v15 = vsel %vm259_vm0, %v2264_v35, %v2271_v51  ;;  %s224_s8 = scalar_lea.vmem %s3466_s5, %s2502_s11 }
 0x541   : > { %v2606_v41 = vpack.i.bf16 %v2272_v15, %v2216_v12 }
 0x542   : > { %v2270_v60 = vsel %vm259_vm0, %v2269_v26, %v2252_v63  ;;  %vm2310_vm0 = vcmask 125952  }
 0x543   : > { %2607 = vrot.lane.b32.xlu1 %v2606_v41, %s2658_s17 }
 0x59a   : > { %v2613_v16 = vpop.permute.xlu2 %2612 }
 0x59b   : > { %v2615_v25 = vunpack.i.h.bf16 %v2613_v16  ;;  %v2614_v22 = vunpack.i.l.bf16 %v2613_v16 }
 0x5b1   : > { %v2618_v17 = vpop.permute.xlu0 %2617 }
 0x5b2   : > { %v2620_v1 = vunpack.i.h.bf16 %v2618_v17  ;;  %v2619_v50 = vunpack.i.l.bf16 %v2618_v17 }
 0x5b5   : > { %v2608_v57 = vpop.permute.xlu1 %2607 }
 0x5b6   : > { %v2610_v19 = vunpack.i.h.bf16 %v2608_v57  ;;  %v2609_v24 = vunpack.i.l.bf16 %v2608_v57 }
 0x5b8   : > { %v2303_v31 = vsel %vm2301_vm3, %v2270_v60, %v2610_v19  ;;  %v2302_v13 = vsel %vm2301_vm3, %v2214_v14, %v2609_v24 }
 0x5b9   : > { %v2305_v7 = vsel %vm607_vm6, %v2303_v31, %v2615_v25  ;;  %v2304_v36 = vsel %vm607_vm6, %v2302_v13, %v2614_v22 }
 0x5ba   : > { %v2307_v4 = vsel %vm1599_vm4, %v2305_v7, %v2620_v1  ;;  %v2306_v8 = vsel %vm1599_vm4, %v2304_v36, %v2619_v50 }
 0x5bb   : > { %v2309_v37 = vpack.c.bf16 %v2307_v4, %v2307_v4  ;;  %v2308_v54 = vpack.c.bf16 %v2306_v8, %v2306_v8 }
 0x5bd   : > { %2312 = vst.msk [vmem:[%s224_s8 + $0x4] sm:$0xf] %vm2310_vm0, %v2309_v37 }
 0x5be   : > { %2311 = vst.msk [vmem:[%s224_s8] sm:$0xf] %vm2310_vm0, %v2308_v54 }
 0x5bf PF: > { %s15_s18 = sadd.s32 1, %s2627_s18  }
 0x5c0   : > { %p12_p4 = scmp.ge.s32.totalorder %s15_s18, 4  }
 0x5c2   :  { %14 = sbr.rel (!%p12_p4) target bundleno = 1 (0x1), region = 86 }

// kernel: feature_extractor_forward.5
= control target key start
LH: loop header
LB: loop body
LE: loop exit
PB: predicated region body
PF: predicated region fallthrough
CT: control target
= control target key end

     0   :  { %s3923_s18 = smov 0   ;;  %s5249_s0 = inlined_call_operand.vmem [shape: bf16[2,64,3,3], index: 0, kind: input, shape index: {}]   ;;  %s5250_s1 = inlined_call_operand.vmem [shape: bf16[9,32,16], index: 1, kind: input, shape index: {}]   ;;  %s5251_s2 = inlined_call_operand.vmem [shape: f32[32,1], index: 2, kind: input, shape index: {}]   ;;  %s5252_s3 = inlined_call_operand.vmem [shape: bf16[9,32,32], index: 3, kind: input, shape index: {}]   ;;  %s5253_s4 = inlined_call_operand.vmem [shape: f32[32,1], index: 4, kind: input, shape index: {}]   ;;  %s5254_s5 = inlined_call_operand.vmem [shape: bf16[2,32,4], index: 5, kind: output, shape index: {}]  }
   0x1 LB: > { %s3479_s19 = sadd.s32 4294967295, %s3871_s18   ;;  %p3483_p0 = scmp.ge.s32.totalorder %s3871_s18, 1  ;;  %s3871_s18 = sphi %s3923_s18, %s15_s18  }
   0x2   : > { %p187_p1 = scmp.lt.s32.totalorder %s3871_s18, 3 }
   0x4   : > { %p188_p2 = pnand %p3483_p0, %p187_p1 }
   0x5   : > { %p215_p3 = scmp.lt.s32.totalorder (!%p188_p2), %s3479_s19, 1  ;;  %s3874_s24 = smov (!%p188_p2), 3  }
   0x6   : > { %191 = sbr.rel (%p188_p2) target bundleno = 1601 (0x641), region = 40  ;;  %s3875_s25 = smov (!%p188_p2), 6  }
   0x7   : > { %s3876_s26 = smov (!%p188_p2), 127   ;;  %s3877_s27 = smov (!%p188_p2), 125  }
   0x8   : > { %s3878_s7 = smov (!%p188_p2), 124   ;;  %s3880_s8 = smov (!%p188_p2), 122  }
   0x9   : > { %s3883_s9 = smov (!%p188_p2), 8   ;;  %s3884_s10 = smov (!%p188_p2), 12  }
   0xa   : > { %s3885_s11 = smov (!%p188_p2), 4   ;;  %s3886_s12 = smov (!%p188_p2), 126  }
   0xb   : > { %s5260_s19 = smov (!%p215_p3, %s3479_s19), 1  ;;  %vm291_vm0 = vcmask 1047556   ;;  %v3873_v9 = vmov 1934713408   ;;  %vm844_vm1 = vcmask 23552   ;;  %vm853_vm2 = vcmask 48128  }
   0xc   : > { %s3734_s20 = sshll.u32 %s5260_s19, 7  ;;  %v294_v10 = vunpack.c.l.s4 %v3873_v9  ;;  %vm885_vm3 = vcmask 130048   ;;  %vm949_vm4 = vcmask 64512   ;;  %vm1237_vm5 = vcmask 39936   ;;  %s3887_s13 = smov 123  }
   0xd   : > { %s3937_s23 = scalar_lea.vmem %s5249_s0, %s3734_s20  ;;  %vm1954_vm10 = vcmask 1040384   ;;  %vm1955_vm11 = vsmask.f32 256  ;;  %vm1989_vm12 = vcmask 1041408   ;;  %vm1990_vm13 = vsmask.f32 1280 }
   0xe   : > { %v228_v0 = vld [vmem:[%s3937_s23 + $0x4] sm:$0x3]  ;;  %v229_v1 = vld [vmem:[%s3937_s23 + $0x6] sm:$0x3]  ;;  %v232_v2 = vld [vmem:[%s3937_s23 + $0xc] sm:$0x3]  ;;  %v3955_v26 = vunpack.c.0.s8 %v294_v10 }
   0xf   : > { %v233_v3 = vld [vmem:[%s3937_s23 + $0xe] sm:$0x3]  ;;  %v236_v4 = vld [vmem:[%s3937_s23 + $0x14] sm:$0x3]  ;;  %v237_v5 = vld [vmem:[%s3937_s23 + $0x16] sm:$0x3] }
  0x10   : > { %v226_v6 = vld [vmem:[%s3937_s23] sm:$0x3]  ;;  %v240_v7 = vld [vmem:[%s3937_s23 + $0x1c] sm:$0x3]  ;;  %v241_v8 = vld [vmem:[%s3937_s23 + $0x1e] sm:$0x3] }
  0x11   : > { %v227_v11 = vld [vmem:[%s3937_s23 + $0x2] sm:$0x3]  ;;  %v230_v12 = vld [vmem:[%s3937_s23 + $0x8] sm:$0x3]  ;;  %v290_v13 = vrot.slane %v228_v0, 4  ;;  %v299_v14 = vrot.slane %v229_v1, 4  ;;  %vm4504_vm14 = vmand %vm1954_vm10, %vm1955_vm11 }
  0x12   : > { %v231_v15 = vld [vmem:[%s3937_s23 + $0xa] sm:$0x3]  ;;  %v307_v16 = vrot.slane %v232_v2, 4  ;;  %v315_v17 = vrot.slane %v233_v3, 4  ;;  %v323_v18 = vrot.slane %v236_v4, 4  ;;  %v331_v19 = vrot.slane %v237_v5, 4  ;;  %vm4514_vm15 = vmand %vm1989_vm12, %vm1990_vm13 }
  0x13   : > { %v234_v20 = vld [vmem:[%s3937_s23 + $0x10] sm:$0x3]  ;;  %v235_v21 = vld [vmem:[%s3937_s23 + $0x12] sm:$0x3]  ;;  %v339_v22 = vrot.slane %v240_v7, 4  ;;  %v347_v23 = vrot.slane %v241_v8, 4  ;;  %v292_v27 = vsel %vm291_vm0, %v290_v13, %v226_v6  ;;  %v300_v28 = vsel %vm291_vm0, %v299_v14, %v227_v11 }
  0x14   : > { %v238_v24 = vld [vmem:[%s3937_s23 + $0x18] sm:$0x3]  ;;  %v239_v25 = vld [vmem:[%s3937_s23 + $0x1a] sm:$0x3]  ;;  %v308_v29 = vsel %vm291_vm0, %v307_v16, %v230_v12  ;;  %v316_v30 = vsel %vm291_vm0, %v315_v17, %v231_v15  ;;  %v324_v31 = vsel %vm291_vm0, %v323_v18, %v234_v20  ;;  %v332_v32 = vsel %vm291_vm0, %v331_v19, %v235_v21  ;;  %v260_v33 = vld [vmem:[%s3937_s23 + $0x44] sm:$0x3] }
  0x15   : > { %v261_v34 = vld [vmem:[%s3937_s23 + $0x46] sm:$0x3]  ;;  %v340_v35 = vsel %vm291_vm0, %v339_v22, %v238_v24  ;;  %v348_v36 = vsel %vm291_vm0, %v347_v23, %v239_v25  ;;  %v264_v37 = vld [vmem:[%s3937_s23 + $0x4c] sm:$0x3]  ;;  %v265_v38 = vld [vmem:[%s3937_s23 + $0x4e] sm:$0x3]  ;;  %v3970_v39 = vperm.slane %v292_v27, %v3955_v26  ;;  %v3973_v40 = vperm.slane %v300_v28, %v3955_v26 }
  0x16   : > { %v268_v41 = vld [vmem:[%s3937_s23 + $0x54] sm:$0x3]  ;;  %v269_v42 = vld [vmem:[%s3937_s23 + $0x56] sm:$0x3]  ;;  %v3978_v43 = vperm.slane %v308_v29, %v3955_v26  ;;  %v3981_v44 = vperm.slane %v316_v30, %v3955_v26  ;;  %v3984_v45 = vperm.slane %v324_v31, %v3955_v26  ;;  %v3987_v46 = vperm.slane %v332_v32, %v3955_v26  ;;  %v272_v47 = vld [vmem:[%s3937_s23 + $0x5c] sm:$0x3] }
  0x17   : > { %v273_v48 = vld [vmem:[%s3937_s23 + $0x5e] sm:$0x3]  ;;  %v3992_v49 = vperm.slane %v340_v35, %v3955_v26  ;;  %v3995_v50 = vperm.slane %v348_v36, %v3955_v26  ;;  %v419_v51 = vrot.slane %v260_v33, 4  ;;  %v427_v52 = vrot.slane %v261_v34, 4  ;;  %v258_v53 = vld [vmem:[%s3937_s23 + $0x40] sm:$0x3] }
  0x18   : > { %v259_v54 = vld [vmem:[%s3937_s23 + $0x42] sm:$0x3]  ;;  %v435_v55 = vrot.slane %v264_v37, 4  ;;  %v443_v56 = vrot.slane %v265_v38, 4  ;;  %v262_v57 = vld [vmem:[%s3937_s23 + $0x48] sm:$0x3]  ;;  %v549_v61 = vpack.i.b16 %v3973_v40, %v3970_v39  ;;  %v558_v2 = vpack.i.b16 %v3981_v44, %v3978_v43 }
  0x19   : > { %v263_v58 = vld [vmem:[%s3937_s23 + $0x4a] sm:$0x3]  ;;  %v451_v59 = vrot.slane %v268_v41, 4  ;;  %v459_v60 = vrot.slane %v269_v42, 4  ;;  %v266_v62 = vld [vmem:[%s3937_s23 + $0x50] sm:$0x3]  ;;  %v420_v5 = vsel %vm291_vm0, %v419_v51, %v258_v53  ;;  %v428_v6 = vsel %vm291_vm0, %v427_v52, %v259_v54 }
  0x1a   : > { %v267_v63 = vld [vmem:[%s3937_s23 + $0x52] sm:$0x3]  ;;  %v467_v0 = vrot.slane %v272_v47, 4  ;;  %v475_v1 = vrot.slane %v273_v48, 4  ;;  %v270_v3 = vld [vmem:[%s3937_s23 + $0x58] sm:$0x3]  ;;  %v567_v7 = vpack.i.b16 %v3987_v46, %v3984_v45  ;;  %v576_v8 = vpack.i.b16 %v3995_v50, %v3992_v49 }
  0x1b   : > { %v271_v4 = vld [vmem:[%s3937_s23 + $0x5a] sm:$0x3]  ;;  %692 = vst [vmem:[#allocation1] ss:$4 sm:$0xff] %v549_v61  ;;  %v436_v9 = vsel %vm291_vm0, %v435_v55, %v262_v57  ;;  %v444_v10 = vsel %vm291_vm0, %v443_v56, %v263_v58  ;;  %v452_v11 = vsel %vm291_vm0, %v451_v59, %v266_v62  ;;  %v460_v12 = vsel %vm291_vm0, %v459_v60, %v267_v63  ;;  %v244_v47 = vld [vmem:[%s3937_s23 + $0x24] sm:$0x3] }
  0x1c   : > { %695 = vst [vmem:[#allocation1 + $0x1] ss:$4 sm:$0xff] %v558_v2  ;;  %v4020_v13 = vperm.slane %v420_v5, %v3955_v26  ;;  %v4023_v14 = vperm.slane %v428_v6, %v3955_v26  ;;  %v468_v15 = vsel %vm291_vm0, %v467_v0, %v270_v3  ;;  %v476_v16 = vsel %vm291_vm0, %v475_v1, %v271_v4  ;;  %v245_v52 = vld [vmem:[%s3937_s23 + $0x26] sm:$0x3]  ;;  %v248_v55 = vld [vmem:[%s3937_s23 + $0x2c] sm:$0x3] }
  0x1d   : > { %698 = vst [vmem:[#allocation1 + $0x2] ss:$4 sm:$0xff] %v567_v7  ;;  %v4028_v17 = vperm.slane %v436_v9, %v3955_v26  ;;  %v4031_v18 = vperm.slane %v444_v10, %v3955_v26  ;;  %v4034_v19 = vperm.slane %v452_v11, %v3955_v26  ;;  %v4037_v20 = vperm.slane %v460_v12, %v3955_v26  ;;  %v249_v59 = vld [vmem:[%s3937_s23 + $0x2e] sm:$0x3]  ;;  %v252_v60 = vld [vmem:[%s3937_s23 + $0x34] sm:$0x3] }
  0x1e   : > { %701 = vst [vmem:[#allocation1 + $0x3] ss:$4 sm:$0xff] %v576_v8  ;;  %v4040_v21 = vperm.slane %v468_v15, %v3955_v26  ;;  %v4043_v22 = vperm.slane %v476_v16, %v3955_v26  ;;  %v621_v23 = vpack.i.b16 %v4023_v14, %v4020_v13  ;;  %v550_v29 = vshrl.u32 %v3970_v39, 16  ;;  %v242_v0 = vld [vmem:[%s3937_s23 + $0x20] sm:$0x3]  ;;  %s3888_s14 = smov 120  }
  0x1f   : > { %v630_v24 = vpack.i.b16 %v4031_v18, %v4028_v17  ;;  %v639_v25 = vpack.i.b16 %v4037_v20, %v4034_v19  ;;  %v551_v30 = vshrl.u32 %v3973_v40, 16  ;;  %v559_v31 = vshrl.u32 %v3978_v43, 16  ;;  %v243_v1 = vld [vmem:[%s3937_s23 + $0x22] sm:$0x3]  ;;  %v253_v2 = vld [vmem:[%s3937_s23 + $0x36] sm:$0x3] }
  0x20   : > { %v648_v27 = vpack.i.b16 %v4043_v22, %v4040_v21  ;;  %v560_v32 = vshrl.u32 %v3981_v44, 16  ;;  %v297_v33 = vrot.slane %v3970_v39, 4  ;;  %v305_v34 = vrot.slane %v3973_v40, 4  ;;  %v246_v3 = vld [vmem:[%s3937_s23 + $0x28] sm:$0x3]  ;;  %s3889_s15 = smov 119  }
  0x21   : > { %v568_v35 = vshrl.u32 %v3984_v45, 16  ;;  %v569_v36 = vshrl.u32 %v3987_v46, 16  ;;  %v313_v37 = vrot.slane %v3978_v43, 4  ;;  %v552_v38 = vpack.i.b16 %v551_v30, %v550_v29  ;;  %v247_v4 = vld [vmem:[%s3937_s23 + $0x2a] sm:$0x3]  ;;  %s3890_s17 = smov 118  }
  0x22   : > { %v577_v41 = vshrl.u32 %v3992_v49, 16  ;;  %v578_v42 = vshrl.u32 %v3995_v50, 16  ;;  %v561_v48 = vpack.i.b16 %v560_v32, %v559_v31  ;;  %v321_v39 = vrot.slane %v3981_v44, 4  ;;  %v256_v5 = vld [vmem:[%s3937_s23 + $0x3c] sm:$0x3]  ;;  %s3891_s20 = smov 116  }
  0x23   : > { %v329_v40 = vrot.slane %v3984_v45, 4  ;;  %v337_v51 = vrot.slane %v3987_v46, 4  ;;  %v4072_v43 = vsel %vm291_vm0, 0, %v297_v33  ;;  %v4075_v53 = vsel %vm291_vm0, 0, %v305_v34  ;;  %v250_v8 = vld [vmem:[%s3937_s23 + $0x30] sm:$0x3] }
  0x24   : > { %v345_v54 = vrot.slane %v3992_v49, 4  ;;  %v353_v44 = vrot.slane %v3995_v50, 4  ;;  %v570_v56 = vpack.i.b16 %v569_v36, %v568_v35  ;;  %v4081_v57 = vsel %vm291_vm0, 0, %v313_v37  ;;  %v251_v9 = vld [vmem:[%s3937_s23 + $0x32] sm:$0x3] }
  0x25   : > { %v4053_v28 = vld.sshfl [vmem:[#allocation1] sm:$0xff pattern:$0x73625140]  ;;  %v622_v58 = vshrl.u32 %v4020_v13, 16  ;;  %v579_v61 = vpack.i.b16 %v578_v42, %v577_v41  ;;  %v623_v63 = vshrl.u32 %v4023_v14, 16  ;;  %v355_v6 = vrot.slane %v244_v47, 4 }
  0x26   : > { %717 = vst [vmem:[#allocation1] ss:$4 sm:$0xff] %v621_v23  ;;  %v363_v7 = vrot.slane %v245_v52, 4  ;;  %v371_v10 = vrot.slane %v248_v55, 4  ;;  %v379_v11 = vrot.slane %v249_v59, 4  ;;  %v387_v15 = vrot.slane %v252_v60, 4 }
  0x27   : > { %719 = vst [vmem:[#allocation1 + $0x1] ss:$4 sm:$0xff] %v630_v24  ;;  %v257_v12 = vld [vmem:[%s3937_s23 + $0x3e] sm:$0x3]  ;;  %v395_v16 = vrot.slane %v253_v2, 4  ;;  %v4099_v23 = vsel %vm291_vm0, 0, %v321_v39  ;;  %v624_v29 = vpack.i.b16 %v623_v63, %v622_v58  ;;  %v356_v33 = vsel %vm291_vm0, %v355_v6, %v242_v0 }
  0x28   : > { %721 = vst [vmem:[#allocation1 + $0x2] ss:$4 sm:$0xff] %v639_v25  ;;  %v631_v24 = vshrl.u32 %v4028_v17, 16  ;;  %v632_v25 = vshrl.u32 %v4031_v18, 16  ;;  %v640_v30 = vshrl.u32 %v4034_v19, 16  ;;  %v364_v34 = vsel %vm291_vm0, %v363_v7, %v243_v1 }
  0x29   : > { %723 = vst [vmem:[#allocation1 + $0x3] ss:$4 sm:$0xff] %v648_v27  ;;  %v403_v27 = vrot.slane %v256_v5, 4  ;;  %v254_v31 = vld [vmem:[%s3937_s23 + $0x38] sm:$0x3]  ;;  %v641_v35 = vshrl.u32 %v4037_v20, 16  ;;  %v372_v36 = vsel %vm291_vm0, %v371_v10, %v246_v3  ;;  %v380_v37 = vsel %vm291_vm0, %v379_v11, %v247_v4 }
  0x2a   : > { %v255_v32 = vld [vmem:[%s3937_s23 + $0x3a] sm:$0x3]  ;;  %v649_v41 = vshrl.u32 %v4040_v21, 16  ;;  %v650_v42 = vshrl.u32 %v4043_v22, 16  ;;  %v388_v47 = vsel %vm291_vm0, %v387_v15, %v250_v8  ;;  %v4116_v39 = vperm.slane %v356_v33, %v3955_v26  ;;  %v276_v59 = vld [vmem:[%s3937_s23 + $0x64] sm:$0x3] }
  0x2b   : > { %v4119_v52 = vperm.slane %v364_v34, %v3955_v26  ;;  %v404_v55 = vsel %vm291_vm0, %v403_v27, %v254_v31  ;;  %v633_v58 = vpack.i.b16 %v632_v25, %v631_v24  ;;  %v277_v60 = vld [vmem:[%s3937_s23 + $0x66] sm:$0x3]  ;;  %v4127_v63 = vperm.slane %v372_v36, %v3955_v26  ;;  %v281_v2 = vld [vmem:[%s3937_s23 + $0x6e] sm:$0x3]  ;;  %v284_v3 = vld [vmem:[%s3937_s23 + $0x74] sm:$0x3] }
  0x2c   : > { %v4130_v0 = vperm.slane %v380_v37, %v3955_v26  ;;  %v642_v1 = vpack.i.b16 %v641_v35, %v640_v30  ;;  %v285_v4 = vld [vmem:[%s3937_s23 + $0x76] sm:$0x3]  ;;  %v4136_v5 = vperm.slane %v388_v47, %v3955_v26  ;;  %v4144_v8 = vsel %vm291_vm0, 0, %v329_v40  ;;  %v274_v10 = vld [vmem:[%s3937_s23 + $0x60] sm:$0x3] }
  0x2d   : > { %v275_v11 = vld [vmem:[%s3937_s23 + $0x62] sm:$0x3]  ;;  %v4150_v15 = vperm.slane %v404_v55, %v3955_v26  ;;  %v278_v45 = vld [vmem:[%s3937_s23 + $0x68] sm:$0x3]  ;;  %v289_v40 = vld [vmem:[%s3937_s23 + $0x7e] sm:$0x3]  ;;  %v585_v27 = vpack.i.b16 %v4119_v52, %v4116_v39 }
  0x2e   : > { %v483_v24 = vrot.slane %v276_v59, 4  ;;  %v491_v25 = vrot.slane %v277_v60, 4  ;;  %v279_v30 = vld [vmem:[%s3937_s23 + $0x6a] sm:$0x3]  ;;  %v594_v33 = vpack.i.b16 %v4130_v0, %v4127_v63  ;;  %v282_v34 = vld [vmem:[%s3937_s23 + $0x70] sm:$0x3] }
  0x2f   : > { %v523_v35 = vrot.slane %v285_v4, 4  ;;  %v283_v37 = vld [vmem:[%s3937_s23 + $0x72] sm:$0x3]  ;;  %v286_v47 = vld [vmem:[%s3937_s23 + $0x78] sm:$0x3]  ;;  %v346_v59 = vsel %vm291_vm0, 0, %v345_v54 }
  0x30   : > { %v4086_v62 = vld.sshfl [vmem:[#allocation1] sm:$0xff pattern:$0x73625140]  ;;  %v484_v55 = vsel %vm291_vm0, %v483_v24, %v274_v10  ;;  %704 = vst [vmem:[#allocation1 + $0x20] ss:$4 sm:$0xff] %v585_v27  ;;  %v449_v24 = vrot.slane %v4031_v18, 4 }
  0x31   : > { %735 = vst [vmem:[#allocation1] ss:$4 sm:$0xff] %v552_v38  ;;  %v411_v38 = vrot.slane %v257_v12, 4  ;;  %v288_v12 = vld [vmem:[%s3937_s23 + $0x7c] sm:$0x3]  ;;  %v4189_v49 = vperm.slane %v484_v55, %v3955_v26  ;;  %v457_v27 = vrot.slane %v4034_v19, 4 }
  0x32   : > { %738 = vst [vmem:[#allocation1 + $0x1] ss:$4 sm:$0xff] %v561_v48  ;;  %v396_v48 = vsel %vm291_vm0, %v395_v16, %v251_v9  ;;  %v651_v9 = vpack.i.b16 %v650_v42, %v649_v41  ;;  %v539_v41 = vrot.slane %v289_v40, 4  ;;  %v441_v40 = vrot.slane %v4028_v17, 4 }
  0x33   : > { %741 = vst [vmem:[#allocation1 + $0x2] ss:$4 sm:$0xff] %v570_v56  ;;  %v412_v56 = vsel %vm291_vm0, %v411_v38, %v255_v32  ;;  %v4139_v6 = vperm.slane %v396_v48, %v3955_v26  ;;  %v507_v32 = vrot.slane %v281_v2, 4  ;;  %v531_v38 = vrot.slane %v288_v12, 4  ;;  %v287_v48 = vld [vmem:[%s3937_s23 + $0x7a] sm:$0x3] }
  0x34   : > { %744 = vst [vmem:[#allocation1 + $0x3] ss:$4 sm:$0xff] %v579_v61  ;;  %v280_v61 = vld [vmem:[%s3937_s23 + $0x6c] sm:$0x3]  ;;  %v4153_v16 = vperm.slane %v412_v56, %v3955_v26  ;;  %v492_v56 = vsel %vm291_vm0, %v491_v25, %v275_v11  ;;  %v555_v2 = vpack.i.b16 %v4075_v53, %v4072_v43  ;;  %v540_v50 = vsel %vm291_vm0, %v539_v41, %v287_v48 }
  0x35   : > { %v499_v31 = vrot.slane %v280_v61, 4  ;;  %v603_v36 = vpack.i.b16 %v4139_v6, %v4136_v5  ;;  %v508_v61 = vsel %vm291_vm0, %v507_v32, %v279_v30  ;;  %707 = vst [vmem:[#allocation1 + $0x21] ss:$4 sm:$0xff] %v594_v33  ;;  %v4192_v54 = vperm.slane %v492_v56, %v3955_v26 }
  0x36   : > { %v612_v42 = vpack.i.b16 %v4153_v16, %v4150_v15  ;;  %v4202_v53 = vperm.slane %v508_v61, %v3955_v26  ;;  %v458_v33 = vsel %vm291_vm0, 0, %v457_v27  ;;  %v595_v41 = vshrl.u32 %v4127_v63, 16 }
  0x37   : > { %v500_v60 = vsel %vm291_vm0, %v499_v31, %v278_v45  ;;  %710 = vst [vmem:[#allocation1 + $0x22] ss:$4 sm:$0xff] %v603_v36  ;;  %v433_v45 = vrot.slane %v4023_v14, 4  ;;  %v473_v14 = vrot.slane %v4040_v21, 4  ;;  %v481_v31 = vrot.slane %v4043_v22, 4 }
  0x38   : > { %713 = vst [vmem:[#allocation1 + $0x23] ss:$4 sm:$0xff] %v612_v42  ;;  %v4199_v43 = vperm.slane %v500_v60, %v3955_v26  ;;  %v450_v21 = vsel %vm291_vm0, 0, %v449_v24  ;;  %v586_v36 = vshrl.u32 %v4116_v39, 16  ;;  %v596_v42 = vshrl.u32 %v4130_v0, 16 }
  0x39   : > { %v434_v19 = vsel %vm291_vm0, 0, %v433_v45  ;;  %v604_v48 = vshrl.u32 %v4136_v5, 16  ;;  %v605_v55 = vshrl.u32 %v4139_v6, 16  ;;  %v614_v60 = vshrl.u32 %v4153_v16, 16 }
  0x3a   : > { %v666_v25 = vpack.i.b16 %v4202_v53, %v4199_v43  ;;  %vm2674_vm10 = vcmask 89088   ;;  %vm2838_vm11 = vcmask 56320  }
  0x3b   : > { %v757_v7 = vld.sshfl [vmem:[#allocation1] sm:$0xff pattern:$0x73625140] }
  0x3c   : > { %781 = vrot.lane.b32.xlu0 %v757_v7, %s3874_s24  ;;  %762 = vst [vmem:[#allocation1] ss:$4 sm:$0xff] %v624_v29  ;;  %v515_v29 = vrot.slane %v284_v3, 4  ;;  %v532_v3 = vsel %vm291_vm0, %v531_v38, %v286_v47 }
  0x3d   : > { %764 = vst [vmem:[#allocation1 + $0x1] ss:$4 sm:$0xff] %v633_v58  ;;  %v338_v58 = vsel %vm291_vm0, 0, %v337_v51  ;;  %v524_v51 = vsel %vm291_vm0, %v523_v35, %v283_v37  ;;  %v4212_v12 = vperm.slane %v532_v3, %v3955_v26  ;;  %v587_v37 = vshrl.u32 %v4119_v52, 16 }
  0x3e   : > { %766 = vst [vmem:[#allocation1 + $0x2] ss:$4 sm:$0xff] %v642_v1  ;;  %v354_v1 = vsel %vm291_vm0, 0, %v353_v44  ;;  %v516_v46 = vsel %vm291_vm0, %v515_v29, %v282_v34  ;;  %v564_v44 = vpack.i.b16 %v4099_v23, %v4081_v57  ;;  %v573_v4 = vpack.i.b16 %v338_v58, %v4144_v8 }
  0x3f   : > { %768 = vst [vmem:[#allocation1 + $0x3] ss:$4 sm:$0xff] %v651_v9  ;;  %v4206_v7 = vperm.slane %v516_v46, %v3955_v26  ;;  %v4209_v9 = vperm.slane %v524_v51, %v3955_v26  ;;  %v582_v10 = vpack.i.b16 %v354_v1, %v346_v59  ;;  %v4215_v57 = vperm.slane %v540_v50, %v3955_v26  ;;  %v4234_v18 = vld.sshfl [vmem:[#allocation1 + $0x20] sm:$0xff pattern:$0x73625140] }
  0x40   : > { %v425_v23 = vrot.slane %v4020_v13, 4  ;;  %v657_v8 = vpack.i.b16 %v4192_v54, %v4189_v49  ;;  %v465_v13 = vrot.slane %v4037_v20, 4  ;;  %v442_v20 = vsel %vm291_vm0, 0, %v441_v40  ;;  %727 = vst [vmem:[#allocation1 + $0x21] ss:$4 sm:$0xff] %v666_v25 }
  0x41   : > { %v675_v30 = vpack.i.b16 %v4209_v9, %v4206_v7  ;;  %v684_v17 = vpack.i.b16 %v4215_v57, %v4212_v12  ;;  %v474_v34 = vsel %vm291_vm0, 0, %v473_v14  ;;  %v482_v29 = vsel %vm291_vm0, 0, %v481_v31 }
  0x42   : > { %v426_v32 = vsel %vm291_vm0, 0, %v425_v23  ;;  %725 = vst [vmem:[#allocation1 + $0x20] ss:$4 sm:$0xff] %v657_v8  ;;  %v466_v22 = vsel %vm291_vm0, 0, %v465_v13  ;;  %v636_v38 = vpack.i.b16 %v450_v21, %v442_v20  ;;  %v654_v56 = vpack.i.b16 %v482_v29, %v474_v34 }
  0x43   : > { %729 = vst [vmem:[#allocation1 + $0x22] ss:$4 sm:$0xff] %v675_v30  ;;  %v627_v35 = vpack.i.b16 %v434_v19, %v426_v32  ;;  %v645_v47 = vpack.i.b16 %v466_v22, %v458_v33  ;;  %v613_v59 = vshrl.u32 %v4150_v15, 16  ;;  %v588_v61 = vpack.i.b16 %v587_v37, %v586_v36 }
  0x44   : > { %731 = vst [vmem:[#allocation1 + $0x23] ss:$4 sm:$0xff] %v684_v17  ;;  %v597_v1 = vpack.i.b16 %v596_v42, %v595_v41  ;;  %v658_v3 = vshrl.u32 %v4189_v49, 16  ;;  %v659_v50 = vshrl.u32 %v4192_v54, 16  ;;  %v685_v23 = vshrl.u32 %v4212_v12, 16 }
  0x45   : > { %v615_v46 = vpack.i.b16 %v614_v60, %v613_v59  ;;  %v686_v45 = vshrl.u32 %v4215_v57, 16  ;;  %v361_v14 = vrot.slane %v4116_v39, 4  ;;  %v369_v30 = vrot.slane %v4119_v52, 4 }
  0x46   : > { %v777_v11 = vld.sshfl [vmem:[#allocation1] sm:$0xff pattern:$0x73625140]  ;;  %v660_v40 = vpack.i.b16 %v659_v50, %v658_v3  ;;  %v377_v31 = vrot.slane %v4127_v63, 4  ;;  %v385_v17 = vrot.slane %v4130_v0, 4  ;;  %v393_v32 = vrot.slane %v4136_v5, 4 }
  0x47   : > { %790 = vst [vmem:[#allocation1] ss:$4 sm:$0xff] %v555_v2  ;;  %785 = vrot.lane.b32.xlu2 %v777_v11, %s3874_s24  ;;  %v606_v2 = vpack.i.b16 %v605_v55, %v604_v48  ;;  %v677_v11 = vshrl.u32 %v4209_v9, 16  ;;  %v687_v13 = vpack.i.b16 %v686_v45, %v685_v23  ;;  %v401_v19 = vrot.slane %v4139_v6, 4  ;;  %v3742_v45 = vld [vmem:[%s5250_s1 + $0x30] sm:$0xff] }
  0x48   : > { %793 = vst [vmem:[#allocation1 + $0x1] ss:$4 sm:$0xff] %v564_v44  ;;  %v667_v44 = vshrl.u32 %v4199_v43, 16  ;;  %v409_v20 = vrot.slane %v4150_v15, 4  ;;  %v417_v21 = vrot.slane %v4153_v16, 4  ;;  %v362_v39 = vsel %vm291_vm0, 0, %v361_v14 }
  0x49   : > { %796 = vst [vmem:[#allocation1 + $0x2] ss:$4 sm:$0xff] %v573_v4  ;;  %v668_v4 = vshrl.u32 %v4202_v53, 16  ;;  %v370_v52 = vsel %vm291_vm0, 0, %v369_v30  ;;  %v378_v33 = vsel %vm291_vm0, 0, %v377_v31  ;;  %v386_v63 = vsel %vm291_vm0, 0, %v385_v17 }
  0x4a   : > { %799 = vst [vmem:[#allocation1 + $0x3] ss:$4 sm:$0xff] %v582_v10  ;;  %v676_v10 = vshrl.u32 %v4206_v7, 16  ;;  %v394_v0 = vsel %vm291_vm0, 0, %v393_v32  ;;  %v402_v5 = vsel %vm291_vm0, 0, %v401_v19  ;;  %v410_v6 = vsel %vm291_vm0, 0, %v409_v20 }
  0x4b   : > { %v4253_v51 = vld.sshfl [vmem:[#allocation1 + $0x20] sm:$0xff pattern:$0x73625140]  ;;  %v669_v24 = vpack.i.b16 %v668_v4, %v667_v44  ;;  %v418_v22 = vsel %vm291_vm0, 0, %v417_v21  ;;  %v591_v15 = vpack.i.b16 %v370_v52, %v362_v39  ;;  %v600_v34 = vpack.i.b16 %v386_v63, %v378_v33  ;;  %v3745_v21 = vld [vmem:[%s5250_s1 + $0x48] sm:$0xff] }
  0x4c   : > { %747 = vst [vmem:[#allocation1 + $0x20] ss:$4 sm:$0xff] %v588_v61  ;;  %v678_v25 = vpack.i.b16 %v677_v11, %v676_v10  ;;  %v609_v16 = vpack.i.b16 %v402_v5, %v394_v0  ;;  %v618_v29 = vpack.i.b16 %v418_v22, %v410_v6  ;;  %v489_v36 = vrot.slane %v4189_v49, 4  ;;  %v3736_v4 = vld [vmem:[%s5250_s1] sm:$0xff]  ;;  %v3747_v0 = vld [vmem:[%s5250_s1 + $0x58] sm:$0xff] }
  0x4d   : > { %750 = vst [vmem:[#allocation1 + $0x21] ss:$4 sm:$0xff] %v597_v1  ;;  %v497_v37 = vrot.slane %v4192_v54, 4  ;;  %v513_v41 = vrot.slane %v4202_v53, 4  ;;  %v521_v42 = vrot.slane %v4206_v7, 4  ;;  %v537_v48 = vrot.slane %v4212_v12, 4 }
  0x4e   : > { %753 = vst [vmem:[#allocation1 + $0x22] ss:$4 sm:$0xff] %v606_v2  ;;  %v545_v55 = vrot.slane %v4215_v57, 4  ;;  %v490_v49 = vsel %vm291_vm0, 0, %v489_v36  ;;  %v3744_v17 = vld [vmem:[%s5250_s1 + $0x40] sm:$0xff]  ;;  %v3879_v5 = vmov 0  }
  0x4f   : > { %756 = vst [vmem:[#allocation1 + $0x23] ss:$4 sm:$0xff] %v615_v46  ;;  %v498_v54 = vsel %vm291_vm0, 0, %v497_v37  ;;  %v522_v53 = vsel %vm291_vm0, 0, %v521_v42  ;;  %v3740_v52 = vld [vmem:[%s5250_s1 + $0x20] sm:$0xff]  ;;  %3802 = vset.pattern.permute.xlu1 %v3879_v5  ;;  %v1288_v6 = vld [vmem:[%s5251_s2 + $0x18] sm:$0xff]  ;;  %3804 = vset.pattern.permute.xlu0 %v3879_v5 }
  0x50   : > { %v663_v12 = vpack.i.b16 %v498_v54, %v490_v49  ;;  %3803 = vset.pattern.permute.xlu2 %v3879_v5  ;;  %v1287_v36 = vld [vmem:[%s5251_s2 + $0x10] sm:$0xff]  ;;  %v3748_v37 = vld [vmem:[%s5250_s1 + $0x60] sm:$0xff] }
  0x51   : > { %v812_v58 = vld.sshfl [vmem:[#allocation1] sm:$0xff pattern:$0x73625140] }
  0x52   : > { %836 = vrot.lane.b32.xlu0 %v812_v58, %s3875_s25  ;;  %817 = vst [vmem:[#allocation1] ss:$4 sm:$0xff] %v627_v35  ;;  %v546_v58 = vsel %vm291_vm0, 0, %v545_v55  ;;  %v3751_v55 = vld [vmem:[%s5250_s1 + $0x78] sm:$0xff] }
  0x53   : > { %819 = vst [vmem:[#allocation1 + $0x1] ss:$4 sm:$0xff] %v636_v38  ;;  %v505_v38 = vrot.slane %v4199_v43, 4  ;;  %v514_v43 = vsel %vm291_vm0, 0, %v513_v41 }
  0x54   : > { %821 = vst [vmem:[#allocation1 + $0x2] ss:$4 sm:$0xff] %v645_v47  ;;  %v529_v47 = vrot.slane %v4209_v9, 4  ;;  %v538_v9 = vsel %vm291_vm0, 0, %v537_v48  ;;  %v3749_v48 = vld [vmem:[%s5250_s1 + $0x68] sm:$0xff] }
  0x55   : > { %823 = vst [vmem:[#allocation1 + $0x3] ss:$4 sm:$0xff] %v654_v56  ;;  %v506_v56 = vsel %vm291_vm0, 0, %v505_v38  ;;  %v690_v60 = vpack.i.b16 %v546_v58, %v538_v9  ;;  %v3753_v38 = vld [vmem:[%s5250_s1 + $0x88] sm:$0xff] }
  0x56   : > { %v759_v27 = vld.sshfl [vmem:[#allocation1 + $0x20] sm:$0xff pattern:$0x73625140]  ;;  %v530_v7 = vsel %vm291_vm0, 0, %v529_v47  ;;  %v672_v59 = vpack.i.b16 %v514_v43, %v506_v56  ;;  %v3750_v47 = vld [vmem:[%s5250_s1 + $0x70] sm:$0xff] }
  0x57   : > { %783 = vrot.lane.b32.xlu1 %v759_v27, %s3874_s24  ;;  %770 = vst [vmem:[#allocation1 + $0x20] ss:$4 sm:$0xff] %v660_v40  ;;  %v681_v57 = vpack.i.b16 %v530_v7, %v522_v53  ;;  %v3739_v27 = vld [vmem:[%s5250_s1 + $0x18] sm:$0xff] }
  0x58   : > { %772 = vst [vmem:[#allocation1 + $0x21] ss:$4 sm:$0xff] %v669_v24 }
  0x59   : > { %774 = vst [vmem:[#allocation1 + $0x22] ss:$4 sm:$0xff] %v678_v25  ;;  %v3738_v25 = vld [vmem:[%s5250_s1 + $0x10] sm:$0xff] }
  0x5a   : > { %776 = vst [vmem:[#allocation1 + $0x23] ss:$4 sm:$0xff] %v687_v13  ;;  %v3743_v13 = vld [vmem:[%s5250_s1 + $0x38] sm:$0xff] }
  0x5c   : > { %v832_v8 = vld.sshfl [vmem:[#allocation1] sm:$0xff pattern:$0x73625140] }
  0x5d   : > { %840 = vrot.lane.b32.xlu2 %v832_v8, %s3875_s25 }
  0x61   : > { %v779_v35 = vld.sshfl [vmem:[#allocation1 + $0x20] sm:$0xff pattern:$0x73625140] }
  0x62   : > { %802 = vst [vmem:[#allocation1 + $0x20] ss:$4 sm:$0xff] %v591_v15 }
  0x63   : > { %805 = vst [vmem:[#allocation1 + $0x21] ss:$4 sm:$0xff] %v600_v34  ;;  %v3741_v34 = vld [vmem:[%s5250_s1 + $0x28] sm:$0xff] }
  0x64   : > { %808 = vst [vmem:[#allocation1 + $0x22] ss:$4 sm:$0xff] %v609_v16  ;;  %v3752_v16 = vld [vmem:[%s5250_s1 + $0x80] sm:$0xff] }
  0x65   : > { %811 = vst [vmem:[#allocation1 + $0x23] ss:$4 sm:$0xff] %v618_v29  ;;  %v1285_v29 = vld [vmem:[%s5251_s2] sm:$0xff] }
  0x6c   : > { %v814_v61 = vld.sshfl [vmem:[#allocation1 + $0x20] sm:$0xff pattern:$0x73625140] }
  0x6d   : > { %838 = vrot.lane.b32.xlu1 %v814_v61, %s3875_s25  ;;  %825 = vst [vmem:[#allocation1 + $0x20] ss:$4 sm:$0xff] %v663_v12 }
  0x6e   : > { %827 = vst [vmem:[#allocation1 + $0x21] ss:$4 sm:$0xff] %v672_v59 }
  0x6f   : > { %829 = vst [vmem:[#allocation1 + $0x22] ss:$4 sm:$0xff] %v681_v57 }
  0x70   : > { %831 = vst [vmem:[#allocation1 + $0x23] ss:$4 sm:$0xff] %v690_v60 }
  0x75   : > { %787 = vrot.lane.b32.xlu1 %v779_v35, %s3874_s24  ;;  %v1286_v35 = vld [vmem:[%s5251_s2 + $0x8] sm:$0xff] }
  0x77   : > { %v834_v50 = vld.sshfl [vmem:[#allocation1 + $0x20] sm:$0xff pattern:$0x73625140] }
  0x78   : > { %842 = vrot.lane.b32.xlu2 %v834_v50, %s3875_s25 }
  0xa1   : > { %v786_v44 = vpop.permute.xlu2 %785 }
  0xa2   : > { %v850_v10 = vsel %vm844_vm1, %v4086_v62, %v786_v44 }
  0xae   : > { %v782_v1 = vpop.permute.xlu0 %781 }
  0xaf   : > { %v846_v2 = vsel %vm844_vm1, %v4053_v28, %v782_v1  ;;  %v3737_v28 = vld [vmem:[%s5250_s1 + $0x8] sm:$0xff] }
  0xb7   : > { %v841_v11 = vpop.permute.xlu2 %840 }
  0xb8   : > { %v861_v23 = vsel %vm853_vm2, %v850_v10, %v841_v11 }
  0xb9   : > { %1087 = vrot.lane.b32.xlu2 %v861_v23, %s3876_s26 }
  0xc1   : > { %1301 = vperm.xlu2 %3803, %v1287_v36  }
  0xc4   : > { %v837_v46 = vpop.permute.xlu0 %836 }
  0xc5   : > { %v855_v3 = vsel %vm853_vm2, %v846_v2, %v837_v46 }
  0xc6   : > { %947 = vrot.lane.b32.xlu0 %v855_v3, %s3876_s26  ;;  %934 = vmatpush.bf16.msra.mxu1 %v855_v3 }
  0xc7   : > { %3773 = vmatpush.bf16.msra.mxu3 %v855_v3 }
  0xc9   : > { %3510 = vmatmul.msk.bf16.vlgmr.msra.gmra.mxu1 %vm885_vm3, %v3736_v4  ;;  %v784_v8 = vpop.permute.xlu1 %783 }
  0xca   : > { %3511 = vmatmul.msk.bf16.vlgmr.msra.gmra.mxu3 %vm885_vm3, %v3737_v28  ;;  %v848_v62 = vsel %vm844_vm1, %v4234_v18, %v784_v8 }
  0xcb   : > { %1026 = vmatpush.bf16.msrb.mxu3 %v861_v23 }
  0xce   : > { %1136 = vrot.lane.b32.xlu0 %v855_v3, %s3877_s27 }
  0xd2   : > { %v843_v30 = vpop.permute.xlu2 %842 }
  0xd6   : > { %1235 = vrot.lane.b32.xlu0 %v855_v3, %s3878_s7 }
  0xda   : > { %3538 = vmatmul.msk.bf16.vlgmr.msrb.gmra.mxu3 %vm885_vm3, %v3742_v45 }
  0xde   : > { %1296 = vperm.xlu0 %3804, %v1286_v35  }
  0xdf   : > { %v839_v40 = vpop.permute.xlu1 %838 }
  0xe0   : > { %v858_v24 = vsel %vm853_vm2, %v848_v62, %v839_v40 }
  0xe1   : > { %1186 = vrot.lane.b32.xlu1 %v858_v24, %s3877_s27  ;;  %899 = vmatpush.bf16.msra.mxu0 %v858_v24 }
  0xe2   : > { %3772 = vmatpush.bf16.msra.mxu2 %v858_v24 }
  0xe4   : > { %3500 = vmatmul.msk.bf16.vlgmr.msra.gmra.mxu0 %vm885_vm3, %v3738_v25 }
  0xe5   : > { %3501 = vmatmul.msk.bf16.vlgmr.msra.gmra.mxu2 %vm885_vm3, %v3739_v27 }
  0xe7   : > { %v788_v18 = vpop.permute.xlu1 %787 }
  0xe8   : > { %v852_v14 = vsel %vm844_vm1, %v4253_v51, %v788_v18  ;;  %v3746_v51 = vld [vmem:[%s5250_s1 + $0x50] sm:$0xff] }
  0xe9   : > { %v864_v31 = vsel %vm853_vm2, %v852_v14, %v843_v30  ;;  %1306 = vperm.xlu1 %3802, %v1288_v6  }
  0xea   : > { %3539 = vmatmul.msk.bf16.gmra.mxu3 %vm885_vm3, %v3743_v13  ;;  %1070 = vmatpush.bf16.msrb.mxu0 %v864_v31 }
  0xf1   : > { %1291 = vperm.xlu1 %3802, %v1285_v29  }
  0xf4   : > { %3552 = vmatmul.msk.bf16.vlgmr.msrb.gmra.mxu0 %vm885_vm3, %v3744_v17 }
 0x104   : > { %3553 = vmatmul.msk.bf16.gmra.mxu0 %vm885_vm3, %v3745_v21 }
 0x113   : > { %v1088_v32 = vpop.permute.xlu2 %1087 }
 0x114   : > { %v1090_v19 = vsel %vm949_vm4, %v1088_v32, 0 }
 0x115   : > { %1120 = vmatpush.bf16.msrb.mxu1 %v1090_v19 }
 0x118   : > { %3566 = vmatmul.msk.bf16.vlgmr.msrb.gmra.mxu1 %vm885_vm3, %v3746_v51 }
 0x128   : > { %3567 = vmatmul.msk.bf16.gmra.mxu1 %vm885_vm3, %v3747_v0 }
 0x138   : > { %v948_v20 = vpop.permute.xlu0 %947 }
 0x139   : > { %v952_v39 = vsel %vm949_vm4, %v948_v20, 0 }
 0x13a   : > { %982 = vmatpush.bf16.msrb.mxu2 %v952_v39 }
 0x13d   : > { %3524 = vmatmul.msk.bf16.vlgmr.msrb.gmra.mxu2 %vm885_vm3, %v3740_v52 }
 0x140   : > { %v1137_v33 = vpop.permute.xlu0 %1136 }
 0x141   : > { %v1139_v63 = vsel %vm853_vm2, %v1137_v33, 0 }
 0x142   : > { %1169 = vmatpush.bf16.msra.mxu2 %v1139_v63 }
 0x146   : > { %v936_v57 = vpop.f32.mrf.mxu1 }
 0x148   : > { %v1236_v22 = vpop.permute.xlu0 %1235 }
 0x149   : > { %v1239_v15 = vsel %vm1237_vm5, %v1236_v22, 0  ;;  %vm2456_vm5 = vcmask 97280  }
 0x14a   : > { %1269 = vmatpush.bf16.msra.mxu0 %v1239_v15 }
 0x14d   : > { %3525 = vmatmul.msk.bf16.gmra.mxu2 %vm885_vm3, %v3741_v34  ;;  %3608 = vmatmul.msk.bf16.vlgmr.msra.gmra.mxu0 %vm885_vm3, %v3752_v16  ;;  %v941_v54 = vpop.f32.mrf.mxu3 }
 0x14e   : > { %v938_v2 = vpop.f32.mrf.mxu1 }
 0x150   : > { %v1297_v29 = vpop.permute.xlu0 %1296 }
 0x153   : > { %v1187_v41 = vpop.permute.xlu1 %1186 }
 0x154   : > { %v1189_v42 = vsel %vm853_vm2, %v1187_v41, 0 }
 0x155   : > { %1219 = vmatpush.bf16.msra.mxu3 %v1189_v42  ;;  %v943_v53 = vpop.f32.mrf.mxu3 }
 0x158   : > { %3594 = vmatmul.msk.bf16.vlgmr.msra.gmra.mxu3 %vm885_vm3, %v3750_v47 }
 0x15b   : > { %v1307_v13 = vpop.permute.xlu1 %1306 }
 0x15d   : > { %3580 = vmatmul.msk.bf16.vlgmr.msra.gmra.mxu2 %vm885_vm3, %v3748_v37  ;;  %3609 = vmatmul.msk.bf16.gmra.mxu0 %vm885_vm3, %v3753_v38  ;;  %v1028_v58 = vpop.f32.mrf.mxu3 }
 0x161   : > { %v901_v49 = vpop.f32.mrf.mxu0 }
 0x162   : > { %v937_v50 = vadd.f32 %v936_v57, %v901_v49 }
 0x163   : > { %v1292_v5 = vpop.permute.xlu1 %1291 }
 0x165   : > { %v1030_v60 = vpop.f32.mrf.mxu3 }
 0x168   : > { %3595 = vmatmul.msk.bf16.gmra.mxu3 %vm885_vm3, %v3751_v55  ;;  %v906_v56 = vpop.f32.mrf.mxu2 }
 0x169   : > { %v903_v43 = vpop.f32.mrf.mxu0  ;;  %v942_v14 = vadd.f32 %v941_v54, %v906_v56 }
 0x16a   : > { %v939_v23 = vadd.f32 %v938_v2, %v903_v43 }
 0x16d   : > { %3581 = vmatmul.msk.bf16.gmra.mxu2 %vm885_vm3, %v3749_v48  ;;  %v1033_v3 = vpop.f32.mrf.mxu3  ;;  %vm2120_vm3 = vcmask 7168  }
 0x170   : > { %v908_v7 = vpop.f32.mrf.mxu2 }
 0x171   : > { %v1072_v9 = vpop.f32.mrf.mxu0  ;;  %v944_v39 = vadd.f32 %v943_v53, %v908_v7 }
 0x175   : > { %v1035_v45 = vpop.f32.mrf.mxu3 }
 0x179   : > { %v1074_v59 = vpop.f32.mrf.mxu0 }
 0x181   : > { %v1077_v1 = vpop.f32.mrf.mxu0 }
 0x189   : > { %v1079_v4 = vpop.f32.mrf.mxu0 }
 0x195   : > { %v1122_v28 = vpop.f32.mrf.mxu1 }
 0x19d   : > { %v1124_v25 = vpop.f32.mrf.mxu1 }
 0x1a5   : > { %v1127_v52 = vpop.f32.mrf.mxu1 }
 0x1ad   : > { %v1129_v54 = vpop.f32.mrf.mxu1 }
 0x1c0   : > { %v984_v12 = vpop.f32.mrf.mxu2 }
 0x1c1   : > { %v994_v44 = vadd.f32 %v984_v12, %v937_v50 }
 0x1c3   : > { %v1038_v10 = vadd.f32 %v1028_v58, %v994_v44 }
 0x1c5   : > { %v1082_v8 = vadd.f32 %v1072_v9, %v1038_v10 }
 0x1c7   : > { %v1132_v40 = vadd.f32 %v1122_v28, %v1082_v8 }
 0x1c8   : > { %v986_v61 = vpop.f32.mrf.mxu2 }
 0x1c9   : > { %v995_v62 = vadd.f32 %v986_v61, %v939_v23 }
 0x1ca   : > { %v1271_v18 = vpop.f32.mrf.mxu0 }
 0x1cb   : > { %v1039_v24 = vadd.f32 %v1030_v60, %v995_v62  ;;  %v1302_v60 = vpop.permute.xlu2 %1301  ;;  %v3881_v62 = vmov 1983009808  }
 0x1cd   : > { %v1083_v31 = vadd.f32 %v1074_v59, %v1039_v24 }
 0x1cf   : > { %v1133_v51 = vadd.f32 %v1124_v25, %v1083_v31 }
 0x1d0   : > { %v989_v46 = vpop.f32.mrf.mxu2 }
 0x1d1   : > { %v996_v17 = vadd.f32 %v989_v46, %v942_v14 }
 0x1d2   : > { %v1273_v0 = vpop.f32.mrf.mxu0 }
 0x1d3   : > { %v1040_v20 = vadd.f32 %v1033_v3, %v996_v17 }
 0x1d5   : > { %v1084_v6 = vadd.f32 %v1077_v1, %v1040_v20 }
 0x1d7   : > { %v1134_v35 = vadd.f32 %v1127_v52, %v1084_v6 }
 0x1d8   : > { %v991_v11 = vpop.f32.mrf.mxu2 }
 0x1d9   : > { %v997_v22 = vadd.f32 %v991_v11, %v944_v39 }
 0x1da   : > { %v1276_v48 = vpop.f32.mrf.mxu0 }
 0x1db   : > { %v1221_v32 = vpop.f32.mrf.mxu3  ;;  %v1041_v36 = vadd.f32 %v1035_v45, %v997_v22 }
 0x1dd   : > { %v1085_v55 = vadd.f32 %v1079_v4, %v1041_v36 }
 0x1df   : > { %v1135_v58 = vadd.f32 %v1129_v54, %v1085_v55 }
 0x1e0   : > { %v1171_v27 = vpop.f32.mrf.mxu2 }
 0x1e1   : > { %v1181_v30 = vadd.f32 %v1171_v27, %v1132_v40  ;;  %v1359_v40 = vunpack.c.l.s4 %v3881_v62 }
 0x1e2   : > { %v1278_v1 = vpop.f32.mrf.mxu0 }
 0x1e3   : > { %v1231_v19 = vadd.f32 %v1221_v32, %v1181_v30  ;;  %v1223_v15 = vpop.f32.mrf.mxu3  ;;  %v4421_v14 = vunpack.c.0.s8 %v1359_v40 }
 0x1e5   : > { %v1281_v33 = vadd.f32 %v1271_v18, %v1231_v19 }
 0x1e7   : > { %v1309_v34 = vadd.f32 %v1292_v5, %v1281_v33 }
 0x1e8   : > { %v1173_v21 = vpop.f32.mrf.mxu2 }
 0x1e9   : > { %v1182_v63 = vadd.f32 %v1173_v21, %v1133_v51  ;;  %v1317_v41 = vmul.f32 0.1, %v1309_v34  ;;  %vm1313_vm6 = vcmp.ge.f32.partialorder %v1309_v34, 0.0 }
 0x1eb   : > { %v1232_v16 = vadd.f32 %v1223_v15, %v1182_v63  ;;  %v1226_v56 = vpop.f32.mrf.mxu3  ;;  %v4405_v43 = vsel %vm1313_vm6, %v1309_v34, %v1317_v41  ;;  %vm2565_vm6 = vcmask 113664  }
 0x1ec   : > { %v1356_v20 = vrot.slane %v4405_v43, 4 }
 0x1ed   : > { %v1282_v37 = vadd.f32 %v1273_v0, %v1232_v16 }
 0x1ef   : > { %v1310_v42 = vadd.f32 %v1297_v29, %v1282_v37 }
 0x1f0   : > { %v1176_v38 = vpop.f32.mrf.mxu2 }
 0x1f1   : > { %v1183_v47 = vadd.f32 %v1176_v38, %v1134_v35  ;;  %vm1314_vm7 = vcmp.ge.f32.partialorder %v1310_v42, 0.0  ;;  %v1318_v49 = vmul.f32 0.1, %v1310_v42 }
 0x1f3   : > { %v4407_v53 = vsel %vm1314_vm7, %v1310_v42, %v1318_v49  ;;  %v1233_v7 = vadd.f32 %v1226_v56, %v1183_v47  ;;  %v1228_v61 = vpop.f32.mrf.mxu3  ;;  %vm2495_vm7 = vcmask 261120  }
 0x1f4   : > { %v3810_v9 = vpack.i.bf16 %v4405_v43, %v4407_v53  ;;  %v1410_v21 = vrot.slane %v4407_v53, 4 }
 0x1f5   : > { %v1283_v59 = vadd.f32 %v1276_v48, %v1233_v7 }
 0x1f6   : > { %3811 = vrot.lane.b32.xlu0 %v3810_v9, %s3880_s8  ;;  %3806 = vrot.lane.b32.xlu2 %v3810_v9, %s3877_s27 }
 0x1f7   : > { %v1311_v2 = vadd.f32 %v1302_v60, %v1283_v59 }
 0x1f8   : > { %v1178_v12 = vpop.f32.mrf.mxu2 }
 0x1f9   : > { %v1184_v57 = vadd.f32 %v1178_v12, %v1135_v58  ;;  %v1319_v50 = vmul.f32 0.1, %v1311_v2  ;;  %vm1315_vm8 = vcmp.ge.f32.partialorder %v1311_v2, 0.0 }
 0x1fb   : > { %v1234_v46 = vadd.f32 %v1228_v61, %v1184_v57  ;;  %v4413_v4 = vsel %vm1315_vm8, %v1311_v2, %v1319_v50  ;;  %vm2729_vm8 = vcmask 80896  }
 0x1fc   : > { %v1464_v33 = vrot.slane %v4413_v4, 4 }
 0x1fd   : > { %v1284_v3 = vadd.f32 %v1278_v1, %v1234_v46 }
 0x1ff   : > { %v1312_v44 = vadd.f32 %v1307_v13, %v1284_v3 }
 0x201   : > { %vm1316_vm9 = vcmp.ge.f32.partialorder %v1312_v44, 0.0  ;;  %v1320_v28 = vmul.f32 0.1, %v1312_v44 }
 0x203   : > { %v4415_v10 = vsel %vm1316_vm9, %v1312_v44, %v1320_v28  ;;  %vm2478_vm9 = vcmask 121856  }
 0x204   : > { %v3820_v11 = vpack.i.bf16 %v4413_v4, %v4415_v10  ;;  %v1518_v6 = vrot.slane %v4415_v10, 4 }
 0x206   : > { %3821 = vrot.lane.b32.xlu1 %v3820_v11, %s3880_s8  ;;  %3816 = vrot.lane.b32.xlu2 %v3820_v11, %s3877_s27  ;;  %s3882_s27 = smov 1  }
 0x250   : > { %v3807_v23 = vpop.permute.xlu2 %3806 }
 0x251   : > { %v3809_v45 = vunpack.i.h.bf16 %v3807_v23  ;;  %v3808_v8 = vunpack.i.l.bf16 %v3807_v23 }
 0x253   : > { %v1366_v25 = vrot.slane %v3809_v45, 4  ;;  %v1420_v27 = vrot.slane %v3808_v8, 4  ;;  %v1371_v19 = vperm.slane %v3809_v45, %v4421_v14  ;;  %v1425_v51 = vperm.slane %v3808_v8, %v4421_v14 }
 0x255   : > { %v1367_v17 = vsel %vm291_vm0, 0.0, %v1366_v25  ;;  %v1421_v32 = vsel %vm291_vm0, 0.0, %v1420_v27  ;;  %v1376_v29 = vrot.slane %v1371_v19, 4  ;;  %v1430_v35 = vrot.slane %v1425_v51, 4 }
 0x256   : > { %v1375_v63 = vperm.slane %v1367_v17, %v4421_v14  ;;  %v1429_v0 = vperm.slane %v1421_v32, %v4421_v14 }
 0x258   : > { %v1388_v48 = vrot.slane %v1375_v63, 4  ;;  %v1442_v55 = vrot.slane %v1429_v0, 4 }
 0x260   : > { %v3817_v24 = vpop.permute.xlu2 %3816 }
 0x261   : > { %v3819_v18 = vunpack.i.h.bf16 %v3817_v24  ;;  %v3818_v13 = vunpack.i.l.bf16 %v3817_v24 }
 0x263   : > { %v1474_v30 = vrot.slane %v3819_v18, 4  ;;  %v1528_v31 = vrot.slane %v3818_v13, 4  ;;  %v4436_v22 = vperm.slane %v3819_v18, %v4421_v14  ;;  %v4439_v15 = vperm.slane %v3818_v13, %v4421_v14 }
 0x265   : > { %v1475_v39 = vsel %vm291_vm0, 0.0, %v1474_v30  ;;  %v1529_v52 = vsel %vm291_vm0, 0.0, %v1528_v31  ;;  %v1484_v56 = vrot.slane %v4436_v22, 4  ;;  %v1538_v7 = vrot.slane %v4439_v15, 4 }
 0x266   : > { %v4442_v36 = vperm.slane %v1475_v39, %v4421_v14  ;;  %v4445_v37 = vperm.slane %v1529_v52, %v4421_v14 }
 0x268   : > { %v3812_v5 = vpop.permute.xlu0 %3811  ;;  %v1496_v61 = vrot.slane %v4442_v36, 4  ;;  %v1550_v1 = vrot.slane %v4445_v37, 4 }
 0x269   : > { %v3814_v34 = vunpack.i.h.bf16 %v3812_v5  ;;  %v3813_v16 = vunpack.i.l.bf16 %v3812_v5 }
 0x26b   : > { %v1353_v38 = vrot.slane %v3814_v34, 4  ;;  %v1357_v41 = vsel %vm291_vm0, %v3814_v34, %v1356_v20  ;;  %v1408_v42 = vrot.slane %v3813_v16, 4  ;;  %v1411_v47 = vsel %vm291_vm0, %v3813_v16, %v1410_v21 }
 0x26c   : > { %v1365_v49 = vperm.slane %v1357_v41, %v4421_v14  ;;  %v1419_v54 = vperm.slane %v1411_v47, %v4421_v14 }
 0x26d   : > { %v1355_v9 = vsel %vm291_vm0, %v1353_v38, %v4405_v43  ;;  %v1409_v58 = vsel %vm291_vm0, %v1408_v42, %v4407_v53 }
 0x26e   : > { %v1361_v12 = vperm.slane %v1355_v9, %v4421_v14  ;;  %v1390_v59 = vrot.slane %v1365_v49, 4  ;;  %v1389_v57 = vsel %vm291_vm0, %v1388_v48, %v1365_v49  ;;  %v1415_v60 = vperm.slane %v1409_v58, %v4421_v14 }
 0x26f   : > { %v1444_v2 = vrot.slane %v1419_v54, 4  ;;  %v1395_v46 = vperm.slane %v1389_v57, %v3955_v26  ;;  %v4470_v45 = vsel %vm291_vm0, %v1442_v55, %v1419_v54 }
 0x270   : > { %v1378_v3 = vrot.slane %v1361_v12, 4  ;;  %v4464_v43 = vsel %vm291_vm0, %v1376_v29, %v1361_v12  ;;  %v1432_v50 = vrot.slane %v1415_v60, 4  ;;  %v1391_v53 = vsel %vm291_vm0, %v1375_v63, %v1390_v59 }
 0x271   : > { %v1574_v44 = vpack.c.bf16 %v1395_v46, %v1395_v46  ;;  %v1399_v28 = vperm.slane %v1391_v53, %v3955_v26  ;;  %v1404_v11 = vrot.slane %v1395_v46, 4  ;;  %v1445_v23 = vsel %vm291_vm0, %v1429_v0, %v1444_v2 }
 0x272   : > { %v1379_v8 = vsel %vm291_vm0, %v1371_v19, %v1378_v3  ;;  %v4474_v62 = vperm.slane %v1445_v23, %v3955_v26  ;;  %v1431_v40 = vsel %vm291_vm0, %v1430_v35, %v1415_v60  ;;  %v1433_v17 = vsel %vm291_vm0, %v1425_v51, %v1432_v50 }
 0x273   : > { %v1638_v24 = vunpack.c.l.b16 %v1574_v44  ;;  %v1576_v25 = vpack.c.bf16 %v1399_v28, %v1399_v28  ;;  %v1387_v27 = vperm.slane %v1379_v8, %v3955_v26  ;;  %v1406_v18 = vrot.slane %v1399_v28, 4 }
 0x274   : > { %v1405_v13 = vsel %vm291_vm0, 0.0, %v1404_v11  ;;  %v1584_v30 = vpack.c.bf16 %v4474_v62, %v4474_v62  ;;  %v4482_v31 = vperm.slane %v1431_v40, %v3955_v26  ;;  %v4487_v29 = vperm.slane %v1433_v17, %v3955_v26 }
 0x275   : > { %v1670_v32 = vpack.c.b16 %v1638_v24, %v1638_v24  ;;  %v1640_v19 = vunpack.c.l.b16 %v1576_v25  ;;  %v1572_v20 = vpack.c.bf16 %v1387_v27, %v1387_v27  ;;  %v1407_v21 = vsel %vm291_vm0, 0.0, %v1406_v18 }
 0x276   : > { %v1577_v39 = vpack.c.bf16 %v1407_v21, %v1407_v21  ;;  %v1402_v52 = vrot.slane %v1387_v27, 4  ;;  %v1575_v63 = vpack.c.bf16 %v1405_v13, %v1405_v13  ;;  %v1648_v0 = vunpack.c.l.b16 %v1584_v30 }
 0x277   : > { %v1727_v5 = vshrl.u32 %v1670_v32, 16  ;;  %v1672_v34 = vpack.c.b16 %v1640_v19, %v1640_v19  ;;  %v1636_v16 = vunpack.c.l.b16 %v1572_v20  ;;  %v1730_v38 = vshll.u32 %v1670_v32, 16 }
 0x278   : > { %v3822_v35 = vpop.permute.xlu1 %3821  ;;  %v1641_v41 = vunpack.c.l.b16 %v1577_v39  ;;  %v1403_v51 = vsel %vm291_vm0, 0.0, %v1402_v52  ;;  %v1639_v42 = vunpack.c.l.b16 %v1575_v63  ;;  %v1680_v12 = vpack.c.b16 %v1648_v0, %v1648_v0 }
 0x279   : > { %v3824_v47 = vunpack.i.h.bf16 %v3822_v35  ;;  %v3823_v48 = vunpack.i.l.bf16 %v3822_v35  ;;  %v1729_v55 = vrot.slane %v1727_v5, 7  ;;  %v1741_v49 = vshrl.u32 %v1672_v34, 16 }
 0x27a   : > { %v1744_v54 = vshll.u32 %v1672_v34, 16  ;;  %v1668_v9 = vpack.c.b16 %v1636_v16, %v1636_v16  ;;  %v1673_v58 = vpack.c.b16 %v1641_v41, %v1641_v41  ;;  %v1573_v23 = vpack.c.bf16 %v1403_v51, %v1403_v51 }
 0x27b   : > { %v1462_v59 = vrot.slane %v3824_v47, 4  ;;  %v1465_v57 = vsel %vm291_vm0, %v3824_v47, %v1464_v33  ;;  %v1516_v60 = vrot.slane %v3823_v48, 4  ;;  %v1519_v2 = vsel %vm291_vm0, %v3823_v48, %v1518_v6 }
 0x27c   : > { %v4497_v46 = vperm.slane %v1465_v57, %v4421_v14  ;;  %v4500_v3 = vperm.slane %v1519_v2, %v4421_v14  ;;  %v1732_v50 = vor.u32 %v1730_v38, %v1729_v55  ;;  %v1743_v44 = vrot.slane %v1741_v49, 7 }
 0x27d   : > { %v1463_v33 = vsel %vm291_vm0, %v1462_v59, %v4413_v4  ;;  %v1517_v6 = vsel %vm291_vm0, %v1516_v60, %v4415_v10  ;;  %v1713_v11 = vshrl.u32 %v1668_v9, 16  ;;  %v1716_v10 = vshll.u32 %v1668_v9, 16 }
 0x27e   : > { %v4519_v8 = vperm.slane %v1463_v33, %v4421_v14  ;;  %v4525_v40 = vsel %vm291_vm0, %v1496_v61, %v4497_v46  ;;  %v4528_v4 = vperm.slane %v1517_v6, %v4421_v14  ;;  %v1498_v24 = vrot.slane %v4497_v46, 4 }
 0x27f   : > { %v4535_v25 = vsel %vm291_vm0, %v1550_v1, %v4500_v3  ;;  %v1961_v27 = vsel %vm4504_vm14, 0, %v1732_v50  ;;  %v1746_v18 = vor.u32 %v1744_v54, %v1743_v44  ;;  %v1715_v17 = vrot.slane %v1713_v11, 7 }
 0x280   : > { %v1486_v13 = vrot.slane %v4519_v8, 4  ;;  %v1540_v61 = vrot.slane %v4528_v4, 4  ;;  %v1996_v30 = vsel %vm4514_vm15, %v1961_v27, 0  ;;  %v1748_v1 = vshrl.u32 %v1673_v58, 16 }
 0x281   : > { %2064 = vrot.lane.b32.xlu0 %v1996_v30, %s3882_s27  ;;  %v1963_v32 = vsel %vm4504_vm14, 0, %v1746_v18  ;;  %v1751_v19 = vshll.u32 %v1673_v58, 16  ;;  %v1637_v20 = vunpack.c.l.b16 %v1573_v23  ;;  %v1718_v39 = vor.u32 %v1716_v10, %v1715_v17 }
 0x282   : > { %v1998_v21 = vsel %vm4514_vm15, %v1963_v32, 0  ;;  %v1671_v52 = vpack.c.b16 %v1639_v42, %v1639_v42  ;;  %v1797_v63 = vshrl.u32 %v1680_v12, 16  ;;  %v1750_v0 = vrot.slane %v1748_v1, 7 }
 0x283   : > { %2068 = vrot.lane.b32.xlu2 %v1998_v21, %s3882_s27  ;;  %v1669_v5 = vpack.c.b16 %v1637_v20, %v1637_v20  ;;  %v1800_v34 = vshll.u32 %v1680_v12, 16  ;;  %v1578_v16 = vpack.c.bf16 %v4482_v31, %v4482_v31  ;;  %v1959_v35 = vsel %vm4504_vm14, 0, %v1718_v39 }
 0x284   : > { %v1734_v38 = vshrl.u32 %v1671_v52, 16  ;;  %v1737_v41 = vshll.u32 %v1671_v52, 16  ;;  %v1799_v51 = vrot.slane %v1797_v63, 7  ;;  %v1994_v47 = vsel %vm4514_vm15, %v1959_v35, 0 }
 0x285   : > { %v1753_v48 = vor.u32 %v1751_v19, %v1750_v0  ;;  %v1720_v42 = vshrl.u32 %v1669_v5, 16  ;;  %v1723_v55 = vshll.u32 %v1669_v5, 16  ;;  %2060 = vrot.lane.b32.xlu1 %v1994_v47, %s3882_s27  ;;  %v1642_v9 = vunpack.c.l.b16 %v1578_v16 }
 0x286   : > { %v1736_v49 = vrot.slane %v1734_v38, 7  ;;  %v1802_v54 = vor.u32 %v1800_v34, %v1799_v51  ;;  %v1580_v58 = vpack.c.bf16 %v4487_v29, %v4487_v29  ;;  %v4562_v57 = vperm.slane %v4470_v45, %v3955_v26 }
 0x287   : > { %v1964_v12 = vsel %vm4504_vm14, 0, %v1753_v48  ;;  %v1722_v59 = vrot.slane %v1720_v42, 7  ;;  %v1456_v60 = vrot.slane %v4487_v29, 4  ;;  %v1674_v33 = vpack.c.b16 %v1642_v9, %v1642_v9 }
 0x288   : > { %v1999_v2 = vsel %vm4514_vm15, %v1964_v12, 0  ;;  %v1739_v50 = vor.u32 %v1737_v41, %v1736_v49  ;;  %v1971_v44 = vsel %vm4504_vm14, 0, %v1802_v54  ;;  %v1644_v23 = vunpack.c.l.b16 %v1580_v58 }
 0x289   : > { %2070 = vrot.lane.b32.xlu0 %v1999_v2, %s3882_s27  ;;  %v1725_v6 = vor.u32 %v1723_v55, %v1722_v59  ;;  %v2006_v11 = vsel %vm4514_vm15, %v1971_v44, 0  ;;  %v1582_v45 = vpack.c.bf16 %v4562_v57, %v4562_v57  ;;  %v1755_v10 = vshrl.u32 %v1674_v33, 16 }
 0x28a   : > { %v1962_v29 = vsel %vm4504_vm14, 0, %v1739_v50  ;;  %v1758_v27 = vshll.u32 %v1674_v33, 16  ;;  %v1457_v18 = vsel %vm291_vm0, 0.0, %v1456_v60  ;;  %v1676_v32 = vpack.c.b16 %v1644_v23, %v1644_v23 }
 0x28b   : > { %v1960_v30 = vsel %vm4504_vm14, 0, %v1725_v6  ;;  %v1997_v17 = vsel %vm4514_vm15, %v1962_v29, 0  ;;  %v1646_v1 = vunpack.c.l.b16 %v1582_v45  ;;  %v1757_v20 = vrot.slane %v1755_v10, 7 }
 0x28c   : > { %v1995_v19 = vsel %vm4514_vm15, %v1960_v30, 0  ;;  %v1581_v21 = vpack.c.bf16 %v1457_v18, %v1457_v18  ;;  %v1460_v39 = vrot.slane %v4474_v62, 4  ;;  %v1769_v52 = vshrl.u32 %v1676_v32, 16 }
 0x28d   : > { %2062 = vrot.lane.b32.xlu2 %v1995_v19, %s3882_s27  ;;  %v1772_v63 = vshll.u32 %v1676_v32, 16  ;;  %v1678_v0 = vpack.c.b16 %v1646_v1, %v1646_v1  ;;  %v1499_v5 = vsel %vm291_vm0, %v4442_v36, %v1498_v24  ;;  %2066 = vrot.lane.b32.xlu1 %v1997_v17, %s3882_s27  ;;  %v1760_v34 = vor.u32 %v1758_v27, %v1757_v20 }
 0x28e   : > { %v1645_v16 = vunpack.c.l.b16 %v1581_v21  ;;  %v1461_v35 = vsel %vm291_vm0, 0.0, %v1460_v39  ;;  %v4592_v38 = vperm.slane %v1499_v5, %v3955_v26  ;;  %v1771_v62 = vrot.slane %v1769_v52, 7 }
 0x28f   : > { %v1783_v41 = vshrl.u32 %v1678_v0, 16  ;;  %v1786_v51 = vshll.u32 %v1678_v0, 16  ;;  %v1585_v47 = vpack.c.bf16 %v1461_v35, %v1461_v35  ;;  %v1965_v48 = vsel %vm4504_vm14, 0, %v1760_v34 }
 0x290   : > { %v1677_v46 = vpack.c.b16 %v1645_v16, %v1645_v16  ;;  %v1592_v36 = vpack.c.bf16 %v4592_v38, %v4592_v38  ;;  %v1485_v24 = vsel %vm291_vm0, %v1484_v56, %v4519_v8  ;;  %v2000_v42 = vsel %vm4514_vm15, %v1965_v48, 0 }
 0x291   : > { %2084 = vrot.lane.b32.xlu0 %v2006_v11, %s3882_s27  ;;  %v1774_v55 = vor.u32 %v1772_v63, %v1771_v62  ;;  %v1785_v49 = vrot.slane %v1783_v41, 7  ;;  %v1649_v54 = vunpack.c.l.b16 %v1585_v47  ;;  %v1491_v59 = vperm.slane %v1485_v24, %v3955_v26 }
 0x292   : > { %v1776_v9 = vshrl.u32 %v1677_v46, 16  ;;  %v1779_v58 = vshll.u32 %v1677_v46, 16  ;;  %v1656_v12 = vunpack.c.l.b16 %v1592_v36  ;;  %v1458_v56 = vrot.slane %v4562_v57, 4 }
 0x293   : > { %v1967_v60 = vsel %vm4504_vm14, 0, %v1774_v55  ;;  %v1788_v2 = vor.u32 %v1786_v51, %v1785_v49  ;;  %v1681_v50 = vpack.c.b16 %v1649_v54, %v1649_v54  ;;  %v1586_v11 = vpack.c.bf16 %v1491_v59, %v1491_v59 }
 0x294   : > { %v2002_v44 = vsel %vm4514_vm15, %v1967_v60, 0  ;;  %v1778_v33 = vrot.slane %v1776_v9, 7  ;;  %v1688_v6 = vpack.c.b16 %v1656_v12, %v1656_v12  ;;  %v1459_v10 = vsel %vm291_vm0, 0.0, %v1458_v56 }
 0x295   : > { %2072 = vrot.lane.b32.xlu2 %v2000_v42, %s3882_s27  ;;  %v1969_v23 = vsel %vm4504_vm14, 0, %v1788_v2  ;;  %v1804_v45 = vshrl.u32 %v1681_v50, 16  ;;  %v1807_v29 = vshll.u32 %v1681_v50, 16  ;;  %2076 = vrot.lane.b32.xlu1 %v2002_v44, %s3882_s27  ;;  %v1650_v32 = vunpack.c.l.b16 %v1586_v11 }
 0x296   : > { %v2004_v57 = vsel %vm4514_vm15, %v1969_v23, 0  ;;  %v1781_v27 = vor.u32 %v1779_v58, %v1778_v33  ;;  %v1853_v18 = vshrl.u32 %v1688_v6, 16  ;;  %v1856_v30 = vshll.u32 %v1688_v6, 16 }
 0x297   : > { %v1806_v17 = vrot.slane %v1804_v45, 7  ;;  %v1583_v1 = vpack.c.bf16 %v1459_v10, %v1459_v10  ;;  %v1508_v19 = vrot.slane %v1491_v59, 4  ;;  %v1487_v39 = vsel %vm291_vm0, %v4436_v22, %v1486_v13 }
 0x298   : > { %v1968_v20 = vsel %vm4504_vm14, 0, %v1781_v27  ;;  %v1855_v21 = vrot.slane %v1853_v18, 7  ;;  %v1503_v52 = vperm.slane %v4525_v40, %v3955_v26  ;;  %v1682_v5 = vpack.c.b16 %v1650_v32, %v1650_v32 }
 0x299   : > { %2080 = vrot.lane.b32.xlu0 %v2004_v57, %s3882_s27  ;;  %v2003_v63 = vsel %vm4514_vm15, %v1968_v20, 0  ;;  %v1809_v0 = vor.u32 %v1807_v29, %v1806_v17  ;;  %v1647_v34 = vunpack.c.l.b16 %v1583_v1  ;;  %v1509_v35 = vsel %vm291_vm0, 0.0, %v1508_v19 }
 0x29a   : > { %v1858_v16 = vor.u32 %v1856_v30, %v1855_v21  ;;  %v1495_v62 = vperm.slane %v1487_v39, %v3955_v26  ;;  %v1590_v8 = vpack.c.bf16 %v1503_v52, %v1503_v52  ;;  %v1811_v13 = vshrl.u32 %v1682_v5, 16 }
 0x29b   : > { %v1972_v22 = vsel %vm4504_vm14, 0, %v1809_v0  ;;  %v1814_v41 = vshll.u32 %v1682_v5, 16  ;;  %v1679_v40 = vpack.c.b16 %v1647_v34, %v1647_v34  ;;  %v1587_v48 = vpack.c.bf16 %v1509_v35, %v1509_v35 }
 0x29c   : > { %v2007_v51 = vsel %vm4514_vm15, %v1972_v22, 0  ;;  %v1979_v47 = vsel %vm4504_vm14, 0, %v1858_v16  ;;  %v1588_v46 = vpack.c.bf16 %v1495_v62, %v1495_v62  ;;  %v1813_v24 = vrot.slane %v1811_v13, 7 }
 0x29d   : > { %2078 = vrot.lane.b32.xlu2 %v2003_v63, %s3882_s27  ;;  %v2014_v36 = vsel %vm4514_vm15, %v1979_v47, 0  ;;  %v1790_v42 = vshrl.u32 %v1679_v40, 16  ;;  %v1793_v55 = vshll.u32 %v1679_v40, 16  ;;  %2086 = vrot.lane.b32.xlu1 %v2007_v51, %s3882_s27  ;;  %v1651_v49 = vunpack.c.l.b16 %v1587_v48 }
 0x29e   : > { %v1652_v54 = vunpack.c.l.b16 %v1588_v46  ;;  %v1654_v9 = vunpack.c.l.b16 %v1590_v8  ;;  %v1510_v58 = vrot.slane %v1495_v62, 4  ;;  %v1816_v12 = vor.u32 %v1814_v41, %v1813_v24 }
 0x29f   : > { %v1792_v59 = vrot.slane %v1790_v42, 7  ;;  %v1512_v60 = vrot.slane %v1503_v52, 4  ;;  %v1514_v2 = vrot.slane %v4592_v38, 4  ;;  %v1683_v50 = vpack.c.b16 %v1651_v49, %v1651_v49 }
 0x2a0   : > { %v1684_v56 = vpack.c.b16 %v1652_v54, %v1652_v54  ;;  %v1686_v44 = vpack.c.b16 %v1654_v9, %v1654_v9  ;;  %v1511_v33 = vsel %vm291_vm0, 0.0, %v1510_v58  ;;  %v1973_v6 = vsel %vm4504_vm14, 0, %v1816_v12 }
 0x2a1   : > { %2100 = vrot.lane.b32.xlu0 %v2014_v36, %s3882_s27  ;;  %v1795_v11 = vor.u32 %v1793_v55, %v1792_v59  ;;  %v1589_v23 = vpack.c.bf16 %v1511_v33, %v1511_v33  ;;  %v1513_v45 = vsel %vm291_vm0, 0.0, %v1512_v60  ;;  %v2008_v29 = vsel %vm4514_vm15, %v1973_v6, 0 }
 0x2a2   : > { %v1818_v10 = vshrl.u32 %v1683_v50, 16  ;;  %v1821_v57 = vshll.u32 %v1683_v50, 16  ;;  %v1825_v38 = vshrl.u32 %v1684_v56, 16  ;;  %v1828_v18 = vshll.u32 %v1684_v56, 16 }
 0x2a3   : > { %v1970_v27 = vsel %vm4504_vm14, 0, %v1795_v11  ;;  %v1839_v30 = vshrl.u32 %v1686_v44, 16  ;;  %v1842_v17 = vshll.u32 %v1686_v44, 16  ;;  %v1653_v20 = vunpack.c.l.b16 %v1589_v23 }
 0x2a4   : > { %v2005_v32 = vsel %vm4514_vm15, %v1970_v27, 0  ;;  %v1820_v1 = vrot.slane %v1818_v10, 7  ;;  %v1827_v19 = vrot.slane %v1825_v38, 7  ;;  %v1591_v39 = vpack.c.bf16 %v1513_v45, %v1513_v45 }
 0x2a5   : > { %2088 = vrot.lane.b32.xlu2 %v2008_v29, %s3882_s27  ;;  %v1841_v21 = vrot.slane %v1839_v30, 7  ;;  %v1515_v52 = vsel %vm291_vm0, 0.0, %v1514_v2  ;;  %v1539_v63 = vsel %vm291_vm0, %v1538_v7, %v4528_v4  ;;  %2082 = vrot.lane.b32.xlu1 %v2005_v32, %s3882_s27  ;;  %v1685_v34 = vpack.c.b16 %v1653_v20, %v1653_v20 }
 0x2a6   : > { %v1823_v0 = vor.u32 %v1821_v57, %v1820_v1  ;;  %v1830_v5 = vor.u32 %v1828_v18, %v1827_v19  ;;  %v1593_v16 = vpack.c.bf16 %v1515_v52, %v1515_v52  ;;  %v1552_v35 = vrot.slane %v4500_v3, 4 }
 0x2a7   : > { %v1844_v62 = vor.u32 %v1842_v17, %v1841_v21  ;;  %v1655_v8 = vunpack.c.l.b16 %v1591_v39  ;;  %v4662_v22 = vperm.slane %v1539_v63, %v3955_v26  ;;  %v1832_v7 = vshrl.u32 %v1685_v34, 16 }
 0x2a8   : > { %v1974_v13 = vsel %vm4504_vm14, 0, %v1823_v0  ;;  %v1975_v41 = vsel %vm4504_vm14, 0, %v1830_v5  ;;  %v1541_v40 = vsel %vm291_vm0, %v4439_v15, %v1540_v61  ;;  %v1835_v47 = vshll.u32 %v1685_v34, 16 }
 0x2a9   : > { %v2009_v3 = vsel %vm4514_vm15, %v1974_v13, 0  ;;  %v1977_v51 = vsel %vm4504_vm14, 0, %v1844_v62  ;;  %v1687_v48 = vpack.c.b16 %v1655_v8, %v1655_v8  ;;  %v2010_v46 = vsel %vm4514_vm15, %v1975_v41, 0 }
 0x2aa   : > { %2090 = vrot.lane.b32.xlu0 %v2009_v3, %s3882_s27  ;;  %v1834_v36 = vrot.slane %v1832_v7, 7  ;;  %v1657_v24 = vunpack.c.l.b16 %v1593_v16  ;;  %v1594_v4 = vpack.c.bf16 %v4662_v22, %v4662_v22  ;;  %v2012_v15 = vsel %vm4514_vm15, %v1977_v51, 0 }
 0x2ab   : > { %v1846_v61 = vshrl.u32 %v1687_v48, 16  ;;  %v1549_v42 = vperm.slane %v1541_v40, %v3955_v26  ;;  %v1553_v55 = vsel %vm291_vm0, %v4445_v37, %v1552_v35  ;;  %v1849_v59 = vshll.u32 %v1687_v48, 16 }
 0x2ac   : > { %v1837_v49 = vor.u32 %v1835_v47, %v1834_v36  ;;  %v1689_v54 = vpack.c.b16 %v1657_v24, %v1657_v24  ;;  %v1658_v9 = vunpack.c.l.b16 %v1594_v4  ;;  %v1561_v58 = vperm.slane %v1553_v55, %v3955_v26 }
 0x2ad   : > { %2092 = vrot.lane.b32.xlu2 %v2010_v46, %s3882_s27  ;;  %v1848_v12 = vrot.slane %v1846_v61, 7  ;;  %v1596_v60 = vpack.c.bf16 %v1549_v42, %v1549_v42  ;;  %v1564_v2 = vrot.slane %v1549_v42, 4  ;;  %2096 = vrot.lane.b32.xlu1 %v2012_v15, %s3882_s27  ;;  %v1557_v37 = vperm.slane %v4535_v25, %v3955_v26 }
 0x2ae   : > { %v1976_v50 = vsel %vm4504_vm14, 0, %v1837_v49  ;;  %v1860_v56 = vshrl.u32 %v1689_v54, 16  ;;  %v1690_v44 = vpack.c.b16 %v1658_v9, %v1658_v9  ;;  %v1863_v6 = vshll.u32 %v1689_v54, 16 }
 0x2af   : > { %v1851_v33 = vor.u32 %v1849_v59, %v1848_v12  ;;  %v1660_v11 = vunpack.c.l.b16 %v1596_v60  ;;  %v1600_v23 = vpack.c.bf16 %v1561_v58, %v1561_v58  ;;  %v2011_v45 = vsel %vm4514_vm15, %v1976_v50, 0 }
 0x2b0   : > { %v1862_v29 = vrot.slane %v1860_v56, 7  ;;  %v1867_v10 = vshrl.u32 %v1690_v44, 16  ;;  %v1565_v57 = vsel %vm291_vm0, 0.0, %v1564_v2  ;;  %v1870_v32 = vshll.u32 %v1690_v44, 16 }
 0x2b1   : > { %v1978_v38 = vsel %vm4504_vm14, 0, %v1851_v33  ;;  %v1692_v27 = vpack.c.b16 %v1660_v11, %v1660_v11  ;;  %v1664_v18 = vunpack.c.l.b16 %v1600_v23  ;;  %v1597_v30 = vpack.c.bf16 %v1565_v57, %v1565_v57 }
 0x2b2   : > { %2094 = vrot.lane.b32.xlu0 %v2011_v45, %s3882_s27  ;;  %v1865_v25 = vor.u32 %v1863_v6, %v1862_v29  ;;  %v1869_v17 = vrot.slane %v1867_v10, 7  ;;  %v1568_v1 = vrot.slane %v1561_v58, 4  ;;  %v2013_v19 = vsel %vm4514_vm15, %v1978_v38, 0 }
 0x2b3   : > { %v1881_v20 = vshrl.u32 %v1692_v27, 16  ;;  %v1696_v21 = vpack.c.b16 %v1664_v18, %v1664_v18  ;;  %v1661_v39 = vunpack.c.l.b16 %v1597_v30  ;;  %v1598_v5 = vpack.c.bf16 %v1557_v37, %v1557_v37 }
 0x2b4   : > { %v1980_v52 = vsel %vm4504_vm14, 0, %v1865_v25  ;;  %v1872_v63 = vor.u32 %v1870_v32, %v1869_v17  ;;  %v1569_v0 = vsel %vm291_vm0, 0.0, %v1568_v1  ;;  %v1884_v35 = vshll.u32 %v1692_v27, 16 }
 0x2b5   : > { %2098 = vrot.lane.b32.xlu2 %v2013_v19, %s3882_s27  ;;  %v2015_v34 = vsel %vm4514_vm15, %v1980_v52, 0  ;;  %v1883_v16 = vrot.slane %v1881_v20, 7  ;;  %v1909_v62 = vshrl.u32 %v1696_v21, 16  ;;  %v1693_v13 = vpack.c.b16 %v1661_v39, %v1661_v39 }
 0x2b6   : > { %2102 = vrot.lane.b32.xlu1 %v2015_v34, %s3882_s27  ;;  %v1981_v8 = vsel %vm4504_vm14, 0, %v1872_v63  ;;  %v1601_v41 = vpack.c.bf16 %v1569_v0, %v1569_v0  ;;  %v1662_v7 = vunpack.c.l.b16 %v1598_v5  ;;  %v1912_v51 = vshll.u32 %v1696_v21, 16 }
 0x2b7   : > { %v1886_v40 = vor.u32 %v1884_v35, %v1883_v16  ;;  %v1911_v3 = vrot.slane %v1909_v62, 7  ;;  %v1454_v47 = vrot.slane %v4482_v31, 4  ;;  %v2016_v48 = vsel %vm4514_vm15, %v1981_v8, 0 }
 0x2b8   : > { %v1888_v46 = vshrl.u32 %v1693_v13, 16  ;;  %v1665_v36 = vunpack.c.l.b16 %v1601_v41  ;;  %v1694_v24 = vpack.c.b16 %v1662_v7, %v1662_v7  ;;  %v1566_v42 = vrot.slane %v1557_v37, 4 }
 0x2b9   : > { %v1983_v4 = vsel %vm4504_vm14, 0, %v1886_v40  ;;  %v1914_v15 = vor.u32 %v1912_v51, %v1911_v3  ;;  %v1455_v61 = vsel %vm291_vm0, 0.0, %v1454_v47  ;;  %v1891_v49 = vshll.u32 %v1693_v13, 16 }
 0x2ba   : > { %2104 = vrot.lane.b32.xlu0 %v2016_v48, %s3882_s27  ;;  %v1890_v55 = vrot.slane %v1888_v46, 7  ;;  %v1697_v54 = vpack.c.b16 %v1665_v36, %v1665_v36  ;;  %v1895_v9 = vshrl.u32 %v1694_v24, 16  ;;  %v2018_v31 = vsel %vm4514_vm15, %v1983_v4, 0 }
 0x2bb   : > { %v1987_v58 = vsel %vm4504_vm14, 0, %v1914_v15  ;;  %v1579_v12 = vpack.c.bf16 %v1455_v61, %v1455_v61  ;;  %v1567_v59 = vsel %vm291_vm0, 0.0, %v1566_v42  ;;  %v1898_v56 = vshll.u32 %v1694_v24, 16 }
 0x2bc   : > { %v2022_v60 = vsel %vm4514_vm15, %v1987_v58, 0  ;;  %v1893_v2 = vor.u32 %v1891_v49, %v1890_v55  ;;  %v1916_v50 = vshrl.u32 %v1697_v54, 16  ;;  %v1897_v44 = vrot.slane %v1895_v9, 7 }
 0x2bd   : > { %2108 = vrot.lane.b32.xlu2 %v2018_v31, %s3882_s27  ;;  %v1643_v37 = vunpack.c.l.b16 %v1579_v12  ;;  %v1599_v33 = vpack.c.bf16 %v1567_v59, %v1567_v59  ;;  %v1562_v6 = vrot.slane %v4662_v22, 4  ;;  %v1919_v45 = vshll.u32 %v1697_v54, 16 }
 0x2be   : > { %2116 = vrot.lane.b32.xlu1 %v2022_v60, %s3882_s27  ;;  %v1984_v11 = vsel %vm4504_vm14, 0, %v1893_v2  ;;  %v1918_v23 = vrot.slane %v1916_v50, 7  ;;  %v1383_v29 = vperm.slane %v4464_v43, %v3955_v26  ;;  %v1900_v10 = vor.u32 %v1898_v56, %v1897_v44 }
 0x2bf   : > { %v1675_v57 = vpack.c.b16 %v1643_v37, %v1643_v37  ;;  %v1663_v38 = vunpack.c.l.b16 %v1599_v33  ;;  %v1563_v18 = vsel %vm291_vm0, 0.0, %v1562_v6  ;;  %v2019_v22 = vsel %vm4514_vm15, %v1984_v11, 0 }
 0x2c0   : > { %v1921_v27 = vor.u32 %v1919_v45, %v1918_v23  ;;  %v1400_v30 = vrot.slane %v1383_v29, 4  ;;  %v1570_v25 = vpack.c.bf16 %v1383_v29, %v1383_v29  ;;  %v1985_v43 = vsel %vm4504_vm14, 0, %v1900_v10 }
 0x2c1   : > { %v1762_v17 = vshrl.u32 %v1675_v57, 16  ;;  %v1695_v32 = vpack.c.b16 %v1663_v38, %v1663_v38  ;;  %v1595_v19 = vpack.c.bf16 %v1563_v18, %v1563_v18  ;;  %v1765_v39 = vshll.u32 %v1675_v57, 16 }
 0x2c2   : > { %2110 = vrot.lane.b32.xlu0 %v2019_v22, %s3882_s27  ;;  %v1988_v1 = vsel %vm4504_vm14, 0, %v1921_v27  ;;  %v1401_v20 = vsel %vm291_vm0, 0.0, %v1400_v30  ;;  %v1634_v34 = vunpack.c.l.b16 %v1570_v25  ;;  %v2020_v16 = vsel %vm4514_vm15, %v1985_v43, 0 }
 0x2c3   : > { %v1764_v21 = vrot.slane %v1762_v17, 7  ;;  %v1902_v52 = vshrl.u32 %v1695_v32, 16  ;;  %v2023_v63 = vsel %vm4514_vm15, %v1988_v1, 0  ;;  %v1659_v0 = vunpack.c.l.b16 %v1595_v19 }
 0x2c4   : > { %v1571_v5 = vpack.c.bf16 %v1401_v20, %v1401_v20  ;;  %v1905_v8 = vshll.u32 %v1695_v32, 16  ;;  %v1666_v7 = vpack.c.b16 %v1634_v34, %v1634_v34 }
 0x2c5   : > { %2118 = vrot.lane.b32.xlu2 %v2023_v63, %s3882_s27  ;;  %v1767_v35 = vor.u32 %v1765_v39, %v1764_v21  ;;  %v1904_v62 = vrot.slane %v1902_v52, 7  ;;  %v1691_v13 = vpack.c.b16 %v1659_v0, %v1659_v0 }
 0x2c6   : > { %2112 = vrot.lane.b32.xlu1 %v2020_v16, %s3882_s27  ;;  %v1635_v41 = vunpack.c.l.b16 %v1571_v5  ;;  %v1699_v36 = vshrl.u32 %v1666_v7, 16  ;;  %v1702_v58 = vshll.u32 %v1666_v7, 16 }
 0x2c7   : > { %v1966_v40 = vsel %vm4504_vm14, 0, %v1767_v35  ;;  %v1907_v3 = vor.u32 %v1905_v8, %v1904_v62  ;;  %v1874_v51 = vshrl.u32 %v1691_v13, 16  ;;  %v1877_v4 = vshll.u32 %v1691_v13, 16 }
 0x2c8   : > { %v1667_v47 = vpack.c.b16 %v1635_v41, %v1635_v41  ;;  %v2001_v48 = vsel %vm4514_vm15, %v1966_v40, 0  ;;  %v1701_v54 = vrot.slane %v1699_v36, 7 }
 0x2c9   : > { %v1986_v46 = vsel %vm4504_vm14, 0, %v1907_v3  ;;  %v1876_v24 = vrot.slane %v1874_v51, 7 }
 0x2ca   : > { %2074 = vrot.lane.b32.xlu0 %v2001_v48, %s3882_s27  ;;  %v1706_v15 = vshrl.u32 %v1667_v47, 16  ;;  %v2021_v61 = vsel %vm4514_vm15, %v1986_v46, 0  ;;  %v1709_v49 = vshll.u32 %v1667_v47, 16  ;;  %v1704_v59 = vor.u32 %v1702_v58, %v1701_v54 }
 0x2cb   : > { %v1879_v42 = vor.u32 %v1877_v4, %v1876_v24 }
 0x2cc   : > { %v1708_v55 = vrot.slane %v1706_v15, 7  ;;  %v1957_v50 = vsel %vm4504_vm14, 0, %v1704_v59 }
 0x2cd   : > { %2114 = vrot.lane.b32.xlu2 %v2021_v61, %s3882_s27  ;;  %v1982_v9 = vsel %vm4504_vm14, 0, %v1879_v42  ;;  %v1992_v56 = vsel %vm4514_vm15, %v1957_v50, 0 }
 0x2ce   : > { %v1711_v31 = vor.u32 %v1709_v49, %v1708_v55  ;;  %v2017_v12 = vsel %vm4514_vm15, %v1982_v9, 0 }
 0x2cf   : > { %2106 = vrot.lane.b32.xlu1 %v2017_v12, %s3882_s27 }
 0x2d0   : > { %v1958_v60 = vsel %vm4504_vm14, 0, %v1711_v31  ;;  %vm3410_vm14 = vcmask 15360  }
 0x2d1   : > { %v1993_v2 = vsel %vm4514_vm15, %v1958_v60, 0  ;;  %vm3419_vm15 = vcmask 27648  }
 0x2d5   : > { %2058 = vrot.lane.b32.xlu2 %v1993_v2, %s3882_s27 }
 0x2d7   : > { %2056 = vrot.lane.b32.xlu1 %v1992_v56, %s3882_s27 }
 0x2dd   : > { %v2069_v44 = vpop.permute.xlu2 %2068 }
 0x2de   : > { %v2134_v6 = vsel %vm2120_vm3, 0, %v2069_v44 }
 0x2df   : > { %v2197_v23 = vsel %vm844_vm1, %v2134_v6, 0 }
 0x2e0   : > { %v2255_v29 = vrot.slane %v2197_v23, 4 }
 0x2e7   : > { %v2063_v37 = vpop.permute.xlu2 %2062 }
 0x2e8   : > { %v2128_v5 = vsel %vm2120_vm3, 0, %v2063_v37 }
 0x2e9   : > { %v2191_v35 = vsel %vm844_vm1, %v2128_v5, 0 }
 0x2ef   : > { %v2073_v33 = vpop.permute.xlu2 %2072 }
 0x2f0   : > { %v2138_v7 = vsel %vm2120_vm3, 0, %v2073_v33 }
 0x2f1   : > { %v4800_v15 = vsel %vm844_vm1, %v2138_v7, 0 }
 0x2f3   : > { %v4772_v11 = vpop.permute.xlu0 %2064 }
 0x2f7   : > { %v2079_v45 = vpop.permute.xlu2 %2078  ;;  %v2061_v53 = vpop.permute.xlu1 %2060 }
 0x2f8   : > { %v2126_v10 = vsel %vm2120_vm3, 0, %v2061_v53  ;;  %v2144_v40 = vsel %vm2120_vm3, 0, %v2079_v45 }
 0x2f9   : > { %v2189_v28 = vsel %vm844_vm1, %v2126_v10, 0  ;;  %v2207_v61 = vsel %vm844_vm1, %v2144_v40, 0 }
 0x2fa   : > { %v4778_v57 = vsel %vm291_vm0, %v2255_v29, %v2189_v28 }
 0x2fb   : > { %v2071_v38 = vpop.permute.xlu0 %2070 }
 0x2fc   : > { %v2136_v39 = vsel %vm2120_vm3, 0, %v2071_v38 }
 0x2fd   : > { %v2199_v63 = vsel %vm844_vm1, %v2136_v39, 0 }
 0x2fe   : > { %v2295_v34 = vrot.slane %v2199_v63, 4 }
 0x2ff   : > { %v2089_v27 = vpop.permute.xlu2 %2088  ;;  %v2067_v18 = vpop.permute.xlu1 %2066 }
 0x300   : > { %v2296_v62 = vsel %vm291_vm0, %v2295_v34, %v2191_v35  ;;  %v2132_v13 = vsel %vm2120_vm3, 0, %v2067_v18  ;;  %v2154_v47 = vsel %vm2120_vm3, 0, %v2089_v27 }
 0x301   : > { %v2300_v3 = vperm.slane %v2296_v62, %v4421_v14  ;;  %v2195_v48 = vsel %vm844_vm1, %v2132_v13, 0  ;;  %v2217_v54 = vsel %vm844_vm1, %v2154_v47, 0 }
 0x302   : > { %v2289_v9 = vrot.slane %v2195_v48, 4 }
 0x303   : > { %v2085_v30 = vpop.permute.xlu0 %2084  ;;  %v2313_v49 = vrot.slane %v2300_v3, 4 }
 0x304   : > { %v2150_v46 = vsel %vm2120_vm3, 0, %v2085_v30 }
 0x305   : > { %v2213_v58 = vsel %vm844_vm1, %v2150_v46, 0 }
 0x307   : > { %v2093_v25 = vpop.permute.xlu2 %2092  ;;  %v2077_v22 = vpop.permute.xlu1 %2076 }
 0x308   : > { %v2158_v36 = vsel %vm2120_vm3, 0, %v2093_v25  ;;  %v2142_v24 = vsel %vm2120_vm3, 0, %v2077_v22  ;;  %v2267_v22 = vrot.slane %v2213_v58, 4 }
 0x309   : > { %v2221_v12 = vsel %vm844_vm1, %v2158_v36, 0  ;;  %v2205_v59 = vsel %vm844_vm1, %v2142_v24, 0 }
 0x30a   : > { %v2268_v5 = vsel %vm291_vm0, %v2267_v22, %v2205_v59 }
 0x30b   : > { %v2081_v17 = vpop.permute.xlu0 %2080 }
 0x30c   : > { %v2146_v50 = vsel %vm2120_vm3, 0, %v2081_v17 }
 0x30d   : > { %v2209_v17 = vsel %vm844_vm1, %v2146_v50, 0 }
 0x30f   : > { %v2099_v32 = vpop.permute.xlu2 %2098  ;;  %v2087_v1 = vpop.permute.xlu1 %2086 }
 0x310   : > { %v2152_v31 = vsel %vm2120_vm3, 0, %v2087_v1  ;;  %v2164_v6 = vsel %vm2120_vm3, 0, %v2099_v32 }
 0x311   : > { %v2215_v23 = vsel %vm844_vm1, %v2152_v31, 0  ;;  %v2227_v32 = vsel %vm844_vm1, %v2164_v6, 0 }
 0x312   : > { %v2307_v34 = vrot.slane %v2215_v23, 4  ;;  %v2369_v7 = vrot.slane %v2227_v32, 4 }
 0x313   : > { %v2101_v43 = vpop.permute.xlu0 %2100 }
 0x314   : > { %v2166_v51 = vsel %vm2120_vm3, 0, %v2101_v43 }
 0x315   : > { %v2229_v42 = vsel %vm844_vm1, %v2166_v51, 0 }
 0x316   : > { %v2335_v56 = vrot.slane %v2229_v42, 4 }
 0x317   : > { %v2109_v19 = vpop.permute.xlu2 %2108  ;;  %v2083_v20 = vpop.permute.xlu1 %2082 }
 0x318   : > { %v2174_v29 = vsel %vm2120_vm3, 0, %v2109_v19  ;;  %v2336_v1 = vsel %vm291_vm0, %v2335_v56, %v2221_v12  ;;  %v2148_v19 = vsel %vm2120_vm3, 0, %v2083_v20 }
 0x319   : > { %v2340_v62 = vperm.slane %v2336_v1, %v4421_v14  ;;  %v2211_v40 = vsel %vm844_vm1, %v2148_v19, 0  ;;  %v2130_v19 = vsel %vm2120_vm3, 0, %v4772_v11 }
 0x31a   : > { %v2301_v31 = vrot.slane %v2211_v40, 4 }
 0x31c   : > { %v2091_v21 = vpop.permute.xlu0 %2090 }
 0x31d   : > { %v2156_v39 = vsel %vm2120_vm3, 0, %v2091_v21 }
 0x31e   : > { %v2219_v3 = vsel %vm844_vm1, %v2156_v39, 0 }
 0x31f   : > { %v4781_v52 = vpop.permute.xlu2 %2118  ;;  %v2097_v0 = vpop.permute.xlu1 %2096 }
 0x320   : > { %v2162_v60 = vsel %vm2120_vm3, 0, %v2097_v0  ;;  %v2184_v13 = vsel %vm2120_vm3, 0, %v4781_v52 }
 0x321   : > { %v2225_v10 = vsel %vm844_vm1, %v2162_v60, 0  ;;  %v2247_v52 = vsel %vm844_vm1, %v2184_v13, 0 }
 0x322   : > { %v2329_v63 = vrot.slane %v2225_v10, 4 }
 0x324   : > { %v2095_v16 = vpop.permute.xlu0 %2094  ;;  %v2330_v47 = vsel %vm291_vm0, %v2329_v63, %v2217_v54  ;;  %v2370_v54 = vsel %vm291_vm0, %v2369_v7, %v2219_v3 }
 0x325   : > { %v2160_v27 = vsel %vm2120_vm3, 0, %v2095_v16  ;;  %v2237_v16 = vsel %vm844_vm1, %v2174_v29, 0 }
 0x326   : > { %v2223_v35 = vsel %vm844_vm1, %v2160_v27, 0  ;;  %v2272_v27 = vperm.slane %v2268_v5, %v4421_v14 }
 0x327   : > { %v4787_v8 = vpop.permute.xlu2 %2114 }
 0x328   : > { %v2103_v41 = vpop.permute.xlu1 %2102  ;;  %v2180_v50 = vsel %vm2120_vm3, 0, %v4787_v8  ;;  %v2374_v8 = vperm.slane %v2370_v54, %v4421_v14  ;;  %v2279_v5 = vrot.slane %v2272_v27, 4 }
 0x329   : > { %v2168_v55 = vsel %vm2120_vm3, 0, %v2103_v41  ;;  %v2261_v41 = vrot.slane %v2209_v17, 4 }
 0x32a   : > { %v2231_v44 = vsel %vm844_vm1, %v2168_v55, 0 }
 0x32b   : > { %v2375_v18 = vrot.slane %v2231_v44, 4  ;;  %v2262_v23 = vsel %vm291_vm0, %v2261_v41, %v4800_v15 }
 0x32c   : > { %v2105_v4 = vpop.permute.xlu0 %2104 }
 0x32d   : > { %v2376_v20 = vsel %vm291_vm0, %v2375_v18, %v2223_v35  ;;  %v2170_v48 = vsel %vm2120_vm3, 0, %v2105_v4  ;;  %v2334_v4 = vperm.slane %v2330_v47, %v4421_v14  ;;  %v2266_v18 = vperm.slane %v2262_v23, %v4421_v14 }
 0x32e   : > { %v2380_v24 = vperm.slane %v2376_v20, %v4421_v14  ;;  %v2233_v12 = vsel %vm844_vm1, %v2170_v48, 0  ;;  %v2260_v35 = vperm.slane %v4778_v57, %v4421_v14 }
 0x32f   : > { %v2059_v2 = vpop.permute.xlu2 %2058  ;;  %v2280_v7 = vsel %vm291_vm0, %v2279_v5, %v2266_v18 }
 0x330   : > { %v2124_v37 = vsel %vm2120_vm3, 0, %v2059_v2  ;;  %v2117_v33 = vpop.permute.xlu1 %2116  ;;  %v2387_v2 = vrot.slane %v2247_v52, 4  ;;  %v2393_v44 = vrot.slane %v2380_v24, 4  ;;  %v2284_v52 = vperm.slane %v2280_v7, %v3955_v26 }
 0x331   : > { %v2187_v45 = vsel %vm844_vm1, %v2124_v37, 0  ;;  %v2182_v53 = vsel %vm2120_vm3, 0, %v2117_v33 }
 0x332   : > { %v2290_v28 = vsel %vm291_vm0, %v2289_v9, %v2187_v45  ;;  %v2245_v38 = vsel %vm844_vm1, %v2182_v53, 0  ;;  %v2353_v9 = vrot.slane %v2340_v62, 4  ;;  %v2394_v15 = vsel %vm291_vm0, %v2393_v44, %v2374_v8 }
 0x333   : > { %v2294_v30 = vperm.slane %v2290_v28, %v4421_v14  ;;  %v2347_v25 = vrot.slane %v2245_v38, 4  ;;  %v2243_v28 = vsel %vm844_vm1, %v2180_v50, 0 }
 0x334   : > { %v2111_v43 = vpop.permute.xlu0 %2110  ;;  %v2354_v10 = vsel %vm291_vm0, %v2353_v9, %v2334_v4  ;;  %v2381_v17 = vrot.slane %v2243_v28, 4 }
 0x335   : > { %v4830_v0 = vsel %vm291_vm0, %v2313_v49, %v2294_v30  ;;  %v2348_v21 = vsel %vm291_vm0, %v2347_v25, %v2237_v16  ;;  %v2176_v46 = vsel %vm2120_vm3, 0, %v2111_v43  ;;  %v2308_v49 = vsel %vm291_vm0, %v2307_v34, %v2207_v61 }
 0x336   : > { %v2352_v42 = vperm.slane %v2348_v21, %v4421_v14  ;;  %v2239_v59 = vsel %vm844_vm1, %v2176_v46, 0  ;;  %v2312_v45 = vperm.slane %v2308_v49, %v4421_v14  ;;  %v2358_v1 = vperm.slane %v2354_v10, %v3955_v26 }
 0x337   : > { %v2388_v53 = vsel %vm291_vm0, %v2387_v2, %v2239_v59  ;;  %v2398_v16 = vperm.slane %v2394_v15, %v3955_v26  ;;  %v2193_v21 = vsel %vm844_vm1, %v2130_v19, 0  ;;  %v2273_v46 = vrot.slane %v2260_v35, 4 }
 0x338   : > { %v2113_v51 = vpop.permute.xlu1 %2112  ;;  %v2359_v37 = vrot.slane %v2352_v42, 4  ;;  %v2392_v30 = vperm.slane %v2388_v53, %v4421_v14  ;;  %v2319_v39 = vrot.slane %v2312_v45, 4  ;;  %v2367_v41 = vrot.slane %v2358_v1, 4 }
 0x339   : > { %v2178_v36 = vsel %vm2120_vm3, 0, %v2113_v51  ;;  %v2407_v47 = vrot.slane %v2398_v16, 4  ;;  %v2249_v48 = vrot.slane %v2193_v21, 4  ;;  %v2318_v4 = vperm.slane %v4830_v0, %v3955_v26  ;;  %v2938_v21 = vld [vmem:[%s5253_s4] sm:$0xff] }
 0x33a   : > { %v2241_v55 = vsel %vm844_vm1, %v2178_v36, 0  ;;  %v2399_v62 = vrot.slane %v2392_v30, 4 }
 0x33b   : > { %v2341_v58 = vrot.slane %v2241_v55, 4  ;;  %v2327_v0 = vrot.slane %v2318_v4, 4 }
 0x33c   : > { %v2075_v60 = vpop.permute.xlu0 %2074 }
 0x33d   : > { %v2342_v56 = vsel %vm291_vm0, %v2341_v58, %v2233_v12  ;;  %v2140_v61 = vsel %vm2120_vm3, 0, %v2075_v60 }
 0x33e   : > { %v2346_v33 = vperm.slane %v2342_v56, %v4421_v14  ;;  %v2203_v6 = vsel %vm844_vm1, %v2140_v61, 0 }
 0x33f   : > { %v2302_v29 = vsel %vm291_vm0, %v2301_v31, %v2203_v6  ;;  %v2285_v6 = vrot.slane %v2284_v52, 4 }
 0x340   : > { %v2360_v38 = vsel %vm291_vm0, %v2359_v37, %v2346_v33  ;;  %v2306_v25 = vperm.slane %v2302_v29, %v4421_v14 }
 0x341   : > { %v2107_v22 = vpop.permute.xlu1 %2106  ;;  %v2364_v43 = vperm.slane %v2360_v38, %v3955_v26 }
 0x342   : > { %v2172_v32 = vsel %vm2120_vm3, 0, %v2107_v22  ;;  %v2320_v13 = vsel %vm291_vm0, %v2319_v39, %v2306_v25 }
 0x343   : > { %v2235_v63 = vsel %vm844_vm1, %v2172_v32, 0  ;;  %v2365_v11 = vrot.slane %v2364_v43, 4  ;;  %v2368_v3 = vsel %vm291_vm0, %v2364_v43, %v2367_v41  ;;  %v2324_v57 = vperm.slane %v2320_v13, %v3955_v26  ;;  %v2939_v13 = vld [vmem:[%s5253_s4 + $0x8] sm:$0xff]  ;;  %v2941_v41 = vld [vmem:[%s5253_s4 + $0x18] sm:$0xff] }
 0x344   : > { %v2382_v34 = vsel %vm291_vm0, %v2381_v17, %v2235_v63  ;;  %v2430_v58 = vshrl.u32 %v2368_v3, 16 }
 0x345   : > { %v2386_v20 = vperm.slane %v2382_v34, %v4421_v14  ;;  %v2366_v55 = vsel %vm291_vm0, %v2365_v11, %v2358_v1  ;;  %v2325_v60 = vrot.slane %v2324_v57, 4  ;;  %v2328_v53 = vsel %vm291_vm0, %v2324_v57, %v2327_v0  ;;  %v3755_v57 = vld [vmem:[%s5252_s3 + $0x8] sm:$0xff] }
 0x346   : > { %v2424_v56 = vshrl.u32 %v2366_v55, 16  ;;  %v2419_v18 = vshrl.u32 %v2328_v53, 16 }
 0x347   : > { %v2400_v40 = vsel %vm291_vm0, %v2399_v62, %v2386_v20  ;;  %v2326_v23 = vsel %vm291_vm0, %v2325_v60, %v2318_v4  ;;  %v2940_v20 = vld [vmem:[%s5253_s4 + $0x10] sm:$0xff] }
 0x348   : > { %v2404_v51 = vperm.slane %v2400_v40, %v3955_v26  ;;  %v2413_v10 = vshrl.u32 %v2326_v23, 16  ;;  %v3754_v40 = vld [vmem:[%s5252_s3] sm:$0xff] }
 0x349   : > { %v2057_v36 = vpop.permute.xlu1 %2056 }
 0x34a   : > { %v2122_v24 = vsel %vm2120_vm3, 0, %v2057_v36  ;;  %v2408_v42 = vsel %vm291_vm0, %v2404_v51, %v2407_v47  ;;  %v2405_v49 = vrot.slane %v2404_v51, 4 }
 0x34b   : > { %v2185_v9 = vsel %vm844_vm1, %v2122_v24, 0  ;;  %v2429_v31 = vpack.i.b16 %v2408_v42, %v2368_v3  ;;  %v2431_v54 = vshrl.u32 %v2408_v42, 16  ;;  %vm2445_vm1 = vcmask 31744   ;;  %v3758_v42 = vld [vmem:[%s5252_s3 + $0x20] sm:$0xff] }
 0x34c   : > { %v2250_v12 = vsel %vm291_vm0, %v2249_v48, %v2185_v9  ;;  %v2406_v59 = vsel %vm291_vm0, %v2405_v49, %v2398_v16  ;;  %v3756_v49 = vld [vmem:[%s5252_s3 + $0x10] sm:$0xff] }
 0x34d   : > { %v2254_v2 = vperm.slane %v2250_v12, %v4421_v14  ;;  %2439 = vrot.lane.b32.xlu1 %v2429_v31, %s3883_s9  ;;  %v2432_v50 = vpack.i.b16 %v2431_v54, %v2430_v58  ;;  %v2425_v61 = vshrl.u32 %v2406_v59, 16  ;;  %v2423_v25 = vpack.i.b16 %v2406_v59, %v2366_v55  ;;  %v3760_v12 = vld [vmem:[%s5252_s3 + $0x30] sm:$0xff] }
 0x34f   : > { %v2274_v44 = vsel %vm291_vm0, %v2273_v46, %v2254_v2  ;;  %2443 = vrot.lane.b32.xlu2 %v2432_v50, %s3884_s10  ;;  %v2426_v37 = vpack.i.b16 %v2425_v61, %v2424_v56  ;;  %v3759_v56 = vld [vmem:[%s5252_s3 + $0x28] sm:$0xff] }
 0x350   : > { %v2278_v33 = vperm.slane %v2274_v44, %v3955_v26  ;;  %v3757_v44 = vld [vmem:[%s5252_s3 + $0x18] sm:$0xff] }
 0x351   : > { %2435 = vrot.lane.b32.xlu0 %v2426_v37, %s3885_s11 }
 0x352   : > { %v2287_v45 = vrot.slane %v2278_v33, 4  ;;  %v2286_v29 = vsel %vm291_vm0, %v2285_v6, %v2278_v33 }
 0x353   : > { %v2412_v8 = vshrl.u32 %v2286_v29, 16  ;;  %v2411_v22 = vpack.i.b16 %v2326_v23, %v2286_v29 }
 0x354   : > { %v2288_v28 = vsel %vm291_vm0, %v2284_v52, %v2287_v45 }
 0x355   : > { %v2417_v38 = vpack.i.b16 %v2328_v53, %v2288_v28  ;;  %v2418_v27 = vshrl.u32 %v2288_v28, 16  ;;  %v2414_v15 = vpack.i.b16 %v2413_v10, %v2412_v8  ;;  %v3764_v53 = vld [vmem:[%s5252_s3 + $0x50] sm:$0xff]  ;;  %v3761_v8 = vld [vmem:[%s5252_s3 + $0x38] sm:$0xff]  ;;  %v3766_v28 = vld [vmem:[%s5252_s3 + $0x60] sm:$0xff] }
 0x357   : > { %2437 = vrot.lane.b32.xlu1 %v2417_v38, %s3883_s9  ;;  %v2420_v30 = vpack.i.b16 %v2419_v18, %v2418_v27  ;;  %v3762_v27 = vld [vmem:[%s5252_s3 + $0x40] sm:$0xff] }
 0x359   : > { %2441 = vrot.lane.b32.xlu2 %v2420_v30, %s3884_s10  ;;  %2433 = vrot.lane.b32.xlu0 %v2414_v15, %s3885_s11  ;;  %v3765_v30 = vld [vmem:[%s5252_s3 + $0x58] sm:$0xff] }
 0x3a9   : > { %v2444_v43 = vpop.permute.xlu2 %2443 }
 0x3b3   : > { %v2442_v16 = vpop.permute.xlu2 %2441 }
 0x3bf   : > { %v2440_v32 = vpop.permute.xlu1 %2439 }
 0x3c3   : > { %v2436_v17 = vpop.permute.xlu0 %2435 }
 0x3c4   : > { %v2451_v1 = vsel %vm2445_vm1, %v2423_v25, %v2436_v17  ;;  %v3768_v25 = vld [vmem:[%s5252_s3 + $0x70] sm:$0xff]  ;;  %v3763_v17 = vld [vmem:[%s5252_s3 + $0x48] sm:$0xff] }
 0x3c5   : > { %v2455_v19 = vsel %vm949_vm4, %v2451_v1, %v2440_v32  ;;  %v3769_v32 = vld [vmem:[%s5252_s3 + $0x78] sm:$0xff]  ;;  %v3770_v1 = vld [vmem:[%s5252_s3 + $0x80] sm:$0xff] }
 0x3c6   : > { %v2461_v39 = vsel %vm2456_vm5, %v2455_v19, %v2444_v43  ;;  %v3771_v43 = vld [vmem:[%s5252_s3 + $0x88] sm:$0xff] }
 0x3c7   : > { %2563 = vrot.lane.b32.xlu2 %v2461_v39, %s3886_s12  ;;  %2476 = vrot.lane.b32.xlu0 %v2461_v39, %s3876_s26 }
 0x3c8   : > { %2543 = vmatpush.bf16.msrb.mxu2 %v2461_v39 }
 0x3c9   : > { %v2438_v5 = vpop.permute.xlu1 %2437 }
 0x3cb   : > { %v2434_v63 = vpop.permute.xlu0 %2433 }
 0x3cc   : > { %v2448_v34 = vsel %vm2445_vm1, %v2411_v22, %v2434_v63  ;;  %v3767_v22 = vld [vmem:[%s5252_s3 + $0x68] sm:$0xff] }
 0x3cd   : > { %v2453_v35 = vsel %vm949_vm4, %v2448_v34, %v2438_v5 }
 0x3ce   : > { %v2458_v62 = vsel %vm2456_vm5, %v2453_v35, %v2442_v16 }
 0x3cf   : > { %2672 = vrot.lane.b32.xlu2 %v2461_v39, %s3887_s13  ;;  %2561 = vrot.lane.b32.xlu0 %v2458_v62, %s3886_s12 }
 0x3d0   : > { %2474 = vrot.lane.b32.xlu1 %v2458_v62, %s3876_s26  ;;  %2544 = vmatpush.bf16.msrb.mxu2 %v2458_v62 }
 0x3d3   : > { %3632 = vmatmul.msk.bf16.vlgmr.msrb.gmra.mxu2 %vm2495_vm7, %v3754_v40 }
 0x3d7   : > { %2727 = vrot.lane.b32.xlu2 %v2461_v39, %s3880_s8  ;;  %2616 = vrot.lane.b32.xlu0 %v2458_v62, %s3878_s7 }
 0x3d8   : > { %2618 = vrot.lane.b32.xlu1 %v2461_v39, %s3878_s7 }
 0x3df   : > { %2780 = vrot.lane.b32.xlu2 %v2458_v62, %s3888_s14  ;;  %2782 = vrot.lane.b32.xlu0 %v2461_v39, %s3888_s14 }
 0x3e0   : > { %2670 = vrot.lane.b32.xlu1 %v2458_v62, %s3887_s13 }
 0x3e3   : > { %3633 = vmatmul.msk.bf16.gmra.mxu2 %vm2495_vm7, %v3755_v57 }
 0x3e7   : > { %2834 = vrot.lane.b32.xlu2 %v2458_v62, %s3889_s15  ;;  %2836 = vrot.lane.b32.xlu0 %v2461_v39, %s3889_s15 }
 0x3e8   : > { %2725 = vrot.lane.b32.xlu1 %v2458_v62, %s3880_s8 }
 0x3ef   : > { %2949 = vperm.xlu2 %3803, %v2939_v13   ;;  %2889 = vrot.lane.b32.xlu0 %v2458_v62, %s3890_s17 }
 0x3f0   : > { %2891 = vrot.lane.b32.xlu1 %v2461_v39, %s3890_s17 }
 0x3f7   : > { %2954 = vperm.xlu0 %3804, %v2940_v20  }
 0x3f8   : > { %2944 = vperm.xlu1 %3802, %v2938_v21  }
 0x400   : > { %2959 = vperm.xlu1 %3802, %v2941_v41  }
 0x421   : > { %v2564_v11 = vpop.permute.xlu2 %2563 }
 0x422   : > { %v2570_v7 = vsel %vm2565_vm6, %v2564_v11, 0 }
 0x423   : > { %2594 = vmatpush.bf16.msrb.mxu3 %v2570_v7 }
 0x429   : > { %v2673_v3 = vpop.permute.xlu2 %2672 }
 0x42a   : > { %v2679_v9 = vsel %vm2674_vm10, %v2673_v3, 0 }
 0x431   : > { %v2728_v51 = vpop.permute.xlu2 %2727 }
 0x432   : > { %v2734_v47 = vsel %vm2729_vm8, %v2728_v51, 0 }
 0x433   : > { %2758 = vmatpush.bf16.msra.mxu2 %v2734_v47 }
 0x439   : > { %v2477_v48 = vpop.permute.xlu0 %2476  ;;  %v2781_v59 = vpop.permute.xlu2 %2780 }
 0x43a   : > { %v2483_v46 = vsel %vm2478_vm9, %v2477_v48, 0  ;;  %v2785_v37 = vsel %vm949_vm4, %v2781_v59, 0 }
 0x43b   : > { %2508 = vmatpush.bf16.msra.mxu1 %v2483_v46 }
 0x441   : > { %v2562_v36 = vpop.permute.xlu0 %2561  ;;  %v2835_v23 = vpop.permute.xlu2 %2834 }
 0x442   : > { %v2567_v52 = vsel %vm2565_vm6, %v2562_v36, 0  ;;  %v2475_v24 = vpop.permute.xlu1 %2474  ;;  %v2840_v29 = vsel %vm2838_vm11, %v2835_v23, 0 }
 0x443   : > { %v2480_v55 = vsel %vm2478_vm9, %v2475_v24, 0  ;;  %2595 = vmatpush.bf16.msrb.mxu3 %v2567_v52 }
 0x444   : > { %2509 = vmatpush.bf16.msra.mxu1 %v2480_v55 }
 0x446   : > { %3646 = vmatmul.msk.bf16.vlgmr.msrb.gmra.mxu3 %vm2495_vm7, %v3758_v42 }
 0x447   : > { %3622 = vmatmul.msk.bf16.vlgmr.msra.gmra.mxu1 %vm2495_vm7, %v3756_v49 }
 0x448   : > { %2703 = vmatpush.bf16.msrb.mxu1 %v2679_v9 }
 0x449   : > { %v2617_v31 = vpop.permute.xlu0 %2616 }
 0x44a   : > { %v2619_v58 = vpop.permute.xlu1 %2618  ;;  %v2621_v4 = vsel %vm2456_vm5, %v2617_v31, 0 }
 0x44b   : > { %v2624_v54 = vsel %vm2456_vm5, %v2619_v58, 0 }
 0x44c   : > { %2648 = vmatpush.bf16.msrb.mxu0 %v2624_v54 }
 0x450   : > { %2649 = vmatpush.bf16.msrb.mxu0 %v2621_v4 }
 0x451   : > { %v2783_v60 = vpop.permute.xlu0 %2782 }
 0x452   : > { %v2788_v2 = vsel %vm949_vm4, %v2783_v60, 0  ;;  %v2671_v50 = vpop.permute.xlu1 %2670 }
 0x453   : > { %v2676_v61 = vsel %vm2674_vm10, %v2671_v50, 0  ;;  %3660 = vmatmul.msk.bf16.vlgmr.msrb.gmra.mxu0 %vm2495_vm7, %v3760_v12  ;;  %2812 = vmatpush.bf16.msra.mxu3 %v2788_v2 }
 0x454   : > { %2704 = vmatpush.bf16.msrb.mxu1 %v2676_v61 }
 0x456   : > { %3647 = vmatmul.msk.bf16.gmra.mxu3 %vm2495_vm7, %v3759_v56  ;;  %v2546_v63 = vpop.f32.mrf.mxu2 }
 0x457   : > { %3623 = vmatmul.msk.bf16.gmra.mxu1 %vm2495_vm7, %v3757_v44  ;;  %2813 = vmatpush.bf16.msra.mxu3 %v2785_v37 }
 0x459   : > { %v2837_v33 = vpop.permute.xlu0 %2836 }
 0x45a   : > { %v2843_v0 = vsel %vm2838_vm11, %v2837_v33, 0  ;;  %v2726_v6 = vpop.permute.xlu1 %2725 }
 0x45b   : > { %v2731_v45 = vsel %vm2729_vm8, %v2726_v6, 0  ;;  %2867 = vmatpush.bf16.msra.mxu0 %v2843_v0 }
 0x45c   : > { %2759 = vmatpush.bf16.msra.mxu2 %v2731_v45 }
 0x45e   : > { %v2548_v35 = vpop.f32.mrf.mxu2 }
 0x45f   : > { %2868 = vmatpush.bf16.msra.mxu0 %v2840_v29  ;;  %3688 = vmatmul.msk.bf16.vlgmr.msra.gmra.mxu2 %vm2495_vm7, %v3764_v53 }
 0x461   : > { %v2890_v18 = vpop.permute.xlu0 %2889 }
 0x462   : > { %v2892_v10 = vpop.permute.xlu1 %2891  ;;  %v2894_v15 = vsel %vm853_vm2, %v2890_v18, 0  ;;  %v2950_v18 = vpop.permute.xlu2 %2949 }
 0x463   : > { %v2897_v38 = vsel %vm853_vm2, %v2892_v10, 0  ;;  %3661 = vmatmul.msk.bf16.gmra.mxu0 %vm2495_vm7, %v3761_v8 }
 0x464   : > { %2921 = vmatpush.bf16.msra.mxu1 %v2897_v38 }
 0x466   : > { %3702 = vmatmul.msk.bf16.vlgmr.msra.gmra.mxu3 %vm2495_vm7, %v3766_v28  ;;  %v2551_v21 = vpop.f32.mrf.mxu2 }
 0x467   : > { %3674 = vmatmul.msk.bf16.vlgmr.msrb.gmra.mxu1 %vm2495_vm7, %v3762_v27 }
 0x468   : > { %2922 = vmatpush.bf16.msra.mxu1 %v2894_v15 }
 0x46a   : > { %v2945_v6 = vpop.permute.xlu1 %2944 }
 0x46e   : > { %v2553_v3 = vpop.f32.mrf.mxu2 }
 0x46f   : > { %3689 = vmatmul.msk.bf16.gmra.mxu2 %vm2495_vm7, %v3765_v30 }
 0x473   : > { %3716 = vmatmul.msk.bf16.vlgmr.msra.gmra.mxu0 %vm2495_vm7, %v3768_v25 }
 0x476   : > { %3703 = vmatmul.msk.bf16.gmra.mxu3 %vm2495_vm7, %v3767_v22 }
 0x477   : > { %3675 = vmatmul.msk.bf16.gmra.mxu1 %vm2495_vm7, %v3763_v17 }
 0x483   : > { %3717 = vmatmul.msk.bf16.gmra.mxu0 %vm2495_vm7, %v3769_v32 }
 0x487   : > { %3730 = vmatmul.msk.bf16.vlgmr.msra.gmra.mxu1 %vm2495_vm7, %v3770_v1 }
 0x497   : > { %3731 = vmatmul.msk.bf16.gmra.mxu1 %vm2495_vm7, %v3771_v43 }
 0x4c4   : > { %v2511_v19 = vpop.f32.mrf.mxu1 }
 0x4c5   : > { %v2547_v46 = vadd.f32 %v2546_v63, %v2511_v19 }
 0x4c9   : > { %v2597_v5 = vpop.f32.mrf.mxu3 }
 0x4ca   : > { %v2607_v52 = vadd.f32 %v2597_v5, %v2547_v46 }
 0x4cc   : > { %v2513_v39 = vpop.f32.mrf.mxu1 }
 0x4cd   : > { %v2549_v49 = vadd.f32 %v2548_v35, %v2513_v39 }
 0x4d0   : > { %v2651_v34 = vpop.f32.mrf.mxu0 }
 0x4d1   : > { %v2599_v62 = vpop.f32.mrf.mxu3  ;;  %v2661_v42 = vadd.f32 %v2651_v34, %v2607_v52 }
 0x4d2   : > { %v2608_v31 = vadd.f32 %v2599_v62, %v2549_v49 }
 0x4d4   : > { %v2516_v16 = vpop.f32.mrf.mxu1 }
 0x4d5   : > { %v2552_v61 = vadd.f32 %v2551_v21, %v2516_v16 }
 0x4d8   : > { %v2653_v13 = vpop.f32.mrf.mxu0 }
 0x4d9   : > { %v2602_v41 = vpop.f32.mrf.mxu3  ;;  %v2662_v54 = vadd.f32 %v2653_v13, %v2608_v31 }
 0x4da   : > { %v2609_v33 = vadd.f32 %v2602_v41, %v2552_v61 }
 0x4dc   : > { %v2518_v20 = vpop.f32.mrf.mxu1 }
 0x4dd   : > { %v2554_v28 = vadd.f32 %v2553_v3, %v2518_v20 }
 0x4e0   : > { %v2656_v7 = vpop.f32.mrf.mxu0 }
 0x4e1   : > { %v2604_v51 = vpop.f32.mrf.mxu3  ;;  %v2663_v45 = vadd.f32 %v2656_v7, %v2609_v33 }
 0x4e2   : > { %v2761_v48 = vpop.f32.mrf.mxu2  ;;  %v2610_v30 = vadd.f32 %v2604_v51, %v2554_v28 }
 0x4e4   : > { %v2706_v11 = vpop.f32.mrf.mxu1 }
 0x4e5   : > { %v2716_v9 = vadd.f32 %v2706_v11, %v2661_v42  ;;  %v2955_v11 = vpop.permute.xlu0 %2954 }
 0x4e7   : > { %v2771_v4 = vadd.f32 %v2761_v48, %v2716_v9 }
 0x4e8   : > { %v2658_v47 = vpop.f32.mrf.mxu0 }
 0x4e9   : > { %v2815_v36 = vpop.f32.mrf.mxu3  ;;  %v2664_v17 = vadd.f32 %v2658_v47, %v2610_v30  ;;  %v2960_v47 = vpop.permute.xlu1 %2959 }
 0x4ea   : > { %v2763_v58 = vpop.f32.mrf.mxu2  ;;  %v2825_v59 = vadd.f32 %v2815_v36, %v2771_v4 }
 0x4ec   : > { %v2708_v40 = vpop.f32.mrf.mxu1 }
 0x4ed   : > { %v2717_v60 = vadd.f32 %v2708_v40, %v2662_v54 }
 0x4ef   : > { %v2772_v44 = vadd.f32 %v2763_v58, %v2717_v60 }
 0x4f0   : > { %v2870_v24 = vpop.f32.mrf.mxu0 }
 0x4f1   : > { %v2817_v12 = vpop.f32.mrf.mxu3  ;;  %v2880_v56 = vadd.f32 %v2870_v24, %v2825_v59 }
 0x4f2   : > { %v2826_v0 = vadd.f32 %v2817_v12, %v2772_v44  ;;  %v2766_v23 = vpop.f32.mrf.mxu2 }
 0x4f4   : > { %v2711_v57 = vpop.f32.mrf.mxu1 }
 0x4f5   : > { %v2718_v38 = vadd.f32 %v2711_v57, %v2663_v45 }
 0x4f7   : > { %v2773_v32 = vadd.f32 %v2766_v23, %v2718_v38 }
 0x4f8   : > { %v2872_v2 = vpop.f32.mrf.mxu0 }
 0x4f9   : > { %v2881_v53 = vadd.f32 %v2872_v2, %v2826_v0  ;;  %v2820_v8 = vpop.f32.mrf.mxu3 }
 0x4fa   : > { %v2827_v43 = vadd.f32 %v2820_v8, %v2773_v32  ;;  %v2768_v5 = vpop.f32.mrf.mxu2 }
 0x4fc   : > { %v2713_v55 = vpop.f32.mrf.mxu1 }
 0x4fd   : > { %v2719_v19 = vadd.f32 %v2713_v55, %v2664_v17 }
 0x4ff   : > { %v2774_v13 = vadd.f32 %v2768_v5, %v2719_v19 }
 0x500   : > { %v2875_v15 = vpop.f32.mrf.mxu0 }
 0x501   : > { %v2882_v35 = vadd.f32 %v2875_v15, %v2827_v43  ;;  %v2822_v62 = vpop.f32.mrf.mxu3 }
 0x502   : > { %v2828_v41 = vadd.f32 %v2822_v62, %v2774_v13 }
 0x504   : > { %v2924_v50 = vpop.f32.mrf.mxu1 }
 0x505   : > { %v2934_v37 = vadd.f32 %v2924_v50, %v2880_v56 }
 0x507   : > { %v2962_v29 = vadd.f32 %v2945_v6, %v2934_v37 }
 0x508   : > { %v2877_v21 = vpop.f32.mrf.mxu0 }
 0x509   : > { %v2970_v25 = vmul.f32 0.1, %v2962_v29  ;;  %vm2966_vm2 = vcmp.ge.f32.partialorder %v2962_v29, 0.0  ;;  %v2883_v7 = vadd.f32 %v2877_v21, %v2828_v41 }
 0x50b   : > { %v2974_v39 = vsel %vm2966_vm2, %v2962_v29, %v2970_v25 }
 0x50c   : > { %v2926_v10 = vpop.f32.mrf.mxu1  ;;  %v3020_v54 = vrot.slane %v2974_v39, 4 }
 0x50d   : > { %v2935_v27 = vadd.f32 %v2926_v10, %v2881_v53 }
 0x50f   : > { %v2963_v22 = vadd.f32 %v2950_v18, %v2935_v27 }
 0x511   : > { %vm2967_vm4 = vcmp.ge.f32.partialorder %v2963_v22, 0.0  ;;  %v2971_v1 = vmul.f32 0.1, %v2963_v22 }
 0x513   : > { %v2975_v63 = vsel %vm2967_vm4, %v2963_v22, %v2971_v1 }
 0x514   : > { %v2929_v34 = vpop.f32.mrf.mxu1  ;;  %v3830_v16 = vpack.i.bf16 %v2975_v63, %v2974_v39  ;;  %v3076_v31 = vrot.slane %v2975_v63, 4 }
 0x515   : > { %v2936_v20 = vadd.f32 %v2929_v34, %v2882_v35 }
 0x516   : > { %3831 = vrot.lane.b32.xlu1 %v3830_v16, %s3891_s20  ;;  %3826 = vrot.lane.b32.xlu2 %v3830_v16, %s3888_s14 }
 0x517   : > { %v2964_v40 = vadd.f32 %v2955_v11, %v2936_v20 }
 0x519   : > { %v2972_v57 = vmul.f32 0.1, %v2964_v40  ;;  %vm2968_vm12 = vcmp.ge.f32.partialorder %v2964_v40, 0.0 }
 0x51b   : > { %v2976_v36 = vsel %vm2968_vm12, %v2964_v40, %v2972_v57 }
 0x51c   : > { %v2931_v3 = vpop.f32.mrf.mxu1  ;;  %v3132_v6 = vrot.slane %v2976_v36, 4 }
 0x51d   : > { %v2937_v51 = vadd.f32 %v2931_v3, %v2883_v7 }
 0x51f   : > { %v2965_v48 = vadd.f32 %v2960_v47, %v2937_v51 }
 0x521   : > { %vm2969_vm13 = vcmp.ge.f32.partialorder %v2965_v48, 0.0  ;;  %v2973_v46 = vmul.f32 0.1, %v2965_v48 }
 0x523   : > { %v2977_v52 = vsel %vm2969_vm13, %v2965_v48, %v2973_v46 }
 0x524   : > { %v3835_v24 = vpack.i.bf16 %v2977_v52, %v2976_v36  ;;  %v3188_v29 = vrot.slane %v2977_v52, 4 }
 0x526   : > { %3836 = vrot.lane.b32.xlu0 %v3835_v24, %s3888_s14  ;;  %3851 = vrot.lane.b32.xlu1 %v3835_v24, %s3878_s7  ;;  %s3735_s14 = sshll.u32 %s5260_s19, 4 }
 0x527   : > { %3841 = vrot.lane.b32.xlu2 %v3835_v24, %s3891_s20  ;;  %s224_s23 = scalar_lea.vmem %s5254_s5, %s3735_s14 }
 0x52e   : > { %3846 = vrot.lane.b32.xlu0 %v3830_v16, %s3878_s7  ;;  %s3892_s7 = smov 2  }
 0x570   : > { %v3827_v42 = vpop.permute.xlu2 %3826 }
 0x571   : > { %v3829_v55 = vunpack.i.h.bf16 %v3827_v42  ;;  %v3828_v49 = vunpack.i.l.bf16 %v3827_v42 }
 0x573   : > { %v3074_v9 = vrot.slane %v3829_v55, 4  ;;  %v3018_v58 = vrot.slane %v3828_v49, 4  ;;  %v3077_v59 = vsel %vm291_vm0, %v3829_v55, %v3076_v31  ;;  %v3021_v60 = vsel %vm291_vm0, %v3828_v49, %v3020_v54 }
 0x574   : > { %v5031_v61 = vperm.slane %v3077_v59, %v4421_v14  ;;  %v5034_v44 = vperm.slane %v3021_v60, %v4421_v14 }
 0x575   : > { %v3075_v12 = vsel %vm291_vm0, %v3074_v9, %v2975_v63  ;;  %v3019_v2 = vsel %vm291_vm0, %v3018_v58, %v2974_v39 }
 0x576   : > { %v5028_v56 = vperm.slane %v3075_v12, %v4421_v14  ;;  %v5037_v37 = vperm.slane %v3019_v2, %v4421_v14  ;;  %v3112_v45 = vrot.slane %v5031_v61, 4  ;;  %v3056_v53 = vrot.slane %v5034_v44, 4 }
 0x578   : > { %v3100_v23 = vrot.slane %v5028_v56, 4  ;;  %v3044_v15 = vrot.slane %v5037_v37, 4 }
 0x581   : > { %v3842_v50 = vpop.permute.xlu2 %3841 }
 0x582   : > { %v3844_v33 = vunpack.i.h.bf16 %v3842_v50  ;;  %v3843_v0 = vunpack.i.l.bf16 %v3842_v50 }
 0x584   : > { %v3198_v30 = vrot.slane %v3844_v33, 4  ;;  %v3142_v25 = vrot.slane %v3843_v0, 4 }
 0x588   : > { %v5021_v4 = vpop.permute.xlu1 %3831 }
 0x589   : > { %v3834_v22 = vunpack.i.h.bf16 %v5021_v4  ;;  %v3833_v13 = vunpack.i.l.bf16 %v5021_v4 }
 0x598   : > { %v3837_v8 = vpop.permute.xlu0 %3836  ;;  %v3852_v10 = vpop.permute.xlu1 %3851 }
 0x599   : > { %v3839_v28 = vunpack.i.h.bf16 %v3837_v8  ;;  %v3838_v38 = vunpack.i.l.bf16 %v3837_v8  ;;  %v3854_v27 = vunpack.i.h.bf16 %v3852_v10  ;;  %v3853_v18 = vunpack.i.l.bf16 %v3852_v10 }
 0x59a   : > { %v3086_v10 = vrot.slane %v3834_v22, 4 }
 0x59b   : > { %v3186_v17 = vrot.slane %v3839_v28, 4  ;;  %v3189_v32 = vsel %vm291_vm0, %v3839_v28, %v3188_v29  ;;  %v3130_v1 = vrot.slane %v3838_v38, 4  ;;  %v3133_v43 = vsel %vm291_vm0, %v3838_v38, %v3132_v6 }
 0x59c   : > { %v3197_v19 = vperm.slane %v3189_v32, %v4421_v14  ;;  %v3141_v39 = vperm.slane %v3133_v43, %v4421_v14  ;;  %v3200_v63 = vrot.slane %v3854_v27, 4  ;;  %v3143_v5 = vsel %vm291_vm0, %v3142_v25, %v3853_v18 }
 0x59d   : > { %v3187_v34 = vsel %vm291_vm0, %v3186_v17, %v2977_v52  ;;  %v3131_v16 = vsel %vm291_vm0, %v3130_v1, %v2976_v36  ;;  %v3144_v35 = vrot.slane %v3853_v18, 4  ;;  %v3149_v62 = vperm.slane %v3143_v5, %v4421_v14 }
 0x59e   : > { %v3193_v20 = vperm.slane %v3187_v34, %v4421_v14  ;;  %v3137_v21 = vperm.slane %v3131_v16, %v4421_v14  ;;  %v3168_v41 = vrot.slane %v3141_v39, 4  ;;  %v3199_v40 = vsel %vm291_vm0, %v3198_v30, %v3854_v27 }
 0x59f   : > { %v3145_v11 = vsel %vm291_vm0, %v3843_v0, %v3144_v35  ;;  %v3154_v7 = vrot.slane %v3149_v62, 4  ;;  %v3201_v3 = vsel %vm291_vm0, %v3844_v33, %v3200_v63  ;;  %v3205_v48 = vperm.slane %v3199_v40, %v4421_v14 }
 0x5a0   : > { %v3212_v51 = vrot.slane %v3193_v20, 4  ;;  %v3156_v47 = vrot.slane %v3137_v21, 4  ;;  %v3153_v57 = vperm.slane %v3145_v11, %v4421_v14  ;;  %v3847_v46 = vpop.permute.xlu0 %3846  ;;  %v3224_v36 = vrot.slane %v3197_v19, 4 }
 0x5a1   : > { %v3155_v52 = vsel %vm291_vm0, %v3154_v7, %v3137_v21  ;;  %v3209_v24 = vperm.slane %v3201_v3, %v4421_v14  ;;  %v3849_v42 = vunpack.i.h.bf16 %v3847_v46  ;;  %v3210_v12 = vrot.slane %v3205_v48, 4 }
 0x5a2   : > { %v3157_v55 = vsel %vm291_vm0, %v3149_v62, %v3156_v47  ;;  %v3161_v49 = vperm.slane %v3155_v52, %v3955_v26  ;;  %v3166_v9 = vrot.slane %v3153_v57, 4  ;;  %v3169_v31 = vsel %vm291_vm0, %v3153_v57, %v3168_v41 }
 0x5a3   : > { %v3165_v58 = vperm.slane %v3157_v55, %v3955_v26  ;;  %v3177_v54 = vperm.slane %v3169_v31, %v3955_v26  ;;  %v3213_v59 = vsel %vm291_vm0, %v3205_v48, %v3212_v51  ;;  %v3222_v33 = vrot.slane %v3209_v24, 4 }
 0x5a4   : > { %v3167_v60 = vsel %vm291_vm0, %v3166_v9, %v3141_v39  ;;  %v3178_v2 = vrot.slane %v3161_v49, 4  ;;  %v3221_v50 = vperm.slane %v3213_v59, %v3955_v26  ;;  %v3211_v8 = vsel %vm291_vm0, %v3210_v12, %v3193_v20 }
 0x5a5   : > { %v5071_v0 = vperm.slane %v3167_v60, %v3955_v26  ;;  %v3180_v6 = vrot.slane %v3165_v58, 4  ;;  %v5073_v29 = vrot.slane %v3177_v54, 4  ;;  %v3217_v28 = vperm.slane %v3211_v8, %v3955_v26 }
 0x5a6   : > { %v3223_v38 = vsel %vm291_vm0, %v3222_v33, %v3197_v19  ;;  %v3225_v27 = vsel %vm291_vm0, %v3209_v24, %v3224_v36  ;;  %v3848_v17 = vunpack.i.l.bf16 %v3847_v46  ;;  %v3030_v32 = vrot.slane %v3833_v13, 4 }
 0x5a7   : > { %v5082_v18 = vsel %vm291_vm0, 0.0, %v3180_v6  ;;  %v5086_v30 = vsel %vm291_vm0, 0.0, %v5073_v29  ;;  %v5089_v25 = vperm.slane %v3223_v38, %v3955_v26  ;;  %v3233_v1 = vperm.slane %v3225_v27, %v3955_v26 }
 0x5a8   : > { %v3234_v43 = vrot.slane %v3217_v28, 4  ;;  %v3236_v19 = vrot.slane %v3221_v50, 4  ;;  %v5095_v39 = vsel %vm291_vm0, 0.0, %v3178_v2  ;;  %v3182_v63 = vrot.slane %v5071_v0, 4 }
 0x5a9   : > { %v5099_v5 = vsel %vm291_vm0, %v3180_v6, %v3161_v49  ;;  %v3088_v34 = vrot.slane %v3849_v42, 4  ;;  %v3238_v16 = vrot.slane %v5089_v25, 4  ;;  %v5102_v35 = vrot.slane %v3233_v1, 4 }
 0x5aa   : > { %v3323_v62 = vrot.slane %v5082_v18, 4  ;;  %v3334_v20 = vrot.slane %v5086_v30, 4  ;;  %v5107_v21 = vsel %vm291_vm0, 0.0, %v3234_v43  ;;  %v3031_v41 = vsel %vm291_vm0, %v3030_v32, %v3848_v17 }
 0x5ab   : > { %v3032_v11 = vrot.slane %v3848_v17, 4  ;;  %v3087_v7 = vsel %vm291_vm0, %v3086_v10, %v3849_v42  ;;  %v3237_v40 = vsel %vm291_vm0, 0.0, %v3236_v19  ;;  %v3037_v3 = vperm.slane %v3031_v41, %v4421_v14 }
 0x5ac   : > { %v3089_v51 = vsel %vm291_vm0, %v3834_v22, %v3088_v34  ;;  %v3093_v47 = vperm.slane %v3087_v7, %v4421_v14  ;;  %v3241_v57 = vsel %vm291_vm0, 0.0, %v5102_v35  ;;  %v5120_v48 = vsel %vm291_vm0, %v3236_v19, %v3217_v28 }
 0x5ad   : > { %v3033_v46 = vsel %vm291_vm0, %v3833_v13, %v3032_v11  ;;  %v3097_v36 = vperm.slane %v3089_v51, %v4421_v14  ;;  %v3042_v24 = vrot.slane %v3037_v3, 4  ;;  %v3045_v22 = vsel %vm291_vm0, %v3037_v3, %v3044_v15 }
 0x5ae   : > { %v3041_v52 = vperm.slane %v3033_v46, %v4421_v14  ;;  %v3098_v42 = vrot.slane %v3093_v47, 4  ;;  %v3053_v55 = vperm.slane %v3045_v22, %v3955_v26  ;;  %v3101_v49 = vsel %vm291_vm0, %v3093_v47, %v3100_v23 }
 0x5af   : > { %v3110_v9 = vrot.slane %v3097_v36, 4  ;;  %v3113_v4 = vsel %vm291_vm0, %v3097_v36, %v3112_v45  ;;  %v3043_v13 = vsel %vm291_vm0, %v3042_v24, %v5037_v37  ;;  %v3109_v37 = vperm.slane %v3101_v49, %v3955_v26 }
 0x5b0   : > { %v3054_v31 = vrot.slane %v3041_v52, 4  ;;  %v3057_v15 = vsel %vm291_vm0, %v3041_v52, %v3056_v53  ;;  %v3099_v58 = vsel %vm291_vm0, %v3098_v42, %v5028_v56  ;;  %v3049_v54 = vperm.slane %v3043_v13, %v3955_v26 }
 0x5b1   : > { %v3065_v23 = vperm.slane %v3057_v15, %v3955_v26  ;;  %v3068_v12 = vrot.slane %v3053_v55, 4  ;;  %v3105_v59 = vperm.slane %v3099_v58, %v3955_v26  ;;  %v3111_v60 = vsel %vm291_vm0, %v3110_v9, %v5031_v61 }
 0x5b2   : > { %v3055_v45 = vsel %vm291_vm0, %v3054_v31, %v5034_v44  ;;  %v3121_v53 = vperm.slane %v3113_v4, %v3955_v26  ;;  %v3066_v56 = vrot.slane %v3049_v54, 4  ;;  %v5156_v6 = vperm.slane %v3111_v60, %v3955_v26 }
 0x5b3   : > { %v3061_v2 = vperm.slane %v3055_v45, %v3955_v26  ;;  %v3069_v50 = vsel %vm291_vm0, 0.0, %v3068_v12  ;;  %v3072_v33 = vrot.slane %v3065_v23, 4  ;;  %v3122_v8 = vrot.slane %v3105_v59, 4 }
 0x5b4   : > { %v3124_v10 = vrot.slane %v3109_v37, 4  ;;  %v5158_v28 = vrot.slane %v3121_v53, 4  ;;  %v3361_v44 = vrot.slane %v3237_v40, 4  ;;  %v3372_v38 = vrot.slane %v3241_v57, 4 }
 0x5b5   : > { %v3073_v27 = vsel %vm291_vm0, 0.0, %v3072_v33  ;;  %v3183_v61 = vsel %vm291_vm0, 0.0, %v3182_v63  ;;  %v3067_v18 = vsel %vm291_vm0, 0.0, %v3066_v56  ;;  %v3070_v30 = vrot.slane %v3061_v2, 4 }
 0x5b6   : > { %v3125_v17 = vsel %vm291_vm0, 0.0, %v3124_v10  ;;  %v3242_v32 = vsel %vm291_vm0, %v3068_v12, %v3049_v54  ;;  %v3123_v1 = vsel %vm291_vm0, 0.0, %v3122_v8  ;;  %v3126_v43 = vrot.slane %v5156_v6, 4 }
 0x5b7   : > { %v3129_v19 = vsel %vm291_vm0, 0.0, %v5158_v28  ;;  %v3247_v34 = vrot.slane %v3069_v50, 4  ;;  %v3258_v41 = vrot.slane %v3073_v27, 4  ;;  %v5170_v11 = vsel %vm291_vm0, %v3124_v10, %v3105_v59 }
 0x5b8   : > { %v3239_v63 = vsel %vm291_vm0, 0.0, %v3238_v16  ;;  %v3324_v7 = vsel %vm291_vm0, %v3323_v62, %v5095_v39  ;;  %v3285_v40 = vrot.slane %v3125_v17, 4  ;;  %v3329_v51 = vsel %vm291_vm0, %v5073_v29, %v5071_v0 }
 0x5b9   : > { %v3328_v3 = vperm.slane %v3324_v7, %v4421_v14  ;;  %v3335_v47 = vsel %vm291_vm0, %v3334_v20, %v3183_v61  ;;  %v3322_v57 = vperm.slane %v5099_v5, %v4421_v14  ;;  %v3362_v16 = vsel %vm291_vm0, %v3361_v44, %v5107_v21 }
 0x5ba   : > { %v3339_v46 = vperm.slane %v3335_v47, %v4421_v14  ;;  %v3367_v39 = vsel %vm291_vm0, %v5102_v35, %v5089_v25  ;;  %v3360_v36 = vperm.slane %v5120_v48, %v4421_v14  ;;  %v3366_v0 = vperm.slane %v3362_v16, %v4421_v14 }
 0x5bb   : > { %v3340_v62 = vrot.slane %v3328_v3, 4  ;;  %v3373_v29 = vsel %vm291_vm0, %v3372_v38, %v3239_v63  ;;  %v3333_v20 = vperm.slane %v3329_v51, %v4421_v14  ;;  %v3071_v24 = vsel %vm291_vm0, 0.0, %v3070_v30 }
 0x5bc   : > { %v3346_v5 = vrot.slane %v3339_v46, 4  ;;  %v3377_v52 = vperm.slane %v3373_v29, %v4421_v14  ;;  %v3371_v22 = vperm.slane %v3367_v39, %v4421_v14  ;;  %v3378_v25 = vrot.slane %v3366_v0, 4 }
 0x5bd   : > { %v3341_v21 = vsel %vm291_vm0, %v3340_v62, %v3322_v57  ;;  %v3248_v35 = vsel %vm291_vm0, %v3247_v34, %v3067_v18  ;;  %v3296_v9 = vrot.slane %v3129_v19, 4  ;;  %v3259_v31 = vsel %vm291_vm0, %v3258_v41, %v3071_v24 }
 0x5be   : > { %v3345_v48 = vperm.slane %v3341_v21, %v3955_v26  ;;  %v3347_v42 = vsel %vm291_vm0, %v3346_v5, %v3333_v20  ;;  %v3384_v55 = vrot.slane %v3377_v52, 4  ;;  %v3252_v49 = vperm.slane %v3248_v35, %v4421_v14 }
 0x5bf   : > { %v3351_v4 = vperm.slane %v3347_v42, %v3955_v26  ;;  %v3379_v13 = vsel %vm291_vm0, %v3378_v25, %v3360_v36  ;;  %v3253_v23 = vsel %vm291_vm0, %v3072_v33, %v3061_v2  ;;  %v3127_v12 = vsel %vm291_vm0, 0.0, %v3126_v43 }
 0x5c0   : > { %v3354_v15 = vrot.slane %v3345_v48, 4  ;;  %v3383_v58 = vperm.slane %v3379_v13, %v3955_v26  ;;  %v3385_v54 = vsel %vm291_vm0, %v3384_v55, %v3371_v22  ;;  %v3246_v59 = vperm.slane %v3242_v32, %v4421_v14 }
 0x5c1   : > { %v3263_v45 = vperm.slane %v3259_v31, %v4421_v14  ;;  %v3264_v37 = vrot.slane %v3252_v49, 4  ;;  %v3389_v53 = vperm.slane %v3385_v54, %v3955_v26  ;;  %v3286_v50 = vsel %vm291_vm0, %v3285_v40, %v3123_v1 }
 0x5c2   : > { %v3355_v60 = vsel %vm291_vm0, %v3351_v4, %v3354_v15  ;;  %v3392_v56 = vrot.slane %v3383_v58, 4  ;;  %v3257_v8 = vperm.slane %v3253_v23, %v4421_v14  ;;  %v3290_v2 = vperm.slane %v3286_v50, %v4421_v14 }
 0x5c3   : > { %v3265_v10 = vsel %vm291_vm0, %v3264_v37, %v3246_v59  ;;  %v3270_v44 = vrot.slane %v3263_v45, 4  ;;  %v3291_v27 = vsel %vm291_vm0, %v5158_v28, %v5156_v6  ;;  %v3297_v61 = vsel %vm291_vm0, %v3296_v9, %v3127_v12 }
 0x5c4   : > { %v3393_v33 = vsel %vm291_vm0, %v3389_v53, %v3392_v56  ;;  %v3269_v38 = vperm.slane %v3265_v10, %v3955_v26  ;;  %v3301_v17 = vperm.slane %v3297_v61, %v4421_v14  ;;  %v3284_v32 = vperm.slane %v5170_v11, %v4421_v14 }
 0x5c5   : > { %v3860_v18 = vpack.i.bf16 %v3393_v33, %v3355_v60  ;;  %v3271_v30 = vsel %vm291_vm0, %v3270_v44, %v3257_v8  ;;  %v3302_v1 = vrot.slane %v3290_v2, 4  ;;  %v3295_v34 = vperm.slane %v3291_v27, %v4421_v14 }
 0x5c6   : > { %v3275_v43 = vperm.slane %v3271_v30, %v3955_v26  ;;  %v3278_v19 = vrot.slane %v3269_v38, 4  ;;  %v3308_v41 = vrot.slane %v3301_v17, 4  ;;  %v3352_v14 = vrot.slane %v3351_v4, 4 }
 0x5c7   : > { %3861 = vrot.lane.b32.xlu0 %v3860_v18, %s3892_s7  ;;  %v3303_v6 = vsel %vm291_vm0, %v3302_v1, %v3284_v32  ;;  %v3390_v46 = vrot.slane %v3389_v53, 4 }
 0x5c8   : > { %v3307_v28 = vperm.slane %v3303_v6, %v3955_v26  ;;  %v3309_v63 = vsel %vm291_vm0, %v3308_v41, %v3295_v34  ;;  %v3279_v11 = vsel %vm291_vm0, %v3275_v43, %v3278_v19  ;;  %v3353_v39 = vsel %vm291_vm0, %v3352_v14, %v3345_v48 }
 0x5c9   : > { %v3313_v7 = vperm.slane %v3309_v63, %v3955_v26  ;;  %v3391_v16 = vsel %vm291_vm0, %v3390_v46, %v3383_v58  ;;  %v3276_v62 = vrot.slane %v3275_v43, 4 }
 0x5ca   : > { %v3316_v40 = vrot.slane %v3307_v28, 4 }
 0x5cb   : > { %v3314_v3 = vrot.slane %v3313_v7, 4  ;;  %v3277_v36 = vsel %vm291_vm0, %v3276_v62, %v3269_v38 }
 0x5cc   : > { %v3317_v51 = vsel %vm291_vm0, %v3313_v7, %v3316_v40 }
 0x5cd   : > { %v3855_v47 = vpack.i.bf16 %v3317_v51, %v3279_v11  ;;  %v3315_v57 = vsel %vm291_vm0, %v3314_v3, %v3307_v28 }
 0x5cf   : > { %3856 = vrot.lane.b32.xlu2 %v3855_v47, %s3892_s7 }
 0x629   : > { %v3857_v26 = vpop.permute.xlu2 %3856 }
 0x62a   : > { %v3859_v0 = vunpack.i.h.bf16 %v3857_v26  ;;  %v3858_v29 = vunpack.i.l.bf16 %v3857_v26 }
 0x62c   : > { %v3412_v20 = vsel %vm3410_vm14, %v3315_v57, %v3859_v0  ;;  %v3411_v5 = vsel %vm3410_vm14, %v3277_v36, %v3858_v29 }
 0x62d   : > { %v3416_v52 = vpack.c.bf16 %v3412_v20, %v3412_v20  ;;  %v3415_v24 = vpack.c.bf16 %v3411_v5, %v3411_v5 }
 0x62f   : > { %3421 = vst.msk [vmem:[%s224_s23 + $0x4] sm:$0xf] %vm3419_vm15, %v3416_v52 }
 0x630   : > { %3420 = vst.msk [vmem:[%s224_s23] sm:$0xf] %vm3419_vm15, %v3415_v24 }
 0x639   : > { %v3862_v21 = vpop.permute.xlu0 %3861 }
 0x63a   : > { %v3864_v22 = vunpack.i.h.bf16 %v3862_v21  ;;  %v3863_v25 = vunpack.i.l.bf16 %v3862_v21 }
 0x63c   : > { %v3414_v35 = vsel %vm3410_vm14, %v3391_v16, %v3864_v22  ;;  %v3413_v48 = vsel %vm3410_vm14, %v3353_v39, %v3863_v25 }
 0x63d   : > { %v3418_v42 = vpack.c.bf16 %v3414_v35, %v3414_v35  ;;  %v3417_v55 = vpack.c.bf16 %v3413_v48, %v3413_v48 }
 0x63f   : > { %3423 = vst.msk [vmem:[%s224_s23 + $0xc] sm:$0xf] %vm3419_vm15, %v3418_v42 }
 0x640   : > { %3422 = vst.msk [vmem:[%s224_s23 + $0x8] sm:$0xf] %vm3419_vm15, %v3417_v55 }
 0x641 PF: > { %s15_s18 = sadd.s32 1, %s3871_s18  }
 0x642   : > { %p12_p4 = scmp.ge.s32.totalorder %s15_s18, 4  }
 0x644   :  { %14 = sbr.rel (!%p12_p4) target bundleno = 1 (0x1), region = 107 }

</bundles_post_ra>
